<compile_context>
chip_gen: v5e
topology: v5e:2x2
jax: 0.10.0
libtpu: 0.0.40
codegen_flags: <defaults>
</compile_context>

<pallas_src>
import functools

import jax
import jax.numpy as jnp
from jax.experimental import pallas as pl
from jax.experimental.pallas import tpu as pltpu


# ----------------------------------------------------------------------------
# Fused forward kernel (B samples per grid step)
# ----------------------------------------------------------------------------
def _fused_forward_kernel(x_ref, w0_ref, b0_ref, w1_ref, b1_ref,
                          w2a_ref, w2b_ref, b2_ref,
                          w3a_ref, w3b_ref, b3_ref,
                          fc1w_ref, fc1b_ref, fc2w_ref, fc2b_ref,
                          fc3w_ref, fc3b_ref, o_ref):
    f32 = jnp.float32
    bf16 = jnp.bfloat16
    neg_slope = 0.01                       # PyTorch F.leaky_relu default
    B = x_ref.shape[1]                     # samples per grid step

    # ---- conv0: 1x1, 1 -> 16 channels ----
    # x block is (4, B, 4) = [h, sample, w].  Stack h into M: (4B, 4).
    X = jnp.concatenate([x_ref[h] for h in range(4)], axis=0)          # (4B, 4)
    # Block-diagonal weight: one small f32 MXU matmul, no lane extracts.
    a0 = jnp.maximum(
        jnp.dot(X, w0_ref[...], preferred_element_type=f32) + b0_ref[...],
        0.0)                                    # (4B, 64), lanes = w*16 + c, M = [h, b]

    # ---- conv1: kernel (1,2), 16 -> 64; 3 windows stacked along M ----
    p1 = jnp.concatenate([a0[:, 0:32], a0[:, 16:48], a0[:, 32:64]],
                         axis=0).astype(bf16)                           # (12B, 32), M = [w, h, b]
    a1 = jnp.maximum(
        jnp.dot(p1, w1_ref[...], preferred_element_type=f32) + b1_ref[...],
        0.0)                                                            # (12B, 64)

    # ---- conv2: kernel (2,1), 64 -> 128; weight split by dh, patches are
    #      contiguous sublane slices of a1 (no lane concat) ----
    p2_top = jnp.concatenate(
        [a1[(w * 4) * B:(w * 4 + 3) * B, :] for w in range(3)],
        axis=0).astype(bf16)                                            # (9B, 64), M = [w, h_out, b]
    p2_bot = jnp.concatenate(
        [a1[(w * 4 + 1) * B:(w * 4 + 4) * B, :] for w in range(3)],
        axis=0).astype(bf16)                                            # (9B, 64)
    a2 = jnp.maximum(
        jnp.dot(p2_top, w2a_ref[...], preferred_element_type=f32)
        + jnp.dot(p2_bot, w2b_ref[...], preferred_element_type=f32)
        + b2_ref[...],
        0.0)                                                            # (9B, 128), M = [w, h, b]

    # ---- conv3: kernel (1,2), 128 -> 256; left/right windows are pure
    #      sublane slices of a2 (w-major layout) ----
    p3_l = a2[0:6 * B, :].astype(bf16)                                  # w in {0, 1}
    p3_r = a2[3 * B:9 * B, :].astype(bf16)                              # w in {1, 2}
    a3 = jnp.maximum(
        jnp.dot(p3_l, w3a_ref[...], preferred_element_type=f32)
        + jnp.dot(p3_r, w3b_ref[...], preferred_element_type=f32)
        + b3_ref[...],
        0.0)                                                            # (6B, 256), M = [w_out, h, b]

    # ---- fc1: flatten folded into 6 accumulated partial matmuls ----
    h1 = fc1b_ref[...]                                                  # (1, 256)
    for k in range(6):                                                  # k = w*3 + h
        h1 = h1 + jnp.dot(a3[k * B:(k + 1) * B, :].astype(bf16),
                          fc1w_ref[k * 256:(k + 1) * 256, :],
                          preferred_element_type=f32)                   # (B, 256)
    h1 = jnp.where(h1 >= 0.0, h1, neg_slope * h1)

    # ---- fc2 + leaky_relu ----
    h2 = jnp.dot(h1.astype(bf16), fc2w_ref[...],
                 preferred_element_type=f32) + fc2b_ref[...]            # (B, 32)
    h2 = jnp.where(h2 >= 0.0, h2, neg_slope * h2)

    # ---- fc3 + log_softmax (dim=1) ----
    y = jnp.dot(h2.astype(bf16), fc3w_ref[...],
                preferred_element_type=f32) + fc3b_ref[...]             # (B, 4)
    m = jnp.max(y, axis=-1, keepdims=True)
    z = y - m
    lse = jnp.log(jnp.sum(jnp.exp(z), axis=-1, keepdims=True))
    o_ref[...] = z - lse


# ----------------------------------------------------------------------------
# Kernel-layout weight packing (derived from canonical params)
# ----------------------------------------------------------------------------
def _pack_kernel_params(params):
    f32 = jnp.float32
    w0 = params["w0"].astype(f32)                          # (1, 16)
    w0_bd = jnp.kron(jnp.eye(4, dtype=f32), w0)            # (4, 64) block-diagonal
    b0_t = jnp.tile(params["b0"].astype(f32), (1, 4))      # (1, 64)
    w2, w3 = params["w2"], params["w3"]
    return dict(
        w0_bd=w0_bd, b0_t=b0_t,
        w1=params["w1"], b1=params["b1"],
        w2a=w2[:64, :], w2b=w2[64:, :], b2=params["b2"],
        w3a=w3[:128, :], w3b=w3[128:, :], b3=params["b3"],
        fc1_w=params["fc1_w"], fc1_b=params["fc1_b"],
        fc2_w=params["fc2_w"], fc2_b=params["fc2_b"],
        fc3_w=params["fc3_w"], fc3_b=params["fc3_b"])


# ----------------------------------------------------------------------------
# Wrapper
# ----------------------------------------------------------------------------
@functools.partial(jax.jit, static_argnames=("block_b",))
def mynet_forward(x_nchw, params, block_b=128):
    N = x_nchw.shape[0]
    B = block_b
    n_pad = (-N) % B
    npad = N + n_pad

    # NCHW (N,1,4,4) with C=1 has the same memory order as (N, H=4, W=4).
    x = x_nchw.reshape(N, 4, 4).astype(jnp.float32)
    if n_pad:
        x = jnp.pad(x, ((0, n_pad), (0, 0), (0, 0)))        # zero-pad batch tail
    # (4, Npad, 4) = [h, sample, w]: lets the kernel stack h into sublanes
    # with no in-kernel relayout.
    xt = jnp.transpose(x, (1, 0, 2))

    kp = _pack_kernel_params(params)
    const2 = lambda n: (0, 0)

    flops_per_sample = (
        2 * 4 * 4 * 64                # conv0 block-diag matmul
        + 2 * 12 * 32 * 64            # conv1
        + 2 * 2 * 9 * 64 * 128        # conv2 (two K=64 matmuls)
        + 2 * 2 * 6 * 128 * 256       # conv3 (two K=128 matmuls)
        + 2 * 6 * 256 * 256           # fc1 (6 partial matmuls)
        + 2 * 256 * 32 + 2 * 32 * 4)  # fc2, fc3
    weight_bytes = (
        4 * (4 * 64 + 64)                                              # f32 conv0 path
        + 2 * (32 * 64 + 128 * 128 + 256 * 256 + 1536 * 256
               + 256 * 32 + 32 * 4)                                    # bf16 matmul weights
        + 4 * (64 + 128 + 256 + 256 + 32 + 4))                         # f32 biases
    cost = pl.CostEstimate(
        flops=npad * flops_per_sample,
        transcendentals=5 * npad,
        bytes_accessed=weight_bytes + npad * (16 + 4) * 4)

    out = pl.pallas_call(
        _fused_forward_kernel,
        out_shape=jax.ShapeDtypeStruct((npad, 4), jnp.float32),
        grid_spec=pltpu.PrefetchScalarGridSpec(
            num_scalar_prefetch=0,
            grid=(npad // B,),
            in_specs=[
                pl.BlockSpec((4, B, 4), lambda n: (0, n, 0)),   # x (B samples)
                pl.BlockSpec((4, 64), const2),      # w0_bd
                pl.BlockSpec((1, 64), const2),      # b0 (tiled)
                pl.BlockSpec((32, 64), const2),     # w1
                pl.BlockSpec((1, 64), const2),      # b1
                pl.BlockSpec((64, 128), const2),    # w2 (dh=0 rows)
                pl.BlockSpec((64, 128), const2),    # w2 (dh=1 rows)
                pl.BlockSpec((1, 128), const2),     # b2
                pl.BlockSpec((128, 256), const2),   # w3 (dw=0 rows)
                pl.BlockSpec((128, 256), const2),   # w3 (dw=1 rows)
                pl.BlockSpec((1, 256), const2),     # b3
                pl.BlockSpec((1536, 256), const2),  # fc1_w
                pl.BlockSpec((1, 256), const2),     # fc1_b
                pl.BlockSpec((256, 32), const2),    # fc2_w
                pl.BlockSpec((1, 32), const2),      # fc2_b
                pl.BlockSpec((32, 4), const2),      # fc3_w
                pl.BlockSpec((1, 4), const2),       # fc3_b
            ],
            out_specs=pl.BlockSpec((B, 4), lambda n: (n, 0)),
        ),
        compiler_params=pltpu.CompilerParams(
            dimension_semantics=("parallel",)),
        cost_estimate=cost,
    )(xt, kp["w0_bd"], kp["b0_t"], kp["w1"], kp["b1"],
      kp["w2a"], kp["w2b"], kp["b2"], kp["w3a"], kp["w3b"], kp["b3"],
      kp["fc1_w"], kp["fc1_b"], kp["fc2_w"], kp["fc2_b"],
      kp["fc3_w"], kp["fc3_b"])
    return out[:N]


# ----------------------------------------------------------------------------
# Pure-JAX reference (same bf16-rounded matmul inputs, f32 accumulation)
# ----------------------------------------------------------------------------
def mynet_forward_ref(x_nchw, params):
    f32, bf16 = jnp.float32, jnp.bfloat16
    bq = lambda v: v.astype(bf16).astype(f32)   # emulate bf16 MXU inputs
    N = x_nchw.shape[0]
    x = x_nchw.reshape(N, 4, 4, 1).astype(f32)                        # NHWC

    a = jnp.maximum(x * params["w0"][0] + params["b0"][0], 0.0)       # (N,4,4,16)

    p = jnp.concatenate([a[:, :, 0:3, :], a[:, :, 1:4, :]], axis=-1)  # (N,4,3,32)
    a = jnp.maximum(jnp.einsum("nhwk,kc->nhwc", bq(p),
                               params["w1"].astype(f32)) + params["b1"][0], 0.0)

    p = jnp.concatenate([a[:, 0:3, :, :], a[:, 1:4, :, :]], axis=-1)  # (N,3,3,128)
    a = jnp.maximum(jnp.einsum("nhwk,kc->nhwc", bq(p),
                               params["w2"].astype(f32)) + params["b2"][0], 0.0)

    p = jnp.concatenate([a[:, :, 0:2, :], a[:, :, 1:3, :]], axis=-1)  # (N,3,2,256)
    a = jnp.maximum(jnp.einsum("nhwk,kc->nhwc", bq(p),
                               params["w3"].astype(f32)) + params["b3"][0], 0.0)

    # flatten in (w, h, c) order to match fc1_w's row permutation
    feat = jnp.transpose(a, (0, 2, 1, 3)).reshape(N, 2 * 3 * 256)
    neg = 0.01
    h = bq(feat) @ params["fc1_w"].astype(f32) + params["fc1_b"][0]
    h = jnp.where(h >= 0, h, neg * h)
    h = bq(h) @ params["fc2_w"].astype(f32) + params["fc2_b"][0]
    h = jnp.where(h >= 0, h, neg * h)
    y = bq(h) @ params["fc3_w"].astype(f32) + params["fc3_b"][0]
    return jax.nn.log_softmax(y, axis=-1)


# ----------------------------------------------------------------------------
# Parameter init (deterministic, synthetic; PyTorch-like uniform scaling)
# ----------------------------------------------------------------------------
def init_params(key):
    def uniform(key, shape, fan_in, dtype=jnp.float32):
        bound = 1.0 / (fan_in ** 0.5)
        return jax.random.uniform(key, shape, jnp.float32, -bound, bound).astype(dtype)

    keys = jax.random.split(key, 14)
    p = {}
    p["w0"] = uniform(keys[0], (1, 16), 1)                              # conv0 kept f32
    p["b0"] = uniform(keys[1], (1, 16), 1)
    p["w1"] = uniform(keys[2], (2 * 16, 64), 2 * 16, jnp.bfloat16)      # rows: dw*16+cin
    p["b1"] = uniform(keys[3], (1, 64), 2 * 16)
    p["w2"] = uniform(keys[4], (2 * 64, 128), 2 * 64, jnp.bfloat16)     # rows: dh*64+cin
    p["b2"] = uniform(keys[5], (1, 128), 2 * 64)
    p["w3"] = uniform(keys[6], (2 * 128, 256), 2 * 128, jnp.bfloat16)   # rows: dw*128+cin
    p["b3"] = uniform(keys[7], (1, 256), 2 * 128)
    # fc1 rows permuted to (w, h, c) order so the conv3 activation blocks feed
    # it directly as 6 accumulated partial matmuls (flatten folded into weight).
    p["fc1_w"] = uniform(keys[8], (256 * 3 * 2, 256), 256 * 3 * 2, jnp.bfloat16)
    p["fc1_b"] = uniform(keys[9], (1, 256), 256 * 3 * 2)
    p["fc2_w"] = uniform(keys[10], (256, 32), 256, jnp.bfloat16)
    p["fc2_b"] = uniform(keys[11], (1, 32), 256)
    p["fc3_w"] = uniform(keys[12], (32, 4), 32, jnp.bfloat16)
    p["fc3_b"] = uniform(keys[13], (1, 4), 32)
    return p


if __name__ == "__main__":
    key = jax.random.PRNGKey(0)
    k_param, k_input = jax.random.split(key)

    params = init_params(k_param)
    # Input implied by the conv chain + fc1: (batch, 1, 4, 4) NCHW.
    # N=200 exercises >1 grid step (B=128) and the zero-padded batch tail.
    N = 200
    x = jax.random.normal(k_input, (N, 1, 4, 4), dtype=jnp.float32)

    out = jax.block_until_ready(mynet_forward(x, params))
    assert out.shape == (N, 4), out.shape

    # log_softmax rows should sum to ~1 after exp
    row_sums = jnp.exp(out).sum(axis=-1)
    assert bool(jnp.all(jnp.abs(row_sums - 1.0) < 1e-3)), row_sums

    ref = mynet_forward_ref(x, params)
    assert bool(jnp.allclose(out, ref, atol=2e-2, rtol=2e-2)), (
        float(jnp.max(jnp.abs(out - ref))))

    print("KERNEL_OK")
</pallas_src>

<mosaic_0001>
module attributes {stable_mosaic.version = 11 : i64} {
  func.func @_fused_forward_kernel(%arg0: i32, %arg1: memref<4x128x4xf32, #tpu.memory_space<vmem>>, %arg2: memref<4x64xf32, #tpu.memory_space<vmem>>, %arg3: memref<1x64xf32, #tpu.memory_space<vmem>>, %arg4: memref<32x64xbf16, #tpu.memory_space<vmem>>, %arg5: memref<1x64xf32, #tpu.memory_space<vmem>>, %arg6: memref<64x128xbf16, #tpu.memory_space<vmem>>, %arg7: memref<64x128xbf16, #tpu.memory_space<vmem>>, %arg8: memref<1x128xf32, #tpu.memory_space<vmem>>, %arg9: memref<128x256xbf16, #tpu.memory_space<vmem>>, %arg10: memref<128x256xbf16, #tpu.memory_space<vmem>>, %arg11: memref<1x256xf32, #tpu.memory_space<vmem>>, %arg12: memref<1536x256xbf16, #tpu.memory_space<vmem>>, %arg13: memref<1x256xf32, #tpu.memory_space<vmem>>, %arg14: memref<256x32xbf16, #tpu.memory_space<vmem>>, %arg15: memref<1x32xf32, #tpu.memory_space<vmem>>, %arg16: memref<32x4xbf16, #tpu.memory_space<vmem>>, %arg17: memref<1x4xf32, #tpu.memory_space<vmem>>, %arg18: memref<128x4xf32, #tpu.memory_space<vmem>>) attributes {dimension_semantics = [#tpu.dimension_semantics<parallel>], iteration_bounds = array<i64: 2>, scalar_prefetch = 0 : i64, scratch_operands = 0 : i64, tpu.core_type = #tpu.core_type<tc>, window_params = [{transform_indices = @transform_0, window_bounds = array<i64: 4, 128, 4>}, {pipeline_mode = #tpu.pipeline_mode<synchronous>, transform_indices = @transform_1, window_bounds = array<i64: 4, 64>}, {pipeline_mode = #tpu.pipeline_mode<synchronous>, transform_indices = @transform_2, window_bounds = array<i64: 1, 64>}, {pipeline_mode = #tpu.pipeline_mode<synchronous>, transform_indices = @transform_3, window_bounds = array<i64: 32, 64>}, {pipeline_mode = #tpu.pipeline_mode<synchronous>, transform_indices = @transform_4, window_bounds = array<i64: 1, 64>}, {pipeline_mode = #tpu.pipeline_mode<synchronous>, transform_indices = @transform_5, window_bounds = array<i64: 64, 128>}, {pipeline_mode = #tpu.pipeline_mode<synchronous>, transform_indices = @transform_6, window_bounds = array<i64: 64, 128>}, {pipeline_mode = #tpu.pipeline_mode<synchronous>, transform_indices = @transform_7, window_bounds = array<i64: 1, 128>}, {pipeline_mode = #tpu.pipeline_mode<synchronous>, transform_indices = @transform_8, window_bounds = array<i64: 128, 256>}, {pipeline_mode = #tpu.pipeline_mode<synchronous>, transform_indices = @transform_9, window_bounds = array<i64: 128, 256>}, {pipeline_mode = #tpu.pipeline_mode<synchronous>, transform_indices = @transform_10, window_bounds = array<i64: 1, 256>}, {pipeline_mode = #tpu.pipeline_mode<synchronous>, transform_indices = @transform_11, window_bounds = array<i64: 1536, 256>}, {pipeline_mode = #tpu.pipeline_mode<synchronous>, transform_indices = @transform_12, window_bounds = array<i64: 1, 256>}, {pipeline_mode = #tpu.pipeline_mode<synchronous>, transform_indices = @transform_13, window_bounds = array<i64: 256, 32>}, {pipeline_mode = #tpu.pipeline_mode<synchronous>, transform_indices = @transform_14, window_bounds = array<i64: 1, 32>}, {pipeline_mode = #tpu.pipeline_mode<synchronous>, transform_indices = @transform_15, window_bounds = array<i64: 32, 4>}, {pipeline_mode = #tpu.pipeline_mode<synchronous>, transform_indices = @transform_16, window_bounds = array<i64: 1, 4>}, {transform_indices = @transform_17, window_bounds = array<i64: 128, 4>}]} {
    %c0 = arith.constant 0 : index
    %c0_0 = arith.constant 0 : index
    %c0_1 = arith.constant 0 : index
    %0 = vector.load %arg1[%c0, %c0_0, %c0_1] : memref<4x128x4xf32, #tpu.memory_space<vmem>>, vector<1x128x4xf32>
    %1 = vector.shape_cast %0 : vector<1x128x4xf32> to vector<128x4xf32>
    %c1 = arith.constant 1 : index
    %c0_2 = arith.constant 0 : index
    %c0_3 = arith.constant 0 : index
    %2 = vector.load %arg1[%c1, %c0_2, %c0_3] : memref<4x128x4xf32, #tpu.memory_space<vmem>>, vector<1x128x4xf32>
    %3 = vector.shape_cast %2 : vector<1x128x4xf32> to vector<128x4xf32>
    %c2 = arith.constant 2 : index
    %c0_4 = arith.constant 0 : index
    %c0_5 = arith.constant 0 : index
    %4 = vector.load %arg1[%c2, %c0_4, %c0_5] : memref<4x128x4xf32, #tpu.memory_space<vmem>>, vector<1x128x4xf32>
    %5 = vector.shape_cast %4 : vector<1x128x4xf32> to vector<128x4xf32>
    %c3 = arith.constant 3 : index
    %c0_6 = arith.constant 0 : index
    %c0_7 = arith.constant 0 : index
    %6 = vector.load %arg1[%c3, %c0_6, %c0_7] : memref<4x128x4xf32, #tpu.memory_space<vmem>>, vector<1x128x4xf32>
    %7 = vector.shape_cast %6 : vector<1x128x4xf32> to vector<128x4xf32>
    %8 = tpu.concatenate %1, %3, %5, %7 in 0 : vector<128x4xf32>, vector<128x4xf32>, vector<128x4xf32>, vector<128x4xf32> -> vector<512x4xf32>
    %c0_8 = arith.constant 0 : index
    %c0_9 = arith.constant 0 : index
    %9 = vector.load %arg2[%c0_8, %c0_9] : memref<4x64xf32, #tpu.memory_space<vmem>>, vector<4x64xf32>
    %cst = arith.constant dense<0.000000e+00> : vector<512x64xf32>
    %10 = tpu.matmul %8, %9, %cst {dimension_numbers = #tpu.dot_dimension_numbers<[1], [0], [0], [1], [0, 0, 1, 1], [], []>} : vector<512x4xf32>, vector<4x64xf32>, vector<512x64xf32> -> vector<512x64xf32>
    %c0_10 = arith.constant 0 : index
    %c0_11 = arith.constant 0 : index
    %11 = vector.load %arg3[%c0_10, %c0_11] : memref<1x64xf32, #tpu.memory_space<vmem>>, vector<1x64xf32>
    %12 = vector.broadcast %11 : vector<1x64xf32> to vector<512x64xf32>
    %13 = arith.addf %10, %12 : vector<512x64xf32>
    %cst_12 = arith.constant 0.000000e+00 : f32
    %14 = vector.broadcast %cst_12 : f32 to vector<512x64xf32>
    %15 = arith.maximumf %13, %14 : vector<512x64xf32>
    %16 = vector.extract_strided_slice %15 {offsets = [0, 0], sizes = [512, 32], strides = [1, 1]} : vector<512x64xf32> to vector<512x32xf32>
    %17 = vector.extract_strided_slice %15 {offsets = [0, 16], sizes = [512, 32], strides = [1, 1]} : vector<512x64xf32> to vector<512x32xf32>
    %18 = vector.extract_strided_slice %15 {offsets = [0, 32], sizes = [512, 32], strides = [1, 1]} : vector<512x64xf32> to vector<512x32xf32>
    %19 = tpu.concatenate %16, %17, %18 in 0 : vector<512x32xf32>, vector<512x32xf32>, vector<512x32xf32> -> vector<1536x32xf32>
    %20 = arith.truncf %19 : vector<1536x32xf32> to vector<1536x32xbf16>
    %c0_13 = arith.constant 0 : index
    %c0_14 = arith.constant 0 : index
    %21 = vector.load %arg4[%c0_13, %c0_14] : memref<32x64xbf16, #tpu.memory_space<vmem>>, vector<32x64xbf16>
    %cst_15 = arith.constant dense<0.000000e+00> : vector<1536x64xf32>
    %22 = tpu.matmul %20, %21, %cst_15 {dimension_numbers = #tpu.dot_dimension_numbers<[1], [0], [0], [1], [0, 0, 1, 1], [], []>} : vector<1536x32xbf16>, vector<32x64xbf16>, vector<1536x64xf32> -> vector<1536x64xf32>
    %c0_16 = arith.constant 0 : index
    %c0_17 = arith.constant 0 : index
    %23 = vector.load %arg5[%c0_16, %c0_17] : memref<1x64xf32, #tpu.memory_space<vmem>>, vector<1x64xf32>
    %24 = vector.broadcast %23 : vector<1x64xf32> to vector<1536x64xf32>
    %25 = arith.addf %22, %24 : vector<1536x64xf32>
    %cst_18 = arith.constant 0.000000e+00 : f32
    %26 = vector.broadcast %cst_18 : f32 to vector<1536x64xf32>
    %27 = arith.maximumf %25, %26 : vector<1536x64xf32>
    %28 = vector.extract_strided_slice %27 {offsets = [0, 0], sizes = [384, 64], strides = [1, 1]} : vector<1536x64xf32> to vector<384x64xf32>
    %29 = vector.extract_strided_slice %27 {offsets = [512, 0], sizes = [384, 64], strides = [1, 1]} : vector<1536x64xf32> to vector<384x64xf32>
    %30 = vector.extract_strided_slice %27 {offsets = [1024, 0], sizes = [384, 64], strides = [1, 1]} : vector<1536x64xf32> to vector<384x64xf32>
    %31 = tpu.concatenate %28, %29, %30 in 0 : vector<384x64xf32>, vector<384x64xf32>, vector<384x64xf32> -> vector<1152x64xf32>
    %32 = arith.truncf %31 : vector<1152x64xf32> to vector<1152x64xbf16>
    %33 = vector.extract_strided_slice %27 {offsets = [128, 0], sizes = [384, 64], strides = [1, 1]} : vector<1536x64xf32> to vector<384x64xf32>
    %34 = vector.extract_strided_slice %27 {offsets = [640, 0], sizes = [384, 64], strides = [1, 1]} : vector<1536x64xf32> to vector<384x64xf32>
    %35 = vector.extract_strided_slice %27 {offsets = [1152, 0], sizes = [384, 64], strides = [1, 1]} : vector<1536x64xf32> to vector<384x64xf32>
    %36 = tpu.concatenate %33, %34, %35 in 0 : vector<384x64xf32>, vector<384x64xf32>, vector<384x64xf32> -> vector<1152x64xf32>
    %37 = arith.truncf %36 : vector<1152x64xf32> to vector<1152x64xbf16>
    %c0_19 = arith.constant 0 : index
    %c0_20 = arith.constant 0 : index
    %38 = vector.load %arg6[%c0_19, %c0_20] : memref<64x128xbf16, #tpu.memory_space<vmem>>, vector<64x128xbf16>
    %cst_21 = arith.constant dense<0.000000e+00> : vector<1152x128xf32>
    %39 = tpu.matmul %32, %38, %cst_21 {dimension_numbers = #tpu.dot_dimension_numbers<[1], [0], [0], [1], [0, 0, 1, 1], [], []>} : vector<1152x64xbf16>, vector<64x128xbf16>, vector<1152x128xf32> -> vector<1152x128xf32>
    %c0_22 = arith.constant 0 : index
    %c0_23 = arith.constant 0 : index
    %40 = vector.load %arg7[%c0_22, %c0_23] : memref<64x128xbf16, #tpu.memory_space<vmem>>, vector<64x128xbf16>
    %cst_24 = arith.constant dense<0.000000e+00> : vector<1152x128xf32>
    %41 = tpu.matmul %37, %40, %cst_24 {dimension_numbers = #tpu.dot_dimension_numbers<[1], [0], [0], [1], [0, 0, 1, 1], [], []>} : vector<1152x64xbf16>, vector<64x128xbf16>, vector<1152x128xf32> -> vector<1152x128xf32>
    %42 = arith.addf %39, %41 : vector<1152x128xf32>
    %c0_25 = arith.constant 0 : index
    %c0_26 = arith.constant 0 : index
    %43 = vector.load %arg8[%c0_25, %c0_26] : memref<1x128xf32, #tpu.memory_space<vmem>>, vector<1x128xf32>
    %44 = vector.broadcast %43 : vector<1x128xf32> to vector<1152x128xf32>
    %45 = arith.addf %42, %44 : vector<1152x128xf32>
    %cst_27 = arith.constant 0.000000e+00 : f32
    %46 = vector.broadcast %cst_27 : f32 to vector<1152x128xf32>
    %47 = arith.maximumf %45, %46 : vector<1152x128xf32>
    %48 = vector.extract_strided_slice %47 {offsets = [0, 0], sizes = [768, 128], strides = [1, 1]} : vector<1152x128xf32> to vector<768x128xf32>
    %49 = arith.truncf %48 : vector<768x128xf32> to vector<768x128xbf16>
    %50 = vector.extract_strided_slice %47 {offsets = [384, 0], sizes = [768, 128], strides = [1, 1]} : vector<1152x128xf32> to vector<768x128xf32>
    %51 = arith.truncf %50 : vector<768x128xf32> to vector<768x128xbf16>
    %c0_28 = arith.constant 0 : index
    %c0_29 = arith.constant 0 : index
    %52 = vector.load %arg9[%c0_28, %c0_29] : memref<128x256xbf16, #tpu.memory_space<vmem>>, vector<128x256xbf16>
    %cst_30 = arith.constant dense<0.000000e+00> : vector<768x256xf32>
    %53 = tpu.matmul %49, %52, %cst_30 {dimension_numbers = #tpu.dot_dimension_numbers<[1], [0], [0], [1], [0, 0, 1, 1], [], []>} : vector<768x128xbf16>, vector<128x256xbf16>, vector<768x256xf32> -> vector<768x256xf32>
    %c0_31 = arith.constant 0 : index
    %c0_32 = arith.constant 0 : index
    %54 = vector.load %arg10[%c0_31, %c0_32] : memref<128x256xbf16, #tpu.memory_space<vmem>>, vector<128x256xbf16>
    %cst_33 = arith.constant dense<0.000000e+00> : vector<768x256xf32>
    %55 = tpu.matmul %51, %54, %cst_33 {dimension_numbers = #tpu.dot_dimension_numbers<[1], [0], [0], [1], [0, 0, 1, 1], [], []>} : vector<768x128xbf16>, vector<128x256xbf16>, vector<768x256xf32> -> vector<768x256xf32>
    %56 = arith.addf %53, %55 : vector<768x256xf32>
    %c0_34 = arith.constant 0 : index
    %c0_35 = arith.constant 0 : index
    %57 = vector.load %arg11[%c0_34, %c0_35] : memref<1x256xf32, #tpu.memory_space<vmem>>, vector<1x256xf32>
    %58 = vector.broadcast %57 : vector<1x256xf32> to vector<768x256xf32>
    %59 = arith.addf %56, %58 : vector<768x256xf32>
    %cst_36 = arith.constant 0.000000e+00 : f32
    %60 = vector.broadcast %cst_36 : f32 to vector<768x256xf32>
    %61 = arith.maximumf %59, %60 : vector<768x256xf32>
    %c0_37 = arith.constant 0 : index
    %c0_38 = arith.constant 0 : index
    %62 = vector.load %arg13[%c0_37, %c0_38] : memref<1x256xf32, #tpu.memory_space<vmem>>, vector<1x256xf32>
    %63 = vector.extract_strided_slice %61 {offsets = [0, 0], sizes = [128, 256], strides = [1, 1]} : vector<768x256xf32> to vector<128x256xf32>
    %64 = arith.truncf %63 : vector<128x256xf32> to vector<128x256xbf16>
    %c0_39 = arith.constant 0 : index
    %c0_40 = arith.constant 0 : index
    %65 = vector.load %arg12[%c0_39, %c0_40] : memref<1536x256xbf16, #tpu.memory_space<vmem>>, vector<256x256xbf16>
    %cst_41 = arith.constant dense<0.000000e+00> : vector<128x256xf32>
    %66 = tpu.matmul %64, %65, %cst_41 {dimension_numbers = #tpu.dot_dimension_numbers<[1], [0], [0], [1], [0, 0, 1, 1], [], []>} : vector<128x256xbf16>, vector<256x256xbf16>, vector<128x256xf32> -> vector<128x256xf32>
    %67 = vector.broadcast %62 : vector<1x256xf32> to vector<128x256xf32>
    %68 = arith.addf %67, %66 : vector<128x256xf32>
    %69 = vector.extract_strided_slice %61 {offsets = [128, 0], sizes = [128, 256], strides = [1, 1]} : vector<768x256xf32> to vector<128x256xf32>
    %70 = arith.truncf %69 : vector<128x256xf32> to vector<128x256xbf16>
    %c256 = arith.constant 256 : index
    %c0_42 = arith.constant 0 : index
    %71 = vector.load %arg12[%c256, %c0_42] : memref<1536x256xbf16, #tpu.memory_space<vmem>>, vector<256x256xbf16>
    %cst_43 = arith.constant dense<0.000000e+00> : vector<128x256xf32>
    %72 = tpu.matmul %70, %71, %cst_43 {dimension_numbers = #tpu.dot_dimension_numbers<[1], [0], [0], [1], [0, 0, 1, 1], [], []>} : vector<128x256xbf16>, vector<256x256xbf16>, vector<128x256xf32> -> vector<128x256xf32>
    %73 = arith.addf %68, %72 : vector<128x256xf32>
    %74 = vector.extract_strided_slice %61 {offsets = [256, 0], sizes = [128, 256], strides = [1, 1]} : vector<768x256xf32> to vector<128x256xf32>
    %75 = arith.truncf %74 : vector<128x256xf32> to vector<128x256xbf16>
    %c512 = arith.constant 512 : index
    %c0_44 = arith.constant 0 : index
    %76 = vector.load %arg12[%c512, %c0_44] : memref<1536x256xbf16, #tpu.memory_space<vmem>>, vector<256x256xbf16>
    %cst_45 = arith.constant dense<0.000000e+00> : vector<128x256xf32>
    %77 = tpu.matmul %75, %76, %cst_45 {dimension_numbers = #tpu.dot_dimension_numbers<[1], [0], [0], [1], [0, 0, 1, 1], [], []>} : vector<128x256xbf16>, vector<256x256xbf16>, vector<128x256xf32> -> vector<128x256xf32>
    %78 = arith.addf %73, %77 : vector<128x256xf32>
    %79 = vector.extract_strided_slice %61 {offsets = [384, 0], sizes = [128, 256], strides = [1, 1]} : vector<768x256xf32> to vector<128x256xf32>
    %80 = arith.truncf %79 : vector<128x256xf32> to vector<128x256xbf16>
    %c768 = arith.constant 768 : index
    %c0_46 = arith.constant 0 : index
    %81 = vector.load %arg12[%c768, %c0_46] : memref<1536x256xbf16, #tpu.memory_space<vmem>>, vector<256x256xbf16>
    %cst_47 = arith.constant dense<0.000000e+00> : vector<128x256xf32>
    %82 = tpu.matmul %80, %81, %cst_47 {dimension_numbers = #tpu.dot_dimension_numbers<[1], [0], [0], [1], [0, 0, 1, 1], [], []>} : vector<128x256xbf16>, vector<256x256xbf16>, vector<128x256xf32> -> vector<128x256xf32>
    %83 = arith.addf %78, %82 : vector<128x256xf32>
    %84 = vector.extract_strided_slice %61 {offsets = [512, 0], sizes = [128, 256], strides = [1, 1]} : vector<768x256xf32> to vector<128x256xf32>
    %85 = arith.truncf %84 : vector<128x256xf32> to vector<128x256xbf16>
    %c1024 = arith.constant 1024 : index
    %c0_48 = arith.constant 0 : index
    %86 = vector.load %arg12[%c1024, %c0_48] : memref<1536x256xbf16, #tpu.memory_space<vmem>>, vector<256x256xbf16>
    %cst_49 = arith.constant dense<0.000000e+00> : vector<128x256xf32>
    %87 = tpu.matmul %85, %86, %cst_49 {dimension_numbers = #tpu.dot_dimension_numbers<[1], [0], [0], [1], [0, 0, 1, 1], [], []>} : vector<128x256xbf16>, vector<256x256xbf16>, vector<128x256xf32> -> vector<128x256xf32>
    %88 = arith.addf %83, %87 : vector<128x256xf32>
    %89 = vector.extract_strided_slice %61 {offsets = [640, 0], sizes = [128, 256], strides = [1, 1]} : vector<768x256xf32> to vector<128x256xf32>
    %90 = arith.truncf %89 : vector<128x256xf32> to vector<128x256xbf16>
    %c1280 = arith.constant 1280 : index
    %c0_50 = arith.constant 0 : index
    %91 = vector.load %arg12[%c1280, %c0_50] : memref<1536x256xbf16, #tpu.memory_space<vmem>>, vector<256x256xbf16>
    %cst_51 = arith.constant dense<0.000000e+00> : vector<128x256xf32>
    %92 = tpu.matmul %90, %91, %cst_51 {dimension_numbers = #tpu.dot_dimension_numbers<[1], [0], [0], [1], [0, 0, 1, 1], [], []>} : vector<128x256xbf16>, vector<256x256xbf16>, vector<128x256xf32> -> vector<128x256xf32>
    %93 = arith.addf %88, %92 : vector<128x256xf32>
    %cst_52 = arith.constant 0.000000e+00 : f32
    %94 = vector.broadcast %cst_52 : f32 to vector<128x256xf32>
    %95 = arith.cmpf oge, %93, %94 : vector<128x256xf32>
    %cst_53 = arith.constant 0.00999999977 : f32
    %96 = vector.broadcast %cst_53 : f32 to vector<128x256xf32>
    %97 = arith.mulf %96, %93 : vector<128x256xf32>
    %98 = arith.select %95, %93, %97 : vector<128x256xi1>, vector<128x256xf32>
    %99 = arith.truncf %98 : vector<128x256xf32> to vector<128x256xbf16>
    %c0_54 = arith.constant 0 : index
    %c0_55 = arith.constant 0 : index
    %100 = vector.load %arg14[%c0_54, %c0_55] : memref<256x32xbf16, #tpu.memory_space<vmem>>, vector<256x32xbf16>
    %cst_56 = arith.constant dense<0.000000e+00> : vector<128x32xf32>
    %101 = tpu.matmul %99, %100, %cst_56 {dimension_numbers = #tpu.dot_dimension_numbers<[1], [0], [0], [1], [0, 0, 1, 1], [], []>} : vector<128x256xbf16>, vector<256x32xbf16>, vector<128x32xf32> -> vector<128x32xf32>
    %c0_57 = arith.constant 0 : index
    %c0_58 = arith.constant 0 : index
    %102 = vector.load %arg15[%c0_57, %c0_58] : memref<1x32xf32, #tpu.memory_space<vmem>>, vector<1x32xf32>
    %103 = vector.broadcast %102 : vector<1x32xf32> to vector<128x32xf32>
    %104 = arith.addf %101, %103 : vector<128x32xf32>
    %cst_59 = arith.constant 0.000000e+00 : f32
    %105 = vector.broadcast %cst_59 : f32 to vector<128x32xf32>
    %106 = arith.cmpf oge, %104, %105 : vector<128x32xf32>
    %cst_60 = arith.constant 0.00999999977 : f32
    %107 = vector.broadcast %cst_60 : f32 to vector<128x32xf32>
    %108 = arith.mulf %107, %104 : vector<128x32xf32>
    %109 = arith.select %106, %104, %108 : vector<128x32xi1>, vector<128x32xf32>
    %110 = arith.truncf %109 : vector<128x32xf32> to vector<128x32xbf16>
    %c0_61 = arith.constant 0 : index
    %c0_62 = arith.constant 0 : index
    %111 = vector.load %arg16[%c0_61, %c0_62] : memref<32x4xbf16, #tpu.memory_space<vmem>>, vector<32x4xbf16>
    %cst_63 = arith.constant dense<0.000000e+00> : vector<128x4xf32>
    %112 = tpu.matmul %110, %111, %cst_63 {dimension_numbers = #tpu.dot_dimension_numbers<[1], [0], [0], [1], [0, 0, 1, 1], [], []>} : vector<128x32xbf16>, vector<32x4xbf16>, vector<128x4xf32> -> vector<128x4xf32>
    %c0_64 = arith.constant 0 : index
    %c0_65 = arith.constant 0 : index
    %113 = vector.load %arg17[%c0_64, %c0_65] : memref<1x4xf32, #tpu.memory_space<vmem>>, vector<1x4xf32>
    %114 = vector.broadcast %113 : vector<1x4xf32> to vector<128x4xf32>
    %115 = arith.addf %112, %114 : vector<128x4xf32>
    %cst_66 = arith.constant dense<0xFF800000> : vector<128xf32>
    %116 = vector.multi_reduction <maximumf>, %115, %cst_66 [1] : vector<128x4xf32> to vector<128xf32>
    %117 = vector.shape_cast %116 : vector<128xf32> to vector<128x1xf32>
    %118 = vector.broadcast %117 : vector<128x1xf32> to vector<128x4xf32>
    %119 = arith.subf %115, %118 : vector<128x4xf32>
    %120 = math.exp %119 : vector<128x4xf32>
    %cst_67 = arith.constant dense<0.000000e+00> : vector<128xf32>
    %121 = vector.multi_reduction <add>, %120, %cst_67 [1] : vector<128x4xf32> to vector<128xf32>
    %122 = vector.shape_cast %121 : vector<128xf32> to vector<128x1xf32>
    %123 = math.log %122 : vector<128x1xf32>
    %124 = vector.broadcast %123 : vector<128x1xf32> to vector<128x4xf32>
    %125 = arith.subf %119, %124 : vector<128x4xf32>
    %c0_68 = arith.constant 0 : index
    %c0_69 = arith.constant 0 : index
    %126 = vector.load %arg18[%c0_68, %c0_69] : memref<128x4xf32, #tpu.memory_space<vmem>>, vector<128x4xf32>
    tpu.vector_store %arg18[%c0_68, %c0_69], %125 {strides = array<i32>} : memref<128x4xf32, #tpu.memory_space<vmem>>, vector<128x4xf32>,
    return
  }
  func.func @transform_0(%arg0: i32) -> (i32, i32, i32) {
    %c0_i32 = arith.constant 0 : i32
    %c0_i32_0 = arith.constant 0 : i32
    %c0_i32_1 = arith.constant 0 : i32
    return %c0_i32, %arg0, %c0_i32_0 : i32, i32, i32
  }
  func.func @transform_1(%arg0: i32) -> (i32, i32) {
    %c0_i32 = arith.constant 0 : i32
    %c0_i32_0 = arith.constant 0 : i32
    %c0_i32_1 = arith.constant 0 : i32
    return %c0_i32, %c0_i32_0 : i32, i32
  }
  func.func @transform_2(%arg0: i32) -> (i32, i32) {
    %c0_i32 = arith.constant 0 : i32
    %c0_i32_0 = arith.constant 0 : i32
    %c0_i32_1 = arith.constant 0 : i32
    return %c0_i32, %c0_i32_0 : i32, i32
  }
  func.func @transform_3(%arg0: i32) -> (i32, i32) {
    %c0_i32 = arith.constant 0 : i32
    %c0_i32_0 = arith.constant 0 : i32
    %c0_i32_1 = arith.constant 0 : i32
    return %c0_i32, %c0_i32_0 : i32, i32
  }
  func.func @transform_4(%arg0: i32) -> (i32, i32) {
    %c0_i32 = arith.constant 0 : i32
    %c0_i32_0 = arith.constant 0 : i32
    %c0_i32_1 = arith.constant 0 : i32
    return %c0_i32, %c0_i32_0 : i32, i32
  }
  func.func @transform_5(%arg0: i32) -> (i32, i32) {
    %c0_i32 = arith.constant 0 : i32
    %c0_i32_0 = arith.constant 0 : i32
    %c0_i32_1 = arith.constant 0 : i32
    return %c0_i32, %c0_i32_0 : i32, i32
  }
  func.func @transform_6(%arg0: i32) -> (i32, i32) {
    %c0_i32 = arith.constant 0 : i32
    %c0_i32_0 = arith.constant 0 : i32
    %c0_i32_1 = arith.constant 0 : i32
    return %c0_i32, %c0_i32_0 : i32, i32
  }
  func.func @transform_7(%arg0: i32) -> (i32, i32) {
    %c0_i32 = arith.constant 0 : i32
    %c0_i32_0 = arith.constant 0 : i32
    %c0_i32_1 = arith.constant 0 : i32
    return %c0_i32, %c0_i32_0 : i32, i32
  }
  func.func @transform_8(%arg0: i32) -> (i32, i32) {
    %c0_i32 = arith.constant 0 : i32
    %c0_i32_0 = arith.constant 0 : i32
    %c0_i32_1 = arith.constant 0 : i32
    return %c0_i32, %c0_i32_0 : i32, i32
  }
  func.func @transform_9(%arg0: i32) -> (i32, i32) {
    %c0_i32 = arith.constant 0 : i32
    %c0_i32_0 = arith.constant 0 : i32
    %c0_i32_1 = arith.constant 0 : i32
    return %c0_i32, %c0_i32_0 : i32, i32
  }
  func.func @transform_10(%arg0: i32) -> (i32, i32) {
    %c0_i32 = arith.constant 0 : i32
    %c0_i32_0 = arith.constant 0 : i32
    %c0_i32_1 = arith.constant 0 : i32
    return %c0_i32, %c0_i32_0 : i32, i32
  }
  func.func @transform_11(%arg0: i32) -> (i32, i32) {
    %c0_i32 = arith.constant 0 : i32
    %c0_i32_0 = arith.constant 0 : i32
    %c0_i32_1 = arith.constant 0 : i32
    return %c0_i32, %c0_i32_0 : i32, i32
  }
  func.func @transform_12(%arg0: i32) -> (i32, i32) {
    %c0_i32 = arith.constant 0 : i32
    %c0_i32_0 = arith.constant 0 : i32
    %c0_i32_1 = arith.constant 0 : i32
    return %c0_i32, %c0_i32_0 : i32, i32
  }
  func.func @transform_13(%arg0: i32) -> (i32, i32) {
    %c0_i32 = arith.constant 0 : i32
    %c0_i32_0 = arith.constant 0 : i32
    %c0_i32_1 = arith.constant 0 : i32
    return %c0_i32, %c0_i32_0 : i32, i32
  }
  func.func @transform_14(%arg0: i32) -> (i32, i32) {
    %c0_i32 = arith.constant 0 : i32
    %c0_i32_0 = arith.constant 0 : i32
    %c0_i32_1 = arith.constant 0 : i32
    return %c0_i32, %c0_i32_0 : i32, i32
  }
  func.func @transform_15(%arg0: i32) -> (i32, i32) {
    %c0_i32 = arith.constant 0 : i32
    %c0_i32_0 = arith.constant 0 : i32
    %c0_i32_1 = arith.constant 0 : i32
    return %c0_i32, %c0_i32_0 : i32, i32
  }
  func.func @transform_16(%arg0: i32) -> (i32, i32) {
    %c0_i32 = arith.constant 0 : i32
    %c0_i32_0 = arith.constant 0 : i32
    %c0_i32_1 = arith.constant 0 : i32
    return %c0_i32, %c0_i32_0 : i32, i32
  }
  func.func @transform_17(%arg0: i32) -> (i32, i32) {
    %c0_i32 = arith.constant 0 : i32
    %c0_i32_0 = arith.constant 0 : i32
    return %arg0, %c0_i32 : i32, i32
  }
}

</mosaic_0001>

<bundles_post_ra>
// kernel: mynet_forward.1
= control target key start
LH: loop header
LB: loop body
LE: loop exit
PB: predicated region body
PF: predicated region fallthrough
CT: control target
= control target key end

     0   :  { %s17146_s0 = inlined_call_operand.vmem [shape: f32[4,256,4], index: 0, kind: input, shape index: {}]   ;;  %s17147_s1 = inlined_call_operand.vmem [shape: f32[4,64], index: 1, kind: input, shape index: {}]   ;;  %s17148_s2 = inlined_call_operand.vmem [shape: f32[1,64], index: 2, kind: input, shape index: {}]   ;;  %s17149_s3 = inlined_call_operand.vmem [shape: bf16[32,64], index: 3, kind: input, shape index: {}]   ;;  %s17150_s4 = inlined_call_operand.vmem [shape: f32[1,64], index: 4, kind: input, shape index: {}]   ;;  %s17151_s5 = inlined_call_operand.vmem [shape: bf16[64,128], index: 5, kind: input, shape index: {}]   ;;  %s17152_s6 = inlined_call_operand.vmem [shape: bf16[64,128], index: 6, kind: input, shape index: {}]   ;;  %s17153_s7 = inlined_call_operand.vmem [shape: f32[1,128], index: 7, kind: input, shape index: {}]   ;;  %s17154_s8 = inlined_call_operand.vmem [shape: bf16[128,256], index: 8, kind: input, shape index: {}]   ;;  %s17155_s9 = inlined_call_operand.vmem [shape: bf16[128,256], index: 9, kind: input, shape index: {}]   ;;  %s17156_s10 = inlined_call_operand.vmem [shape: f32[1,256], index: 10, kind: input, shape index: {}]   ;;  %s17157_s11 = inlined_call_operand.vmem [shape: bf16[1536,256], index: 11, kind: input, shape index: {}]   ;;  %s17158_s12 = inlined_call_operand.vmem [shape: f32[1,256], index: 12, kind: input, shape index: {}]   ;;  %s17159_s13 = inlined_call_operand.vmem [shape: bf16[256,32], index: 13, kind: input, shape index: {}]   ;;  %s17160_s14 = inlined_call_operand.vmem [shape: f32[1,32], index: 14, kind: input, shape index: {}]   ;;  %s17161_s15 = inlined_call_operand.vmem [shape: bf16[32,4], index: 15, kind: input, shape index: {}]   ;;  %s17162_s16 = inlined_call_operand.vmem [shape: f32[1,4], index: 16, kind: input, shape index: {}]   ;;  %s17163_s17 = inlined_call_operand.vmem [shape: f32[256,4], index: 17, kind: output, shape index: {}]  }
   0x1   :  { %17288 = sst [smem:[#allocation124_spill]] %s17146_s0 }
   0x2   :  { %17289 = sst [smem:[#allocation125_spill]] %s17147_s1 }
   0x3   :  { %s11615_s24 = smov 0   ;;  %s11617_s25 = smov 0  }
   0x4   :  { %s11619_s26 = smov 0  }
   0x5 LB: > { %s9428_s27 = sadd.s32 4294967295, %s11521_s26   ;;  %s11632_s28 = sadd.s32 1, %s11521_s26   ;;  %s11521_s26 = sphi %s11619_s26, %s17875_s26   ;;  %s11517_s25 = sphi %s11617_s25, %s17874_s25   ;;  %s11513_s24 = sphi %s11615_s24, %s17873_s24  }
   0x6   : > { %s31_s29 = ssub.s32 %s11521_s26, %s11632_s28  ;;  %s34_s0 = sadd.s32 1, %s11517_s25 }
   0x7   : > { %p32_p0 = scmp.eq.s32.totalorder %s31_s29, 0  ;;  %p41_p1 = scmp.ne.s32.totalorder %s11517_s25, %s11513_s24 }
   0x8   : > { %p42_p2 = scmp.eq.s32.totalorder %s11521_s26, 0  ;;  %p9431_p4 = scmp.ge.s32.totalorder %s11521_s26, 2 }
   0x9   : > { %s11641_s30 = scalar_select %p32_p0, %s11517_s25, %s34_s0  }
   0xa   : > { %p43_p3 = por %p42_p2, %p41_p1  ;;  %477 = sbr.rel (%p9431_p4) target bundleno = 89 (0x59), region = 80 }
   0xf   : > { %480 = sbr.rel (!%p43_p3) target bundleno = 89 (0x59), region = 84  ;;  %s482_s18 = sand.u32 (%p43_p3), 1, %s11517_s25  }
  0x10   : > { %s10810_s19 = sshll.u32 (%p43_p3), %s11521_s26, 7  ;;  %s9432_s1 = sshll.u32 (%p43_p3), %s482_s18, 9 }
  0x11   : > { %s17290_s22 = sld [smem:[#allocation124_spill]] (%p43_p3)  ;;  %s11654_s29 = scalar_lea.vmem (%p43_p3), [#allocation2], %s9432_s1 }
  0x17   : > { %s11649_s23 = scalar_lea.vmem %s17290_s22, %s10810_s19 }
  0x18   : > { %v642_v0 = vld [vmem:[%s11649_s23] sm:$0xff]  ;;  %v644_v1 = vld [vmem:[%s11649_s23 + $0x8] sm:$0xff]  ;;  %v646_v2 = vld [vmem:[%s11649_s23 + $0x10] sm:$0xff] }
  0x19   : > { %643 = vst [vmem:[%s11654_s29] sm:$0xff] %v642_v0  ;;  %v648_v3 = vld [vmem:[%s11649_s23 + $0x18] sm:$0xff]  ;;  %v650_v4 = vld [vmem:[%s11649_s23 + $0x20] sm:$0xff]  ;;  %v652_v5 = vld [vmem:[%s11649_s23 + $0x28] sm:$0xff] }
  0x1a   : > { %645 = vst [vmem:[%s11654_s29 + $0x8] sm:$0xff] %v644_v1  ;;  %v654_v6 = vld [vmem:[%s11649_s23 + $0x30] sm:$0xff]  ;;  %v656_v7 = vld [vmem:[%s11649_s23 + $0x38] sm:$0xff]  ;;  %v658_v8 = vld [vmem:[%s11649_s23 + $0x40] sm:$0xff] }
  0x1b   : > { %647 = vst [vmem:[%s11654_s29 + $0x10] sm:$0xff] %v646_v2  ;;  %v660_v9 = vld [vmem:[%s11649_s23 + $0x48] sm:$0xff]  ;;  %v662_v10 = vld [vmem:[%s11649_s23 + $0x50] sm:$0xff]  ;;  %v664_v11 = vld [vmem:[%s11649_s23 + $0x58] sm:$0xff] }
  0x1c   : > { %649 = vst [vmem:[%s11654_s29 + $0x18] sm:$0xff] %v648_v3  ;;  %v666_v12 = vld [vmem:[%s11649_s23 + $0x60] sm:$0xff]  ;;  %v668_v13 = vld [vmem:[%s11649_s23 + $0x68] sm:$0xff]  ;;  %v670_v14 = vld [vmem:[%s11649_s23 + $0x70] sm:$0xff] }
  0x1d   : > { %651 = vst [vmem:[%s11654_s29 + $0x20] sm:$0xff] %v650_v4  ;;  %v672_v15 = vld [vmem:[%s11649_s23 + $0x78] sm:$0xff]  ;;  %v674_v16 = vld [vmem:[%s11649_s23 + $0x100] sm:$0xff]  ;;  %v676_v17 = vld [vmem:[%s11649_s23 + $0x108] sm:$0xff] }
  0x1e   : > { %653 = vst [vmem:[%s11654_s29 + $0x28] sm:$0xff] %v652_v5  ;;  %v678_v18 = vld [vmem:[%s11649_s23 + $0x110] sm:$0xff]  ;;  %v680_v19 = vld [vmem:[%s11649_s23 + $0x118] sm:$0xff]  ;;  %v682_v20 = vld [vmem:[%s11649_s23 + $0x120] sm:$0xff] }
  0x1f   : > { %655 = vst [vmem:[%s11654_s29 + $0x30] sm:$0xff] %v654_v6  ;;  %v684_v21 = vld [vmem:[%s11649_s23 + $0x128] sm:$0xff]  ;;  %v686_v22 = vld [vmem:[%s11649_s23 + $0x130] sm:$0xff]  ;;  %v688_v23 = vld [vmem:[%s11649_s23 + $0x138] sm:$0xff] }
  0x20   : > { %657 = vst [vmem:[%s11654_s29 + $0x38] sm:$0xff] %v656_v7  ;;  %v690_v24 = vld [vmem:[%s11649_s23 + $0x140] sm:$0xff]  ;;  %v692_v25 = vld [vmem:[%s11649_s23 + $0x148] sm:$0xff]  ;;  %v694_v26 = vld [vmem:[%s11649_s23 + $0x150] sm:$0xff] }
  0x21   : > { %659 = vst [vmem:[%s11654_s29 + $0x40] sm:$0xff] %v658_v8  ;;  %v696_v27 = vld [vmem:[%s11649_s23 + $0x158] sm:$0xff]  ;;  %v698_v28 = vld [vmem:[%s11649_s23 + $0x160] sm:$0xff]  ;;  %v700_v29 = vld [vmem:[%s11649_s23 + $0x168] sm:$0xff] }
  0x22   : > { %661 = vst [vmem:[%s11654_s29 + $0x48] sm:$0xff] %v660_v9  ;;  %v702_v30 = vld [vmem:[%s11649_s23 + $0x170] sm:$0xff]  ;;  %v704_v31 = vld [vmem:[%s11649_s23 + $0x178] sm:$0xff]  ;;  %v706_v32 = vld [vmem:[%s11649_s23 + $0x200] sm:$0xff] }
  0x23   : > { %663 = vst [vmem:[%s11654_s29 + $0x50] sm:$0xff] %v662_v10  ;;  %v708_v33 = vld [vmem:[%s11649_s23 + $0x208] sm:$0xff]  ;;  %v710_v34 = vld [vmem:[%s11649_s23 + $0x210] sm:$0xff]  ;;  %v712_v35 = vld [vmem:[%s11649_s23 + $0x218] sm:$0xff] }
  0x24   : > { %665 = vst [vmem:[%s11654_s29 + $0x58] sm:$0xff] %v664_v11  ;;  %v714_v36 = vld [vmem:[%s11649_s23 + $0x220] sm:$0xff]  ;;  %v716_v37 = vld [vmem:[%s11649_s23 + $0x228] sm:$0xff]  ;;  %v718_v38 = vld [vmem:[%s11649_s23 + $0x230] sm:$0xff] }
  0x25   : > { %667 = vst [vmem:[%s11654_s29 + $0x60] sm:$0xff] %v666_v12  ;;  %v720_v39 = vld [vmem:[%s11649_s23 + $0x238] sm:$0xff]  ;;  %v722_v40 = vld [vmem:[%s11649_s23 + $0x240] sm:$0xff]  ;;  %v724_v41 = vld [vmem:[%s11649_s23 + $0x248] sm:$0xff] }
  0x26   : > { %669 = vst [vmem:[%s11654_s29 + $0x68] sm:$0xff] %v668_v13  ;;  %v726_v42 = vld [vmem:[%s11649_s23 + $0x250] sm:$0xff]  ;;  %v728_v43 = vld [vmem:[%s11649_s23 + $0x258] sm:$0xff]  ;;  %v730_v44 = vld [vmem:[%s11649_s23 + $0x260] sm:$0xff] }
  0x27   : > { %671 = vst [vmem:[%s11654_s29 + $0x70] sm:$0xff] %v670_v14  ;;  %v732_v45 = vld [vmem:[%s11649_s23 + $0x268] sm:$0xff]  ;;  %v734_v46 = vld [vmem:[%s11649_s23 + $0x270] sm:$0xff]  ;;  %v736_v47 = vld [vmem:[%s11649_s23 + $0x278] sm:$0xff] }
  0x28   : > { %673 = vst [vmem:[%s11654_s29 + $0x78] sm:$0xff] %v672_v15  ;;  %v738_v48 = vld [vmem:[%s11649_s23 + $0x300] sm:$0xff]  ;;  %v740_v49 = vld [vmem:[%s11649_s23 + $0x308] sm:$0xff]  ;;  %v742_v50 = vld [vmem:[%s11649_s23 + $0x310] sm:$0xff] }
  0x29   : > { %675 = vst [vmem:[%s11654_s29 + $0x80] sm:$0xff] %v674_v16  ;;  %v744_v51 = vld [vmem:[%s11649_s23 + $0x318] sm:$0xff]  ;;  %v746_v52 = vld [vmem:[%s11649_s23 + $0x320] sm:$0xff]  ;;  %v748_v53 = vld [vmem:[%s11649_s23 + $0x328] sm:$0xff] }
  0x2a   : > { %677 = vst [vmem:[%s11654_s29 + $0x88] sm:$0xff] %v676_v17  ;;  %v750_v54 = vld [vmem:[%s11649_s23 + $0x330] sm:$0xff]  ;;  %v752_v55 = vld [vmem:[%s11649_s23 + $0x338] sm:$0xff]  ;;  %v754_v56 = vld [vmem:[%s11649_s23 + $0x340] sm:$0xff] }
  0x2b   : > { %679 = vst [vmem:[%s11654_s29 + $0x90] sm:$0xff] %v678_v18  ;;  %v756_v57 = vld [vmem:[%s11649_s23 + $0x348] sm:$0xff]  ;;  %v758_v58 = vld [vmem:[%s11649_s23 + $0x350] sm:$0xff]  ;;  %v760_v59 = vld [vmem:[%s11649_s23 + $0x358] sm:$0xff] }
  0x2c   : > { %681 = vst [vmem:[%s11654_s29 + $0x98] sm:$0xff] %v680_v19  ;;  %v762_v60 = vld [vmem:[%s11649_s23 + $0x360] sm:$0xff]  ;;  %v764_v61 = vld [vmem:[%s11649_s23 + $0x368] sm:$0xff]  ;;  %v766_v62 = vld [vmem:[%s11649_s23 + $0x370] sm:$0xff] }
  0x2d   : > { %683 = vst [vmem:[%s11654_s29 + $0xa0] sm:$0xff] %v682_v20  ;;  %v768_v63 = vld [vmem:[%s11649_s23 + $0x378] sm:$0xff] }
  0x2e   : > { %685 = vst [vmem:[%s11654_s29 + $0xa8] sm:$0xff] %v684_v21 }
  0x2f   : > { %687 = vst [vmem:[%s11654_s29 + $0xb0] sm:$0xff] %v686_v22 }
  0x30   : > { %689 = vst [vmem:[%s11654_s29 + $0xb8] sm:$0xff] %v688_v23 }
  0x31   : > { %691 = vst [vmem:[%s11654_s29 + $0xc0] sm:$0xff] %v690_v24 }
  0x32   : > { %693 = vst [vmem:[%s11654_s29 + $0xc8] sm:$0xff] %v692_v25 }
  0x33   : > { %695 = vst [vmem:[%s11654_s29 + $0xd0] sm:$0xff] %v694_v26 }
  0x34   : > { %697 = vst [vmem:[%s11654_s29 + $0xd8] sm:$0xff] %v696_v27 }
  0x35   : > { %699 = vst [vmem:[%s11654_s29 + $0xe0] sm:$0xff] %v698_v28 }
  0x36   : > { %701 = vst [vmem:[%s11654_s29 + $0xe8] sm:$0xff] %v700_v29 }
  0x37   : > { %703 = vst [vmem:[%s11654_s29 + $0xf0] sm:$0xff] %v702_v30 }
  0x38   : > { %705 = vst [vmem:[%s11654_s29 + $0xf8] sm:$0xff] %v704_v31 }
  0x39   : > { %707 = vst [vmem:[%s11654_s29 + $0x100] sm:$0xff] %v706_v32 }
  0x3a   : > { %709 = vst [vmem:[%s11654_s29 + $0x108] sm:$0xff] %v708_v33 }
  0x3b   : > { %711 = vst [vmem:[%s11654_s29 + $0x110] sm:$0xff] %v710_v34 }
  0x3c   : > { %713 = vst [vmem:[%s11654_s29 + $0x118] sm:$0xff] %v712_v35 }
  0x3d   : > { %715 = vst [vmem:[%s11654_s29 + $0x120] sm:$0xff] %v714_v36 }
  0x3e   : > { %717 = vst [vmem:[%s11654_s29 + $0x128] sm:$0xff] %v716_v37 }
  0x3f   : > { %719 = vst [vmem:[%s11654_s29 + $0x130] sm:$0xff] %v718_v38 }
  0x40   : > { %721 = vst [vmem:[%s11654_s29 + $0x138] sm:$0xff] %v720_v39 }
  0x41   : > { %723 = vst [vmem:[%s11654_s29 + $0x140] sm:$0xff] %v722_v40 }
  0x42   : > { %725 = vst [vmem:[%s11654_s29 + $0x148] sm:$0xff] %v724_v41 }
  0x43   : > { %727 = vst [vmem:[%s11654_s29 + $0x150] sm:$0xff] %v726_v42 }
  0x44   : > { %729 = vst [vmem:[%s11654_s29 + $0x158] sm:$0xff] %v728_v43 }
  0x45   : > { %731 = vst [vmem:[%s11654_s29 + $0x160] sm:$0xff] %v730_v44 }
  0x46   : > { %733 = vst [vmem:[%s11654_s29 + $0x168] sm:$0xff] %v732_v45 }
  0x47   : > { %735 = vst [vmem:[%s11654_s29 + $0x170] sm:$0xff] %v734_v46 }
  0x48   : > { %737 = vst [vmem:[%s11654_s29 + $0x178] sm:$0xff] %v736_v47 }
  0x49   : > { %739 = vst [vmem:[%s11654_s29 + $0x180] sm:$0xff] %v738_v48 }
  0x4a   : > { %741 = vst [vmem:[%s11654_s29 + $0x188] sm:$0xff] %v740_v49 }
  0x4b   : > { %743 = vst [vmem:[%s11654_s29 + $0x190] sm:$0xff] %v742_v50 }
  0x4c   : > { %745 = vst [vmem:[%s11654_s29 + $0x198] sm:$0xff] %v744_v51 }
  0x4d   : > { %747 = vst [vmem:[%s11654_s29 + $0x1a0] sm:$0xff] %v746_v52 }
  0x4e   : > { %749 = vst [vmem:[%s11654_s29 + $0x1a8] sm:$0xff] %v748_v53 }
  0x4f   : > { %751 = vst [vmem:[%s11654_s29 + $0x1b0] sm:$0xff] %v750_v54 }
  0x50   : > { %753 = vst [vmem:[%s11654_s29 + $0x1b8] sm:$0xff] %v752_v55 }
  0x51   : > { %755 = vst [vmem:[%s11654_s29 + $0x1c0] sm:$0xff] %v754_v56 }
  0x52   : > { %757 = vst [vmem:[%s11654_s29 + $0x1c8] sm:$0xff] %v756_v57 }
  0x53   : > { %759 = vst [vmem:[%s11654_s29 + $0x1d0] sm:$0xff] %v758_v58 }
  0x54   : > { %761 = vst [vmem:[%s11654_s29 + $0x1d8] sm:$0xff] %v760_v59 }
  0x55   : > { %763 = vst [vmem:[%s11654_s29 + $0x1e0] sm:$0xff] %v762_v60 }
  0x56   : > { %765 = vst [vmem:[%s11654_s29 + $0x1e8] sm:$0xff] %v764_v61 }
  0x57   : > { %767 = vst [vmem:[%s11654_s29 + $0x1f0] sm:$0xff] %v766_v62 }
  0x58   : > { %769 = vst [vmem:[%s11654_s29 + $0x1f8] sm:$0xff] %v768_v63 }
  0x59 PF: > { %p9435_p5 = scmp.ge.s32.totalorder %s11521_s26, 1  ;;  %p774_p6 = scmp.lt.s32.totalorder %s11521_s26, 3 }
  0x5b   : > { %p775_p7 = pnand %p9435_p5, %p774_p6 }
  0x5d   : > { %778 = sbr.rel (%p775_p7) target bundleno = 4172 (0x104c), region = 122 }
  0x62   : > { %s17291_s19 = sld [smem:[#allocation125_spill]]  ;;  %vm1105_vm0 = vcmask 1043456   ;;  %s781_s1 = sand.u32 1, %s11513_s24   ;;  %vm912_vm1 = vcmask 31744   ;;  %v10812_v14 = vld [vmem:[%s17149_s3 + $0x8] sm:$0xff]  ;;  %v10811_v16 = vld [vmem:[%s17149_s3] sm:$0xff] }
  0x63   : > { %s9436_s20 = sshll.u32 %s781_s1, 9  ;;  %2241 = vmatpush.bf16.msra.mxu1 %v10812_v14  ;;  %11065 = vmatpush.bf16.msra.mxu3 %v10812_v14  ;;  %v11831_v21 = vld [vmem:[%s17148_s2] ss:$0 sm:$0xff]  ;;  %vm1946_vm2 = vcmask 261120   ;;  %s11524_s22 = smov 96   ;;  %vm3052_vm3 = vcmask 523264  }
  0x64   : > { %s11787_s21 = scalar_lea.vmem [#allocation2], %s9436_s20  ;;  %s9437_s20 = sshll.u32 %s9428_s27, 4 }
  0x65   : > { %v840_v1 = vld [vmem:[%s11787_s21] sm:$0xff]  ;;  %v841_v2 = vld [vmem:[%s11787_s21 + $0x8] sm:$0xff]  ;;  %v842_v3 = vld [vmem:[%s11787_s21 + $0x10] sm:$0xff]  ;;  %p834_p8 = scmp.lt.s32.totalorder %s9437_s20, 31 }
  0x66   : > { %v843_v4 = vld [vmem:[%s11787_s21 + $0x18] sm:$0xff]  ;;  %v844_v5 = vld [vmem:[%s11787_s21 + $0x20] sm:$0xff]  ;;  %v845_v6 = vld [vmem:[%s11787_s21 + $0x28] sm:$0xff] }
  0x67   : > { %v846_v7 = vld [vmem:[%s11787_s21 + $0x30] sm:$0xff]  ;;  %v847_v8 = vld [vmem:[%s11787_s21 + $0x38] sm:$0xff]  ;;  %v848_v9 = vld [vmem:[%s11787_s21 + $0x40] sm:$0xff]  ;;  %2242 = vmatpush.bf16.msra.mxu1 %v10811_v16  ;;  %11067 = vmatpush.bf16.msra.mxu3 %v10811_v16  ;;  %s17877_s20 = smov (!%p834_p8, %s9437_s20), 31 }
  0x68   : > { %v907_v0 = vld [vmem:[%s17291_s19] sm:$0xf]  ;;  %v849_v10 = vld [vmem:[%s11787_s21 + $0x48] sm:$0xff]  ;;  %v850_v11 = vld [vmem:[%s11787_s21 + $0x50] sm:$0xff]  ;;  %s11523_s19 = smov 112  }
  0x69   : > { %9487 = vmatpush.msk.msra.mxu0 %vm1105_vm0, %v907_v0  ;;  %11063 = vmatpush.msk.msra.mxu2 %vm1105_vm0, %v907_v0  ;;  %v851_v12 = vld [vmem:[%s11787_s21 + $0x58] sm:$0xff]  ;;  %v852_v13 = vld [vmem:[%s11787_s21 + $0x60] sm:$0xff]  ;;  %v853_v15 = vld [vmem:[%s11787_s21 + $0x68] sm:$0xff] }
  0x6a   : > { %9488 = vmatmul.msk.f32.vlgmr.msra.gmra.mxu0 %vm912_vm1, %v840_v1  ;;  %v854_v17 = vld [vmem:[%s11787_s21 + $0x70] sm:$0xff]  ;;  %v855_v18 = vld [vmem:[%s11787_s21 + $0x78] sm:$0xff]  ;;  %v9439_v20 = vld [vmem:[%s11787_s21 + $0x80] sm:$0xff] }
  0x6b   : > { %11064 = vmatpush.bf16.msrb.mxu2 %v10812_v14  ;;  %v9440_v24 = vld [vmem:[%s11787_s21 + $0x88] sm:$0xff]  ;;  %v9441_v31 = vld [vmem:[%s11787_s21 + $0x90] sm:$0xff]  ;;  %v9442_v34 = vld [vmem:[%s11787_s21 + $0x98] sm:$0xff] }
  0x6c   : > { %v9443_v41 = vld [vmem:[%s11787_s21 + $0xa0] sm:$0xff]  ;;  %v9444_v44 = vld [vmem:[%s11787_s21 + $0xa8] sm:$0xff]  ;;  %v9445_v51 = vld [vmem:[%s11787_s21 + $0xb0] sm:$0xff] }
  0x6d   : > { %v9446_v54 = vld [vmem:[%s11787_s21 + $0xb8] sm:$0xff]  ;;  %v9447_v61 = vld [vmem:[%s11787_s21 + $0xc0] sm:$0xff]  ;;  %v9448_v0 = vld [vmem:[%s11787_s21 + $0xc8] sm:$0xff] }
  0x6f   : > { %11066 = vmatpush.bf16.msrb.mxu2 %v10811_v16 }
  0x72   : > { %9489 = vmatmul.msk.f32.gmra.mxu0 %vm912_vm1, %v841_v2 }
  0x7a   : > { %9490 = vmatmul.msk.f32.gmra.mxu0 %vm912_vm1, %v842_v3 }
  0x82   : > { %9491 = vmatmul.msk.f32.gmra.mxu0 %vm912_vm1, %v843_v4 }
  0x8a   : > { %9492 = vmatmul.msk.f32.gmra.mxu0 %vm912_vm1, %v844_v5 }
  0x92   : > { %9493 = vmatmul.msk.f32.gmra.mxu0 %vm912_vm1, %v845_v6 }
  0x9a   : > { %9494 = vmatmul.msk.f32.gmra.mxu0 %vm912_vm1, %v846_v7  ;;  %v9449_v7 = vld [vmem:[%s11787_s21 + $0xd0] sm:$0xff] }
  0xa2   : > { %9495 = vmatmul.msk.f32.gmra.mxu0 %vm912_vm1, %v847_v8 }
  0xaa   : > { %9496 = vmatmul.msk.f32.gmra.mxu0 %vm912_vm1, %v848_v9 }
  0xb2   : > { %9497 = vmatmul.msk.f32.gmra.mxu0 %vm912_vm1, %v849_v10  ;;  %v9450_v10 = vld [vmem:[%s11787_s21 + $0xd8] sm:$0xff] }
  0xba   : > { %9498 = vmatmul.msk.f32.gmra.mxu0 %vm912_vm1, %v850_v11 }
  0xc2   : > { %9499 = vmatmul.msk.f32.gmra.mxu0 %vm912_vm1, %v851_v12 }
  0xca   : > { %9500 = vmatmul.msk.f32.gmra.mxu0 %vm912_vm1, %v852_v13 }
  0xd2   : > { %9501 = vmatmul.msk.f32.gmra.mxu0 %vm912_vm1, %v853_v15 }
  0xda   : > { %9502 = vmatmul.msk.f32.gmra.mxu0 %vm912_vm1, %v854_v17  ;;  %v9451_v17 = vld [vmem:[%s11787_s21 + $0xe0] sm:$0xff] }
  0xe2   : > { %9503 = vmatmul.msk.f32.gmra.mxu0 %vm912_vm1, %v855_v18 }
  0xe7   : > { %v1126_v19 = vpop.f32.mrf.mxu0 }
  0xe8   : > { %v1127_v22 = vadd.f32 %v11831_v21, %v1126_v19 }
  0xea   : > { %9504 = vmatmul.msk.f32.gmra.mxu0 %vm912_vm1, %v9439_v20  ;;  %v1318_v26 = vmax.f32 %v1127_v22, 0.0  ;;  %v9452_v20 = vld [vmem:[%s11787_s21 + $0xe8] sm:$0xff] }
  0xef   : > { %v1129_v23 = vpop.f32.mrf.mxu0 }
  0xf0   : > { %v1130_v25 = vadd.f32 %v11831_v21, %v1129_v23 }
  0xf2   : > { %v1319_v27 = vmax.f32 %v1130_v25, 0.0  ;;  %9505 = vmatmul.msk.f32.gmra.mxu0 %vm912_vm1, %v9440_v24 }
  0xf4   : > { %v1830_v28 = vpack.c.bf16 %v1319_v27, %v1318_v26  ;;  %v11838_v29 = vpack.i.bf16 %v1319_v27, %v1318_v26 }
  0xf6   : > { %9560 = vmatmul.msk.bf16.vlgmr.msra.gmra.mxu1 %vm1946_vm2, %v1830_v28  ;;  %v9453_v28 = vld [vmem:[%s11787_s21 + $0xf0] sm:$0xff] }
  0xf7   : > { %v1132_v30 = vpop.f32.mrf.mxu0 }
  0xf8   : > { %v1133_v32 = vadd.f32 %v11831_v21, %v1132_v30 }
  0xfa   : > { %9506 = vmatmul.msk.f32.gmra.mxu0 %vm912_vm1, %v9441_v31  ;;  %v1320_v36 = vmax.f32 %v1133_v32, 0.0  ;;  %v9454_v32 = vld [vmem:[%s11787_s21 + $0xf8] sm:$0xff] }
  0xff   : > { %v1135_v33 = vpop.f32.mrf.mxu0 }
 0x100   : > { %v1136_v35 = vadd.f32 %v11831_v21, %v1135_v33 }
 0x102   : > { %v1321_v37 = vmax.f32 %v1136_v35, 0.0  ;;  %9507 = vmatmul.msk.f32.gmra.mxu0 %vm912_vm1, %v9442_v34 }
 0x104   : > { %v11847_v38 = vpack.i.bf16 %v1321_v37, %v1320_v36  ;;  %v1831_v39 = vpack.c.bf16 %v1321_v37, %v1320_v36 }
 0x106   : > { %11123 = vrot.lane.b32.xlu2 %v11847_v38, %s11523_s19  ;;  %9561 = vmatmul.msk.bf16.gmra.mxu1 %vm1946_vm2, %v1831_v39 }
 0x107   : > { %v1138_v40 = vpop.f32.mrf.mxu0 }
 0x108   : > { %v1139_v42 = vadd.f32 %v11831_v21, %v1138_v40  ;;  %v9455_v40 = vld [vmem:[%s11787_s21 + $0x100] sm:$0xff] }
 0x10a   : > { %9508 = vmatmul.msk.f32.gmra.mxu0 %vm912_vm1, %v9443_v41  ;;  %v1322_v46 = vmax.f32 %v1139_v42, 0.0 }
 0x10f   : > { %v1141_v43 = vpop.f32.mrf.mxu0 }
 0x110   : > { %v1142_v45 = vadd.f32 %v11831_v21, %v1141_v43  ;;  %v9456_v43 = vld [vmem:[%s11787_s21 + $0x108] sm:$0xff] }
 0x112   : > { %v1323_v47 = vmax.f32 %v1142_v45, 0.0  ;;  %9509 = vmatmul.msk.f32.gmra.mxu0 %vm912_vm1, %v9444_v44 }
 0x114   : > { %v11858_v48 = vpack.i.bf16 %v1323_v47, %v1322_v46  ;;  %v1832_v49 = vpack.c.bf16 %v1323_v47, %v1322_v46 }
 0x116   : > { %11128 = vrot.lane.b32.xlu2 %v11858_v48, %s11523_s19  ;;  %9562 = vmatmul.msk.bf16.gmra.mxu1 %vm1946_vm2, %v1832_v49 }
 0x117   : > { %v1144_v50 = vpop.f32.mrf.mxu0 }
 0x118   : > { %v1145_v52 = vadd.f32 %v11831_v21, %v1144_v50 }
 0x11a   : > { %9510 = vmatmul.msk.f32.gmra.mxu0 %vm912_vm1, %v9445_v51  ;;  %v1324_v56 = vmax.f32 %v1145_v52, 0.0  ;;  %v11921_v51 = vld [vmem:[%s17150_s4] ss:$0 sm:$0xff] }
 0x11f   : > { %v1147_v53 = vpop.f32.mrf.mxu0 }
 0x120   : > { %v1148_v55 = vadd.f32 %v11831_v21, %v1147_v53  ;;  %v9457_v53 = vld [vmem:[%s11787_s21 + $0x110] sm:$0xff] }
 0x122   : > { %v1325_v57 = vmax.f32 %v1148_v55, 0.0  ;;  %9511 = vmatmul.msk.f32.gmra.mxu0 %vm912_vm1, %v9446_v54 }
 0x124   : > { %v1833_v58 = vpack.c.bf16 %v1325_v57, %v1324_v56  ;;  %v11869_v59 = vpack.i.bf16 %v1325_v57, %v1324_v56 }
 0x126   : > { %9563 = vmatmul.msk.bf16.gmra.mxu1 %vm1946_vm2, %v1833_v58 }
 0x127   : > { %v1150_v60 = vpop.f32.mrf.mxu0 }
 0x128   : > { %v1151_v62 = vadd.f32 %v11831_v21, %v1150_v60 }
 0x12a   : > { %9512 = vmatmul.msk.f32.gmra.mxu0 %vm912_vm1, %v9447_v61  ;;  %v1326_v2 = vmax.f32 %v1151_v62, 0.0  ;;  %v9458_v62 = vld [vmem:[%s11787_s21 + $0x118] sm:$0xff] }
 0x12f   : > { %v1153_v63 = vpop.f32.mrf.mxu0 }
 0x130   : > { %v1154_v1 = vadd.f32 %v11831_v21, %v1153_v63 }
 0x132   : > { %v1327_v3 = vmax.f32 %v1154_v1, 0.0  ;;  %9513 = vmatmul.msk.f32.gmra.mxu0 %vm912_vm1, %v9448_v0 }
 0x134   : > { %v1834_v4 = vpack.c.bf16 %v1327_v3, %v1326_v2  ;;  %v11878_v5 = vpack.i.bf16 %v1327_v3, %v1326_v2 }
 0x136   : > { %9564 = vmatmul.msk.bf16.gmra.mxu1 %vm1946_vm2, %v1834_v4 }
 0x137   : > { %v1156_v6 = vpop.f32.mrf.mxu0 }
 0x138   : > { %v1157_v8 = vadd.f32 %v11831_v21, %v1156_v6 }
 0x13a   : > { %9514 = vmatmul.msk.f32.gmra.mxu0 %vm912_vm1, %v9449_v7  ;;  %v1328_v12 = vmax.f32 %v1157_v8, 0.0  ;;  %v9459_v8 = vld [vmem:[%s11787_s21 + $0x120] sm:$0xff] }
 0x13f   : > { %v1159_v9 = vpop.f32.mrf.mxu0 }
 0x140   : > { %v1160_v11 = vadd.f32 %v11831_v21, %v1159_v9 }
 0x142   : > { %v1329_v13 = vmax.f32 %v1160_v11, 0.0  ;;  %9515 = vmatmul.msk.f32.gmra.mxu0 %vm912_vm1, %v9450_v10 }
 0x144   : > { %v11887_v14 = vpack.i.bf16 %v1329_v13, %v1328_v12  ;;  %v1835_v15 = vpack.c.bf16 %v1329_v13, %v1328_v12 }
 0x146   : > { %11143 = vrot.lane.b32.xlu2 %v11887_v14, %s11523_s19  ;;  %9565 = vmatmul.msk.bf16.gmra.mxu1 %vm1946_vm2, %v1835_v15 }
 0x147   : > { %v1162_v16 = vpop.f32.mrf.mxu0 }
 0x148   : > { %v1163_v18 = vadd.f32 %v11831_v21, %v1162_v16 }
 0x14a   : > { %9516 = vmatmul.msk.f32.gmra.mxu0 %vm912_vm1, %v9451_v17  ;;  %v1330_v23 = vmax.f32 %v1163_v18, 0.0  ;;  %v9460_v17 = vld [vmem:[%s11787_s21 + $0x128] sm:$0xff] }
 0x14f   : > { %v1165_v19 = vpop.f32.mrf.mxu0 }
 0x150   : > { %v1166_v22 = vadd.f32 %v11831_v21, %v1165_v19 }
 0x152   : > { %v1331_v24 = vmax.f32 %v1166_v22, 0.0  ;;  %9517 = vmatmul.msk.f32.gmra.mxu0 %vm912_vm1, %v9452_v20 }
 0x154   : > { %v1836_v25 = vpack.c.bf16 %v1331_v24, %v1330_v23  ;;  %v11898_v26 = vpack.i.bf16 %v1331_v24, %v1330_v23 }
 0x156   : > { %9566 = vmatmul.msk.bf16.gmra.mxu1 %vm1946_vm2, %v1836_v25 }
 0x157   : > { %v1168_v27 = vpop.f32.mrf.mxu0 }
 0x158   : > { %v1169_v30 = vadd.f32 %v11831_v21, %v1168_v27 }
 0x15a   : > { %9518 = vmatmul.msk.f32.gmra.mxu0 %vm912_vm1, %v9453_v28  ;;  %v1332_v34 = vmax.f32 %v1169_v30, 0.0  ;;  %v9461_v28 = vld [vmem:[%s11787_s21 + $0x130] sm:$0xff] }
 0x15f   : > { %v1171_v31 = vpop.f32.mrf.mxu0 }
 0x160   : > { %v1172_v33 = vadd.f32 %v11831_v21, %v1171_v31 }
 0x162   : > { %v1333_v35 = vmax.f32 %v1172_v33, 0.0  ;;  %9519 = vmatmul.msk.f32.gmra.mxu0 %vm912_vm1, %v9454_v32 }
 0x164   : > { %v1837_v36 = vpack.c.bf16 %v1333_v35, %v1332_v34  ;;  %v11907_v37 = vpack.i.bf16 %v1333_v35, %v1332_v34 }
 0x166   : > { %9567 = vmatmul.msk.bf16.gmra.mxu1 %vm1946_vm2, %v1837_v36 }
 0x167   : > { %v1174_v39 = vpop.f32.mrf.mxu0 }
 0x168   : > { %v1175_v41 = vadd.f32 %v11831_v21, %v1174_v39  ;;  %v9462_v39 = vld [vmem:[%s11787_s21 + $0x138] sm:$0xff] }
 0x16a   : > { %9520 = vmatmul.msk.f32.gmra.mxu0 %vm912_vm1, %v9455_v40  ;;  %v1334_v45 = vmax.f32 %v1175_v41, 0.0 }
 0x16f   : > { %v1177_v42 = vpop.f32.mrf.mxu0 }
 0x170   : > { %v1178_v44 = vadd.f32 %v11831_v21, %v1177_v42 }
 0x172   : > { %v1335_v46 = vmax.f32 %v1178_v44, 0.0  ;;  %9521 = vmatmul.msk.f32.gmra.mxu0 %vm912_vm1, %v9456_v43 }
 0x173   : > { %v2244_v47 = vpop.f32.mrf.mxu1 }
 0x174   : > { %v11916_v49 = vpack.i.bf16 %v1335_v46, %v1334_v45  ;;  %v1838_v50 = vpack.c.bf16 %v1335_v46, %v1334_v45  ;;  %v2245_v54 = vadd.f32 %v11921_v51, %v2244_v47 }
 0x176   : > { %11158 = vrot.lane.b32.xlu2 %v11916_v49, %s11523_s19  ;;  %9568 = vmatmul.msk.bf16.gmra.mxu1 %vm1946_vm2, %v1838_v50  ;;  %v2724_v57 = vmax.f32 %v2245_v54, 0.0  ;;  %v9463_v50 = vld [vmem:[%s11787_s21 + $0x140] sm:$0xff] }
 0x177   : > { %v1180_v52 = vpop.f32.mrf.mxu0 }
 0x178   : > { %v1181_v58 = vadd.f32 %v11831_v21, %v1180_v52 }
 0x17a   : > { %9522 = vmatmul.msk.f32.gmra.mxu0 %vm912_vm1, %v9457_v53  ;;  %v1336_v1 = vmax.f32 %v1181_v58, 0.0 }
 0x17b   : > { %v2246_v55 = vpop.f32.mrf.mxu1 }
 0x17c   : > { %v2247_v56 = vadd.f32 %v11921_v51, %v2246_v55 }
 0x17e   : > { %v2725_v60 = vmax.f32 %v2247_v56, 0.0 }
 0x17f   : > { %v1183_v61 = vpop.f32.mrf.mxu0 }
 0x180   : > { %v11932_v63 = vpack.c.bf16 %v2725_v60, %v2724_v57  ;;  %v1184_v0 = vadd.f32 %v11831_v21, %v1183_v61  ;;  %v9464_v60 = vld [vmem:[%s11787_s21 + $0x148] sm:$0xff] }
 0x182   : > { %v1337_v2 = vmax.f32 %v1184_v0, 0.0  ;;  %9523 = vmatmul.msk.f32.gmra.mxu0 %vm912_vm1, %v9458_v62 }
 0x183   : > { %v2249_v3 = vpop.f32.mrf.mxu1 }
 0x184   : > { %v1839_v4 = vpack.c.bf16 %v1337_v2, %v1336_v1  ;;  %v11936_v6 = vpack.i.bf16 %v1337_v2, %v1336_v1  ;;  %v2250_v9 = vadd.f32 %v11921_v51, %v2249_v3 }
 0x186   : > { %9569 = vmatmul.msk.bf16.gmra.mxu1 %vm1946_vm2, %v1839_v4  ;;  %v2726_v12 = vmax.f32 %v2250_v9, 0.0 }
 0x187   : > { %v1186_v7 = vpop.f32.mrf.mxu0 }
 0x188   : > { %v1187_v13 = vadd.f32 %v11831_v21, %v1186_v7 }
 0x18a   : > { %9524 = vmatmul.msk.f32.gmra.mxu0 %vm912_vm1, %v9459_v8  ;;  %v1338_v20 = vmax.f32 %v1187_v13, 0.0  ;;  %v9465_v8 = vld [vmem:[%s11787_s21 + $0x150] sm:$0xff] }
 0x18b   : > { %v2251_v10 = vpop.f32.mrf.mxu1 }
 0x18c   : > { %v2252_v11 = vadd.f32 %v11921_v51, %v2251_v10 }
 0x18e   : > { %v2727_v15 = vmax.f32 %v2252_v11, 0.0 }
 0x18f   : > { %v1189_v16 = vpop.f32.mrf.mxu0 }
 0x190   : > { %v1190_v18 = vadd.f32 %v11831_v21, %v1189_v16  ;;  %v11946_v19 = vpack.c.bf16 %v2727_v15, %v2726_v12 }
 0x192   : > { %v1339_v22 = vmax.f32 %v1190_v18, 0.0  ;;  %9525 = vmatmul.msk.f32.gmra.mxu0 %vm912_vm1, %v9460_v17  ;;  %v9466_v17 = vld [vmem:[%s11787_s21 + $0x158] sm:$0xff] }
 0x193   : > { %v2254_v23 = vpop.f32.mrf.mxu1 }
 0x194   : > { %v1840_v24 = vpack.c.bf16 %v1339_v22, %v1338_v20  ;;  %v11949_v25 = vpack.i.bf16 %v1339_v22, %v1338_v20  ;;  %v2255_v30 = vadd.f32 %v11921_v51, %v2254_v23 }
 0x196   : > { %9570 = vmatmul.msk.bf16.gmra.mxu1 %vm1946_vm2, %v1840_v24  ;;  %v2728_v33 = vmax.f32 %v2255_v30, 0.0 }
 0x197   : > { %v1192_v27 = vpop.f32.mrf.mxu0 }
 0x198   : > { %v1193_v34 = vadd.f32 %v11831_v21, %v1192_v27 }
 0x19a   : > { %9526 = vmatmul.msk.f32.gmra.mxu0 %vm912_vm1, %v9461_v28  ;;  %v1340_v42 = vmax.f32 %v1193_v34, 0.0 }
 0x19b   : > { %v2256_v31 = vpop.f32.mrf.mxu1 }
 0x19c   : > { %v2257_v32 = vadd.f32 %v11921_v51, %v2256_v31  ;;  %v9467_v31 = vld [vmem:[%s11787_s21 + $0x160] sm:$0xff] }
 0x19e   : > { %v2729_v35 = vmax.f32 %v2257_v32, 0.0 }
 0x19f   : > { %v1195_v36 = vpop.f32.mrf.mxu0 }
 0x1a0   : > { %v1196_v40 = vadd.f32 %v11831_v21, %v1195_v36  ;;  %v11959_v41 = vpack.c.bf16 %v2729_v35, %v2728_v33 }
 0x1a2   : > { %v1341_v43 = vmax.f32 %v1196_v40, 0.0  ;;  %9527 = vmatmul.msk.f32.gmra.mxu0 %vm912_vm1, %v9462_v39 }
 0x1a3   : > { %v2259_v44 = vpop.f32.mrf.mxu1 }
 0x1a4   : > { %v11962_v45 = vpack.i.bf16 %v1341_v43, %v1340_v42  ;;  %v1841_v46 = vpack.c.bf16 %v1341_v43, %v1340_v42  ;;  %v2260_v52 = vadd.f32 %v11921_v51, %v2259_v44  ;;  %v9468_v42 = vld [vmem:[%s11787_s21 + $0x168] sm:$0xff] }
 0x1a6   : > { %11173 = vrot.lane.b32.xlu2 %v11962_v45, %s11523_s19  ;;  %9571 = vmatmul.msk.bf16.gmra.mxu1 %vm1946_vm2, %v1841_v46  ;;  %v2730_v55 = vmax.f32 %v2260_v52, 0.0 }
 0x1a7   : > { %v1198_v47 = vpop.f32.mrf.mxu0 }
 0x1a8   : > { %v1199_v56 = vadd.f32 %v11831_v21, %v1198_v47 }
 0x1aa   : > { %9528 = vmatmul.msk.f32.gmra.mxu0 %vm912_vm1, %v9463_v50  ;;  %v1342_v0 = vmax.f32 %v1199_v56, 0.0 }
 0x1ab   : > { %v2261_v53 = vpop.f32.mrf.mxu1 }
 0x1ac   : > { %v2262_v54 = vadd.f32 %v11921_v51, %v2261_v53 }
 0x1ae   : > { %v2731_v57 = vmax.f32 %v2262_v54, 0.0 }
 0x1af   : > { %v1201_v58 = vpop.f32.mrf.mxu0 }
 0x1b0   : > { %v1202_v61 = vadd.f32 %v11831_v21, %v1201_v58  ;;  %v11974_v62 = vpack.c.bf16 %v2731_v57, %v2730_v55  ;;  %v9469_v55 = vld [vmem:[%s11787_s21 + $0x170] sm:$0xff] }
 0x1b2   : > { %v1343_v1 = vmax.f32 %v1202_v61, 0.0  ;;  %9529 = vmatmul.msk.f32.gmra.mxu0 %vm912_vm1, %v9464_v60 }
 0x1b3   : > { %v2264_v2 = vpop.f32.mrf.mxu1 }
 0x1b4   : > { %v1842_v3 = vpack.c.bf16 %v1343_v1, %v1342_v0  ;;  %v11977_v4 = vpack.i.bf16 %v1343_v1, %v1342_v0  ;;  %v2265_v9 = vadd.f32 %v11921_v51, %v2264_v2  ;;  %v9470_v2 = vld [vmem:[%s11787_s21 + $0x178] sm:$0xff] }
 0x1b6   : > { %9572 = vmatmul.msk.bf16.gmra.mxu1 %vm1946_vm2, %v1842_v3  ;;  %v2732_v12 = vmax.f32 %v2265_v9, 0.0 }
 0x1b7   : > { %v1204_v7 = vpop.f32.mrf.mxu0 }
 0x1b8   : > { %v1205_v13 = vadd.f32 %v11831_v21, %v1204_v7 }
 0x1ba   : > { %9530 = vmatmul.msk.f32.gmra.mxu0 %vm912_vm1, %v9465_v8  ;;  %v1344_v22 = vmax.f32 %v1205_v13, 0.0 }
 0x1bb   : > { %v2266_v10 = vpop.f32.mrf.mxu1 }
 0x1bc   : > { %v2267_v11 = vadd.f32 %v11921_v51, %v2266_v10 }
 0x1be   : > { %v2733_v15 = vmax.f32 %v2267_v11, 0.0 }
 0x1bf   : > { %v1207_v16 = vpop.f32.mrf.mxu0 }
 0x1c0   : > { %v1208_v18 = vadd.f32 %v11831_v21, %v1207_v16  ;;  %v11987_v20 = vpack.c.bf16 %v2733_v15, %v2732_v12  ;;  %v9471_v15 = vld [vmem:[%s11787_s21 + $0x180] sm:$0xff] }
 0x1c2   : > { %v1345_v23 = vmax.f32 %v1208_v18, 0.0  ;;  %9531 = vmatmul.msk.f32.gmra.mxu0 %vm912_vm1, %v9466_v17 }
 0x1c3   : > { %v2269_v24 = vpop.f32.mrf.mxu1 }
 0x1c4   : > { %v1843_v27 = vpack.c.bf16 %v1345_v23, %v1344_v22  ;;  %v11990_v28 = vpack.i.bf16 %v1345_v23, %v1344_v22  ;;  %v2270_v32 = vadd.f32 %v11921_v51, %v2269_v24 }
 0x1c6   : > { %9573 = vmatmul.msk.bf16.gmra.mxu1 %vm1946_vm2, %v1843_v27  ;;  %v2734_v35 = vmax.f32 %v2270_v32, 0.0 }
 0x1c7   : > { %v1210_v30 = vpop.f32.mrf.mxu0 }
 0x1c8   : > { %v1211_v36 = vadd.f32 %v11831_v21, %v1210_v30  ;;  %v9472_v30 = vld [vmem:[%s11787_s21 + $0x188] sm:$0xff] }
 0x1ca   : > { %9532 = vmatmul.msk.f32.gmra.mxu0 %vm912_vm1, %v9467_v31  ;;  %v1346_v46 = vmax.f32 %v1211_v36, 0.0 }
 0x1cb   : > { %v2271_v33 = vpop.f32.mrf.mxu1 }
 0x1cc   : > { %v2272_v34 = vadd.f32 %v11921_v51, %v2271_v33 }
 0x1ce   : > { %v2735_v39 = vmax.f32 %v2272_v34, 0.0 }
 0x1cf   : > { %v1213_v40 = vpop.f32.mrf.mxu0 }
 0x1d0   : > { %v1214_v43 = vadd.f32 %v11831_v21, %v1213_v40  ;;  %v12000_v44 = vpack.c.bf16 %v2735_v39, %v2734_v35 }
 0x1d2   : > { %v1347_v47 = vmax.f32 %v1214_v43, 0.0  ;;  %9533 = vmatmul.msk.f32.gmra.mxu0 %vm912_vm1, %v9468_v42  ;;  %v9473_v42 = vld [vmem:[%s11787_s21 + $0x190] sm:$0xff] }
 0x1d3   : > { %v2274_v50 = vpop.f32.mrf.mxu1 }
 0x1d4   : > { %v1844_v52 = vpack.c.bf16 %v1347_v47, %v1346_v46  ;;  %v12003_v53 = vpack.i.bf16 %v1347_v47, %v1346_v46  ;;  %v2275_v56 = vadd.f32 %v11921_v51, %v2274_v50 }
 0x1d6   : > { %11188 = vrot.lane.b32.xlu2 %v12003_v53, %s11523_s19  ;;  %9574 = vmatmul.msk.bf16.gmra.mxu1 %vm1946_vm2, %v1844_v52  ;;  %v2736_v60 = vmax.f32 %v2275_v56, 0.0  ;;  %v9474_v56 = vld [vmem:[%s11787_s21 + $0x198] sm:$0xff] }
 0x1d7   : > { %v1216_v54 = vpop.f32.mrf.mxu0 }
 0x1d8   : > { %v1217_v61 = vadd.f32 %v11831_v21, %v1216_v54 }
 0x1da   : > { %9534 = vmatmul.msk.f32.gmra.mxu0 %vm912_vm1, %v9469_v55  ;;  %v1348_v8 = vmax.f32 %v1217_v61, 0.0 }
 0x1db   : > { %v2276_v57 = vpop.f32.mrf.mxu1 }
 0x1dc   : > { %v2277_v58 = vadd.f32 %v11921_v51, %v2276_v57 }
 0x1de   : > { %v2737_v0 = vmax.f32 %v2277_v58, 0.0 }
 0x1df   : > { %v1219_v1 = vpop.f32.mrf.mxu0 }
 0x1e0   : > { %v1220_v3 = vadd.f32 %v11831_v21, %v1219_v1  ;;  %v12015_v7 = vpack.c.bf16 %v2737_v0, %v2736_v60 }
 0x1e2   : > { %v1349_v9 = vmax.f32 %v1220_v3, 0.0  ;;  %9535 = vmatmul.msk.f32.gmra.mxu0 %vm912_vm1, %v9470_v2 }
 0x1e3   : > { %v2279_v10 = vpop.f32.mrf.mxu1 }
 0x1e4   : > { %v1845_v11 = vpack.c.bf16 %v1349_v9, %v1348_v8  ;;  %v12018_v12 = vpack.i.bf16 %v1349_v9, %v1348_v8  ;;  %v2280_v16 = vadd.f32 %v11921_v51, %v2279_v10  ;;  %v9475_v8 = vld [vmem:[%s11787_s21 + $0x1a0] sm:$0xff] }
 0x1e6   : > { %9575 = vmatmul.msk.bf16.gmra.mxu1 %vm1946_vm2, %v1845_v11  ;;  %v2738_v22 = vmax.f32 %v2280_v16, 0.0 }
 0x1e7   : > { %v1222_v13 = vpop.f32.mrf.mxu0 }
 0x1e8   : > { %v1223_v23 = vadd.f32 %v11831_v21, %v1222_v13 }
 0x1ea   : > { %9536 = vmatmul.msk.f32.gmra.mxu0 %vm912_vm1, %v9471_v15  ;;  %v1350_v33 = vmax.f32 %v1223_v23, 0.0 }
 0x1eb   : > { %v2281_v17 = vpop.f32.mrf.mxu1 }
 0x1ec   : > { %v2282_v18 = vadd.f32 %v11921_v51, %v2281_v17 }
 0x1ee   : > { %v2739_v24 = vmax.f32 %v2282_v18, 0.0  ;;  %v9476_v18 = vld [vmem:[%s11787_s21 + $0x1a8] sm:$0xff] }
 0x1ef   : > { %v1225_v27 = vpop.f32.mrf.mxu0 }
 0x1f0   : > { %v1226_v31 = vadd.f32 %v11831_v21, %v1225_v27  ;;  %v12028_v32 = vpack.c.bf16 %v2739_v24, %v2738_v22 }
 0x1f2   : > { %17292 = vst [vmem:[#allocation3_spill] sm:$0xff] %v12028_v32  ;;  %v1351_v34 = vmax.f32 %v1226_v31, 0.0  ;;  %9537 = vmatmul.msk.f32.gmra.mxu0 %vm912_vm1, %v9472_v30 }
 0x1f3   : > { %v2284_v35 = vpop.f32.mrf.mxu1 }
 0x1f4   : > { %v1846_v36 = vpack.c.bf16 %v1351_v34, %v1350_v33  ;;  %v12031_v39 = vpack.i.bf16 %v1351_v34, %v1350_v33  ;;  %v2285_v43 = vadd.f32 %v11921_v51, %v2284_v35  ;;  %v9477_v35 = vld [vmem:[%s11787_s21 + $0x1b0] sm:$0xff] }
 0x1f6   : > { %9576 = vmatmul.msk.bf16.gmra.mxu1 %vm1946_vm2, %v1846_v36  ;;  %v2740_v50 = vmax.f32 %v2285_v43, 0.0 }
 0x1f7   : > { %v1228_v40 = vpop.f32.mrf.mxu0 }
 0x1f8   : > { %v1229_v52 = vadd.f32 %v11831_v21, %v1228_v40 }
 0x1fa   : > { %9538 = vmatmul.msk.f32.gmra.mxu0 %vm912_vm1, %v9473_v42  ;;  %v1352_v60 = vmax.f32 %v1229_v52, 0.0  ;;  %v9478_v52 = vld [vmem:[%s11787_s21 + $0x1b8] sm:$0xff] }
 0x1fb   : > { %v2286_v46 = vpop.f32.mrf.mxu1 }
 0x1fc   : > { %v2287_v47 = vadd.f32 %v11921_v51, %v2286_v46 }
 0x1fe   : > { %v2741_v54 = vmax.f32 %v2287_v47, 0.0 }
 0x1ff   : > { %v1231_v55 = vpop.f32.mrf.mxu0 }
 0x200   : > { %v12040_v57 = vpack.c.bf16 %v2741_v54, %v2740_v50  ;;  %v1232_v58 = vadd.f32 %v11831_v21, %v1231_v55 }
 0x202   : > { %v1353_v61 = vmax.f32 %v1232_v58, 0.0  ;;  %9539 = vmatmul.msk.f32.gmra.mxu0 %vm912_vm1, %v9474_v56 }
 0x203   : > { %v2289_v0 = vpop.f32.mrf.mxu1 }
 0x204   : > { %v1847_v1 = vpack.c.bf16 %v1353_v61, %v1352_v60  ;;  %v12044_v2 = vpack.i.bf16 %v1353_v61, %v1352_v60  ;;  %v2290_v9 = vadd.f32 %v11921_v51, %v2289_v0 }
 0x206   : > { %11203 = vrot.lane.b32.xlu2 %v12044_v2, %s11523_s19  ;;  %9577 = vmatmul.msk.bf16.gmra.mxu1 %vm1946_vm2, %v1847_v1  ;;  %v2742_v13 = vmax.f32 %v2290_v9, 0.0 }
 0x207   : > { %v1234_v3 = vpop.f32.mrf.mxu0 }
 0x208   : > { %v1235_v15 = vadd.f32 %v11831_v21, %v1234_v3  ;;  %v9479_v3 = vld [vmem:[%s11787_s21 + $0x1c0] sm:$0xff] }
 0x20a   : > { %9540 = vmatmul.msk.f32.gmra.mxu0 %vm912_vm1, %v9475_v8  ;;  %v1354_v24 = vmax.f32 %v1235_v15, 0.0 }
 0x20b   : > { %v2291_v10 = vpop.f32.mrf.mxu1 }
 0x20c   : > { %v2292_v11 = vadd.f32 %v11921_v51, %v2291_v10 }
 0x20e   : > { %v2743_v16 = vmax.f32 %v2292_v11, 0.0 }
 0x20f   : > { %v1237_v17 = vpop.f32.mrf.mxu0 }
 0x210   : > { %v1238_v22 = vadd.f32 %v11831_v21, %v1237_v17  ;;  %v12056_v23 = vpack.c.bf16 %v2743_v16, %v2742_v13  ;;  %v9480_v17 = vld [vmem:[%s11787_s21 + $0x1c8] sm:$0xff] }
 0x212   : > { %v1355_v27 = vmax.f32 %v1238_v22, 0.0  ;;  %9541 = vmatmul.msk.f32.gmra.mxu0 %vm912_vm1, %v9476_v18 }
 0x213   : > { %v2294_v30 = vpop.f32.mrf.mxu1 }
 0x214   : > { %v1848_v31 = vpack.c.bf16 %v1355_v27, %v1354_v24  ;;  %v12059_v33 = vpack.i.bf16 %v1355_v27, %v1354_v24  ;;  %v2295_v36 = vadd.f32 %v11921_v51, %v2294_v30 }
 0x216   : > { %9578 = vmatmul.msk.bf16.gmra.mxu1 %vm1946_vm2, %v1848_v31  ;;  %v2744_v43 = vmax.f32 %v2295_v36, 0.0  ;;  %v9486_v31 = vld [vmem:[%s11787_s21 + $0x1f8] sm:$0xff] }
 0x217   : > { %v1240_v34 = vpop.f32.mrf.mxu0  ;;  %9551 = vmatmul.msk.f32.vlgmr.msra.gmra.mxu2 %vm912_vm1, %v9486_v31 }
 0x218   : > { %v1241_v46 = vadd.f32 %v11831_v21, %v1240_v34 }
 0x21a   : > { %9542 = vmatmul.msk.f32.gmra.mxu0 %vm912_vm1, %v9477_v35  ;;  %v1356_v56 = vmax.f32 %v1241_v46, 0.0 }
 0x21b   : > { %v2296_v40 = vpop.f32.mrf.mxu1 }
 0x21c   : > { %v2297_v42 = vadd.f32 %v11921_v51, %v2296_v40  ;;  %v9481_v40 = vld [vmem:[%s11787_s21 + $0x1d0] sm:$0xff] }
 0x21e   : > { %v2745_v47 = vmax.f32 %v2297_v42, 0.0 }
 0x21f   : > { %v1243_v50 = vpop.f32.mrf.mxu0 }
 0x220   : > { %v1244_v54 = vadd.f32 %v11831_v21, %v1243_v50  ;;  %v12069_v55 = vpack.c.bf16 %v2745_v47, %v2744_v43 }
 0x222   : > { %v1357_v58 = vmax.f32 %v1244_v54, 0.0  ;;  %9543 = vmatmul.msk.f32.gmra.mxu0 %vm912_vm1, %v9478_v52 }
 0x223   : > { %v2299_v60 = vpop.f32.mrf.mxu1 }
 0x224   : > { %v1849_v61 = vpack.c.bf16 %v1357_v58, %v1356_v56  ;;  %v12072_v0 = vpack.i.bf16 %v1357_v58, %v1356_v56  ;;  %v2300_v8 = vadd.f32 %v11921_v51, %v2299_v60  ;;  %v9482_v56 = vld [vmem:[%s11787_s21 + $0x1d8] sm:$0xff] }
 0x226   : > { %9579 = vmatmul.msk.bf16.gmra.mxu1 %vm1946_vm2, %v1849_v61  ;;  %v2746_v11 = vmax.f32 %v2300_v8, 0.0 }
 0x227   : > { %v1246_v1 = vpop.f32.mrf.mxu0 }
 0x228   : > { %v1247_v13 = vadd.f32 %v11831_v21, %v1246_v1 }
 0x22a   : > { %9544 = vmatmul.msk.f32.gmra.mxu0 %vm912_vm1, %v9479_v3  ;;  %v1358_v24 = vmax.f32 %v1247_v13, 0.0 }
 0x22b   : > { %v2301_v9 = vpop.f32.mrf.mxu1 }
 0x22c   : > { %v2302_v10 = vadd.f32 %v11921_v51, %v2301_v9 }
 0x22e   : > { %v2747_v15 = vmax.f32 %v2302_v10, 0.0 }
 0x22f   : > { %v1249_v16 = vpop.f32.mrf.mxu0 }
 0x230   : > { %v1250_v18 = vadd.f32 %v11831_v21, %v1249_v16  ;;  %v12082_v22 = vpack.c.bf16 %v2747_v15, %v2746_v11  ;;  %v9483_v11 = vld [vmem:[%s11787_s21 + $0x1e0] sm:$0xff] }
 0x232   : > { %v1359_v27 = vmax.f32 %v1250_v18, 0.0  ;;  %9545 = vmatmul.msk.f32.gmra.mxu0 %vm912_vm1, %v9480_v17 }
 0x233   : > { %v2304_v30 = vpop.f32.mrf.mxu1 }
 0x234   : > { %v1850_v34 = vpack.c.bf16 %v1359_v27, %v1358_v24  ;;  %v12086_v35 = vpack.i.bf16 %v1359_v27, %v1358_v24  ;;  %v2305_v42 = vadd.f32 %v11921_v51, %v2304_v30  ;;  %v9484_v30 = vld [vmem:[%s11787_s21 + $0x1e8] sm:$0xff] }
 0x236   : > { %11218 = vrot.lane.b32.xlu2 %v12086_v35, %s11523_s19  ;;  %9580 = vmatmul.msk.bf16.gmra.mxu1 %vm1946_vm2, %v1850_v34  ;;  %v2748_v47 = vmax.f32 %v2305_v42, 0.0 }
 0x237   : > { %v1252_v36 = vpop.f32.mrf.mxu0 }
 0x238   : > { %v1253_v50 = vadd.f32 %v11831_v21, %v1252_v36 }
 0x23a   : > { %9546 = vmatmul.msk.f32.gmra.mxu0 %vm912_vm1, %v9481_v40  ;;  %v1360_v61 = vmax.f32 %v1253_v50, 0.0  ;;  %v9485_v50 = vld [vmem:[%s11787_s21 + $0x1f0] sm:$0xff] }
 0x23b   : > { %v2306_v43 = vpop.f32.mrf.mxu1 }
 0x23c   : > { %v2307_v46 = vadd.f32 %v11921_v51, %v2306_v43 }
 0x23e   : > { %v2749_v52 = vmax.f32 %v2307_v46, 0.0 }
 0x23f   : > { %v1255_v54 = vpop.f32.mrf.mxu0 }
 0x240   : > { %v1256_v58 = vadd.f32 %v11831_v21, %v1255_v54  ;;  %v12099_v60 = vpack.c.bf16 %v2749_v52, %v2748_v47 }
 0x242   : > { %v1361_v1 = vmax.f32 %v1256_v58, 0.0  ;;  %9547 = vmatmul.msk.f32.gmra.mxu0 %vm912_vm1, %v9482_v56 }
 0x243   : > { %v2309_v3 = vpop.f32.mrf.mxu1 }
 0x244   : > { %v1851_v8 = vpack.c.bf16 %v1361_v1, %v1360_v61  ;;  %v12102_v9 = vpack.i.bf16 %v1361_v1, %v1360_v61  ;;  %v2310_v13 = vadd.f32 %v11921_v51, %v2309_v3 }
 0x246   : > { %9581 = vmatmul.msk.bf16.gmra.mxu1 %vm1946_vm2, %v1851_v8  ;;  %v2750_v17 = vmax.f32 %v2310_v13, 0.0 }
 0x247   : > { %v1258_v10 = vpop.f32.mrf.mxu0 }
 0x248   : > { %v1259_v18 = vadd.f32 %v11831_v21, %v1258_v10 }
 0x24a   : > { %9548 = vmatmul.msk.f32.gmra.mxu0 %vm912_vm1, %v9483_v11  ;;  %v1362_v36 = vmax.f32 %v1259_v18, 0.0 }
 0x24b   : > { %v2311_v15 = vpop.f32.mrf.mxu1 }
 0x24c   : > { %v2312_v16 = vadd.f32 %v11921_v51, %v2311_v15 }
 0x24e   : > { %v2751_v24 = vmax.f32 %v2312_v16, 0.0 }
 0x24f   : > { %v1261_v27 = vpop.f32.mrf.mxu0 }
 0x250   : > { %v1262_v31 = vadd.f32 %v11831_v21, %v1261_v27  ;;  %v12112_v34 = vpack.c.bf16 %v2751_v24, %v2750_v17 }
 0x252   : > { %v1363_v40 = vmax.f32 %v1262_v31, 0.0  ;;  %9549 = vmatmul.msk.f32.gmra.mxu0 %vm912_vm1, %v9484_v30 }
 0x253   : > { %v2314_v42 = vpop.f32.mrf.mxu1 }
 0x254   : > { %v1852_v43 = vpack.c.bf16 %v1363_v40, %v1362_v36  ;;  %v12115_v46 = vpack.i.bf16 %v1363_v40, %v1362_v36  ;;  %v2315_v52 = vadd.f32 %v11921_v51, %v2314_v42 }
 0x256   : > { %9582 = vmatmul.msk.bf16.gmra.mxu1 %vm1946_vm2, %v1852_v43  ;;  %v2752_v58 = vmax.f32 %v2315_v52, 0.0 }
 0x257   : > { %v1264_v47 = vpop.f32.mrf.mxu0 }
 0x258   : > { %v1265_v61 = vadd.f32 %v11831_v21, %v1264_v47 }
 0x25a   : > { %9550 = vmatmul.msk.f32.gmra.mxu0 %vm912_vm1, %v9485_v50  ;;  %v1364_v11 = vmax.f32 %v1265_v61, 0.0 }
 0x25b   : > { %v2316_v54 = vpop.f32.mrf.mxu1 }
 0x25c   : > { %v2317_v56 = vadd.f32 %v11921_v51, %v2316_v54 }
 0x25e   : > { %v2753_v1 = vmax.f32 %v2317_v56, 0.0 }
 0x25f   : > { %v1267_v3 = vpop.f32.mrf.mxu0 }
 0x260   : > { %v1268_v8 = vadd.f32 %v11831_v21, %v1267_v3  ;;  %v12124_v10 = vpack.c.bf16 %v2753_v1, %v2752_v58 }
 0x262   : > { %v1365_v13 = vmax.f32 %v1268_v8, 0.0 }
 0x263   : > { %v2319_v15 = vpop.f32.mrf.mxu1 }
 0x264   : > { %v1853_v16 = vpack.c.bf16 %v1365_v13, %v1364_v11  ;;  %v12126_v17 = vpack.i.bf16 %v1365_v13, %v1364_v11  ;;  %v2320_v24 = vadd.f32 %v11921_v51, %v2319_v15 }
 0x266   : > { %11233 = vrot.lane.b32.xlu2 %v12126_v17, %s11523_s19  ;;  %9583 = vmatmul.msk.bf16.gmra.mxu1 %vm1946_vm2, %v1853_v16  ;;  %v2754_v31 = vmax.f32 %v2320_v24, 0.0 }
 0x267   : > { %v1270_v18 = vpop.f32.mrf.mxu0 }
 0x268   : > { %v1271_v36 = vadd.f32 %v11831_v21, %v1270_v18 }
 0x26a   : > { %v1366_v50 = vmax.f32 %v1271_v36, 0.0 }
 0x26b   : > { %v2321_v27 = vpop.f32.mrf.mxu1 }
 0x26c   : > { %v2322_v30 = vadd.f32 %v11921_v51, %v2321_v27 }
 0x26e   : > { %v2755_v40 = vmax.f32 %v2322_v30, 0.0 }
 0x26f   : > { %v1273_v42 = vpop.f32.mrf.mxu0 }
 0x270   : > { %v1274_v43 = vadd.f32 %v11831_v21, %v1273_v42  ;;  %v12135_v47 = vpack.c.bf16 %v2755_v40, %v2754_v31 }
 0x272   : > { %v1367_v52 = vmax.f32 %v1274_v43, 0.0 }
 0x273   : > { %v2324_v54 = vpop.f32.mrf.mxu1 }
 0x274   : > { %v1854_v56 = vpack.c.bf16 %v1367_v52, %v1366_v50  ;;  %v12137_v58 = vpack.i.bf16 %v1367_v52, %v1366_v50  ;;  %v2325_v1 = vadd.f32 %v11921_v51, %v2324_v54 }
 0x276   : > { %9584 = vmatmul.msk.bf16.gmra.mxu1 %vm1946_vm2, %v1854_v56  ;;  %v2756_v11 = vmax.f32 %v2325_v1, 0.0 }
 0x277   : > { %v1276_v61 = vpop.f32.mrf.mxu0 }
 0x278   : > { %v1277_v13 = vadd.f32 %v11831_v21, %v1276_v61 }
 0x27a   : > { %v1368_v27 = vmax.f32 %v1277_v13, 0.0 }
 0x27b   : > { %v2326_v3 = vpop.f32.mrf.mxu1 }
 0x27c   : > { %v2327_v8 = vadd.f32 %v11921_v51, %v2326_v3 }
 0x27e   : > { %v2757_v15 = vmax.f32 %v2327_v8, 0.0 }
 0x27f   : > { %v1279_v16 = vpop.f32.mrf.mxu0 }
 0x280   : > { %v1280_v18 = vadd.f32 %v11831_v21, %v1279_v16  ;;  %v12144_v24 = vpack.c.bf16 %v2757_v15, %v2756_v11 }
 0x282   : > { %17293 = vst [vmem:[#allocation4_spill] sm:$0xff] %v12144_v24  ;;  %v1369_v30 = vmax.f32 %v1280_v18, 0.0 }
 0x283   : > { %v2329_v31 = vpop.f32.mrf.mxu1 }
 0x284   : > { %v1855_v36 = vpack.c.bf16 %v1369_v30, %v1368_v27  ;;  %v12146_v40 = vpack.i.bf16 %v1369_v30, %v1368_v27  ;;  %v2330_v43 = vadd.f32 %v11921_v51, %v2329_v31 }
 0x286   : > { %9585 = vmatmul.msk.bf16.gmra.mxu1 %vm1946_vm2, %v1855_v36  ;;  %v2758_v54 = vmax.f32 %v2330_v43, 0.0 }
 0x287   : > { %v1282_v42 = vpop.f32.mrf.mxu0 }
 0x288   : > { %v1283_v56 = vadd.f32 %v11831_v21, %v1282_v42 }
 0x28a   : > { %v1370_v11 = vmax.f32 %v1283_v56, 0.0  ;;  %v11491_v56 = vld [vmem:[%s17148_s2] ss:$0 sm:$0xff] }
 0x28b   : > { %v2331_v50 = vpop.f32.mrf.mxu1 }
 0x28c   : > { %v2332_v52 = vadd.f32 %v11921_v51, %v2331_v50 }
 0x28e   : > { %v2759_v61 = vmax.f32 %v2332_v52, 0.0 }
 0x28f   : > { %v1285_v1 = vpop.f32.mrf.mxu0 }
 0x290   : > { %v1286_v3 = vadd.f32 %v11831_v21, %v1285_v1  ;;  %v12153_v8 = vpack.c.bf16 %v2759_v61, %v2758_v54 }
 0x292   : > { %17294 = vst [vmem:[#allocation5_spill] sm:$0xff] %v12153_v8  ;;  %v1371_v13 = vmax.f32 %v1286_v3, 0.0 }
 0x293   : > { %v2334_v15 = vpop.f32.mrf.mxu1 }
 0x294   : > { %v1856_v16 = vpack.c.bf16 %v1371_v13, %v1370_v11  ;;  %v12155_v18 = vpack.i.bf16 %v1371_v13, %v1370_v11  ;;  %v2335_v30 = vadd.f32 %v11921_v51, %v2334_v15 }
 0x296   : > { %11248 = vrot.lane.b32.xlu2 %v12155_v18, %s11523_s19  ;;  %9586 = vmatmul.msk.bf16.gmra.mxu1 %vm1946_vm2, %v1856_v16  ;;  %v2760_v42 = vmax.f32 %v2335_v30, 0.0 }
 0x297   : > { %v1288_v27 = vpop.f32.mrf.mxu0 }
 0x298   : > { %v1289_v43 = vadd.f32 %v11831_v21, %v1288_v27 }
 0x29a   : > { %v1372_v1 = vmax.f32 %v1289_v43, 0.0 }
 0x29b   : > { %v2336_v31 = vpop.f32.mrf.mxu1 }
 0x29c   : > { %v2337_v36 = vadd.f32 %v11921_v51, %v2336_v31 }
 0x29e   : > { %v2761_v50 = vmax.f32 %v2337_v36, 0.0 }
 0x29f   : > { %v1291_v52 = vpop.f32.mrf.mxu0 }
 0x2a0   : > { %v12163_v54 = vpack.c.bf16 %v2761_v50, %v2760_v42  ;;  %v1292_v61 = vadd.f32 %v11491_v56, %v1291_v52 }
 0x2a2   : > { %17295 = vst [vmem:[#allocation6_spill] sm:$0xff] %v12163_v54  ;;  %v1373_v3 = vmax.f32 %v1292_v61, 0.0 }
 0x2a3   : > { %v2339_v11 = vpop.f32.mrf.mxu1 }
 0x2a4   : > { %v1857_v13 = vpack.c.bf16 %v1373_v3, %v1372_v1  ;;  %v12168_v15 = vpack.i.bf16 %v1373_v3, %v1372_v1  ;;  %v2340_v21 = vadd.f32 %v11921_v51, %v2339_v11 }
 0x2a6   : > { %9587 = vmatmul.msk.bf16.gmra.mxu1 %vm1946_vm2, %v1857_v13  ;;  %v2762_v31 = vmax.f32 %v2340_v21, 0.0 }
 0x2a7   : > { %v1294_v16 = vpop.f32.mrf.mxu0 }
 0x2a8   : > { %v1295_v36 = vadd.f32 %v11491_v56, %v1294_v16 }
 0x2aa   : > { %v1374_v52 = vmax.f32 %v1295_v36, 0.0  ;;  %v1315_v36 = vpop.f32.mrf.mxu2 }
 0x2ab   : > { %v2341_v27 = vpop.f32.mrf.mxu1 }
 0x2ac   : > { %v2342_v30 = vadd.f32 %v11921_v51, %v2341_v27 }
 0x2ae   : > { %v2763_v42 = vmax.f32 %v2342_v30, 0.0 }
 0x2af   : > { %v1297_v50 = vpop.f32.mrf.mxu0 }
 0x2b0   : > { %v12173_v54 = vpack.c.bf16 %v2763_v42, %v2762_v31  ;;  %v1298_v43 = vadd.f32 %v11491_v56, %v1297_v50 }
 0x2b2   : > { %v1375_v61 = vmax.f32 %v1298_v43, 0.0 }
 0x2b4   : > { %v1858_v8 = vpack.c.bf16 %v1375_v61, %v1374_v52  ;;  %v12175_v1 = vpack.i.bf16 %v1375_v61, %v1374_v52 }
 0x2b6   : > { %9588 = vmatmul.msk.bf16.gmra.mxu1 %vm1946_vm2, %v1858_v8 }
 0x2b7   : > { %v1300_v3 = vpop.f32.mrf.mxu0 }
 0x2b8   : > { %v1301_v13 = vadd.f32 %v11491_v56, %v1300_v3 }
 0x2ba   : > { %v1376_v32 = vmax.f32 %v1301_v13, 0.0 }
 0x2bf   : > { %v1303_v11 = vpop.f32.mrf.mxu0 }
 0x2c0   : > { %v1304_v24 = vadd.f32 %v11491_v56, %v1303_v11 }
 0x2c2   : > { %v1377_v51 = vmax.f32 %v1304_v24, 0.0  ;;  %v1316_v24 = vadd.f32 %v11491_v56, %v1315_v36  ;;  %v10817_v36 = vld [vmem:[%s17152_s6] sm:$0xff] }
 0x2c4   : > { %v1859_v21 = vpack.c.bf16 %v1377_v51, %v1376_v32  ;;  %v11262_v16 = vpack.i.bf16 %v1377_v51, %v1376_v32  ;;  %v1381_v3 = vmax.f32 %v1316_v24, 0.0 }
 0x2c6   : > { %11263 = vrot.lane.b32.xlu2 %v11262_v16, %s11523_s19  ;;  %9589 = vmatmul.msk.bf16.gmra.mxu1 %vm1946_vm2, %v1859_v21 }
 0x2c7   : > { %v1306_v27 = vpop.f32.mrf.mxu0 }
 0x2c8   : > { %v1307_v30 = vadd.f32 %v11491_v56, %v1306_v27  ;;  %v10815_v27 = vld [vmem:[%s17151_s5 + $0x10] sm:$0xff] }
 0x2ca   : > { %v1378_v42 = vmax.f32 %v1307_v30, 0.0  ;;  %v10819_v30 = vld [vmem:[%s17152_s6 + $0x10] sm:$0xff] }
 0x2ce   : > { %11278 = vrot.lane.b32.xlu2 %v11838_v29, %s11524_s22 }
 0x2cf   : > { %v1309_v31 = vpop.f32.mrf.mxu0 }
 0x2d0   : > { %v1310_v8 = vadd.f32 %v11491_v56, %v1309_v31 }
 0x2d2   : > { %v1379_v50 = vmax.f32 %v1310_v8, 0.0  ;;  %v10818_v8 = vld [vmem:[%s17152_s6 + $0x8] sm:$0xff] }
 0x2d4   : > { %v1860_v43 = vpack.c.bf16 %v1379_v50, %v1378_v42  ;;  %v11102_v52 = vpack.i.bf16 %v1379_v50, %v1378_v42 }
 0x2d6   : > { %11103 = vrot.lane.b32.xlu0 %v11102_v52, %s11524_s22  ;;  %11293 = vrot.lane.b32.xlu2 %v11869_v59, %s11524_s22 }
 0x2d7   : > { %9590 = vmatmul.msk.bf16.gmra.mxu1 %vm1946_vm2, %v1860_v43  ;;  %v1312_v32 = vpop.f32.mrf.mxu0 }
 0x2d8   : > { %v1313_v61 = vadd.f32 %v11491_v56, %v1312_v32  ;;  %v12197_v56 = vpop.f32.mrf.mxu1 }
 0x2da   : > { %v1380_v13 = vmax.f32 %v1313_v61, 0.0 }
 0x2dc   : > { %v11112_v11 = vpack.i.bf16 %v1381_v3, %v1380_v13  ;;  %v1861_v51 = vpack.c.bf16 %v1381_v3, %v1380_v13 }
 0x2de   : > { %11113 = vrot.lane.b32.xlu1 %v11112_v11, %s11524_s22  ;;  %11108 = vrot.lane.b32.xlu0 %v11262_v16, %s11524_s22 }
 0x2df   : > { %11308 = vrot.lane.b32.xlu2 %v11898_v26, %s11524_s22 }
 0x2e0   : > { %v12211_v16 = vpop.f32.mrf.mxu1 }
 0x2e6   : > { %11133 = vrot.lane.b32.xlu0 %v11869_v59, %s11523_s19  ;;  %11118 = vrot.lane.b32.xlu1 %v11838_v29, %s11523_s19  ;;  %v9890_v29 = vld [vmem:[%s17155_s9 + $0x70] sm:$0xf]  ;;  %v10852_v59 = vld [vmem:[%s17155_s9 + $0x74] sm:$0xf0] }
 0x2e7   : > { %11323 = vrot.lane.b32.xlu2 %v11936_v6, %s11524_s22  ;;  %9591 = vmatmul.msk.bf16.gmra.mxu1 %vm1946_vm2, %v1861_v51  ;;  %v9891_v21 = vor.u32 %v10852_v59, %v9890_v29 }
 0x2e9   : > { %11068 = vmatpush.bf16.msrb.mxu1 %v9891_v21  ;;  %4579 = vmatpush.bf16.msrb.mxu0 %v9891_v21 }
 0x2ee   : > { %11148 = vrot.lane.b32.xlu0 %v11898_v26, %s11523_s19  ;;  %11138 = vrot.lane.b32.xlu1 %v11878_v5, %s11523_s19  ;;  %v12223_v26 = vpop.f32.mrf.mxu1 }
 0x2ef   : > { %11338 = vrot.lane.b32.xlu2 %v11977_v4, %s11524_s22 }
 0x2f6   : > { %11163 = vrot.lane.b32.xlu0 %v11936_v6, %s11523_s19  ;;  %11153 = vrot.lane.b32.xlu1 %v11907_v37, %s11523_s19  ;;  %v12233_v6 = vpop.f32.mrf.mxu1 }
 0x2f7   : > { %11353 = vrot.lane.b32.xlu2 %v12018_v12, %s11524_s22 }
 0x2fe   : > { %11178 = vrot.lane.b32.xlu0 %v11977_v4, %s11523_s19  ;;  %11168 = vrot.lane.b32.xlu1 %v11949_v25, %s11523_s19  ;;  %v12241_v4 = vpop.f32.mrf.mxu1 }
 0x2ff   : > { %11368 = vrot.lane.b32.xlu2 %v12059_v33, %s11524_s22 }
 0x306   : > { %11193 = vrot.lane.b32.xlu0 %v12018_v12, %s11523_s19  ;;  %11183 = vrot.lane.b32.xlu1 %v11990_v28, %s11523_s19  ;;  %v12249_v12 = vpop.f32.mrf.mxu1 }
 0x307   : > { %11383 = vrot.lane.b32.xlu2 %v12102_v9, %s11524_s22 }
 0x30e   : > { %11208 = vrot.lane.b32.xlu0 %v12059_v33, %s11523_s19  ;;  %11198 = vrot.lane.b32.xlu1 %v12031_v39, %s11523_s19  ;;  %v12259_v33 = vpop.f32.mrf.mxu1 }
 0x30f   : > { %11398 = vrot.lane.b32.xlu2 %v12137_v58, %s11524_s22 }
 0x316   : > { %11223 = vrot.lane.b32.xlu0 %v12102_v9, %s11523_s19  ;;  %11213 = vrot.lane.b32.xlu1 %v12072_v0, %s11523_s19  ;;  %v10816_v9 = vld [vmem:[%s17151_s5 + $0x18] sm:$0xff] }
 0x317   : > { %11413 = vrot.lane.b32.xlu2 %v12168_v15, %s11524_s22  ;;  %3738 = vmatpush.bf16.msrb.mxu3 %v10816_v9 }
 0x31b   : > { %3739 = vmatpush.bf16.msrb.mxu3 %v10815_v27 }
 0x31e   : > { %11238 = vrot.lane.b32.xlu0 %v12137_v58, %s11523_s19  ;;  %11228 = vrot.lane.b32.xlu1 %v12115_v46, %s11523_s19  ;;  %v12267_v58 = vpop.f32.mrf.mxu1 }
 0x326   : > { %11253 = vrot.lane.b32.xlu0 %v12168_v15, %s11523_s19  ;;  %11243 = vrot.lane.b32.xlu1 %v12146_v40, %s11523_s19  ;;  %v10820_v15 = vld [vmem:[%s17152_s6 + $0x18] sm:$0xff]  ;;  %v12281_v31 = vpop.f32.mrf.mxu1 }
 0x327   : > { %3273 = vmatpush.bf16.msra.mxu2 %v10820_v15 }
 0x32b   : > { %3274 = vmatpush.bf16.msra.mxu2 %v10819_v30 }
 0x32e   : > { %11268 = vrot.lane.b32.xlu0 %v11102_v52, %s11523_s19  ;;  %11258 = vrot.lane.b32.xlu1 %v12175_v1, %s11523_s19  ;;  %v12296_v42 = vpop.f32.mrf.mxu1 }
 0x32f   : > { %3275 = vmatpush.bf16.msra.mxu2 %v10818_v8 }
 0x333   : > { %3276 = vmatpush.bf16.msra.mxu2 %v10817_v36 }
 0x336   : > { %11283 = vrot.lane.b32.xlu0 %v11847_v38, %s11524_s22  ;;  %11273 = vrot.lane.b32.xlu1 %v11112_v11, %s11523_s19  ;;  %v10814_v38 = vld [vmem:[%s17151_s5 + $0x8] sm:$0xff]  ;;  %s9438_s19 = sshll.u32 %s17877_s20, 3 }
 0x337   : > { %3740 = vmatpush.bf16.msrb.mxu3 %v10814_v38  ;;  %v10851_v38 = vld [vmem:[%s17155_s9 + $0x74] sm:$0xf]  ;;  %s17086_s26 = scalar_lea.vmem %s17163_s17, %s9438_s19 }
 0x33e   : > { %11298 = vrot.lane.b32.xlu0 %v11878_v5, %s11524_s22  ;;  %11288 = vrot.lane.b32.xlu1 %v11858_v48, %s11524_s22  ;;  %v10813_v48 = vld [vmem:[%s17151_s5] sm:$0xff] }
 0x33f   : > { %3741 = vmatpush.bf16.msrb.mxu3 %v10813_v48  ;;  %v10836_v48 = vld [vmem:[%s17154_s8 + $0x74] sm:$0xf0] }
 0x346   : > { %11313 = vrot.lane.b32.xlu0 %v11907_v37, %s11524_s22  ;;  %11303 = vrot.lane.b32.xlu1 %v11887_v14, %s11524_s22  ;;  %v12310_v37 = vpop.f32.mrf.mxu1 }
 0x348   : > { %v11104_v5 = vpop.permute.xlu0 %11103 }
 0x349   : > { %v11106_v50 = vunpack.i.h.bf16 %v11104_v5  ;;  %v11105_v43 = vunpack.i.l.bf16 %v11104_v5 }
 0x34b   : > { %v1924_v52 = vpack.c.bf16 %v11106_v50, %v11105_v43 }
 0x34d   : > { %9654 = vmatmul.msk.bf16.vlgmr.msra.gmra.mxu3 %vm1946_vm2, %v1924_v52 }
 0x34e   : > { %11328 = vrot.lane.b32.xlu0 %v11949_v25, %s11524_s22  ;;  %11318 = vrot.lane.b32.xlu1 %v11916_v49, %s11524_s22  ;;  %v12317_v29 = vpop.f32.mrf.mxu1 }
 0x350   : > { %v11114_v14 = vpop.permute.xlu1 %11113  ;;  %v11109_v24 = vpop.permute.xlu0 %11108 }
 0x351   : > { %v11111_v32 = vunpack.i.h.bf16 %v11109_v24  ;;  %v11110_v61 = vunpack.i.l.bf16 %v11109_v24  ;;  %v11116_v13 = vunpack.i.h.bf16 %v11114_v14  ;;  %v11115_v25 = vunpack.i.l.bf16 %v11114_v14 }
 0x353   : > { %v1923_v3 = vpack.c.bf16 %v11111_v32, %v11110_v61  ;;  %v1925_v59 = vpack.c.bf16 %v11116_v13, %v11115_v25  ;;  %v9882_v61 = vld [vmem:[%s17155_s9 + $0x60] sm:$0xf] }
 0x355   : > { %9653 = vmatmul.msk.bf16.vlgmr.msrb.gmra.mxu2 %vm1946_vm2, %v1923_v3  ;;  %v10850_v3 = vld [vmem:[%s17155_s9 + $0x64] sm:$0xf0] }
 0x356   : > { %11343 = vrot.lane.b32.xlu0 %v11990_v28, %s11524_s22  ;;  %11333 = vrot.lane.b32.xlu1 %v11962_v45, %s11524_s22  ;;  %v11124_v45 = vpop.permute.xlu2 %11123  ;;  %v12325_v28 = vpop.f32.mrf.mxu1  ;;  %v9883_v13 = vor.u32 %v10850_v3, %v9882_v61 }
 0x357   : > { %v11126_v9 = vunpack.i.h.bf16 %v11124_v45  ;;  %v11125_v15 = vunpack.i.l.bf16 %v11124_v45 }
 0x358   : > { %v11119_v11 = vpop.permute.xlu1 %11118  ;;  %4580 = vmatpush.bf16.msrb.mxu0 %v9883_v13  ;;  %11069 = vmatpush.bf16.msrb.mxu1 %v9883_v13 }
 0x359   : > { %v11121_v51 = vunpack.i.h.bf16 %v11119_v11  ;;  %v11120_v49 = vunpack.i.l.bf16 %v11119_v11  ;;  %v1863_v27 = vpack.c.bf16 %v11126_v9, %v11125_v15 }
 0x35b   : > { %v1862_v21 = vpack.c.bf16 %v11121_v51, %v11120_v49 }
 0x35d   : > { %9592 = vmatmul.msk.bf16.gmra.mxu1 %vm1946_vm2, %v1862_v21  ;;  %9655 = vmatmul.msk.bf16.gmra.mxu3 %vm1946_vm2, %v1925_v59 }
 0x35e   : > { %11358 = vrot.lane.b32.xlu0 %v12031_v39, %s11524_s22  ;;  %11348 = vrot.lane.b32.xlu1 %v12003_v53, %s11524_s22  ;;  %v12336_v53 = vpop.f32.mrf.mxu1  ;;  %v11129_v39 = vpop.permute.xlu2 %11128 }
 0x360   : > { %v11139_v50 = vpop.permute.xlu1 %11138 }
 0x361   : > { %v11141_v52 = vunpack.i.h.bf16 %v11139_v50  ;;  %v11140_v14 = vunpack.i.l.bf16 %v11139_v50 }
 0x363   : > { %v1866_v24 = vpack.c.bf16 %v11141_v52, %v11140_v14  ;;  %v17296_v14 = vld [vmem:[#allocation3_spill] sm:$0xff] }
 0x365   : > { %9672 = vmatmul.msk.bf16.vlgmr.msra.gmra.mxu2 %vm3052_vm3, %v12040_v57 }
 0x366   : > { %11373 = vrot.lane.b32.xlu0 %v12072_v0, %s11524_s22  ;;  %11363 = vrot.lane.b32.xlu1 %v12044_v2, %s11524_s22  ;;  %v11131_v2 = vunpack.i.h.bf16 %v11129_v39  ;;  %v12348_v0 = vpop.f32.mrf.mxu1 }
 0x36d   : > { %9593 = vmatmul.msk.bf16.gmra.mxu1 %vm1946_vm2, %v1863_v27  ;;  %9760 = vmatmul.msk.bf16.vlgmr.msrb.gmra.mxu3 %vm3052_vm3, %v11932_v63  ;;  %v11130_v63 = vunpack.i.l.bf16 %v11129_v39  ;;  %v11154_v27 = vpop.permute.xlu1 %11153 }
 0x36e   : > { %11388 = vrot.lane.b32.xlu0 %v12115_v46, %s11524_s22  ;;  %11378 = vrot.lane.b32.xlu1 %v12086_v35, %s11524_s22  ;;  %v12357_v35 = vpop.f32.mrf.mxu1  ;;  %v11134_v46 = vpop.permute.xlu0 %11133  ;;  %v11155_v39 = vunpack.i.l.bf16 %v11154_v27 }
 0x36f   : > { %v1864_v30 = vpack.c.bf16 %v11131_v2, %v11130_v63 }
 0x375   : > { %9673 = vmatmul.msk.bf16.gmra.mxu2 %vm3052_vm3, %v12056_v23 }
 0x376   : > { %11403 = vrot.lane.b32.xlu0 %v12146_v40, %s11524_s22  ;;  %11393 = vrot.lane.b32.xlu1 %v12126_v17, %s11524_s22  ;;  %v11136_v17 = vunpack.i.h.bf16 %v11134_v46  ;;  %v11135_v40 = vunpack.i.l.bf16 %v11134_v46  ;;  %v11149_v59 = vpop.permute.xlu0 %11148 }
 0x377   : > { %v11151_v21 = vunpack.i.h.bf16 %v11149_v59  ;;  %v11150_v45 = vunpack.i.l.bf16 %v11149_v59 }
 0x378   : > { %v1865_v8 = vpack.c.bf16 %v11136_v17, %v11135_v40 }
 0x379   : > { %v1868_v9 = vpack.c.bf16 %v11151_v21, %v11150_v45 }
 0x37d   : > { %9594 = vmatmul.msk.bf16.gmra.mxu1 %vm1946_vm2, %v1864_v30  ;;  %9761 = vmatmul.msk.bf16.gmra.mxu3 %vm3052_vm3, %v11946_v19  ;;  %v9892_v19 = vld [vmem:[%s17155_s9 + $0x78] sm:$0xf0] }
 0x37e   : > { %11418 = vrot.lane.b32.xlu0 %v12175_v1, %s11524_s22  ;;  %11408 = vrot.lane.b32.xlu1 %v12155_v18, %s11524_s22  ;;  %v9954_v18 = vld [vmem:[%s17154_s8 + $0x70] sm:$0xf]  ;;  %v12370_v1 = vpop.f32.mrf.mxu1  ;;  %v9895_v36 = vor.u32 %v10851_v38, %v9892_v19  ;;  %v11164_v21 = vpop.permute.xlu0 %11163 }
 0x37f   : > { %v9955_v5 = vor.u32 %v10836_v48, %v9954_v18 }
 0x380   : > { %4828 = vmatpush.bf16.msrb.mxu2 %v9895_v36 }
 0x381   : > { %5157 = vmatpush.bf16.msra.mxu3 %v9955_v5 }
 0x385   : > { %9674 = vmatmul.msk.bf16.gmra.mxu2 %vm3052_vm3, %v12069_v55 }
 0x386   : > { %v12380_v43 = vpop.f32.mrf.mxu1 }
 0x38d   : > { %9595 = vmatmul.msk.bf16.gmra.mxu1 %vm1946_vm2, %v1865_v8  ;;  %9762 = vmatmul.msk.bf16.gmra.mxu3 %vm3052_vm3, %v11959_v41  ;;  %v11144_v41 = vpop.permute.xlu2 %11143  ;;  %v12423_v8 = vld [vmem:[%s17150_s4] ss:$0 sm:$0xff] }
 0x38e   : > { %v12385_v32 = vpop.f32.mrf.mxu1  ;;  %v11146_v25 = vunpack.i.h.bf16 %v11144_v41  ;;  %v11145_v11 = vunpack.i.l.bf16 %v11144_v41 }
 0x390   : > { %v1867_v51 = vpack.c.bf16 %v11146_v25, %v11145_v11 }
 0x395   : > { %9675 = vmatmul.msk.bf16.gmra.mxu2 %vm3052_vm3, %v12082_v22 }
 0x39d   : > { %9596 = vmatmul.msk.bf16.gmra.mxu1 %vm1946_vm2, %v1866_v24  ;;  %9763 = vmatmul.msk.bf16.gmra.mxu3 %vm3052_vm3, %v11974_v62  ;;  %v12395_v62 = vpop.f32.mrf.mxu1 }
 0x3a5   : > { %9676 = vmatmul.msk.bf16.gmra.mxu2 %vm3052_vm3, %v12099_v60  ;;  %v12400_v49 = vpop.f32.mrf.mxu1 }
 0x3ad   : > { %9597 = vmatmul.msk.bf16.gmra.mxu1 %vm1946_vm2, %v1867_v51  ;;  %9764 = vmatmul.msk.bf16.gmra.mxu3 %vm3052_vm3, %v11987_v20  ;;  %v12407_v15 = vpop.f32.mrf.mxu1  ;;  %v11156_v20 = vunpack.i.h.bf16 %v11154_v27 }
 0x3af   : > { %v1869_v63 = vpack.c.bf16 %v11156_v20, %v11155_v39  ;;  %v17297_v20 = vld [vmem:[#allocation4_spill] sm:$0xff]  ;;  %v11166_v39 = vunpack.i.h.bf16 %v11164_v21 }
 0x3b5   : > { %9677 = vmatmul.msk.bf16.gmra.mxu2 %vm3052_vm3, %v12112_v34  ;;  %v12411_v2 = vpop.f32.mrf.mxu1 }
 0x3bd   : > { %9598 = vmatmul.msk.bf16.gmra.mxu1 %vm1946_vm2, %v1868_v9  ;;  %9765 = vmatmul.msk.bf16.gmra.mxu3 %vm3052_vm3, %v12000_v44  ;;  %v12416_v46 = vpop.f32.mrf.mxu1  ;;  %v11159_v44 = vpop.permute.xlu2 %11158 }
 0x3be   : > { %v11161_v17 = vunpack.i.h.bf16 %v11159_v44  ;;  %v11160_v40 = vunpack.i.l.bf16 %v11159_v44 }
 0x3c0   : > { %v1870_v48 = vpack.c.bf16 %v11161_v17, %v11160_v40  ;;  %v9874_v17 = vld [vmem:[%s17155_s9 + $0x50] sm:$0xf]  ;;  %v10848_v40 = vld [vmem:[%s17155_s9 + $0x54] sm:$0xf0] }
 0x3c5   : > { %9678 = vmatmul.msk.bf16.gmra.mxu2 %vm3052_vm3, %v12124_v10 }
 0x3cd   : > { %9599 = vmatmul.msk.bf16.gmra.mxu1 %vm1946_vm2, %v1869_v63  ;;  %9766 = vmatmul.msk.bf16.gmra.mxu3 %vm3052_vm3, %v12015_v7  ;;  %v11165_v63 = vunpack.i.l.bf16 %v11164_v21 }
 0x3d0   : > { %v2714_v30 = vpop.f32.mrf.mxu3 }
 0x3d1   : > { %v2715_v38 = vadd.f32 %v12423_v8, %v2714_v30 }
 0x3d3   : > { %v2912_v5 = vmax.f32 %v2715_v38, 0.0 }
 0x3d5   : > { %9679 = vmatmul.msk.bf16.gmra.mxu2 %vm3052_vm3, %v12135_v47 }
 0x3d8   : > { %v2709_v19 = vpop.f32.mrf.mxu2  ;;  %v2716_v18 = vpop.f32.mrf.mxu3 }
 0x3d9   : > { %v2717_v7 = vadd.f32 %v12423_v8, %v2716_v18  ;;  %v2710_v24 = vadd.f32 %v12423_v8, %v2709_v19  ;;  %v9875_v18 = vor.u32 %v10848_v40, %v9874_v17 }
 0x3da   : > { %v2404_v36 = vpop.f32.mrf.mxu1 }
 0x3db   : > { %v2913_v50 = vmax.f32 %v2717_v7, 0.0  ;;  %v2405_v3 = vadd.f32 %v12423_v8, %v2404_v36  ;;  %v2910_v11 = vmax.f32 %v2710_v24, 0.0  ;;  %4581 = vmatpush.bf16.msrb.mxu0 %v9875_v18  ;;  %11070 = vmatpush.bf16.msrb.mxu1 %v9875_v18 }
 0x3dd   : > { %v12427_v52 = vpack.c.bf16 %v2913_v50, %v2912_v5  ;;  %9600 = vmatmul.msk.bf16.gmra.mxu1 %vm1946_vm2, %v1870_v48  ;;  %9767 = vmatmul.msk.bf16.gmra.mxu3 %vm3052_vm3, %v17296_v14  ;;  %v2788_v45 = vmax.f32 %v2405_v3, 0.0  ;;  %v1871_v48 = vpack.c.bf16 %v11166_v39, %v11165_v63 }
 0x3e0   : > { %v2711_v41 = vpop.f32.mrf.mxu2  ;;  %v2719_v61 = vpop.f32.mrf.mxu3 }
 0x3e1   : > { %v2712_v13 = vadd.f32 %v12423_v8, %v2711_v41  ;;  %v2720_v30 = vadd.f32 %v12423_v8, %v2719_v61 }
 0x3e2   : > { %v2406_v25 = vpop.f32.mrf.mxu1 }
 0x3e3   : > { %v2911_v51 = vmax.f32 %v2712_v13, 0.0  ;;  %v2407_v59 = vadd.f32 %v12423_v8, %v2406_v25  ;;  %v2914_v5 = vmax.f32 %v2720_v30, 0.0 }
 0x3e5   : > { %v12436_v9 = vpack.c.bf16 %v2911_v51, %v2910_v11  ;;  %v2789_v27 = vmax.f32 %v2407_v59, 0.0  ;;  %9680 = vmatmul.msk.bf16.gmra.mxu2 %vm3052_vm3, %v17297_v20  ;;  %v11169_v11 = vpop.permute.xlu1 %11168  ;;  %v12460_v59 = vld [vmem:[%s17153_s7] ss:$0 sm:$0xff] }
 0x3e7   : > { %v12441_v44 = vpack.c.bf16 %v2789_v27, %v2788_v45  ;;  %v17298_v45 = vld [vmem:[#allocation5_spill] sm:$0xff]  ;;  %v11170_v27 = vunpack.i.l.bf16 %v11169_v11 }
 0x3e8   : > { %v2721_v38 = vpop.f32.mrf.mxu3  ;;  %v3278_v19 = vpop.f32.mrf.mxu2 }
 0x3e9   : > { %v2722_v7 = vadd.f32 %v12423_v8, %v2721_v38 }
 0x3ea   : > { %v2409_v36 = vpop.f32.mrf.mxu1 }
 0x3eb   : > { %v2915_v50 = vmax.f32 %v2722_v7, 0.0  ;;  %v2410_v61 = vadd.f32 %v12423_v8, %v2409_v36 }
 0x3ed   : > { %v12450_v14 = vpack.c.bf16 %v2915_v50, %v2914_v5  ;;  %9601 = vmatmul.msk.bf16.gmra.mxu1 %vm1946_vm2, %v1871_v48  ;;  %9768 = vmatmul.msk.bf16.gmra.mxu3 %vm3052_vm3, %v12040_v57  ;;  %v2790_v51 = vmax.f32 %v2410_v61, 0.0  ;;  %v11171_v57 = vunpack.i.h.bf16 %v11169_v11 }
 0x3f0   : > { %v3280_v24 = vpop.f32.mrf.mxu2  ;;  %v3743_v41 = vpop.f32.mrf.mxu3 }
 0x3f1   : > { %v3744_v3 = vadd.f32 %v3743_v41, %v3278_v19  ;;  %v1872_v19 = vpack.c.bf16 %v11171_v57, %v11170_v27 }
 0x3f2   : > { %v2411_v13 = vpop.f32.mrf.mxu1 }
 0x3f3   : > { %v2412_v25 = vadd.f32 %v12423_v8, %v2411_v13  ;;  %v4107_v17 = vadd.f32 %v12460_v59, %v3744_v3  ;;  %v11174_v13 = vpop.permute.xlu2 %11173 }
 0x3f4   : > { %v11175_v57 = vunpack.i.l.bf16 %v11174_v13 }
 0x3f5   : > { %v2791_v21 = vmax.f32 %v2412_v25, 0.0  ;;  %9681 = vmatmul.msk.bf16.gmra.mxu2 %vm3052_vm3, %v17298_v45  ;;  %v4251_v7 = vmax.f32 %v4107_v17, 0.0 }
 0x3f7   : > { %v12464_v39 = vpack.c.bf16 %v2791_v21, %v2790_v51  ;;  %v17299_v51 = vld [vmem:[#allocation6_spill] sm:$0xff]  ;;  %v11176_v21 = vunpack.i.h.bf16 %v11174_v13  ;;  %v11179_v13 = vpop.permute.xlu0 %11178 }
 0x3f8   : > { %v3283_v63 = vpop.f32.mrf.mxu2  ;;  %v3745_v30 = vpop.f32.mrf.mxu3 }
 0x3f9   : > { %v3746_v40 = vadd.f32 %v3745_v30, %v3280_v24 }
 0x3fa   : > { %v2414_v38 = vpop.f32.mrf.mxu1 }
 0x3fb   : > { %v4108_v18 = vadd.f32 %v12460_v59, %v3746_v40  ;;  %v2415_v41 = vadd.f32 %v12423_v8, %v2414_v38 }
 0x3fd   : > { %v4252_v36 = vmax.f32 %v4108_v18, 0.0  ;;  %9602 = vmatmul.msk.bf16.gmra.mxu1 %vm1946_vm2, %v1872_v19  ;;  %9769 = vmatmul.msk.bf16.gmra.mxu3 %vm3052_vm3, %v12056_v23  ;;  %v2792_v25 = vmax.f32 %v2415_v41, 0.0 }
 0x3ff   : > { %v12471_v48 = vpack.c.bf16 %v4252_v36, %v4251_v7 }
 0x400   : > { %v3285_v5 = vpop.f32.mrf.mxu2  ;;  %v3748_v50 = vpop.f32.mrf.mxu3 }
 0x401   : > { %v3749_v61 = vadd.f32 %v3748_v50, %v3283_v63  ;;  %v1873_v63 = vpack.c.bf16 %v11176_v21, %v11175_v57  ;;  %v11181_v21 = vunpack.i.h.bf16 %v11179_v13  ;;  %v11180_v57 = vunpack.i.l.bf16 %v11179_v13 }
 0x402   : > { %v2416_v3 = vpop.f32.mrf.mxu1 }
 0x403   : > { %v2417_v24 = vadd.f32 %v12423_v8, %v2416_v3  ;;  %v4109_v17 = vadd.f32 %v12460_v59, %v3749_v61 }
 0x405   : > { %v2793_v11 = vmax.f32 %v2417_v24, 0.0  ;;  %9682 = vmatmul.msk.bf16.gmra.mxu2 %vm3052_vm3, %v17299_v51  ;;  %v4253_v18 = vmax.f32 %v4109_v17, 0.0 }
 0x407   : > { %v12477_v27 = vpack.c.bf16 %v2793_v11, %v2792_v25 }
 0x408   : > { %v3288_v23 = vpop.f32.mrf.mxu2  ;;  %v3750_v30 = vpop.f32.mrf.mxu3 }
 0x409   : > { %v3751_v40 = vadd.f32 %v3750_v30, %v3285_v5 }
 0x40a   : > { %v2419_v38 = vpop.f32.mrf.mxu1 }
 0x40b   : > { %v4110_v19 = vadd.f32 %v12460_v59, %v3751_v40  ;;  %v2420_v3 = vadd.f32 %v12423_v8, %v2419_v38 }
 0x40d   : > { %v4254_v7 = vmax.f32 %v4110_v19, 0.0  ;;  %9603 = vmatmul.msk.bf16.gmra.mxu1 %vm1946_vm2, %v1873_v63  ;;  %9770 = vmatmul.msk.bf16.gmra.mxu3 %vm3052_vm3, %v12069_v55  ;;  %v2794_v25 = vmax.f32 %v2420_v3, 0.0  ;;  %v1874_v19 = vpack.c.bf16 %v11181_v21, %v11180_v57 }
 0x40f   : > { %v12484_v36 = vpack.c.bf16 %v4254_v7, %v4253_v18  ;;  %v2345_v7 = vadd.f32 %v12423_v8, %v12197_v56  ;;  %v9946_v56 = vld [vmem:[%s17154_s8 + $0x60] sm:$0xf] }
 0x410   : > { %v3290_v50 = vpop.f32.mrf.mxu2  ;;  %v3753_v41 = vpop.f32.mrf.mxu3 }
 0x411   : > { %v3754_v24 = vadd.f32 %v3753_v41, %v3288_v23  ;;  %v2347_v23 = vadd.f32 %v12423_v8, %v12211_v16  ;;  %v9884_v16 = vld [vmem:[%s17155_s9 + $0x68] sm:$0xf0]  ;;  %v2764_v21 = vmax.f32 %v2345_v7, 0.0 }
 0x412   : > { %v2421_v61 = vpop.f32.mrf.mxu1 }
 0x413   : > { %v2422_v5 = vadd.f32 %v12423_v8, %v2421_v61  ;;  %v4111_v40 = vadd.f32 %v12460_v59, %v3754_v24  ;;  %v10834_v61 = vld [vmem:[%s17154_s8 + $0x64] sm:$0xf0] }
 0x414   : > { %v9947_v13 = vor.u32 %v10834_v61, %v9946_v56 }
 0x415   : > { %v2795_v11 = vmax.f32 %v2422_v5, 0.0  ;;  %9683 = vmatmul.msk.bf16.gmra.mxu2 %vm3052_vm3, %v12173_v54  ;;  %v4255_v41 = vmax.f32 %v4111_v40, 0.0  ;;  %v2765_v5 = vmax.f32 %v2347_v23, 0.0 }
 0x416   : > { %5158 = vmatpush.bf16.msra.mxu3 %v9947_v13 }
 0x417   : > { %v12490_v30 = vpack.c.bf16 %v2795_v11, %v2794_v25 }
 0x418   : > { %v3293_v55 = vpop.f32.mrf.mxu2  ;;  %v3755_v17 = vpop.f32.mrf.mxu3 }
 0x419   : > { %v3756_v63 = vadd.f32 %v3755_v17, %v3290_v50  ;;  %v10849_v50 = vld [vmem:[%s17155_s9 + $0x64] sm:$0xf] }
 0x41a   : > { %v2424_v38 = vpop.f32.mrf.mxu1  ;;  %v9887_v24 = vor.u32 %v10849_v50, %v9884_v16 }
 0x41b   : > { %v4112_v18 = vadd.f32 %v12460_v59, %v3756_v63  ;;  %v2425_v57 = vadd.f32 %v12423_v8, %v2424_v38  ;;  %v12516_v63 = vpack.c.bf16 %v2765_v5, %v2764_v21  ;;  %v10846_v38 = vld [vmem:[%s17155_s9 + $0x44] sm:$0xf0] }
 0x41c   : > { %4829 = vmatpush.bf16.msrb.mxu2 %v9887_v24 }
 0x41d   : > { %v4256_v3 = vmax.f32 %v4112_v18, 0.0  ;;  %9604 = vmatmul.msk.bf16.gmra.mxu1 %vm1946_vm2, %v1874_v19  ;;  %9771 = vmatmul.msk.bf16.gmra.mxu3 %vm3052_vm3, %v12082_v22  ;;  %v11184_v18 = vpop.permute.xlu1 %11183  ;;  %v2796_v50 = vmax.f32 %v2425_v57, 0.0 }
 0x41e   : > { %v11186_v23 = vunpack.i.h.bf16 %v11184_v18 }
 0x41f   : > { %v12513_v22 = vpack.c.bf16 %v4256_v3, %v4255_v41  ;;  %v11185_v41 = vunpack.i.l.bf16 %v11184_v18 }
 0x420   : > { %v3295_v25 = vpop.f32.mrf.mxu2  ;;  %v3758_v11 = vpop.f32.mrf.mxu3 }
 0x421   : > { %v3759_v17 = vadd.f32 %v3758_v11, %v3293_v55  ;;  %v9866_v55 = vld [vmem:[%s17155_s9 + $0x40] sm:$0xf]  ;;  %v2352_v11 = vadd.f32 %v12423_v8, %v12233_v6  ;;  %v1875_v21 = vpack.c.bf16 %v11186_v23, %v11185_v41 }
 0x422   : > { %v2426_v40 = vpop.f32.mrf.mxu1  ;;  %v9867_v56 = vor.u32 %v10846_v38, %v9866_v55 }
 0x423   : > { %v2427_v19 = vadd.f32 %v12423_v8, %v2426_v40  ;;  %v4113_v61 = vadd.f32 %v12460_v59, %v3759_v17  ;;  %v2350_v40 = vadd.f32 %v12423_v8, %v12223_v26 }
 0x424   : > { %4582 = vmatpush.bf16.msrb.mxu0 %v9867_v56  ;;  %11071 = vmatpush.bf16.msrb.mxu1 %v9867_v56 }
 0x425   : > { %v2797_v16 = vmax.f32 %v2427_v19, 0.0  ;;  %9684 = vmatmul.msk.bf16.gmra.mxu2 %vm3052_vm3, %v12516_v63  ;;  %v4257_v19 = vmax.f32 %v4113_v61, 0.0  ;;  %v2766_v55 = vmax.f32 %v2350_v40, 0.0 }
 0x427   : > { %v12521_v3 = vpack.c.bf16 %v2797_v16, %v2796_v50 }
 0x428   : > { %v3298_v7 = vpop.f32.mrf.mxu2  ;;  %v3760_v24 = vpop.f32.mrf.mxu3 }
 0x429   : > { %v3761_v5 = vadd.f32 %v3760_v24, %v3295_v25  ;;  %v2767_v25 = vmax.f32 %v2352_v11, 0.0  ;;  %v11189_v24 = vpop.permute.xlu2 %11188 }
 0x42a   : > { %v2429_v13 = vpop.f32.mrf.mxu1 }
 0x42b   : > { %v4114_v57 = vadd.f32 %v12460_v59, %v3761_v5  ;;  %v2430_v6 = vadd.f32 %v12423_v8, %v2429_v13  ;;  %v12541_v38 = vpack.c.bf16 %v2767_v25, %v2766_v55  ;;  %v11190_v5 = vunpack.i.l.bf16 %v11189_v24 }
 0x42d   : > { %v4258_v18 = vmax.f32 %v4114_v57, 0.0  ;;  %9605 = vmatmul.msk.bf16.gmra.mxu1 %vm1946_vm2, %v1875_v21  ;;  %9772 = vmatmul.msk.bf16.gmra.mxu3 %vm3052_vm3, %v12099_v60  ;;  %v2798_v56 = vmax.f32 %v2430_v6, 0.0  ;;  %v11191_v60 = vunpack.i.h.bf16 %v11189_v24 }
 0x42f   : > { %v12538_v17 = vpack.c.bf16 %v4258_v18, %v4257_v19  ;;  %v1876_v19 = vpack.c.bf16 %v11191_v60, %v11190_v5  ;;  %v2357_v18 = vadd.f32 %v12423_v8, %v12249_v12  ;;  %v11194_v5 = vpop.permute.xlu0 %11193 }
 0x430   : > { %v3300_v50 = vpop.f32.mrf.mxu2  ;;  %v3763_v16 = vpop.f32.mrf.mxu3 }
 0x431   : > { %v3764_v23 = vadd.f32 %v3763_v16, %v3298_v7  ;;  %v2355_v16 = vadd.f32 %v12423_v8, %v12241_v4 }
 0x432   : > { %v2431_v41 = vpop.f32.mrf.mxu1 }
 0x433   : > { %v2432_v26 = vadd.f32 %v12423_v8, %v2431_v41  ;;  %v4115_v13 = vadd.f32 %v12460_v59, %v3764_v23  ;;  %v2769_v41 = vmax.f32 %v2357_v18, 0.0  ;;  %v2768_v24 = vmax.f32 %v2355_v16, 0.0 }
 0x435   : > { %v2799_v61 = vmax.f32 %v2432_v26, 0.0  ;;  %9685 = vmatmul.msk.bf16.gmra.mxu2 %vm3052_vm3, %v12541_v38  ;;  %v4259_v55 = vmax.f32 %v4115_v13, 0.0  ;;  %v12560_v60 = vpack.c.bf16 %v2769_v41, %v2768_v24 }
 0x437   : > { %v12546_v11 = vpack.c.bf16 %v2799_v61, %v2798_v56 }
 0x438   : > { %v3303_v21 = vpop.f32.mrf.mxu2  ;;  %v3765_v57 = vpop.f32.mrf.mxu3 }
 0x439   : > { %v3766_v7 = vadd.f32 %v3765_v57, %v3300_v50 }
 0x43a   : > { %v2434_v40 = vpop.f32.mrf.mxu1 }
 0x43b   : > { %v4116_v25 = vadd.f32 %v12460_v59, %v3766_v7  ;;  %v2435_v12 = vadd.f32 %v12423_v8, %v2434_v40  ;;  %v11195_v7 = vunpack.i.l.bf16 %v11194_v5 }
 0x43d   : > { %v4260_v6 = vmax.f32 %v4116_v25, 0.0  ;;  %9606 = vmatmul.msk.bf16.gmra.mxu1 %vm1946_vm2, %v1876_v19  ;;  %9773 = vmatmul.msk.bf16.gmra.mxu3 %vm3052_vm3, %v12112_v34  ;;  %v2800_v57 = vmax.f32 %v2435_v12, 0.0  ;;  %v11196_v34 = vunpack.i.h.bf16 %v11194_v5 }
 0x43f   : > { %v12557_v23 = vpack.c.bf16 %v4260_v6, %v4259_v55  ;;  %v2362_v55 = vadd.f32 %v12423_v8, %v12267_v58  ;;  %v1877_v6 = vpack.c.bf16 %v11196_v34, %v11195_v7  ;;  %v11199_v7 = vpop.permute.xlu1 %11198 }
 0x440   : > { %v3305_v50 = vpop.f32.mrf.mxu2  ;;  %v3768_v26 = vpop.f32.mrf.mxu3 }
 0x441   : > { %v3769_v56 = vadd.f32 %v3768_v26, %v3303_v21  ;;  %v2360_v26 = vadd.f32 %v12423_v8, %v12259_v33 }
 0x442   : > { %v2436_v61 = vpop.f32.mrf.mxu1 }
 0x443   : > { %v2437_v4 = vadd.f32 %v12423_v8, %v2436_v61  ;;  %v4117_v40 = vadd.f32 %v12460_v59, %v3769_v56  ;;  %v2771_v61 = vmax.f32 %v2362_v55, 0.0  ;;  %v2770_v5 = vmax.f32 %v2360_v26, 0.0 }
 0x445   : > { %v2801_v13 = vmax.f32 %v2437_v4, 0.0  ;;  %9686 = vmatmul.msk.bf16.gmra.mxu2 %vm3052_vm3, %v12560_v60  ;;  %v4261_v24 = vmax.f32 %v4117_v40, 0.0  ;;  %v12579_v34 = vpack.c.bf16 %v2771_v61, %v2770_v5 }
 0x447   : > { %v12565_v19 = vpack.c.bf16 %v2801_v13, %v2800_v57 }
 0x448   : > { %v3308_v18 = vpop.f32.mrf.mxu2  ;;  %v3770_v25 = vpop.f32.mrf.mxu3 }
 0x449   : > { %v3771_v21 = vadd.f32 %v3770_v25, %v3305_v50 }
 0x44a   : > { %v2439_v16 = vpop.f32.mrf.mxu1 }
 0x44b   : > { %v4118_v41 = vadd.f32 %v12460_v59, %v3771_v21  ;;  %v2440_v58 = vadd.f32 %v12423_v8, %v2439_v16  ;;  %v11200_v21 = vunpack.i.l.bf16 %v11199_v7 }
 0x44d   : > { %v4262_v12 = vmax.f32 %v4118_v41, 0.0  ;;  %9607 = vmatmul.msk.bf16.gmra.mxu1 %vm1946_vm2, %v1877_v6  ;;  %9774 = vmatmul.msk.bf16.gmra.mxu3 %vm3052_vm3, %v12124_v10  ;;  %v2802_v25 = vmax.f32 %v2440_v58, 0.0  ;;  %v11201_v10 = vunpack.i.h.bf16 %v11199_v7 }
 0x44f   : > { %v12576_v56 = vpack.c.bf16 %v4262_v12, %v4261_v24  ;;  %v2367_v24 = vadd.f32 %v12423_v8, %v12296_v42  ;;  %v1878_v12 = vpack.c.bf16 %v11201_v10, %v11200_v21  ;;  %v11204_v21 = vpop.permute.xlu2 %11203 }
 0x450   : > { %v3310_v50 = vpop.f32.mrf.mxu2  ;;  %v3773_v4 = vpop.f32.mrf.mxu3 }
 0x451   : > { %v3774_v57 = vadd.f32 %v3773_v4, %v3308_v18  ;;  %v2365_v4 = vadd.f32 %v12423_v8, %v12281_v31 }
 0x452   : > { %v2441_v13 = vpop.f32.mrf.mxu1 }
 0x453   : > { %v2442_v33 = vadd.f32 %v12423_v8, %v2441_v13  ;;  %v4119_v16 = vadd.f32 %v12460_v59, %v3774_v57  ;;  %v2773_v13 = vmax.f32 %v2367_v24, 0.0  ;;  %v2772_v7 = vmax.f32 %v2365_v4, 0.0 }
 0x455   : > { %v2803_v40 = vmax.f32 %v2442_v33, 0.0  ;;  %9687 = vmatmul.msk.bf16.gmra.mxu2 %vm3052_vm3, %v12579_v34  ;;  %v4263_v5 = vmax.f32 %v4119_v16, 0.0  ;;  %v2988_v10 = vpack.c.bf16 %v2773_v13, %v2772_v7  ;;  %v2372_v7 = vadd.f32 %v12423_v8, %v12317_v29 }
 0x457   : > { %v12584_v55 = vpack.c.bf16 %v2803_v40, %v2802_v25 }
 0x458   : > { %v3313_v6 = vpop.f32.mrf.mxu2  ;;  %v3775_v41 = vpop.f32.mrf.mxu3 }
 0x459   : > { %v3776_v18 = vadd.f32 %v3775_v41, %v3310_v50 }
 0x45a   : > { %v2444_v26 = vpop.f32.mrf.mxu1 }
 0x45b   : > { %v4120_v61 = vadd.f32 %v12460_v59, %v3776_v18  ;;  %v2445_v42 = vadd.f32 %v12423_v8, %v2444_v26  ;;  %v11206_v18 = vunpack.i.h.bf16 %v11204_v21 }
 0x45d   : > { %v4264_v58 = vmax.f32 %v4120_v61, 0.0  ;;  %9608 = vmatmul.msk.bf16.gmra.mxu1 %vm1946_vm2, %v1878_v12  ;;  %9775 = vmatmul.msk.bf16.gmra.mxu3 %vm3052_vm3, %v12135_v47  ;;  %v2804_v41 = vmax.f32 %v2445_v42, 0.0  ;;  %v11205_v47 = vunpack.i.l.bf16 %v11204_v21  ;;  %v9858_v12 = vld [vmem:[%s17155_s9 + $0x30] sm:$0xf] }
 0x45f   : > { %v12595_v57 = vpack.c.bf16 %v4264_v58, %v4263_v5 }
 0x460   : > { %v3315_v50 = vpop.f32.mrf.mxu2  ;;  %v3778_v33 = vpop.f32.mrf.mxu3 }
 0x461   : > { %v3779_v25 = vadd.f32 %v3778_v33, %v3313_v6  ;;  %v10844_v6 = vld [vmem:[%s17155_s9 + $0x34] sm:$0xf0]  ;;  %v1879_v33 = vpack.c.bf16 %v11206_v18, %v11205_v47 }
 0x462   : > { %v2446_v40 = vpop.f32.mrf.mxu1  ;;  %v9859_v4 = vor.u32 %v10844_v6, %v9858_v12  ;;  %v11209_v6 = vpop.permute.xlu0 %11208 }
 0x463   : > { %v2447_v31 = vadd.f32 %v12423_v8, %v2446_v40  ;;  %v4121_v5 = vadd.f32 %v12460_v59, %v3779_v25  ;;  %v2370_v40 = vadd.f32 %v12423_v8, %v12310_v37 }
 0x464   : > { %4583 = vmatpush.bf16.msrb.mxu0 %v9859_v4  ;;  %11072 = vmatpush.bf16.msrb.mxu1 %v9859_v4 }
 0x465   : > { %v2805_v16 = vmax.f32 %v2447_v31, 0.0  ;;  %9688 = vmatmul.msk.bf16.gmra.mxu2 %vm3052_vm3, %v2988_v10  ;;  %v4265_v10 = vmax.f32 %v4121_v5, 0.0  ;;  %v11211_v5 = vunpack.i.h.bf16 %v11209_v6 }
 0x467   : > { %v12600_v24 = vpack.c.bf16 %v2805_v16, %v2804_v41  ;;  %v2774_v16 = vmax.f32 %v2370_v40, 0.0 }
 0x468   : > { %v3318_v26 = vpop.f32.mrf.mxu2  ;;  %v3780_v61 = vpop.f32.mrf.mxu3 }
 0x469   : > { %v3781_v58 = vadd.f32 %v3780_v61, %v3315_v50  ;;  %v2775_v50 = vmax.f32 %v2372_v7, 0.0 }
 0x46a   : > { %v2449_v13 = vpop.f32.mrf.mxu1 }
 0x46b   : > { %v4122_v42 = vadd.f32 %v12460_v59, %v3781_v58  ;;  %v2450_v29 = vadd.f32 %v12423_v8, %v2449_v13  ;;  %v2989_v12 = vpack.c.bf16 %v2775_v50, %v2774_v16  ;;  %v2375_v50 = vadd.f32 %v12423_v8, %v12325_v28 }
 0x46d   : > { %v4266_v31 = vmax.f32 %v4122_v42, 0.0  ;;  %9609 = vmatmul.msk.bf16.gmra.mxu1 %vm1946_vm2, %v1879_v33  ;;  %9776 = vmatmul.msk.bf16.gmra.mxu3 %vm3052_vm3, %v17297_v20  ;;  %v2806_v61 = vmax.f32 %v2450_v29, 0.0  ;;  %v11210_v20 = vunpack.i.l.bf16 %v11209_v6 }
 0x46f   : > { %v12617_v25 = vpack.c.bf16 %v4266_v31, %v4265_v10  ;;  %v1880_v10 = vpack.c.bf16 %v11211_v5, %v11210_v20 }
 0x470   : > { %v3320_v21 = vpop.f32.mrf.mxu2  ;;  %v3783_v41 = vpop.f32.mrf.mxu3 }
 0x471   : > { %v3784_v18 = vadd.f32 %v3783_v41, %v3318_v26  ;;  %v2377_v26 = vadd.f32 %v12423_v8, %v12336_v53 }
 0x472   : > { %v2451_v47 = vpop.f32.mrf.mxu1 }
 0x473   : > { %v2452_v37 = vadd.f32 %v12423_v8, %v2451_v47  ;;  %v4123_v42 = vadd.f32 %v12460_v59, %v3784_v18  ;;  %v2777_v29 = vmax.f32 %v2377_v26, 0.0 }
 0x475   : > { %v2807_v4 = vmax.f32 %v2452_v37, 0.0  ;;  %9689 = vmatmul.msk.bf16.gmra.mxu2 %vm3052_vm3, %v2989_v12  ;;  %v4267_v41 = vmax.f32 %v4123_v42, 0.0  ;;  %v2776_v12 = vmax.f32 %v2375_v50, 0.0 }
 0x477   : > { %v12622_v58 = vpack.c.bf16 %v2807_v4, %v2806_v61  ;;  %v2990_v61 = vpack.c.bf16 %v2777_v29, %v2776_v12  ;;  %v11214_v4 = vpop.permute.xlu1 %11213 }
 0x478   : > { %v3323_v33 = vpop.f32.mrf.mxu2  ;;  %v3785_v7 = vpop.f32.mrf.mxu3 }
 0x479   : > { %v3786_v40 = vadd.f32 %v3785_v7, %v3320_v21  ;;  %v11216_v7 = vunpack.i.h.bf16 %v11214_v4 }
 0x47a   : > { %v2454_v13 = vpop.f32.mrf.mxu1 }
 0x47b   : > { %v4124_v31 = vadd.f32 %v12460_v59, %v3786_v40  ;;  %v2455_v53 = vadd.f32 %v12423_v8, %v2454_v13 }
 0x47d   : > { %v4268_v16 = vmax.f32 %v4124_v31, 0.0  ;;  %9610 = vmatmul.msk.bf16.gmra.mxu1 %vm1946_vm2, %v1880_v10  ;;  %9777 = vmatmul.msk.bf16.gmra.mxu3 %vm3052_vm3, %v17298_v45  ;;  %v2808_v5 = vmax.f32 %v2455_v53, 0.0  ;;  %v11215_v45 = vunpack.i.l.bf16 %v11214_v4 }
 0x47f   : > { %v12633_v18 = vpack.c.bf16 %v4268_v16, %v4267_v41  ;;  %v1881_v50 = vpack.c.bf16 %v11216_v7, %v11215_v45  ;;  %v2380_v16 = vadd.f32 %v12423_v8, %v12348_v0 }
 0x480   : > { %v3325_v21 = vpop.f32.mrf.mxu2  ;;  %v3788_v47 = vpop.f32.mrf.mxu3 }
 0x481   : > { %v3789_v37 = vadd.f32 %v3788_v47, %v3323_v33  ;;  %v2382_v33 = vadd.f32 %v12423_v8, %v12357_v35 }
 0x482   : > { %v2456_v6 = vpop.f32.mrf.mxu1 }
 0x483   : > { %v2457_v28 = vadd.f32 %v12423_v8, %v2456_v6  ;;  %v4125_v10 = vadd.f32 %v12460_v59, %v3789_v37  ;;  %v2779_v12 = vmax.f32 %v2382_v33, 0.0  ;;  %v2778_v6 = vmax.f32 %v2380_v16, 0.0 }
 0x485   : > { %v2809_v20 = vmax.f32 %v2457_v28, 0.0  ;;  %9690 = vmatmul.msk.bf16.gmra.mxu2 %vm3052_vm3, %v2990_v61  ;;  %v4269_v29 = vmax.f32 %v4125_v10, 0.0  ;;  %v2991_v4 = vpack.c.bf16 %v2779_v12, %v2778_v6 }
 0x487   : > { %v12638_v42 = vpack.c.bf16 %v2809_v20, %v2808_v5  ;;  %v11219_v5 = vpop.permute.xlu2 %11218 }
 0x488   : > { %v3328_v40 = vpop.f32.mrf.mxu2  ;;  %v3790_v26 = vpop.f32.mrf.mxu3  ;;  %v11221_v45 = vunpack.i.h.bf16 %v11219_v5 }
 0x489   : > { %v3791_v31 = vadd.f32 %v3790_v26, %v3325_v21 }
 0x48a   : > { %v2459_v13 = vpop.f32.mrf.mxu1 }
 0x48b   : > { %v4126_v41 = vadd.f32 %v12460_v59, %v3791_v31  ;;  %v2460_v35 = vadd.f32 %v12423_v8, %v2459_v13 }
 0x48d   : > { %v4270_v47 = vmax.f32 %v4126_v41, 0.0  ;;  %9611 = vmatmul.msk.bf16.gmra.mxu1 %vm1946_vm2, %v1881_v50  ;;  %9778 = vmatmul.msk.bf16.gmra.mxu3 %vm3052_vm3, %v17299_v51  ;;  %v2810_v20 = vmax.f32 %v2460_v35, 0.0  ;;  %v11220_v51 = vunpack.i.l.bf16 %v11219_v5  ;;  %v2387_v41 = vadd.f32 %v12423_v8, %v12380_v43  ;;  %v11224_v5 = vpop.permute.xlu0 %11223 }
 0x48f   : > { %v12649_v53 = vpack.c.bf16 %v4270_v47, %v4269_v29  ;;  %v2385_v29 = vadd.f32 %v12423_v8, %v12370_v1 }
 0x490   : > { %v3330_v21 = vpop.f32.mrf.mxu2  ;;  %v3793_v37 = vpop.f32.mrf.mxu3 }
 0x491   : > { %v3794_v61 = vadd.f32 %v3793_v37, %v3328_v40  ;;  %v1882_v40 = vpack.c.bf16 %v11221_v45, %v11220_v51  ;;  %v2781_v37 = vmax.f32 %v2387_v41, 0.0  ;;  %v11226_v45 = vunpack.i.h.bf16 %v11224_v5 }
 0x492   : > { %v2461_v28 = vpop.f32.mrf.mxu1 }
 0x493   : > { %v2462_v0 = vadd.f32 %v12423_v8, %v2461_v28  ;;  %v4127_v33 = vadd.f32 %v12460_v59, %v3794_v61  ;;  %v2780_v61 = vmax.f32 %v2385_v29, 0.0  ;;  %v2392_v29 = vadd.f32 %v12423_v8, %v12395_v62  ;;  %v9876_v62 = vld [vmem:[%s17155_s9 + $0x58] sm:$0xf0] }
 0x495   : > { %v2811_v7 = vmax.f32 %v2462_v0, 0.0  ;;  %9691 = vmatmul.msk.bf16.gmra.mxu2 %vm3052_vm3, %v2991_v4  ;;  %v4271_v47 = vmax.f32 %v4127_v33, 0.0  ;;  %v2992_v0 = vpack.c.bf16 %v2781_v37, %v2780_v61  ;;  %v2390_v37 = vadd.f32 %v12423_v8, %v12385_v32  ;;  %v9938_v32 = vld [vmem:[%s17154_s8 + $0x50] sm:$0xf] }
 0x497   : > { %v12654_v26 = vpack.c.bf16 %v2811_v7, %v2810_v20 }
 0x498   : > { %v3333_v10 = vpop.f32.mrf.mxu2  ;;  %v3795_v31 = vpop.f32.mrf.mxu3 }
 0x499   : > { %v3796_v50 = vadd.f32 %v3795_v31, %v3330_v21  ;;  %v9850_v31 = vld [vmem:[%s17155_s9 + $0x20] sm:$0xf] }
 0x49a   : > { %v2464_v13 = vpop.f32.mrf.mxu1 }
 0x49b   : > { %v4128_v16 = vadd.f32 %v12460_v59, %v3796_v50  ;;  %v2465_v43 = vadd.f32 %v12423_v8, %v2464_v13 }
 0x49d   : > { %v4272_v12 = vmax.f32 %v4128_v16, 0.0  ;;  %9612 = vmatmul.msk.bf16.gmra.mxu1 %vm1946_vm2, %v1882_v40  ;;  %9779 = vmatmul.msk.bf16.gmra.mxu3 %vm3052_vm3, %v12173_v54  ;;  %v2812_v20 = vmax.f32 %v2465_v43, 0.0  ;;  %v11225_v54 = vunpack.i.l.bf16 %v11224_v5 }
 0x49f   : > { %v12665_v6 = vpack.c.bf16 %v4272_v12, %v4271_v47  ;;  %v1883_v47 = vpack.c.bf16 %v11226_v45, %v11225_v54 }
 0x4a0   : > { %v3335_v21 = vpop.f32.mrf.mxu2  ;;  %v3798_v35 = vpop.f32.mrf.mxu3 }
 0x4a1   : > { %v3799_v28 = vadd.f32 %v3798_v35, %v3333_v10  ;;  %v10842_v10 = vld [vmem:[%s17155_s9 + $0x24] sm:$0xf0] }
 0x4a2   : > { %v2466_v4 = vpop.f32.mrf.mxu1  ;;  %v9851_v13 = vor.u32 %v10842_v10, %v9850_v31 }
 0x4a3   : > { %v2467_v1 = vadd.f32 %v12423_v8, %v2466_v4  ;;  %v4129_v40 = vadd.f32 %v12460_v59, %v3799_v28  ;;  %v10832_v28 = vld [vmem:[%s17154_s8 + $0x54] sm:$0xf0]  ;;  %v2783_v4 = vmax.f32 %v2392_v29, 0.0 }
 0x4a4   : > { %4584 = vmatpush.bf16.msrb.mxu0 %v9851_v13  ;;  %11073 = vmatpush.bf16.msrb.mxu1 %v9851_v13 }
 0x4a5   : > { %v2813_v7 = vmax.f32 %v2467_v1, 0.0  ;;  %9692 = vmatmul.msk.bf16.gmra.mxu2 %vm3052_vm3, %v2992_v0  ;;  %v4273_v35 = vmax.f32 %v4129_v40, 0.0  ;;  %v9939_v0 = vor.u32 %v10832_v28, %v9938_v32 }
 0x4a7   : > { %v12670_v51 = vpack.c.bf16 %v2813_v7, %v2812_v20  ;;  %v2782_v20 = vmax.f32 %v2390_v37, 0.0  ;;  %5159 = vmatpush.bf16.msra.mxu3 %v9939_v0 }
 0x4a8   : > { %v3338_v33 = vpop.f32.mrf.mxu2  ;;  %v3800_v50 = vpop.f32.mrf.mxu3 }
 0x4a9   : > { %v3801_v41 = vadd.f32 %v3800_v50, %v3335_v21  ;;  %v10847_v21 = vld [vmem:[%s17155_s9 + $0x54] sm:$0xf]  ;;  %v2993_v31 = vpack.c.bf16 %v2783_v4, %v2782_v20  ;;  %v11229_v50 = vpop.permute.xlu1 %11228 }
 0x4aa   : > { %v2469_v16 = vpop.f32.mrf.mxu1  ;;  %v9879_v43 = vor.u32 %v10847_v21, %v9876_v62  ;;  %v11230_v29 = vunpack.i.l.bf16 %v11229_v50 }
 0x4ab   : > { %v4130_v12 = vadd.f32 %v12460_v59, %v3801_v41  ;;  %v2470_v7 = vadd.f32 %v12423_v8, %v2469_v16  ;;  %v11231_v41 = vunpack.i.h.bf16 %v11229_v50 }
 0x4ac   : > { %4830 = vmatpush.bf16.msrb.mxu2 %v9879_v43  ;;  %v2395_v43 = vadd.f32 %v12423_v8, %v12400_v49 }
 0x4ad   : > { %v4274_v61 = vmax.f32 %v4130_v12, 0.0  ;;  %9613 = vmatmul.msk.bf16.gmra.mxu1 %vm1946_vm2, %v1883_v47  ;;  %9780 = vmatmul.msk.bf16.gmra.mxu3 %vm3052_vm3, %v12516_v63  ;;  %v2814_v13 = vmax.f32 %v2470_v7, 0.0  ;;  %v1884_v21 = vpack.c.bf16 %v11231_v41, %v11230_v29 }
 0x4ae   : > { %v2784_v20 = vmax.f32 %v2395_v43, 0.0 }
 0x4af   : > { %v12699_v63 = vpack.c.bf16 %v4274_v61, %v4273_v35  ;;  %v2397_v61 = vadd.f32 %v12423_v8, %v12407_v15 }
 0x4b0   : > { %v3340_v1 = vpop.f32.mrf.mxu2  ;;  %v3803_v5 = vpop.f32.mrf.mxu3 }
 0x4b1   : > { %v3804_v45 = vadd.f32 %v3803_v5, %v3338_v33  ;;  %v2785_v4 = vmax.f32 %v2397_v61, 0.0 }
 0x4b2   : > { %v2471_v54 = vpop.f32.mrf.mxu1 }
 0x4b3   : > { %v2472_v10 = vadd.f32 %v12423_v8, %v2471_v54  ;;  %v4131_v37 = vadd.f32 %v12460_v59, %v3804_v45  ;;  %v2994_v54 = vpack.c.bf16 %v2785_v4, %v2784_v20 }
 0x4b5   : > { %v2815_v40 = vmax.f32 %v2472_v10, 0.0  ;;  %9693 = vmatmul.msk.bf16.gmra.mxu2 %vm3052_vm3, %v2993_v31  ;;  %v4275_v32 = vmax.f32 %v4131_v37, 0.0  ;;  %v11234_v31 = vpop.permute.xlu2 %11233 }
 0x4b7   : > { %v12704_v47 = vpack.c.bf16 %v2815_v40, %v2814_v13  ;;  %v11236_v13 = vunpack.i.h.bf16 %v11234_v31 }
 0x4b8   : > { %v3343_v12 = vpop.f32.mrf.mxu2  ;;  %v3805_v35 = vpop.f32.mrf.mxu3 }
 0x4b9   : > { %v3806_v16 = vadd.f32 %v3805_v35, %v3340_v1 }
 0x4ba   : > { %v2474_v33 = vpop.f32.mrf.mxu1 }
 0x4bb   : > { %v4132_v62 = vadd.f32 %v12460_v59, %v3806_v16  ;;  %v2475_v15 = vadd.f32 %v12423_v8, %v2474_v33  ;;  %v2402_v33 = vadd.f32 %v12423_v8, %v12416_v46 }
 0x4bd   : > { %v4276_v28 = vmax.f32 %v4132_v62, 0.0  ;;  %9614 = vmatmul.msk.bf16.gmra.mxu1 %vm1946_vm2, %v1884_v21  ;;  %9781 = vmatmul.msk.bf16.gmra.mxu3 %vm3052_vm3, %v12541_v38  ;;  %v2816_v10 = vmax.f32 %v2475_v15, 0.0  ;;  %v11235_v38 = vunpack.i.l.bf16 %v11234_v31  ;;  %v2400_v21 = vadd.f32 %v12423_v8, %v12411_v2 }
 0x4bf   : > { %v12715_v0 = vpack.c.bf16 %v4276_v28, %v4275_v32  ;;  %v2787_v32 = vmax.f32 %v2402_v33, 0.0 }
 0x4c0   : > { %v3345_v1 = vpop.f32.mrf.mxu2  ;;  %v3808_v5 = vpop.f32.mrf.mxu3 }
 0x4c1   : > { %17300 = vst [vmem:[#allocation3_spill] sm:$0xff] %v12715_v0  ;;  %v3809_v7 = vadd.f32 %v3808_v5, %v3343_v12  ;;  %v1885_v12 = vpack.c.bf16 %v11236_v13, %v11235_v38  ;;  %v2786_v5 = vmax.f32 %v2400_v21, 0.0  ;;  %v12748_v21 = vld [vmem:[%s17150_s4] ss:$0 sm:$0xff] }
 0x4c2   : > { %v2476_v45 = vpop.f32.mrf.mxu1 }
 0x4c3   : > { %v2477_v49 = vadd.f32 %v12423_v8, %v2476_v45  ;;  %v4133_v35 = vadd.f32 %v12460_v59, %v3809_v7  ;;  %v2995_v7 = vpack.c.bf16 %v2787_v32, %v2786_v5  ;;  %v11239_v45 = vpop.permute.xlu0 %11238 }
 0x4c4   : > { %v11241_v31 = vunpack.i.h.bf16 %v11239_v45 }
 0x4c5   : > { %v2817_v50 = vmax.f32 %v2477_v49, 0.0  ;;  %9694 = vmatmul.msk.bf16.gmra.mxu2 %vm3052_vm3, %v2994_v54  ;;  %v4277_v62 = vmax.f32 %v4133_v35, 0.0 }
 0x4c7   : > { %v12720_v40 = vpack.c.bf16 %v2817_v50, %v2816_v10 }
 0x4c8   : > { %v3348_v41 = vpop.f32.mrf.mxu2  ;;  %v3810_v29 = vpop.f32.mrf.mxu3 }
 0x4c9   : > { %v3811_v37 = vadd.f32 %v3810_v29, %v3345_v1 }
 0x4ca   : > { %v2479_v16 = vpop.f32.mrf.mxu1 }
 0x4cb   : > { %v4134_v61 = vadd.f32 %v12460_v59, %v3811_v37  ;;  %v2480_v46 = vadd.f32 %v12423_v8, %v2479_v16 }
 0x4cd   : > { %v4278_v43 = vmax.f32 %v4134_v61, 0.0  ;;  %9615 = vmatmul.msk.bf16.gmra.mxu1 %vm1946_vm2, %v1885_v12  ;;  %9782 = vmatmul.msk.bf16.gmra.mxu3 %vm3052_vm3, %v12560_v60  ;;  %v2818_v54 = vmax.f32 %v2480_v46, 0.0  ;;  %v11240_v60 = vunpack.i.l.bf16 %v11239_v45 }
 0x4cf   : > { %v12731_v28 = vpack.c.bf16 %v4278_v43, %v4277_v62 }
 0x4d0   : > { %v3350_v4 = vpop.f32.mrf.mxu2  ;;  %v3813_v1 = vpop.f32.mrf.mxu3 }
 0x4d1   : > { %17301 = vst [vmem:[#allocation4_spill] sm:$0xff] %v12731_v28  ;;  %v3814_v20 = vadd.f32 %v3813_v1, %v3348_v41  ;;  %v1886_v41 = vpack.c.bf16 %v11241_v31, %v11240_v60  ;;  %v11244_v1 = vpop.permute.xlu1 %11243 }
 0x4d2   : > { %v2481_v15 = vpop.f32.mrf.mxu1 }
 0x4d3   : > { %v2482_v2 = vadd.f32 %v12423_v8, %v2481_v15  ;;  %v4135_v38 = vadd.f32 %v12460_v59, %v3814_v20  ;;  %v11245_v20 = vunpack.i.l.bf16 %v11244_v1 }
 0x4d5   : > { %v2819_v49 = vmax.f32 %v2482_v2, 0.0  ;;  %9695 = vmatmul.msk.bf16.gmra.mxu2 %vm3052_vm3, %v2995_v7  ;;  %v4279_v16 = vmax.f32 %v4135_v38, 0.0  ;;  %v9842_v7 = vld [vmem:[%s17155_s9 + $0x10] sm:$0xf]  ;;  %v10840_v2 = vld [vmem:[%s17155_s9 + $0x14] sm:$0xf0] }
 0x4d7   : > { %v12736_v10 = vpack.c.bf16 %v2819_v49, %v2818_v54  ;;  %v9843_v49 = vor.u32 %v10840_v2, %v9842_v7 }
 0x4d8   : > { %v3353_v50 = vpop.f32.mrf.mxu2  ;;  %v3815_v13 = vpop.f32.mrf.mxu3 }
 0x4d9   : > { %v3816_v29 = vadd.f32 %v3815_v13, %v3350_v4  ;;  %4585 = vmatpush.bf16.msrb.mxu0 %v9843_v49  ;;  %11074 = vmatpush.bf16.msrb.mxu1 %v9843_v49 }
 0x4da   : > { %v2484_v35 = vpop.f32.mrf.mxu1 }
 0x4db   : > { %v4136_v37 = vadd.f32 %v12460_v59, %v3816_v29  ;;  %v2485_v62 = vadd.f32 %v12748_v21, %v2484_v35 }
 0x4dd   : > { %v4280_v8 = vmax.f32 %v4136_v37, 0.0  ;;  %9616 = vmatmul.msk.bf16.gmra.mxu1 %vm1946_vm2, %v1886_v41  ;;  %9783 = vmatmul.msk.bf16.gmra.mxu3 %vm3052_vm3, %v12579_v34  ;;  %v2820_v5 = vmax.f32 %v2485_v62, 0.0  ;;  %v11246_v34 = vunpack.i.h.bf16 %v11244_v1 }
 0x4df   : > { %v12743_v12 = vpack.c.bf16 %v4280_v8, %v4279_v16  ;;  %v1887_v13 = vpack.c.bf16 %v11246_v34, %v11245_v20 }
 0x4e0   : > { %v3355_v33 = vpop.f32.mrf.mxu2  ;;  %v3818_v61 = vpop.f32.mrf.mxu3 }
 0x4e1   : > { %17302 = vst [vmem:[#allocation5_spill] sm:$0xff] %v12743_v12  ;;  %v3819_v43 = vadd.f32 %v3818_v61, %v3353_v50 }
 0x4e2   : > { %v2486_v32 = vpop.f32.mrf.mxu1 }
 0x4e3   : > { %v2487_v4 = vadd.f32 %v12748_v21, %v2486_v32  ;;  %v4137_v31 = vadd.f32 %v12460_v59, %v3819_v43  ;;  %v11249_v43 = vpop.permute.xlu2 %11248 }
 0x4e4   : > { %v11251_v1 = vunpack.i.h.bf16 %v11249_v43 }
 0x4e5   : > { %v2821_v46 = vmax.f32 %v2487_v4, 0.0  ;;  %9696 = vmatmul.msk.bf16.gmra.mxu2 %vm3052_vm3, %v12600_v24  ;;  %v4281_v29 = vmax.f32 %v4137_v31, 0.0 }
 0x4e7   : > { %v12754_v15 = vpack.c.bf16 %v2821_v46, %v2820_v5  ;;  %v11250_v5 = vunpack.i.l.bf16 %v11249_v43 }
 0x4e8   : > { %v3358_v45 = vpop.f32.mrf.mxu2  ;;  %v3820_v54 = vpop.f32.mrf.mxu3 }
 0x4e9   : > { %v3821_v60 = vadd.f32 %v3820_v54, %v3355_v33 }
 0x4ea   : > { %v2489_v50 = vpop.f32.mrf.mxu1 }
 0x4eb   : > { %v4138_v38 = vadd.f32 %v12460_v59, %v3821_v60  ;;  %v2490_v8 = vadd.f32 %v12748_v21, %v2489_v50 }
 0x4ed   : > { %v4282_v35 = vmax.f32 %v4138_v38, 0.0  ;;  %9617 = vmatmul.msk.bf16.gmra.mxu1 %vm1946_vm2, %v1887_v13  ;;  %9784 = vmatmul.msk.bf16.gmra.mxu3 %vm3052_vm3, %v12441_v44  ;;  %v2822_v32 = vmax.f32 %v2490_v8, 0.0 }
 0x4ef   : > { %v12767_v41 = vpack.c.bf16 %v4282_v35, %v4281_v29 }
 0x4f0   : > { %v3360_v37 = vpop.f32.mrf.mxu2  ;;  %v3823_v16 = vpop.f32.mrf.mxu3 }
 0x4f1   : > { %17303 = vst [vmem:[#allocation6_spill] sm:$0xff] %v12767_v41  ;;  %v3824_v33 = vadd.f32 %v3823_v16, %v3358_v45  ;;  %v1888_v45 = vpack.c.bf16 %v11251_v1, %v11250_v5  ;;  %v11254_v16 = vpop.permute.xlu0 %11253 }
 0x4f2   : > { %v2491_v61 = vpop.f32.mrf.mxu1 }
 0x4f3   : > { %v2492_v62 = vadd.f32 %v12748_v21, %v2491_v61  ;;  %v4139_v20 = vadd.f32 %v12460_v59, %v3824_v33  ;;  %v11256_v33 = vunpack.i.h.bf16 %v11254_v16  ;;  %v11255_v61 = vunpack.i.l.bf16 %v11254_v16 }
 0x4f5   : > { %v2823_v4 = vmax.f32 %v2492_v62, 0.0  ;;  %9697 = vmatmul.msk.bf16.gmra.mxu2 %vm3052_vm3, %v12622_v58  ;;  %v4283_v49 = vmax.f32 %v4139_v20, 0.0 }
 0x4f7   : > { %v12773_v46 = vpack.c.bf16 %v2823_v4, %v2822_v32  ;;  %v12791_v32 = vld [vmem:[%s17153_s7] ss:$0 sm:$0xff] }
 0x4f8   : > { %v3363_v44 = vpop.f32.mrf.mxu2  ;;  %v3825_v34 = vpop.f32.mrf.mxu3 }
 0x4f9   : > { %v3826_v7 = vadd.f32 %v3825_v34, %v3360_v37 }
 0x4fa   : > { %v2494_v2 = vpop.f32.mrf.mxu1 }
 0x4fb   : > { %v4140_v54 = vadd.f32 %v12460_v59, %v3826_v7  ;;  %v2495_v38 = vadd.f32 %v12748_v21, %v2494_v2 }
 0x4fd   : > { %v4284_v31 = vmax.f32 %v4140_v54, 0.0  ;;  %9618 = vmatmul.msk.bf16.gmra.mxu1 %vm1946_vm2, %v1888_v45  ;;  %9785 = vmatmul.msk.bf16.gmra.mxu3 %vm3052_vm3, %v12464_v39  ;;  %v2824_v8 = vmax.f32 %v2495_v38, 0.0  ;;  %v11259_v38 = vpop.permute.xlu1 %11258 }
 0x4fe   : > { %v11260_v16 = vunpack.i.l.bf16 %v11259_v38 }
 0x4ff   : > { %v12780_v60 = vpack.c.bf16 %v4284_v31, %v4283_v49 }
 0x500   : > { %v3365_v50 = vpop.f32.mrf.mxu2  ;;  %v3828_v13 = vpop.f32.mrf.mxu3 }
 0x501   : > { %17304 = vst [vmem:[#allocation7_spill] sm:$0xff] %v12780_v60  ;;  %v3829_v29 = vadd.f32 %v3828_v13, %v3363_v44  ;;  %v1889_v44 = vpack.c.bf16 %v11256_v33, %v11255_v61 }
 0x502   : > { %v2496_v35 = vpop.f32.mrf.mxu1 }
 0x503   : > { %v2497_v37 = vadd.f32 %v12748_v21, %v2496_v35  ;;  %v4141_v4 = vadd.f32 %v12791_v32, %v3829_v29 }
 0x505   : > { %v2825_v59 = vmax.f32 %v2497_v37, 0.0  ;;  %9698 = vmatmul.msk.bf16.gmra.mxu2 %vm3052_vm3, %v12638_v42  ;;  %v4285_v20 = vmax.f32 %v4141_v4, 0.0  ;;  %v11261_v37 = vunpack.i.h.bf16 %v11259_v38 }
 0x507   : > { %v12786_v62 = vpack.c.bf16 %v2825_v59, %v2824_v8 }
 0x508   : > { %v3368_v39 = vpop.f32.mrf.mxu2  ;;  %v3830_v43 = vpop.f32.mrf.mxu3 }
 0x509   : > { %v3831_v1 = vadd.f32 %v3830_v43, %v3365_v50 }
 0x50a   : > { %v2499_v5 = vpop.f32.mrf.mxu1 }
 0x50b   : > { %v4142_v34 = vadd.f32 %v12791_v32, %v3831_v1  ;;  %v2500_v49 = vadd.f32 %v12748_v21, %v2499_v5 }
 0x50d   : > { %v4286_v7 = vmax.f32 %v4142_v34, 0.0  ;;  %9619 = vmatmul.msk.bf16.gmra.mxu1 %vm1946_vm2, %v1889_v44  ;;  %9786 = vmatmul.msk.bf16.gmra.mxu3 %vm3052_vm3, %v12477_v27  ;;  %v2826_v29 = vmax.f32 %v2500_v49, 0.0 }
 0x50f   : > { %v12798_v2 = vpack.c.bf16 %v4286_v7, %v4285_v20 }
 0x510   : > { %v3370_v45 = vpop.f32.mrf.mxu2  ;;  %v3833_v54 = vpop.f32.mrf.mxu3 }
 0x511   : > { %17305 = vst [vmem:[#allocation8_spill] sm:$0xff] %v12798_v2  ;;  %v3834_v31 = vadd.f32 %v3833_v54, %v3368_v39  ;;  %v1890_v39 = vpack.c.bf16 %v11261_v37, %v11260_v16  ;;  %v10838_v37 = vld [vmem:[%s17155_s9 + $0x4] sm:$0xf0] }
 0x512   : > { %v2501_v13 = vpop.f32.mrf.mxu1 }
 0x513   : > { %v2502_v50 = vadd.f32 %v12748_v21, %v2501_v13  ;;  %v4143_v33 = vadd.f32 %v12791_v32, %v3834_v31  ;;  %v11264_v31 = vpop.permute.xlu2 %11263 }
 0x514   : > { %v11266_v38 = vunpack.i.h.bf16 %v11264_v31 }
 0x515   : > { %v2827_v35 = vmax.f32 %v2502_v50, 0.0  ;;  %9699 = vmatmul.msk.bf16.gmra.mxu2 %vm3052_vm3, %v12654_v26  ;;  %v4287_v1 = vmax.f32 %v4143_v33, 0.0 }
 0x517   : > { %v12804_v8 = vpack.c.bf16 %v2827_v35, %v2826_v29  ;;  %v11265_v29 = vunpack.i.l.bf16 %v11264_v31 }
 0x518   : > { %v3373_v27 = vpop.f32.mrf.mxu2  ;;  %v3835_v59 = vpop.f32.mrf.mxu3 }
 0x519   : > { %v3836_v61 = vadd.f32 %v3835_v59, %v3370_v45 }
 0x51a   : > { %v2504_v43 = vpop.f32.mrf.mxu1 }
 0x51b   : > { %v4144_v4 = vadd.f32 %v12791_v32, %v3836_v61  ;;  %v2505_v7 = vadd.f32 %v12748_v21, %v2504_v43 }
 0x51d   : > { %v4288_v5 = vmax.f32 %v4144_v4, 0.0  ;;  %9620 = vmatmul.msk.bf16.gmra.mxu1 %vm1946_vm2, %v1890_v39  ;;  %9787 = vmatmul.msk.bf16.gmra.mxu3 %vm3052_vm3, %v12490_v30  ;;  %v2828_v13 = vmax.f32 %v2505_v7, 0.0  ;;  %v9834_v30 = vld [vmem:[%s17155_s9] sm:$0xf]  ;;  %v1891_v39 = vpack.c.bf16 %v11266_v38, %v11265_v29 }
 0x51e   : > { %v9835_v59 = vor.u32 %v10838_v37, %v9834_v30 }
 0x51f   : > { %v12811_v44 = vpack.c.bf16 %v4288_v5, %v4287_v1 }
 0x520   : > { %v3375_v34 = vpop.f32.mrf.mxu2  ;;  %v3838_v20 = vpop.f32.mrf.mxu3  ;;  %4586 = vmatpush.bf16.msrb.mxu0 %v9835_v59  ;;  %11075 = vmatpush.bf16.msrb.mxu1 %v9835_v59 }
 0x521   : > { %17306 = vst [vmem:[#allocation9_spill] sm:$0xff] %v12811_v44  ;;  %v3839_v54 = vadd.f32 %v3838_v20, %v3373_v27 }
 0x522   : > { %v2506_v49 = vpop.f32.mrf.mxu1 }
 0x523   : > { %v2507_v45 = vadd.f32 %v12748_v21, %v2506_v49  ;;  %v4145_v33 = vadd.f32 %v12791_v32, %v3839_v54 }
 0x525   : > { %v2829_v50 = vmax.f32 %v2507_v45, 0.0  ;;  %9700 = vmatmul.msk.bf16.gmra.mxu2 %vm3052_vm3, %v12670_v51  ;;  %v4289_v1 = vmax.f32 %v4145_v33, 0.0 }
 0x527   : > { %v12817_v35 = vpack.c.bf16 %v2829_v50, %v2828_v13  ;;  %v11269_v13 = vpop.permute.xlu0 %11268 }
 0x528   : > { %v3378_v16 = vpop.f32.mrf.mxu2  ;;  %v3840_v27 = vpop.f32.mrf.mxu3  ;;  %v11271_v29 = vunpack.i.h.bf16 %v11269_v13  ;;  %v11270_v30 = vunpack.i.l.bf16 %v11269_v13 }
 0x529   : > { %v3841_v61 = vadd.f32 %v3840_v27, %v3375_v34 }
 0x52a   : > { %v2509_v43 = vpop.f32.mrf.mxu1 }
 0x52b   : > { %v4146_v4 = vadd.f32 %v12791_v32, %v3841_v61  ;;  %v2510_v54 = vadd.f32 %v12748_v21, %v2509_v43 }
 0x52d   : > { %v4290_v5 = vmax.f32 %v4146_v4, 0.0  ;;  %9621 = vmatmul.msk.bf16.gmra.mxu1 %vm1946_vm2, %v1891_v39  ;;  %9788 = vmatmul.msk.bf16.gmra.mxu3 %vm3052_vm3, %v12521_v3  ;;  %v2830_v50 = vmax.f32 %v2510_v54, 0.0  ;;  %v10830_v54 = vld [vmem:[%s17154_s8 + $0x44] sm:$0xf0] }
 0x52f   : > { %v12830_v20 = vpack.c.bf16 %v4290_v5, %v4289_v1  ;;  %v10845_v1 = vld [vmem:[%s17155_s9 + $0x44] sm:$0xf]  ;;  %v9868_v5 = vld [vmem:[%s17155_s9 + $0x48] sm:$0xf0] }
 0x530   : > { %v3380_v7 = vpop.f32.mrf.mxu2  ;;  %v3843_v49 = vpop.f32.mrf.mxu3 }
 0x531   : > { %17307 = vst [vmem:[#allocation10_spill] sm:$0xff] %v12830_v20  ;;  %v3844_v34 = vadd.f32 %v3843_v49, %v3378_v16  ;;  %v1892_v16 = vpack.c.bf16 %v11271_v29, %v11270_v30  ;;  %v9930_v49 = vld [vmem:[%s17154_s8 + $0x40] sm:$0xf]  ;;  %v11274_v30 = vpop.permute.xlu1 %11273 }
 0x532   : > { %v2511_v45 = vpop.f32.mrf.mxu1 }
 0x533   : > { %v2512_v31 = vadd.f32 %v12748_v21, %v2511_v45  ;;  %v4147_v59 = vadd.f32 %v12791_v32, %v3844_v34  ;;  %v9931_v34 = vor.u32 %v10830_v54, %v9930_v49 }
 0x535   : > { %v2831_v38 = vmax.f32 %v2512_v31, 0.0  ;;  %9701 = vmatmul.msk.bf16.gmra.mxu2 %vm3052_vm3, %v12704_v47  ;;  %v4291_v39 = vmax.f32 %v4147_v59, 0.0  ;;  %5160 = vmatpush.bf16.msra.mxu3 %v9931_v34 }
 0x537   : > { %v12836_v37 = vpack.c.bf16 %v2831_v38, %v2830_v50 }
 0x538   : > { %v3383_v3 = vpop.f32.mrf.mxu2  ;;  %v3845_v27 = vpop.f32.mrf.mxu3 }
 0x539   : > { %v3846_v33 = vadd.f32 %v3845_v27, %v3380_v7  ;;  %v9871_v7 = vor.u32 %v10845_v1, %v9868_v5 }
 0x53a   : > { %v2514_v61 = vpop.f32.mrf.mxu1 }
 0x53b   : > { %v4148_v43 = vadd.f32 %v12791_v32, %v3846_v33  ;;  %4831 = vmatpush.bf16.msrb.mxu2 %v9871_v7  ;;  %v2515_v13 = vadd.f32 %v12748_v21, %v2514_v61  ;;  %v11276_v33 = vunpack.i.h.bf16 %v11274_v30 }
 0x53d   : > { %v4292_v4 = vmax.f32 %v4148_v43, 0.0  ;;  %9622 = vmatmul.msk.bf16.gmra.mxu1 %vm1946_vm2, %v1892_v16  ;;  %9789 = vmatmul.msk.bf16.gmra.mxu3 %vm3052_vm3, %v12546_v11  ;;  %v2832_v27 = vmax.f32 %v2515_v13, 0.0  ;;  %v11275_v16 = vunpack.i.l.bf16 %v11274_v30  ;;  %v11279_v30 = vpop.permute.xlu2 %11278 }
 0x53f   : > { %v12855_v45 = vpack.c.bf16 %v4292_v4, %v4291_v39  ;;  %v1893_v5 = vpack.c.bf16 %v11276_v33, %v11275_v16  ;;  %v11281_v33 = vunpack.i.h.bf16 %v11279_v30  ;;  %v11280_v16 = vunpack.i.l.bf16 %v11279_v30 }
 0x540   : > { %v3385_v11 = vpop.f32.mrf.mxu2  ;;  %v3848_v31 = vpop.f32.mrf.mxu3 }
 0x541   : > { %17308 = vst [vmem:[#allocation11_spill] sm:$0xff] %v12855_v45  ;;  %v3849_v50 = vadd.f32 %v3848_v31, %v3383_v3 }
 0x542   : > { %v2516_v38 = vpop.f32.mrf.mxu1 }
 0x543   : > { %v2517_v29 = vadd.f32 %v12748_v21, %v2516_v38  ;;  %v4149_v1 = vadd.f32 %v12791_v32, %v3849_v50 }
 0x545   : > { %v2833_v59 = vmax.f32 %v2517_v29, 0.0  ;;  %9702 = vmatmul.msk.bf16.gmra.mxu2 %vm3052_vm3, %v12720_v40  ;;  %v4293_v49 = vmax.f32 %v4149_v1, 0.0 }
 0x547   : > { %v12861_v43 = vpack.c.bf16 %v2833_v59, %v2832_v27 }
 0x548   : > { %v3388_v39 = vpop.f32.mrf.mxu2  ;;  %v3850_v4 = vpop.f32.mrf.mxu3 }
 0x549   : > { %v3851_v61 = vadd.f32 %v3850_v4, %v3385_v11 }
 0x54a   : > { %v2519_v3 = vpop.f32.mrf.mxu1 }
 0x54b   : > { %v4150_v7 = vadd.f32 %v12791_v32, %v3851_v61  ;;  %v2520_v38 = vadd.f32 %v12748_v21, %v2519_v3 }
 0x54d   : > { %v4294_v54 = vmax.f32 %v4150_v7, 0.0  ;;  %9623 = vmatmul.msk.bf16.gmra.mxu1 %vm1946_vm2, %v1893_v5  ;;  %9790 = vmatmul.msk.bf16.gmra.mxu3 %vm3052_vm3, %v12565_v19  ;;  %v2834_v27 = vmax.f32 %v2520_v38, 0.0 }
 0x54f   : > { %v12868_v34 = vpack.c.bf16 %v4294_v54, %v4293_v49 }
 0x550   : > { %v3390_v31 = vpop.f32.mrf.mxu2  ;;  %v3853_v13 = vpop.f32.mrf.mxu3 }
 0x551   : > { %17309 = vst [vmem:[#allocation12_spill] sm:$0xff] %v12868_v34  ;;  %v3854_v29 = vadd.f32 %v3853_v13, %v3388_v39  ;;  %v1894_v39 = vpack.c.bf16 %v11281_v33, %v11280_v16  ;;  %v9956_v16 = vld [vmem:[%s17154_s8 + $0x78] sm:$0xf0] }
 0x552   : > { %v2521_v50 = vpop.f32.mrf.mxu1 }
 0x553   : > { %v2522_v11 = vadd.f32 %v12748_v21, %v2521_v50  ;;  %v4151_v61 = vadd.f32 %v12791_v32, %v3854_v29 }
 0x555   : > { %v2835_v59 = vmax.f32 %v2522_v11, 0.0  ;;  %9703 = vmatmul.msk.bf16.gmra.mxu2 %vm3052_vm3, %v12736_v10  ;;  %v4295_v49 = vmax.f32 %v4151_v61, 0.0 }
 0x557   : > { %v12874_v4 = vpack.c.bf16 %v2835_v59, %v2834_v27  ;;  %v11284_v27 = vpop.permute.xlu0 %11283 }
 0x558   : > { %v3393_v19 = vpop.f32.mrf.mxu2  ;;  %v3855_v1 = vpop.f32.mrf.mxu3  ;;  %v11286_v61 = vunpack.i.h.bf16 %v11284_v27 }
 0x559   : > { %v3856_v5 = vadd.f32 %v3855_v1, %v3390_v31 }
 0x55a   : > { %v2524_v3 = vpop.f32.mrf.mxu1 }
 0x55b   : > { %v4152_v7 = vadd.f32 %v12791_v32, %v3856_v5  ;;  %v2525_v11 = vadd.f32 %v12748_v21, %v2524_v3 }
 0x55d   : > { %v4296_v54 = vmax.f32 %v4152_v7, 0.0  ;;  %9624 = vmatmul.msk.bf16.gmra.mxu1 %vm1946_vm2, %v1894_v39  ;;  %9791 = vmatmul.msk.bf16.gmra.mxu3 %vm3052_vm3, %v12584_v55  ;;  %v2836_v59 = vmax.f32 %v2525_v11, 0.0  ;;  %v10835_v55 = vld [vmem:[%s17154_s8 + $0x74] sm:$0xf] }
 0x55e   : > { %v9959_v1 = vor.u32 %v10835_v55, %v9956_v16 }
 0x55f   : > { %v12881_v13 = vpack.c.bf16 %v4296_v54, %v4295_v49 }
 0x560   : > { %v3395_v38 = vpop.f32.mrf.mxu2  ;;  %v3858_v50 = vpop.f32.mrf.mxu3  ;;  %5406 = vmatpush.bf16.msra.mxu0 %v9959_v1 }
 0x561   : > { %17310 = vst [vmem:[#allocation13_spill] sm:$0xff] %v12881_v13  ;;  %v3859_v30 = vadd.f32 %v3858_v50, %v3393_v19  ;;  %v11285_v19 = vunpack.i.l.bf16 %v11284_v27 }
 0x562   : > { %v2526_v29 = vpop.f32.mrf.mxu1 }
 0x563   : > { %v2527_v31 = vadd.f32 %v12748_v21, %v2526_v29  ;;  %v4153_v7 = vadd.f32 %v12791_v32, %v3859_v30  ;;  %v1895_v50 = vpack.c.bf16 %v11286_v61, %v11285_v19  ;;  %v11289_v30 = vpop.permute.xlu1 %11288 }
 0x565   : > { %v2837_v33 = vmax.f32 %v2527_v31, 0.0  ;;  %9704 = vmatmul.msk.bf16.gmra.mxu2 %vm3052_vm3, %v12754_v15  ;;  %v4297_v29 = vmax.f32 %v4153_v7, 0.0  ;;  %v11290_v7 = vunpack.i.l.bf16 %v11289_v30 }
 0x567   : > { %v12893_v5 = vpack.c.bf16 %v2837_v33, %v2836_v59 }
 0x568   : > { %v3398_v3 = vpop.f32.mrf.mxu2  ;;  %v3860_v39 = vpop.f32.mrf.mxu3 }
 0x569   : > { %v3861_v49 = vadd.f32 %v3860_v39, %v3395_v38  ;;  %v11291_v39 = vunpack.i.h.bf16 %v11289_v30 }
 0x56a   : > { %v2529_v54 = vpop.f32.mrf.mxu1 }
 0x56b   : > { %v4154_v11 = vadd.f32 %v12791_v32, %v3861_v49  ;;  %v2530_v55 = vadd.f32 %v12748_v21, %v2529_v54 }
 0x56d   : > { %v4298_v31 = vmax.f32 %v4154_v11, 0.0  ;;  %9625 = vmatmul.msk.bf16.gmra.mxu1 %vm1946_vm2, %v1895_v50  ;;  %9792 = vmatmul.msk.bf16.gmra.mxu3 %vm3052_vm3, %v12600_v24  ;;  %v2838_v1 = vmax.f32 %v2530_v55, 0.0 }
 0x56f   : > { %v12900_v27 = vpack.c.bf16 %v4298_v31, %v4297_v29  ;;  %v1896_v31 = vpack.c.bf16 %v11291_v39, %v11290_v7 }
 0x570   : > { %v3400_v59 = vpop.f32.mrf.mxu2  ;;  %v3863_v33 = vpop.f32.mrf.mxu3 }
 0x571   : > { %17311 = vst [vmem:[#allocation14_spill] sm:$0xff] %v12900_v27  ;;  %v3864_v61 = vadd.f32 %v3863_v33, %v3398_v3 }
 0x572   : > { %v2531_v16 = vpop.f32.mrf.mxu1 }
 0x573   : > { %v2532_v38 = vadd.f32 %v12748_v21, %v2531_v16  ;;  %v4155_v11 = vadd.f32 %v12791_v32, %v3864_v61  ;;  %v11294_v61 = vpop.permute.xlu2 %11293 }
 0x575   : > { %v2839_v19 = vmax.f32 %v2532_v38, 0.0  ;;  %9705 = vmatmul.msk.bf16.gmra.mxu2 %vm3052_vm3, %v12773_v46  ;;  %v4299_v27 = vmax.f32 %v4155_v11, 0.0 }
 0x577   : > { %v12906_v49 = vpack.c.bf16 %v2839_v19, %v2838_v1 }
 0x578   : > { %v3403_v24 = vpop.f32.mrf.mxu2  ;;  %v3865_v50 = vpop.f32.mrf.mxu3 }
 0x579   : > { %v3866_v29 = vadd.f32 %v3865_v50, %v3400_v59  ;;  %v11296_v50 = vunpack.i.h.bf16 %v11294_v61 }
 0x57a   : > { %v2534_v54 = vpop.f32.mrf.mxu1 }
 0x57b   : > { %v4156_v16 = vadd.f32 %v12791_v32, %v3866_v29  ;;  %v2535_v30 = vadd.f32 %v12748_v21, %v2534_v54 }
 0x57d   : > { %v4300_v55 = vmax.f32 %v4156_v16, 0.0  ;;  %9626 = vmatmul.msk.bf16.gmra.mxu1 %vm1946_vm2, %v1896_v31  ;;  %9793 = vmatmul.msk.bf16.gmra.mxu3 %vm3052_vm3, %v12622_v58  ;;  %v2840_v19 = vmax.f32 %v2535_v30, 0.0  ;;  %v11295_v58 = vunpack.i.l.bf16 %v11294_v61 }
 0x57f   : > { %v12913_v3 = vpack.c.bf16 %v4300_v55, %v4299_v27  ;;  %v1897_v55 = vpack.c.bf16 %v11296_v50, %v11295_v58 }
 0x580   : > { %v3405_v33 = vpop.f32.mrf.mxu2  ;;  %v3868_v38 = vpop.f32.mrf.mxu3 }
 0x581   : > { %4587 = vmatmul.bf16.vlgmr.msrb.gmra.mxu0 %v12913_v3  ;;  %v3869_v39 = vadd.f32 %v3868_v38, %v3403_v24 }
 0x582   : > { %v2536_v59 = vpop.f32.mrf.mxu1 }
 0x583   : > { %v2537_v1 = vadd.f32 %v12748_v21, %v2536_v59  ;;  %v4157_v54 = vadd.f32 %v12791_v32, %v3869_v39  ;;  %v11299_v39 = vpop.permute.xlu0 %11298 }
 0x585   : > { %v2841_v7 = vmax.f32 %v2537_v1, 0.0  ;;  %9706 = vmatmul.msk.bf16.gmra.mxu2 %vm3052_vm3, %v12786_v62  ;;  %v4301_v13 = vmax.f32 %v4157_v54, 0.0 }
 0x587   : > { %v12920_v27 = vpack.c.bf16 %v2841_v7, %v2840_v19 }
 0x588   : > { %v3408_v11 = vpop.f32.mrf.mxu2  ;;  %v3870_v29 = vpop.f32.mrf.mxu3 }
 0x589   : > { %v3871_v31 = vadd.f32 %v3870_v29, %v3405_v33  ;;  %v11301_v29 = vunpack.i.h.bf16 %v11299_v39 }
 0x58a   : > { %v2539_v16 = vpop.f32.mrf.mxu1 }
 0x58b   : > { %v4158_v59 = vadd.f32 %v12791_v32, %v3871_v31  ;;  %v2540_v61 = vadd.f32 %v12748_v21, %v2539_v16 }
 0x58d   : > { %v4302_v30 = vmax.f32 %v4158_v59, 0.0  ;;  %9627 = vmatmul.msk.bf16.gmra.mxu1 %vm1946_vm2, %v1897_v55  ;;  %9794 = vmatmul.msk.bf16.gmra.mxu3 %vm3052_vm3, %v12638_v42  ;;  %v2842_v7 = vmax.f32 %v2540_v61, 0.0  ;;  %v11300_v42 = vunpack.i.l.bf16 %v11299_v39 }
 0x58f   : > { %v12927_v24 = vpack.c.bf16 %v4302_v30, %v4301_v13  ;;  %v1898_v30 = vpack.c.bf16 %v11301_v29, %v11300_v42 }
 0x590   : > { %v3410_v38 = vpop.f32.mrf.mxu2  ;;  %v3873_v1 = vpop.f32.mrf.mxu3 }
 0x591   : > { %4592 = vmatmul.bf16.gmra.mxu0 %v12927_v24  ;;  %v3874_v50 = vadd.f32 %v3873_v1, %v3408_v11 }
 0x592   : > { %v2541_v33 = vpop.f32.mrf.mxu1 }
 0x593   : > { %v2542_v19 = vadd.f32 %v12748_v21, %v2541_v33  ;;  %v4159_v16 = vadd.f32 %v12791_v32, %v3874_v50  ;;  %v11304_v50 = vpop.permute.xlu1 %11303 }
 0x595   : > { %v2843_v58 = vmax.f32 %v2542_v19, 0.0  ;;  %9707 = vmatmul.msk.bf16.gmra.mxu2 %vm3052_vm3, %v12804_v8  ;;  %v4303_v34 = vmax.f32 %v4159_v16, 0.0 }
 0x597   : > { %v12934_v13 = vpack.c.bf16 %v2843_v58, %v2842_v7 }
 0x598   : > { %v3413_v54 = vpop.f32.mrf.mxu2  ;;  %v3875_v31 = vpop.f32.mrf.mxu3 }
 0x599   : > { %v3876_v55 = vadd.f32 %v3875_v31, %v3410_v38  ;;  %v11306_v31 = vunpack.i.h.bf16 %v11304_v50 }
 0x59a   : > { %v2544_v59 = vpop.f32.mrf.mxu1 }
 0x59b   : > { %v4160_v33 = vadd.f32 %v12791_v32, %v3876_v55  ;;  %v2545_v39 = vadd.f32 %v12748_v21, %v2544_v59 }
 0x59d   : > { %v4304_v61 = vmax.f32 %v4160_v33, 0.0  ;;  %9628 = vmatmul.msk.bf16.gmra.mxu1 %vm1946_vm2, %v1898_v30  ;;  %9795 = vmatmul.msk.bf16.gmra.mxu3 %vm3052_vm3, %v12654_v26  ;;  %v2844_v58 = vmax.f32 %v2545_v39, 0.0  ;;  %v11305_v26 = vunpack.i.l.bf16 %v11304_v50 }
 0x59f   : > { %v12941_v11 = vpack.c.bf16 %v4304_v61, %v4303_v34  ;;  %v1899_v61 = vpack.c.bf16 %v11306_v31, %v11305_v26 }
 0x5a0   : > { %v3415_v1 = vpop.f32.mrf.mxu2  ;;  %v3878_v19 = vpop.f32.mrf.mxu3 }
 0x5a1   : > { %4597 = vmatmul.bf16.gmra.mxu0 %v12941_v11  ;;  %v3879_v29 = vadd.f32 %v3878_v19, %v3413_v54 }
 0x5a2   : > { %v2546_v38 = vpop.f32.mrf.mxu1 }
 0x5a3   : > { %v2547_v7 = vadd.f32 %v12748_v21, %v2546_v38  ;;  %v4161_v59 = vadd.f32 %v12791_v32, %v3879_v29  ;;  %v11309_v29 = vpop.permute.xlu2 %11308 }
 0x5a5   : > { %v2845_v42 = vmax.f32 %v2547_v7, 0.0  ;;  %9708 = vmatmul.msk.bf16.gmra.mxu2 %vm3052_vm3, %v12817_v35  ;;  %v4305_v45 = vmax.f32 %v4161_v59, 0.0  ;;  %v10833_v59 = vld [vmem:[%s17154_s8 + $0x64] sm:$0xf] }
 0x5a7   : > { %v12948_v34 = vpack.c.bf16 %v2845_v42, %v2844_v58 }
 0x5a8   : > { %v3418_v16 = vpop.f32.mrf.mxu2  ;;  %v3880_v55 = vpop.f32.mrf.mxu3 }
 0x5a9   : > { %v3881_v30 = vadd.f32 %v3880_v55, %v3415_v1  ;;  %v11311_v55 = vunpack.i.h.bf16 %v11309_v29 }
 0x5aa   : > { %v2549_v33 = vpop.f32.mrf.mxu1 }
 0x5ab   : > { %v4162_v38 = vadd.f32 %v12791_v32, %v3881_v30  ;;  %v2550_v50 = vadd.f32 %v12748_v21, %v2549_v33  ;;  %v9948_v30 = vld [vmem:[%s17154_s8 + $0x68] sm:$0xf0] }
 0x5ad   : > { %v4306_v39 = vmax.f32 %v4162_v38, 0.0  ;;  %9629 = vmatmul.msk.bf16.gmra.mxu1 %vm1946_vm2, %v1899_v61  ;;  %9796 = vmatmul.msk.bf16.gmra.mxu3 %vm3052_vm3, %v12670_v51  ;;  %v2846_v42 = vmax.f32 %v2550_v50, 0.0  ;;  %v11310_v51 = vunpack.i.l.bf16 %v11309_v29  ;;  %v9951_v38 = vor.u32 %v10833_v59, %v9948_v30 }
 0x5af   : > { %v12955_v54 = vpack.c.bf16 %v4306_v39, %v4305_v45  ;;  %5407 = vmatpush.bf16.msra.mxu0 %v9951_v38  ;;  %v1900_v50 = vpack.c.bf16 %v11311_v55, %v11310_v51  ;;  %v11314_v55 = vpop.permute.xlu0 %11313 }
 0x5b0   : > { %v3420_v19 = vpop.f32.mrf.mxu2  ;;  %v3883_v7 = vpop.f32.mrf.mxu3  ;;  %v11316_v38 = vunpack.i.h.bf16 %v11314_v55 }
 0x5b1   : > { %4602 = vmatmul.bf16.gmra.mxu0 %v12955_v54  ;;  %v3884_v31 = vadd.f32 %v3883_v7, %v3418_v16 }
 0x5b2   : > { %v2551_v1 = vpop.f32.mrf.mxu1 }
 0x5b3   : > { %v2552_v58 = vadd.f32 %v12748_v21, %v2551_v1  ;;  %v4163_v16 = vadd.f32 %v12791_v32, %v3884_v31 }
 0x5b5   : > { %v2847_v26 = vmax.f32 %v2552_v58, 0.0  ;;  %9709 = vmatmul.msk.bf16.gmra.mxu2 %vm3052_vm3, %v12836_v37  ;;  %v4307_v58 = vmax.f32 %v4163_v16, 0.0 }
 0x5b7   : > { %v12962_v45 = vpack.c.bf16 %v2847_v26, %v2846_v42 }
 0x5b8   : > { %v3423_v33 = vpop.f32.mrf.mxu2  ;;  %v3885_v61 = vpop.f32.mrf.mxu3 }
 0x5b9   : > { %v3886_v39 = vadd.f32 %v3885_v61, %v3420_v19 }
 0x5ba   : > { %v2554_v7 = vpop.f32.mrf.mxu1 }
 0x5bb   : > { %v4164_v1 = vadd.f32 %v12791_v32, %v3886_v39  ;;  %v2555_v59 = vadd.f32 %v12748_v21, %v2554_v7 }
 0x5bd   : > { %v4308_v29 = vmax.f32 %v4164_v1, 0.0  ;;  %9630 = vmatmul.msk.bf16.gmra.mxu1 %vm1946_vm2, %v1900_v50  ;;  %9797 = vmatmul.msk.bf16.gmra.mxu3 %vm3052_vm3, %v12704_v47  ;;  %v2848_v51 = vmax.f32 %v2555_v59, 0.0  ;;  %v11315_v47 = vunpack.i.l.bf16 %v11314_v55 }
 0x5bf   : > { %v12975_v42 = vpack.c.bf16 %v4308_v29, %v4307_v58  ;;  %v1901_v29 = vpack.c.bf16 %v11316_v38, %v11315_v47 }
 0x5c0   : > { %v3425_v26 = vpop.f32.mrf.mxu2  ;;  %v3888_v20 = vpop.f32.mrf.mxu3 }
 0x5c1   : > { %4607 = vmatmul.bf16.gmra.mxu0 %v12975_v42  ;;  %v3889_v30 = vadd.f32 %v3888_v20, %v3423_v33  ;;  %v10843_v33 = vld [vmem:[%s17155_s9 + $0x34] sm:$0xf] }
 0x5c2   : > { %v2556_v19 = vpop.f32.mrf.mxu1 }
 0x5c3   : > { %v2557_v31 = vadd.f32 %v12748_v21, %v2556_v19  ;;  %v4165_v7 = vadd.f32 %v12791_v32, %v3889_v30 }
 0x5c5   : > { %v2849_v61 = vmax.f32 %v2557_v31, 0.0  ;;  %9710 = vmatmul.msk.bf16.gmra.mxu2 %vm3052_vm3, %v12861_v43  ;;  %v4309_v44 = vmax.f32 %v4165_v7, 0.0  ;;  %v9922_v31 = vld [vmem:[%s17154_s8 + $0x30] sm:$0xf] }
 0x5c7   : > { %v12982_v16 = vpack.c.bf16 %v2849_v61, %v2848_v51 }
 0x5c8   : > { %v3428_v39 = vpop.f32.mrf.mxu2  ;;  %v3890_v50 = vpop.f32.mrf.mxu3 }
 0x5c9   : > { %v3891_v1 = vadd.f32 %v3890_v50, %v3425_v26  ;;  %v9860_v26 = vld [vmem:[%s17155_s9 + $0x38] sm:$0xf0]  ;;  %v11319_v50 = vpop.permute.xlu1 %11318 }
 0x5ca   : > { %v2559_v58 = vpop.f32.mrf.mxu1  ;;  %v9863_v30 = vor.u32 %v10843_v33, %v9860_v26 }
 0x5cb   : > { %v4166_v19 = vadd.f32 %v12791_v32, %v3891_v1 }
 0x5cc   : > { %4832 = vmatpush.bf16.msrb.mxu2 %v9863_v30 }
 0x5cd   : > { %v4310_v59 = vmax.f32 %v4166_v19, 0.0  ;;  %9631 = vmatmul.msk.bf16.gmra.mxu1 %vm1946_vm2, %v1901_v29  ;;  %9798 = vmatmul.msk.bf16.gmra.mxu3 %vm3052_vm3, %v12720_v40  ;;  %v10828_v40 = vld [vmem:[%s17154_s8 + $0x34] sm:$0xf0]  ;;  %v11321_v19 = vunpack.i.h.bf16 %v11319_v50 }
 0x5ce   : > { %v9923_v61 = vor.u32 %v10828_v40, %v9922_v31 }
 0x5cf   : > { %v12989_v20 = vpack.c.bf16 %v4310_v59, %v4309_v44  ;;  %v2560_v44 = vadd.f32 %v12748_v21, %v2559_v58  ;;  %v11320_v59 = vunpack.i.l.bf16 %v11319_v50 }
 0x5d0   : > { %v3430_v55 = vpop.f32.mrf.mxu2  ;;  %v3893_v51 = vpop.f32.mrf.mxu3  ;;  %5161 = vmatpush.bf16.msra.mxu3 %v9923_v61 }
 0x5d1   : > { %4612 = vmatmul.bf16.gmra.mxu0 %v12989_v20  ;;  %v2850_v7 = vmax.f32 %v2560_v44, 0.0  ;;  %v3894_v1 = vadd.f32 %v3893_v51, %v3428_v39  ;;  %v1902_v2 = vpack.c.bf16 %v11321_v19, %v11320_v59 }
 0x5d2   : > { %v2561_v38 = vpop.f32.mrf.mxu1 }
 0x5d3   : > { %v2562_v47 = vadd.f32 %v12748_v21, %v2561_v38  ;;  %v4167_v31 = vadd.f32 %v12791_v32, %v3894_v1  ;;  %v11324_v1 = vpop.permute.xlu2 %11323 }
 0x5d5   : > { %v2851_v29 = vmax.f32 %v2562_v47, 0.0  ;;  %9711 = vmatmul.msk.bf16.gmra.mxu2 %vm3052_vm3, %v12874_v4  ;;  %v4311_v38 = vmax.f32 %v4167_v31, 0.0 }
 0x5d7   : > { %v13008_v33 = vpack.c.bf16 %v2851_v29, %v2850_v7 }
 0x5d8   : > { %v3433_v58 = vpop.f32.mrf.mxu2  ;;  %v3895_v26 = vpop.f32.mrf.mxu3 }
 0x5d9   : > { %v3896_v40 = vadd.f32 %v3895_v26, %v3430_v55 }
 0x5da   : > { %v2564_v30 = vpop.f32.mrf.mxu1 }
 0x5db   : > { %v4168_v61 = vadd.f32 %v12791_v32, %v3896_v40  ;;  %v2565_v50 = vadd.f32 %v12748_v21, %v2564_v30 }
 0x5dd   : > { %v4312_v44 = vmax.f32 %v4168_v61, 0.0  ;;  %9632 = vmatmul.msk.bf16.gmra.mxu1 %vm1946_vm2, %v1902_v2  ;;  %9799 = vmatmul.msk.bf16.gmra.mxu3 %vm3052_vm3, %v12736_v10  ;;  %v2852_v29 = vmax.f32 %v2565_v50, 0.0  ;;  %v11326_v2 = vunpack.i.h.bf16 %v11324_v1  ;;  %v11325_v10 = vunpack.i.l.bf16 %v11324_v1 }
 0x5df   : > { %v13015_v39 = vpack.c.bf16 %v4312_v44, %v4311_v38  ;;  %v1903_v44 = vpack.c.bf16 %v11326_v2, %v11325_v10 }
 0x5e0   : > { %v3435_v51 = vpop.f32.mrf.mxu2  ;;  %v3898_v47 = vpop.f32.mrf.mxu3 }
 0x5e1   : > { %4617 = vmatmul.bf16.gmra.mxu0 %v13015_v39  ;;  %v3899_v19 = vadd.f32 %v3898_v47, %v3433_v58 }
 0x5e2   : > { %v2566_v55 = vpop.f32.mrf.mxu1 }
 0x5e3   : > { %v2567_v7 = vadd.f32 %v12748_v21, %v2566_v55  ;;  %v4169_v30 = vadd.f32 %v12791_v32, %v3899_v19 }
 0x5e5   : > { %v2853_v59 = vmax.f32 %v2567_v7, 0.0  ;;  %9712 = vmatmul.msk.bf16.gmra.mxu2 %vm3052_vm3, %v12893_v5  ;;  %v4313_v60 = vmax.f32 %v4169_v30, 0.0 }
 0x5e7   : > { %v13022_v26 = vpack.c.bf16 %v2853_v59, %v2852_v29  ;;  %v11329_v29 = vpop.permute.xlu0 %11328 }
 0x5e8   : > { %v3438_v31 = vpop.f32.mrf.mxu2  ;;  %v3900_v40 = vpop.f32.mrf.mxu3  ;;  %v11331_v10 = vunpack.i.h.bf16 %v11329_v29 }
 0x5e9   : > { %v3901_v61 = vadd.f32 %v3900_v40, %v3435_v51 }
 0x5ea   : > { %v2569_v38 = vpop.f32.mrf.mxu1 }
 0x5eb   : > { %v4170_v55 = vadd.f32 %v12791_v32, %v3901_v61  ;;  %v2570_v7 = vadd.f32 %v12748_v21, %v2569_v38 }
 0x5ed   : > { %v4314_v50 = vmax.f32 %v4170_v55, 0.0  ;;  %9633 = vmatmul.msk.bf16.gmra.mxu1 %vm1946_vm2, %v1903_v44  ;;  %9800 = vmatmul.msk.bf16.gmra.mxu3 %vm3052_vm3, %v12754_v15  ;;  %v2854_v19 = vmax.f32 %v2570_v7, 0.0  ;;  %v11330_v15 = vunpack.i.l.bf16 %v11329_v29 }
 0x5ef   : > { %v13029_v5 = vpack.c.bf16 %v4314_v50, %v4313_v60  ;;  %v1904_v55 = vpack.c.bf16 %v11331_v10, %v11330_v15 }
 0x5f0   : > { %v3440_v58 = vpop.f32.mrf.mxu2  ;;  %v3903_v47 = vpop.f32.mrf.mxu3 }
 0x5f1   : > { %4622 = vmatmul.bf16.gmra.mxu0 %v13029_v5  ;;  %v3904_v59 = vadd.f32 %v3903_v47, %v3438_v31 }
 0x5f2   : > { %v2571_v51 = vpop.f32.mrf.mxu1 }
 0x5f3   : > { %v2572_v1 = vadd.f32 %v12748_v21, %v2571_v51  ;;  %v4171_v61 = vadd.f32 %v12791_v32, %v3904_v59  ;;  %v11334_v59 = vpop.permute.xlu1 %11333 }
 0x5f5   : > { %v2855_v2 = vmax.f32 %v2572_v1, 0.0  ;;  %9713 = vmatmul.msk.bf16.gmra.mxu2 %vm3052_vm3, %v12906_v49  ;;  %v4315_v51 = vmax.f32 %v4171_v61, 0.0  ;;  %v11335_v61 = vunpack.i.l.bf16 %v11334_v59 }
 0x5f7   : > { %v13036_v60 = vpack.c.bf16 %v2855_v2, %v2854_v19 }
 0x5f8   : > { %v3443_v40 = vpop.f32.mrf.mxu2  ;;  %v3905_v30 = vpop.f32.mrf.mxu3 }
 0x5f9   : > { %v3906_v38 = vadd.f32 %v3905_v30, %v3440_v58  ;;  %v11336_v30 = vunpack.i.h.bf16 %v11334_v59 }
 0x5fa   : > { %v2574_v44 = vpop.f32.mrf.mxu1 }
 0x5fb   : > { %v4172_v50 = vadd.f32 %v12791_v32, %v3906_v38  ;;  %v2575_v29 = vadd.f32 %v12748_v21, %v2574_v44 }
 0x5fd   : > { %v4316_v7 = vmax.f32 %v4172_v50, 0.0  ;;  %9634 = vmatmul.msk.bf16.gmra.mxu1 %vm1946_vm2, %v1904_v55  ;;  %9801 = vmatmul.msk.bf16.gmra.mxu3 %vm3052_vm3, %v12773_v46  ;;  %v2856_v2 = vmax.f32 %v2575_v29, 0.0 }
 0x5fe   : > { %v13043_v49 = vpop.f32.mrf.mxu0 }
 0x5ff   : > { %v13045_v31 = vpack.c.bf16 %v4316_v7, %v4315_v51 }
 0x600   : > { %v3445_v47 = vpop.f32.mrf.mxu2  ;;  %v3908_v1 = vpop.f32.mrf.mxu3 }
 0x601   : > { %4627 = vmatmul.bf16.gmra.mxu0 %v13045_v31  ;;  %v3909_v10 = vadd.f32 %v3908_v1, %v3443_v40 }
 0x602   : > { %v2576_v58 = vpop.f32.mrf.mxu1 }
 0x603   : > { %v2577_v19 = vadd.f32 %v12748_v21, %v2576_v58  ;;  %v4173_v50 = vadd.f32 %v12791_v32, %v3909_v10  ;;  %v1905_v21 = vpack.c.bf16 %v11336_v30, %v11335_v61 }
 0x605   : > { %v2857_v15 = vmax.f32 %v2577_v19, 0.0  ;;  %9714 = vmatmul.msk.bf16.gmra.mxu2 %vm3052_vm3, %v12920_v27  ;;  %v4317_v40 = vmax.f32 %v4173_v50, 0.0  ;;  %v10831_v19 = vld [vmem:[%s17154_s8 + $0x54] sm:$0xf] }
 0x606   : > { %v13052_v46 = vpop.f32.mrf.mxu0 }
 0x607   : > { %v13054_v38 = vpack.c.bf16 %v2857_v15, %v2856_v2  ;;  %v13074_v15 = vld [vmem:[%s17150_s4] ss:$0 sm:$0xff] }
 0x608   : > { %v3448_v55 = vpop.f32.mrf.mxu2  ;;  %v3910_v44 = vpop.f32.mrf.mxu3 }
 0x609   : > { %v3911_v51 = vadd.f32 %v3910_v44, %v3445_v47  ;;  %v9940_v47 = vld [vmem:[%s17154_s8 + $0x58] sm:$0xf0]  ;;  %v11339_v44 = vpop.permute.xlu2 %11338 }
 0x60a   : > { %v2579_v7 = vpop.f32.mrf.mxu1  ;;  %v9943_v10 = vor.u32 %v10831_v19, %v9940_v47 }
 0x60b   : > { %v4174_v29 = vadd.f32 %v12791_v32, %v3911_v51 }
 0x60c   : > { %5408 = vmatpush.bf16.msra.mxu0 %v9943_v10 }
 0x60d   : > { %v4318_v1 = vmax.f32 %v4174_v29, 0.0  ;;  %9635 = vmatmul.msk.bf16.gmra.mxu1 %vm1946_vm2, %v1905_v21  ;;  %9802 = vmatmul.msk.bf16.gmra.mxu3 %vm3052_vm3, %v12786_v62  ;;  %v2580_v62 = vadd.f32 %v13074_v15, %v2579_v7 }
 0x60e   : > { %v13061_v27 = vpop.f32.mrf.mxu0 }
 0x60f   : > { %v13063_v58 = vpack.c.bf16 %v4318_v1, %v4317_v40  ;;  %v2858_v50 = vmax.f32 %v2580_v62, 0.0  ;;  %v11341_v40 = vunpack.i.h.bf16 %v11339_v44  ;;  %v11340_v1 = vunpack.i.l.bf16 %v11339_v44 }
 0x610   : > { %v3450_v59 = vpop.f32.mrf.mxu2  ;;  %v3913_v2 = vpop.f32.mrf.mxu3 }
 0x611   : > { %4632 = vmatmul.bf16.gmra.mxu0 %v13063_v58  ;;  %v3914_v51 = vadd.f32 %v3913_v2, %v3448_v55 }
 0x612   : > { %v2581_v30 = vpop.f32.mrf.mxu1 }
 0x613   : > { %v2582_v61 = vadd.f32 %v13074_v15, %v2581_v30  ;;  %v4175_v41 = vadd.f32 %v12791_v32, %v3914_v51  ;;  %v1906_v30 = vpack.c.bf16 %v11341_v40, %v11340_v1 }
 0x615   : > { %v2859_v21 = vmax.f32 %v2582_v61, 0.0  ;;  %9715 = vmatmul.msk.bf16.gmra.mxu2 %vm3052_vm3, %v12934_v13  ;;  %v4319_v55 = vmax.f32 %v4175_v41, 0.0  ;;  %v11344_v41 = vpop.permute.xlu0 %11343 }
 0x616   : > { %v13081_v29 = vpop.f32.mrf.mxu0 }
 0x617   : > { %v13083_v19 = vpack.c.bf16 %v2859_v21, %v2858_v50 }
 0x618   : > { %v3453_v7 = vpop.f32.mrf.mxu2  ;;  %v3915_v47 = vpop.f32.mrf.mxu3 }
 0x619   : > { %v3916_v10 = vadd.f32 %v3915_v47, %v3450_v59 }
 0x61a   : > { %v2584_v12 = vpop.f32.mrf.mxu1 }
 0x61b   : > { %v4176_v62 = vadd.f32 %v12791_v32, %v3916_v10  ;;  %v2585_v51 = vadd.f32 %v13074_v15, %v2584_v12  ;;  %v11346_v10 = vunpack.i.h.bf16 %v11344_v41 }
 0x61d   : > { %v4320_v2 = vmax.f32 %v4176_v62, 0.0  ;;  %9636 = vmatmul.msk.bf16.gmra.mxu1 %vm1946_vm2, %v1906_v30  ;;  %9803 = vmatmul.msk.bf16.gmra.mxu3 %vm3052_vm3, %v12804_v8  ;;  %v2860_v40 = vmax.f32 %v2585_v51, 0.0  ;;  %v11345_v30 = vunpack.i.l.bf16 %v11344_v41 }
 0x61e   : > { %v13090_v13 = vpop.f32.mrf.mxu0 }
 0x61f   : > { %v13092_v61 = vpack.c.bf16 %v4320_v2, %v4319_v55 }
 0x620   : > { %v3455_v44 = vpop.f32.mrf.mxu2  ;;  %v3918_v50 = vpop.f32.mrf.mxu3 }
 0x621   : > { %4637 = vmatmul.bf16.gmra.mxu0 %v13092_v61  ;;  %v3919_v1 = vadd.f32 %v3918_v50, %v3453_v7 }
 0x622   : > { %v2586_v59 = vpop.f32.mrf.mxu1 }
 0x623   : > { %v2587_v21 = vadd.f32 %v13074_v15, %v2586_v59  ;;  %v4177_v2 = vadd.f32 %v12791_v32, %v3919_v1  ;;  %v1907_v59 = vpack.c.bf16 %v11346_v10, %v11345_v30 }
 0x625   : > { %v2861_v47 = vmax.f32 %v2587_v21, 0.0  ;;  %9716 = vmatmul.msk.bf16.gmra.mxu2 %vm3052_vm3, %v12948_v34  ;;  %v4321_v7 = vmax.f32 %v4177_v2, 0.0 }
 0x626   : > { %v13099_v8 = vpop.f32.mrf.mxu0 }
 0x627   : > { %v13101_v62 = vpack.c.bf16 %v2861_v47, %v2860_v40 }
 0x628   : > { %v3458_v55 = vpop.f32.mrf.mxu2  ;;  %v3920_v12 = vpop.f32.mrf.mxu3 }
 0x629   : > { %v3921_v28 = vadd.f32 %v3920_v12, %v3455_v44 }
 0x62a   : > { %v2589_v0 = vpop.f32.mrf.mxu1 }
 0x62b   : > { %v4178_v51 = vadd.f32 %v12791_v32, %v3921_v28  ;;  %v2590_v1 = vadd.f32 %v13074_v15, %v2589_v0  ;;  %v11349_v32 = vpop.permute.xlu1 %11348 }
 0x62c   : > { %v11351_v12 = vunpack.i.h.bf16 %v11349_v32  ;;  %v11350_v2 = vunpack.i.l.bf16 %v11349_v32 }
 0x62d   : > { %v4322_v50 = vmax.f32 %v4178_v51, 0.0  ;;  %9637 = vmatmul.msk.bf16.gmra.mxu1 %vm1946_vm2, %v1907_v59  ;;  %9804 = vmatmul.msk.bf16.gmra.mxu3 %vm3052_vm3, %v12817_v35  ;;  %v2862_v47 = vmax.f32 %v2590_v1, 0.0 }
 0x62e   : > { %v13108_v34 = vpop.f32.mrf.mxu0  ;;  %v1908_v1 = vpack.c.bf16 %v11351_v12, %v11350_v2  ;;  %v11354_v2 = vpop.permute.xlu2 %11353 }
 0x62f   : > { %17312 = vst [vmem:[#allocation15_spill] sm:$0xff] %v13108_v34  ;;  %v13110_v21 = vpack.c.bf16 %v4322_v50, %v4321_v7  ;;  %v13124_v7 = vld [vmem:[%s17153_s7] ss:$0 sm:$0xff] }
 0x630   : > { %v3460_v41 = vpop.f32.mrf.mxu2  ;;  %v3923_v40 = vpop.f32.mrf.mxu3 }
 0x631   : > { %17313 = vst [vmem:[#allocation16_spill] sm:$0xff] %v13110_v21  ;;  %4642 = vmatmul.bf16.gmra.mxu0 %v13110_v21  ;;  %v3924_v10 = vadd.f32 %v3923_v40, %v3458_v55 }
 0x632   : > { %v2591_v44 = vpop.f32.mrf.mxu1 }
 0x633   : > { %v2592_v28 = vadd.f32 %v13074_v15, %v2591_v44  ;;  %v4179_v50 = vadd.f32 %v13124_v7, %v3924_v10 }
 0x635   : > { %v2863_v30 = vmax.f32 %v2592_v28, 0.0  ;;  %9717 = vmatmul.msk.bf16.gmra.mxu2 %vm3052_vm3, %v12962_v45  ;;  %v4323_v44 = vmax.f32 %v4179_v50, 0.0 }
 0x636   : > { %v13117_v35 = vpop.f32.mrf.mxu0 }
 0x637   : > { %17314 = vst [vmem:[#allocation17_spill] sm:$0xff] %v13117_v35  ;;  %v13119_v59 = vpack.c.bf16 %v2863_v30, %v2862_v47 }
 0x638   : > { %v3463_v51 = vpop.f32.mrf.mxu2  ;;  %v3925_v0 = vpop.f32.mrf.mxu3 }
 0x639   : > { %v3926_v55 = vadd.f32 %v3925_v0, %v3460_v41 }
 0x63a   : > { %v2594_v40 = vpop.f32.mrf.mxu1 }
 0x63b   : > { %v4180_v45 = vadd.f32 %v13124_v7, %v3926_v55  ;;  %v2595_v10 = vadd.f32 %v13074_v15, %v2594_v40 }
 0x63d   : > { %v4324_v28 = vmax.f32 %v4180_v45, 0.0  ;;  %9638 = vmatmul.msk.bf16.gmra.mxu1 %vm1946_vm2, %v1908_v1  ;;  %9805 = vmatmul.msk.bf16.gmra.mxu3 %vm3052_vm3, %v12836_v37  ;;  %v2864_v0 = vmax.f32 %v2595_v10, 0.0  ;;  %v11356_v1 = vunpack.i.h.bf16 %v11354_v2  ;;  %v11355_v45 = vunpack.i.l.bf16 %v11354_v2 }
 0x63e   : > { %v13131_v32 = vpop.f32.mrf.mxu0 }
 0x63f   : > { %17315 = vst [vmem:[#allocation18_spill] sm:$0xff] %v13131_v32  ;;  %v13133_v47 = vpack.c.bf16 %v4324_v28, %v4323_v44 }
 0x640   : > { %v3465_v30 = vpop.f32.mrf.mxu2  ;;  %v3928_v35 = vpop.f32.mrf.mxu3 }
 0x641   : > { %17316 = vst [vmem:[#allocation19_spill] sm:$0xff] %v13133_v47  ;;  %4647 = vmatmul.bf16.gmra.mxu0 %v13133_v47  ;;  %v3929_v50 = vadd.f32 %v3928_v35, %v3463_v51 }
 0x642   : > { %v2596_v41 = vpop.f32.mrf.mxu1 }
 0x643   : > { %v2597_v12 = vadd.f32 %v13074_v15, %v2596_v41  ;;  %v4181_v32 = vadd.f32 %v13124_v7, %v3929_v50  ;;  %v1909_v41 = vpack.c.bf16 %v11356_v1, %v11355_v45 }
 0x645   : > { %v2865_v55 = vmax.f32 %v2597_v12, 0.0  ;;  %9718 = vmatmul.msk.bf16.gmra.mxu2 %vm3052_vm3, %v12982_v16  ;;  %v4325_v35 = vmax.f32 %v4181_v32, 0.0  ;;  %v11359_v32 = vpop.permute.xlu0 %11358 }
 0x646   : > { %v13140_v37 = vpop.f32.mrf.mxu0 }
 0x647   : > { %v13142_v44 = vpack.c.bf16 %v2865_v55, %v2864_v0 }
 0x648   : > { %v3468_v28 = vpop.f32.mrf.mxu2  ;;  %v3930_v40 = vpop.f32.mrf.mxu3 }
 0x649   : > { %v3931_v47 = vadd.f32 %v3930_v40, %v3465_v30  ;;  %v11361_v40 = vunpack.i.h.bf16 %v11359_v32 }
 0x64a   : > { %v2599_v34 = vpop.f32.mrf.mxu1 }
 0x64b   : > { %v4182_v10 = vadd.f32 %v13124_v7, %v3931_v47  ;;  %v2600_v50 = vadd.f32 %v13074_v15, %v2599_v34 }
 0x64d   : > { %v4326_v51 = vmax.f32 %v4182_v10, 0.0  ;;  %9639 = vmatmul.msk.bf16.gmra.mxu1 %vm1946_vm2, %v1909_v41  ;;  %9806 = vmatmul.msk.bf16.gmra.mxu3 %vm3052_vm3, %v12861_v43  ;;  %v2866_v55 = vmax.f32 %v2600_v50, 0.0  ;;  %v11360_v41 = vunpack.i.l.bf16 %v11359_v32  ;;  %v10841_v32 = vld [vmem:[%s17155_s9 + $0x24] sm:$0xf] }
 0x64e   : > { %v13149_v16 = vpop.f32.mrf.mxu0 }
 0x64f   : > { %17317 = vst [vmem:[#allocation20_spill] sm:$0xff] %v13149_v16  ;;  %v13151_v12 = vpack.c.bf16 %v4326_v51, %v4325_v35 }
 0x650   : > { %v3470_v2 = vpop.f32.mrf.mxu2  ;;  %v3933_v0 = vpop.f32.mrf.mxu3 }
 0x651   : > { %17318 = vst [vmem:[#allocation21_spill] sm:$0xff] %v13151_v12  ;;  %4652 = vmatmul.bf16.gmra.mxu0 %v13151_v12  ;;  %v3934_v1 = vadd.f32 %v3933_v0, %v3468_v28 }
 0x652   : > { %v2601_v30 = vpop.f32.mrf.mxu1 }
 0x653   : > { %v2602_v47 = vadd.f32 %v13074_v15, %v2601_v30  ;;  %v4183_v51 = vadd.f32 %v13124_v7, %v3934_v1  ;;  %v1910_v30 = vpack.c.bf16 %v11361_v40, %v11360_v41 }
 0x655   : > { %v2867_v45 = vmax.f32 %v2602_v47, 0.0  ;;  %9719 = vmatmul.msk.bf16.gmra.mxu2 %vm3052_vm3, %v13008_v33  ;;  %v4327_v28 = vmax.f32 %v4183_v51, 0.0 }
 0x656   : > { %v13158_v43 = vpop.f32.mrf.mxu0 }
 0x657   : > { %17319 = vst [vmem:[#allocation22_spill] sm:$0xff] %v13158_v43  ;;  %v13160_v10 = vpack.c.bf16 %v2867_v45, %v2866_v55 }
 0x658   : > { %v3473_v35 = vpop.f32.mrf.mxu2  ;;  %v3935_v34 = vpop.f32.mrf.mxu3 }
 0x659   : > { %v3936_v16 = vadd.f32 %v3935_v34, %v3470_v2  ;;  %v9852_v2 = vld [vmem:[%s17155_s9 + $0x28] sm:$0xf0] }
 0x65a   : > { %v2604_v12 = vpop.f32.mrf.mxu1  ;;  %v9855_v45 = vor.u32 %v10841_v32, %v9852_v2 }
 0x65b   : > { %v4184_v50 = vadd.f32 %v13124_v7, %v3936_v16  ;;  %v9914_v16 = vld [vmem:[%s17154_s8 + $0x20] sm:$0xf]  ;;  %v2605_v40 = vadd.f32 %v13074_v15, %v2604_v12  ;;  %v10829_v12 = vld [vmem:[%s17154_s8 + $0x44] sm:$0xf] }
 0x65c   : > { %4833 = vmatpush.bf16.msrb.mxu2 %v9855_v45 }
 0x65d   : > { %v4328_v0 = vmax.f32 %v4184_v50, 0.0  ;;  %9640 = vmatmul.msk.bf16.gmra.mxu1 %vm1946_vm2, %v1910_v30  ;;  %9807 = vmatmul.msk.bf16.gmra.mxu3 %vm3052_vm3, %v12874_v4  ;;  %v10826_v4 = vld [vmem:[%s17154_s8 + $0x24] sm:$0xf0]  ;;  %v11364_v30 = vpop.permute.xlu1 %11363  ;;  %v2868_v50 = vmax.f32 %v2605_v40, 0.0 }
 0x65e   : > { %v13167_v33 = vpop.f32.mrf.mxu0  ;;  %v9915_v41 = vor.u32 %v10826_v4, %v9914_v16  ;;  %v11366_v32 = vunpack.i.h.bf16 %v11364_v30  ;;  %v11365_v2 = vunpack.i.l.bf16 %v11364_v30  ;;  %v9932_v16 = vld [vmem:[%s17154_s8 + $0x48] sm:$0xf0] }
 0x65f   : > { %17320 = vst [vmem:[#allocation23_spill] sm:$0xff] %v13167_v33  ;;  %v13169_v47 = vpack.c.bf16 %v4328_v0, %v4327_v28 }
 0x660   : > { %v3475_v55 = vpop.f32.mrf.mxu2  ;;  %v3938_v1 = vpop.f32.mrf.mxu3  ;;  %5162 = vmatpush.bf16.msra.mxu3 %v9915_v41  ;;  %v9935_v41 = vor.u32 %v10829_v12, %v9932_v16 }
 0x661   : > { %17321 = vst [vmem:[#allocation24_spill] sm:$0xff] %v13169_v47  ;;  %4657 = vmatmul.bf16.gmra.mxu0 %v13169_v47  ;;  %v3939_v28 = vadd.f32 %v3938_v1, %v3473_v35 }
 0x662   : > { %v2606_v34 = vpop.f32.mrf.mxu1  ;;  %5409 = vmatpush.bf16.msra.mxu0 %v9935_v41 }
 0x663   : > { %v2607_v51 = vadd.f32 %v13074_v15, %v2606_v34  ;;  %v4185_v35 = vadd.f32 %v13124_v7, %v3939_v28  ;;  %v1911_v34 = vpack.c.bf16 %v11366_v32, %v11365_v2 }
 0x665   : > { %v2869_v0 = vmax.f32 %v2607_v51, 0.0  ;;  %v4329_v30 = vmax.f32 %v4185_v35, 0.0 }
 0x666   : > { %v13186_v33 = vpop.f32.mrf.mxu0 }
 0x667   : > { %17322 = vst [vmem:[#allocation25_spill] sm:$0xff] %v13186_v33  ;;  %v13188_v43 = vpack.c.bf16 %v2869_v0, %v2868_v50 }
 0x668   : > { %v3478_v45 = vpop.f32.mrf.mxu2  ;;  %v3940_v4 = vpop.f32.mrf.mxu3 }
 0x669   : > { %v3941_v1 = vadd.f32 %v3940_v4, %v3475_v55  ;;  %9720 = vmatmul.msk.bf16.gmra.mxu2 %vm3052_vm3, %v13188_v43  ;;  %v11369_v4 = vpop.permute.xlu2 %11368 }
 0x66a   : > { %v2609_v40 = vpop.f32.mrf.mxu1 }
 0x66b   : > { %v4186_v51 = vadd.f32 %v13124_v7, %v3941_v1  ;;  %v2610_v16 = vadd.f32 %v13074_v15, %v2609_v40 }
 0x66d   : > { %v4330_v50 = vmax.f32 %v4186_v51, 0.0  ;;  %9641 = vmatmul.msk.bf16.gmra.mxu1 %vm1946_vm2, %v1911_v34  ;;  %9808 = vmatmul.msk.bf16.gmra.mxu3 %vm3052_vm3, %v13022_v26  ;;  %v2870_v41 = vmax.f32 %v2610_v16, 0.0  ;;  %v11371_v26 = vunpack.i.h.bf16 %v11369_v4  ;;  %v11370_v51 = vunpack.i.l.bf16 %v11369_v4 }
 0x66e   : > { %v13203_v0 = vpop.f32.mrf.mxu0 }
 0x66f   : > { %17323 = vst [vmem:[#allocation26_spill] sm:$0xff] %v13203_v0  ;;  %v13205_v12 = vpack.c.bf16 %v4330_v50, %v4329_v30 }
 0x670   : > { %v3480_v55 = vpop.f32.mrf.mxu2  ;;  %v3943_v28 = vpop.f32.mrf.mxu3 }
 0x671   : > { %17324 = vst [vmem:[#allocation27_spill] sm:$0xff] %v13205_v12  ;;  %4662 = vmatmul.bf16.gmra.mxu0 %v13205_v12  ;;  %v3944_v35 = vadd.f32 %v3943_v28, %v3478_v45 }
 0x672   : > { %v2611_v32 = vpop.f32.mrf.mxu1 }
 0x673   : > { %v2612_v2 = vadd.f32 %v13074_v15, %v2611_v32  ;;  %v4187_v33 = vadd.f32 %v13124_v7, %v3944_v35  ;;  %v1912_v32 = vpack.c.bf16 %v11371_v26, %v11370_v51 }
 0x675   : > { %v2871_v1 = vmax.f32 %v2612_v2, 0.0  ;;  %v4331_v45 = vmax.f32 %v4187_v33, 0.0  ;;  %v11374_v33 = vpop.permute.xlu0 %11373 }
 0x676   : > { %v13210_v34 = vpop.f32.mrf.mxu0 }
 0x677   : > { %17325 = vst [vmem:[#allocation28_spill] sm:$0xff] %v13210_v34  ;;  %v13212_v0 = vpack.c.bf16 %v2871_v1, %v2870_v41 }
 0x678   : > { %v3483_v30 = vpop.f32.mrf.mxu2  ;;  %v3945_v50 = vpop.f32.mrf.mxu3 }
 0x679   : > { %v3946_v40 = vadd.f32 %v3945_v50, %v3480_v55  ;;  %9721 = vmatmul.msk.bf16.gmra.mxu2 %vm3052_vm3, %v13212_v0 }
 0x67a   : > { %v2614_v12 = vpop.f32.mrf.mxu1 }
 0x67b   : > { %v4188_v16 = vadd.f32 %v13124_v7, %v3946_v40  ;;  %v2615_v35 = vadd.f32 %v13074_v15, %v2614_v12 }
 0x67d   : > { %v4332_v28 = vmax.f32 %v4188_v16, 0.0  ;;  %9642 = vmatmul.msk.bf16.gmra.mxu1 %vm1946_vm2, %v1912_v32  ;;  %9809 = vmatmul.msk.bf16.gmra.mxu3 %vm3052_vm3, %v13036_v60  ;;  %v2872_v51 = vmax.f32 %v2615_v35, 0.0  ;;  %v11376_v60 = vunpack.i.h.bf16 %v11374_v33  ;;  %v11375_v16 = vunpack.i.l.bf16 %v11374_v33 }
 0x67e   : > { %v13221_v2 = vpop.f32.mrf.mxu0 }
 0x67f   : > { %17326 = vst [vmem:[#allocation29_spill] sm:$0xff] %v13221_v2  ;;  %v13223_v4 = vpack.c.bf16 %v4332_v28, %v4331_v45 }
 0x680   : > { %v3485_v41 = vpop.f32.mrf.mxu2  ;;  %v3948_v55 = vpop.f32.mrf.mxu3 }
 0x681   : > { %17327 = vst [vmem:[#allocation30_spill] sm:$0xff] %v13223_v4  ;;  %4667 = vmatmul.bf16.gmra.mxu0 %v13223_v4  ;;  %v3949_v50 = vadd.f32 %v3948_v55, %v3483_v30 }
 0x682   : > { %v2616_v1 = vpop.f32.mrf.mxu1 }
 0x683   : > { %v2617_v26 = vadd.f32 %v13074_v15, %v2616_v1  ;;  %v4189_v34 = vadd.f32 %v13124_v7, %v3949_v50  ;;  %v1913_v1 = vpack.c.bf16 %v11376_v60, %v11375_v16 }
 0x685   : > { %v2873_v40 = vmax.f32 %v2617_v26, 0.0  ;;  %v4333_v30 = vmax.f32 %v4189_v34, 0.0  ;;  %v11379_v34 = vpop.permute.xlu1 %11378 }
 0x686   : > { %v13228_v32 = vpop.f32.mrf.mxu0 }
 0x687   : > { %17328 = vst [vmem:[#allocation31_spill] sm:$0xff] %v13228_v32  ;;  %v13230_v2 = vpack.c.bf16 %v2873_v40, %v2872_v51 }
 0x688   : > { %v3488_v45 = vpop.f32.mrf.mxu2  ;;  %v3950_v28 = vpop.f32.mrf.mxu3 }
 0x689   : > { %v3951_v12 = vadd.f32 %v3950_v28, %v3485_v41  ;;  %9722 = vmatmul.msk.bf16.gmra.mxu2 %vm3052_vm3, %v13230_v2 }
 0x68a   : > { %v2619_v4 = vpop.f32.mrf.mxu1 }
 0x68b   : > { %v4190_v35 = vadd.f32 %v13124_v7, %v3951_v12  ;;  %v2620_v50 = vadd.f32 %v13074_v15, %v2619_v4 }
 0x68d   : > { %v4334_v55 = vmax.f32 %v4190_v35, 0.0  ;;  %9643 = vmatmul.msk.bf16.gmra.mxu1 %vm1946_vm2, %v1913_v1  ;;  %9810 = vmatmul.msk.bf16.gmra.mxu3 %vm3052_vm3, %v13054_v38  ;;  %v2874_v16 = vmax.f32 %v2620_v50, 0.0  ;;  %v11381_v38 = vunpack.i.h.bf16 %v11379_v34  ;;  %v11380_v35 = vunpack.i.l.bf16 %v11379_v34 }
 0x68e   : > { %v13239_v26 = vpop.f32.mrf.mxu0 }
 0x68f   : > { %17329 = vst [vmem:[#allocation32_spill] sm:$0xff] %v13239_v26  ;;  %v13241_v33 = vpack.c.bf16 %v4334_v55, %v4333_v30 }
 0x690   : > { %v3490_v51 = vpop.f32.mrf.mxu2  ;;  %v3953_v41 = vpop.f32.mrf.mxu3 }
 0x691   : > { %17330 = vst [vmem:[#allocation33_spill] sm:$0xff] %v13241_v33  ;;  %4672 = vmatmul.bf16.gmra.mxu0 %v13241_v33  ;;  %v3954_v28 = vadd.f32 %v3953_v41, %v3488_v45 }
 0x692   : > { %v2621_v40 = vpop.f32.mrf.mxu1 }
 0x693   : > { %v2622_v60 = vadd.f32 %v13074_v15, %v2621_v40  ;;  %v4191_v32 = vadd.f32 %v13124_v7, %v3954_v28  ;;  %v1914_v40 = vpack.c.bf16 %v11381_v38, %v11380_v35 }
 0x695   : > { %v2875_v12 = vmax.f32 %v2622_v60, 0.0  ;;  %v4335_v45 = vmax.f32 %v4191_v32, 0.0  ;;  %v11384_v32 = vpop.permute.xlu2 %11383 }
 0x696   : > { %v13246_v1 = vpop.f32.mrf.mxu0 }
 0x697   : > { %17331 = vst [vmem:[#allocation34_spill] sm:$0xff] %v13246_v1  ;;  %v13248_v26 = vpack.c.bf16 %v2875_v12, %v2874_v16 }
 0x698   : > { %v3493_v30 = vpop.f32.mrf.mxu2  ;;  %v3955_v55 = vpop.f32.mrf.mxu3 }
 0x699   : > { %v3956_v4 = vadd.f32 %v3955_v55, %v3490_v51  ;;  %9723 = vmatmul.msk.bf16.gmra.mxu2 %vm3052_vm3, %v13248_v26 }
 0x69a   : > { %v2624_v33 = vpop.f32.mrf.mxu1 }
 0x69b   : > { %v4192_v50 = vadd.f32 %v13124_v7, %v3956_v4  ;;  %v2625_v28 = vadd.f32 %v13074_v15, %v2624_v33 }
 0x69d   : > { %v4336_v41 = vmax.f32 %v4192_v50, 0.0  ;;  %9644 = vmatmul.msk.bf16.gmra.mxu1 %vm1946_vm2, %v1914_v40  ;;  %9811 = vmatmul.msk.bf16.gmra.mxu3 %vm3052_vm3, %v13083_v19  ;;  %v2876_v35 = vmax.f32 %v2625_v28, 0.0  ;;  %v11386_v19 = vunpack.i.h.bf16 %v11384_v32  ;;  %v11385_v50 = vunpack.i.l.bf16 %v11384_v32 }
 0x69e   : > { %v13257_v60 = vpop.f32.mrf.mxu0 }
 0x69f   : > { %17332 = vst [vmem:[#allocation35_spill] sm:$0xff] %v13257_v60  ;;  %v13259_v34 = vpack.c.bf16 %v4336_v41, %v4335_v45 }
 0x6a0   : > { %v3495_v16 = vpop.f32.mrf.mxu2  ;;  %v3958_v51 = vpop.f32.mrf.mxu3 }
 0x6a1   : > { %17333 = vst [vmem:[#allocation36_spill] sm:$0xff] %v13259_v34  ;;  %4677 = vmatmul.bf16.gmra.mxu0 %v13259_v34  ;;  %v3959_v55 = vadd.f32 %v3958_v51, %v3493_v30 }
 0x6a2   : > { %v2626_v12 = vpop.f32.mrf.mxu1 }
 0x6a3   : > { %v2627_v38 = vadd.f32 %v13074_v15, %v2626_v12  ;;  %v4193_v1 = vadd.f32 %v13124_v7, %v3959_v55  ;;  %v1915_v12 = vpack.c.bf16 %v11386_v19, %v11385_v50 }
 0x6a5   : > { %v2877_v4 = vmax.f32 %v2627_v38, 0.0  ;;  %v4337_v30 = vmax.f32 %v4193_v1, 0.0  ;;  %v11389_v1 = vpop.permute.xlu0 %11388 }
 0x6a6   : > { %v13264_v40 = vpop.f32.mrf.mxu0 }
 0x6a7   : > { %17334 = vst [vmem:[#allocation37_spill] sm:$0xff] %v13264_v40  ;;  %v13266_v60 = vpack.c.bf16 %v2877_v4, %v2876_v35 }
 0x6a8   : > { %v3498_v45 = vpop.f32.mrf.mxu2  ;;  %v3960_v41 = vpop.f32.mrf.mxu3 }
 0x6a9   : > { %v3961_v33 = vadd.f32 %v3960_v41, %v3495_v16  ;;  %9724 = vmatmul.msk.bf16.gmra.mxu2 %vm3052_vm3, %v13266_v60 }
 0x6aa   : > { %v2629_v34 = vpop.f32.mrf.mxu1 }
 0x6ab   : > { %v4194_v28 = vadd.f32 %v13124_v7, %v3961_v33  ;;  %v2630_v55 = vadd.f32 %v13074_v15, %v2629_v34 }
 0x6ad   : > { %v4338_v51 = vmax.f32 %v4194_v28, 0.0  ;;  %9645 = vmatmul.msk.bf16.gmra.mxu1 %vm1946_vm2, %v1915_v12  ;;  %9812 = vmatmul.msk.bf16.gmra.mxu3 %vm3052_vm3, %v13101_v62  ;;  %v2878_v50 = vmax.f32 %v2630_v55, 0.0  ;;  %v11391_v62 = vunpack.i.h.bf16 %v11389_v1  ;;  %v11390_v28 = vunpack.i.l.bf16 %v11389_v1 }
 0x6ae   : > { %v13275_v38 = vpop.f32.mrf.mxu0 }
 0x6af   : > { %17335 = vst [vmem:[#allocation38_spill] sm:$0xff] %v13275_v38  ;;  %v13277_v32 = vpack.c.bf16 %v4338_v51, %v4337_v30 }
 0x6b0   : > { %v3500_v35 = vpop.f32.mrf.mxu2  ;;  %v3963_v16 = vpop.f32.mrf.mxu3 }
 0x6b1   : > { %17336 = vst [vmem:[#allocation39_spill] sm:$0xff] %v13277_v32  ;;  %4682 = vmatmul.bf16.gmra.mxu0 %v13277_v32  ;;  %v3964_v41 = vadd.f32 %v3963_v16, %v3498_v45 }
 0x6b2   : > { %v2631_v4 = vpop.f32.mrf.mxu1 }
 0x6b3   : > { %v2632_v19 = vadd.f32 %v13074_v15, %v2631_v4  ;;  %v4195_v40 = vadd.f32 %v13124_v7, %v3964_v41  ;;  %v1916_v4 = vpack.c.bf16 %v11391_v62, %v11390_v28 }
 0x6b5   : > { %v2879_v33 = vmax.f32 %v2632_v19, 0.0  ;;  %v4339_v45 = vmax.f32 %v4195_v40, 0.0 }
 0x6b6   : > { %v13282_v12 = vpop.f32.mrf.mxu0 }
 0x6b7   : > { %17337 = vst [vmem:[#allocation40_spill] sm:$0xff] %v13282_v12  ;;  %v13284_v38 = vpack.c.bf16 %v2879_v33, %v2878_v50  ;;  %v9924_v50 = vld [vmem:[%s17154_s8 + $0x38] sm:$0xf0] }
 0x6b8   : > { %v3503_v30 = vpop.f32.mrf.mxu2  ;;  %v3965_v51 = vpop.f32.mrf.mxu3 }
 0x6b9   : > { %v3966_v34 = vadd.f32 %v3965_v51, %v3500_v35  ;;  %9725 = vmatmul.msk.bf16.gmra.mxu2 %vm3052_vm3, %v13284_v38  ;;  %v10827_v35 = vld [vmem:[%s17154_s8 + $0x34] sm:$0xf]  ;;  %v11394_v51 = vpop.permute.xlu1 %11393 }
 0x6ba   : > { %v2634_v32 = vpop.f32.mrf.mxu1  ;;  %v9927_v33 = vor.u32 %v10827_v35, %v9924_v50 }
 0x6bb   : > { %v4196_v55 = vadd.f32 %v13124_v7, %v3966_v34  ;;  %v2635_v62 = vadd.f32 %v13074_v15, %v2634_v32 }
 0x6bc   : > { %5410 = vmatpush.bf16.msra.mxu0 %v9927_v33 }
 0x6bd   : > { %v4340_v16 = vmax.f32 %v4196_v55, 0.0  ;;  %9646 = vmatmul.msk.bf16.gmra.mxu1 %vm1946_vm2, %v1916_v4  ;;  %9813 = vmatmul.msk.bf16.gmra.mxu3 %vm3052_vm3, %v13119_v59  ;;  %v2880_v34 = vmax.f32 %v2635_v62, 0.0 }
 0x6be   : > { %v13293_v19 = vpop.f32.mrf.mxu0 }
 0x6bf   : > { %17338 = vst [vmem:[#allocation41_spill] sm:$0xff] %v13293_v19  ;;  %v13295_v1 = vpack.c.bf16 %v4340_v16, %v4339_v45  ;;  %v11396_v16 = vunpack.i.h.bf16 %v11394_v51  ;;  %v11395_v19 = vunpack.i.l.bf16 %v11394_v51 }
 0x6c0   : > { %v3505_v41 = vpop.f32.mrf.mxu2  ;;  %v3968_v40 = vpop.f32.mrf.mxu3 }
 0x6c1   : > { %17339 = vst [vmem:[#allocation42_spill] sm:$0xff] %v13295_v1  ;;  %4687 = vmatmul.bf16.gmra.mxu0 %v13295_v1  ;;  %v3969_v4 = vadd.f32 %v3968_v40, %v3503_v30 }
 0x6c2   : > { %v2636_v59 = vpop.f32.mrf.mxu1 }
 0x6c3   : > { %v2637_v28 = vadd.f32 %v13074_v15, %v2636_v59  ;;  %v4197_v32 = vadd.f32 %v13124_v7, %v3969_v4  ;;  %v1917_v59 = vpack.c.bf16 %v11396_v16, %v11395_v19  ;;  %v11399_v16 = vpop.permute.xlu2 %11398 }
 0x6c5   : > { %v2881_v55 = vmax.f32 %v2637_v28, 0.0  ;;  %v4341_v30 = vmax.f32 %v4197_v32, 0.0 }
 0x6c6   : > { %v13306_v45 = vpop.f32.mrf.mxu0 }
 0x6c7   : > { %17340 = vst [vmem:[#allocation43_spill] sm:$0xff] %v13306_v45  ;;  %v13308_v12 = vpack.c.bf16 %v2881_v55, %v2880_v34 }
 0x6c8   : > { %v3508_v47 = vpop.f32.mrf.mxu2  ;;  %v3970_v35 = vpop.f32.mrf.mxu3 }
 0x6c9   : > { %v3971_v50 = vadd.f32 %v3970_v35, %v3505_v41  ;;  %9726 = vmatmul.msk.bf16.gmra.mxu2 %vm3052_vm3, %v13308_v12 }
 0x6ca   : > { %v2639_v33 = vpop.f32.mrf.mxu1 }
 0x6cb   : > { %v4198_v62 = vadd.f32 %v13124_v7, %v3971_v50  ;;  %v2640_v4 = vadd.f32 %v13074_v15, %v2639_v33 }
 0x6cd   : > { %v4342_v40 = vmax.f32 %v4198_v62, 0.0  ;;  %9647 = vmatmul.msk.bf16.gmra.mxu1 %vm1946_vm2, %v1917_v59  ;;  %9814 = vmatmul.msk.bf16.gmra.mxu3 %vm3052_vm3, %v13142_v44  ;;  %v2882_v35 = vmax.f32 %v2640_v4, 0.0  ;;  %v11401_v44 = vunpack.i.h.bf16 %v11399_v16  ;;  %v11400_v62 = vunpack.i.l.bf16 %v11399_v16 }
 0x6ce   : > { %v13317_v28 = vpop.f32.mrf.mxu0 }
 0x6cf   : > { %17341 = vst [vmem:[#allocation44_spill] sm:$0xff] %v13317_v28  ;;  %v13319_v51 = vpack.c.bf16 %v4342_v40, %v4341_v30 }
 0x6d0   : > { %v3510_v34 = vpop.f32.mrf.mxu2  ;;  %v3973_v41 = vpop.f32.mrf.mxu3 }
 0x6d1   : > { %17342 = vst [vmem:[#allocation45_spill] sm:$0xff] %v13319_v51  ;;  %4692 = vmatmul.bf16.gmra.mxu0 %v13319_v51  ;;  %v3974_v32 = vadd.f32 %v3973_v41, %v3508_v47 }
 0x6d2   : > { %v2641_v19 = vpop.f32.mrf.mxu1 }
 0x6d3   : > { %v2642_v55 = vadd.f32 %v13074_v15, %v2641_v19  ;;  %v4199_v40 = vadd.f32 %v13124_v7, %v3974_v32  ;;  %v1918_v19 = vpack.c.bf16 %v11401_v44, %v11400_v62 }
 0x6d5   : > { %v2883_v50 = vmax.f32 %v2642_v55, 0.0  ;;  %v4343_v47 = vmax.f32 %v4199_v40, 0.0 }
 0x6d6   : > { %v13324_v59 = vpop.f32.mrf.mxu0 }
 0x6d7   : > { %17343 = vst [vmem:[#allocation46_spill] sm:$0xff] %v13324_v59  ;;  %v13326_v28 = vpack.c.bf16 %v2883_v50, %v2882_v35 }
 0x6d8   : > { %v3975_v30 = vpop.f32.mrf.mxu3  ;;  %v3513_v33 = vpop.f32.mrf.mxu2 }
 0x6d9   : > { %v3976_v45 = vadd.f32 %v3975_v30, %v3510_v34  ;;  %9727 = vmatmul.msk.bf16.gmra.mxu2 %vm3052_vm3, %v13326_v28 }
 0x6da   : > { %v2644_v51 = vpop.f32.mrf.mxu1 }
 0x6db   : > { %v4200_v4 = vadd.f32 %v13124_v7, %v3976_v45  ;;  %v2645_v35 = vadd.f32 %v13074_v15, %v2644_v51  ;;  %v11404_v45 = vpop.permute.xlu0 %11403 }
 0x6dd   : > { %v4344_v41 = vmax.f32 %v4200_v4, 0.0  ;;  %9648 = vmatmul.msk.bf16.gmra.mxu1 %vm1946_vm2, %v1918_v19  ;;  %9815 = vmatmul.msk.bf16.gmra.mxu3 %vm3052_vm3, %v13160_v10  ;;  %v2884_v62 = vmax.f32 %v2645_v35, 0.0  ;;  %v11406_v10 = vunpack.i.h.bf16 %v11404_v45  ;;  %v11405_v4 = vunpack.i.l.bf16 %v11404_v45  ;;  %v9844_v45 = vld [vmem:[%s17155_s9 + $0x18] sm:$0xf0] }
 0x6de   : > { %v13335_v55 = vpop.f32.mrf.mxu0 }
 0x6df   : > { %17344 = vst [vmem:[#allocation47_spill] sm:$0xff] %v13335_v55  ;;  %v13337_v16 = vpack.c.bf16 %v4344_v41, %v4343_v47 }
 0x6e0   : > { %v3978_v34 = vpop.f32.mrf.mxu3  ;;  %v3515_v44 = vpop.f32.mrf.mxu2 }
 0x6e1   : > { %17345 = vst [vmem:[#allocation48_spill] sm:$0xff] %v13337_v16  ;;  %4697 = vmatmul.bf16.gmra.mxu0 %v13337_v16  ;;  %v3979_v30 = vadd.f32 %v3978_v34, %v3513_v33 }
 0x6e2   : > { %v2646_v32 = vpop.f32.mrf.mxu1 }
 0x6e3   : > { %v2647_v50 = vadd.f32 %v13074_v15, %v2646_v32  ;;  %v4201_v41 = vadd.f32 %v13124_v7, %v3979_v30  ;;  %v1919_v32 = vpack.c.bf16 %v11406_v10, %v11405_v4  ;;  %v10824_v30 = vld [vmem:[%s17154_s8 + $0x14] sm:$0xf0] }
 0x6e5   : > { %v2885_v40 = vmax.f32 %v2647_v50, 0.0  ;;  %v4345_v33 = vmax.f32 %v4201_v41, 0.0  ;;  %v10839_v50 = vld [vmem:[%s17155_s9 + $0x14] sm:$0xf] }
 0x6e6   : > { %v13342_v19 = vpop.f32.mrf.mxu0 }
 0x6e7   : > { %17346 = vst [vmem:[#allocation49_spill] sm:$0xff] %v13342_v19  ;;  %v13344_v55 = vpack.c.bf16 %v2885_v40, %v2884_v62  ;;  %v9847_v62 = vor.u32 %v10839_v50, %v9844_v45 }
 0x6e8   : > { %v3980_v47 = vpop.f32.mrf.mxu3 }
 0x6e9   : > { %v3981_v51 = vadd.f32 %v3980_v47, %v3515_v44  ;;  %9728 = vmatmul.msk.bf16.gmra.mxu2 %vm3052_vm3, %v13344_v55 }
 0x6ea   : > { %v2649_v16 = vpop.f32.mrf.mxu1  ;;  %4834 = vmatpush.bf16.msrb.mxu2 %v9847_v62 }
 0x6eb   : > { %v4202_v59 = vadd.f32 %v13124_v7, %v3981_v51  ;;  %v2650_v4 = vadd.f32 %v13074_v15, %v2649_v16  ;;  %v11409_v51 = vpop.permute.xlu1 %11408 }
 0x6ec   : > { %v3518_v35 = vpop.f32.mrf.mxu2 }
 0x6ed   : > { %v4346_v34 = vmax.f32 %v4202_v59, 0.0  ;;  %9649 = vmatmul.msk.bf16.gmra.mxu1 %vm1946_vm2, %v1919_v32  ;;  %9816 = vmatmul.msk.bf16.gmra.mxu3 %vm3052_vm3, %v13188_v43  ;;  %v9906_v59 = vld [vmem:[%s17154_s8 + $0x10] sm:$0xf]  ;;  %v2886_v50 = vmax.f32 %v2650_v4, 0.0 }
 0x6ee   : > { %v13359_v44 = vpop.f32.mrf.mxu0  ;;  %v9907_v40 = vor.u32 %v10824_v30, %v9906_v59 }
 0x6ef   : > { %17347 = vst [vmem:[#allocation50_spill] sm:$0xff] %v13359_v44  ;;  %v13367_v43 = vpack.c.bf16 %v4346_v34, %v4345_v33  ;;  %v11411_v33 = vunpack.i.h.bf16 %v11409_v51  ;;  %v11410_v34 = vunpack.i.l.bf16 %v11409_v51 }
 0x6f0   : > { %v3983_v10 = vpop.f32.mrf.mxu3  ;;  %5163 = vmatpush.bf16.msra.mxu3 %v9907_v40 }
 0x6f1   : > { %17348 = vst [vmem:[#allocation51_spill] sm:$0xff] %v13367_v43  ;;  %4702 = vmatmul.bf16.gmra.mxu0 %v13367_v43  ;;  %v3984_v45 = vadd.f32 %v3983_v10, %v3518_v35 }
 0x6f2   : > { %v2651_v47 = vpop.f32.mrf.mxu1 }
 0x6f3   : > { %v2652_v41 = vadd.f32 %v13074_v15, %v2651_v47  ;;  %v4203_v16 = vadd.f32 %v13124_v7, %v3984_v45  ;;  %v1920_v47 = vpack.c.bf16 %v11411_v33, %v11410_v34  ;;  %v11414_v33 = vpop.permute.xlu2 %11413 }
 0x6f4   : > { %v3520_v32 = vpop.f32.mrf.mxu2 }
 0x6f5   : > { %v2887_v44 = vmax.f32 %v2652_v41, 0.0  ;;  %v4347_v35 = vmax.f32 %v4203_v16, 0.0 }
 0x6f6   : > { %v13372_v19 = vpop.f32.mrf.mxu0 }
 0x6f7   : > { %17349 = vst [vmem:[#allocation52_spill] sm:$0xff] %v13372_v19  ;;  %v13374_v59 = vpack.c.bf16 %v2887_v44, %v2886_v50 }
 0x6f8   : > { %v3985_v62 = vpop.f32.mrf.mxu3 }
 0x6f9   : > { %v3986_v30 = vadd.f32 %v3985_v62, %v3520_v32  ;;  %9729 = vmatmul.msk.bf16.gmra.mxu2 %vm3052_vm3, %v13374_v59 }
 0x6fa   : > { %v2654_v40 = vpop.f32.mrf.mxu1 }
 0x6fb   : > { %v4204_v43 = vadd.f32 %v13124_v7, %v3986_v30  ;;  %v2655_v32 = vadd.f32 %v13074_v15, %v2654_v40 }
 0x6fc   : > { %v3523_v4 = vpop.f32.mrf.mxu2 }
 0x6fd   : > { %v4348_v10 = vmax.f32 %v4204_v43, 0.0  ;;  %9650 = vmatmul.msk.bf16.gmra.mxu1 %vm1946_vm2, %v1920_v47  ;;  %9817 = vmatmul.msk.bf16.gmra.mxu3 %vm3052_vm3, %v13212_v0  ;;  %v2888_v43 = vmax.f32 %v2655_v32, 0.0  ;;  %v11416_v0 = vunpack.i.h.bf16 %v11414_v33  ;;  %v11415_v47 = vunpack.i.l.bf16 %v11414_v33  ;;  %v10825_v33 = vld [vmem:[%s17154_s8 + $0x24] sm:$0xf] }
 0x6fe   : > { %v13383_v44 = vpop.f32.mrf.mxu0 }
 0x6ff   : > { %17350 = vst [vmem:[#allocation53_spill] sm:$0xff] %v13383_v44  ;;  %v13385_v41 = vpack.c.bf16 %v4348_v10, %v4347_v35 }
 0x700   : > { %v3988_v51 = vpop.f32.mrf.mxu3 }
 0x701   : > { %17351 = vst [vmem:[#allocation54_spill] sm:$0xff] %v13385_v41  ;;  %4707 = vmatmul.bf16.gmra.mxu0 %v13385_v41  ;;  %v3989_v62 = vadd.f32 %v3988_v51, %v3523_v4 }
 0x702   : > { %v2656_v50 = vpop.f32.mrf.mxu1 }
 0x703   : > { %v2657_v45 = vadd.f32 %v13074_v15, %v2656_v50  ;;  %v4205_v10 = vadd.f32 %v13124_v7, %v3989_v62  ;;  %v1921_v50 = vpack.c.bf16 %v11416_v0, %v11415_v47  ;;  %v11419_v47 = vpop.permute.xlu0 %11418 }
 0x704   : > { %v3525_v34 = vpop.f32.mrf.mxu2 }
 0x705   : > { %v2889_v16 = vmax.f32 %v2657_v45, 0.0  ;;  %v4349_v4 = vmax.f32 %v4205_v10, 0.0 }
 0x706   : > { %v13390_v30 = vpop.f32.mrf.mxu0 }
 0x707   : > { %17352 = vst [vmem:[#allocation55_spill] sm:$0xff] %v13390_v30  ;;  %v13392_v44 = vpack.c.bf16 %v2889_v16, %v2888_v43  ;;  %v11421_v30 = vunpack.i.h.bf16 %v11419_v47 }
 0x708   : > { %v3990_v35 = vpop.f32.mrf.mxu3 }
 0x709   : > { %v3991_v40 = vadd.f32 %v3990_v35, %v3525_v34  ;;  %9730 = vmatmul.msk.bf16.gmra.mxu2 %vm3052_vm3, %v13392_v44  ;;  %v9916_v34 = vld [vmem:[%s17154_s8 + $0x28] sm:$0xf0] }
 0x70a   : > { %v2659_v41 = vpop.f32.mrf.mxu1  ;;  %v9919_v62 = vor.u32 %v10825_v33, %v9916_v34 }
 0x70b   : > { %v4206_v19 = vadd.f32 %v13124_v7, %v3991_v40 }
 0x70c   : > { %v3528_v32 = vpop.f32.mrf.mxu2  ;;  %5411 = vmatpush.bf16.msra.mxu0 %v9919_v62 }
 0x70d   : > { %v4350_v51 = vmax.f32 %v4206_v19, 0.0  ;;  %9651 = vmatmul.msk.bf16.gmra.mxu1 %vm1946_vm2, %v1921_v50  ;;  %9818 = vmatmul.msk.bf16.gmra.mxu3 %vm3052_vm3, %v13230_v2  ;;  %v2660_v19 = vadd.f32 %v13074_v15, %v2659_v41 }
 0x70e   : > { %v13401_v45 = vpop.f32.mrf.mxu0 }
 0x70f   : > { %17353 = vst [vmem:[#allocation56_spill] sm:$0xff] %v13401_v45  ;;  %v13409_v43 = vpack.c.bf16 %v4350_v51, %v4349_v4  ;;  %v2890_v10 = vmax.f32 %v2660_v19, 0.0  ;;  %v11420_v4 = vunpack.i.l.bf16 %v11419_v47 }
 0x710   : > { %v3993_v16 = vpop.f32.mrf.mxu3 }
 0x711   : > { %17354 = vst [vmem:[#allocation57_spill] sm:$0xff] %v13409_v43  ;;  %4712 = vmatmul.bf16.gmra.mxu0 %v13409_v43  ;;  %v3994_v40 = vadd.f32 %v3993_v16, %v3528_v32 }
 0x712   : > { %v2661_v0 = vpop.f32.mrf.mxu1 }
 0x713   : > { %v2662_v2 = vadd.f32 %v13074_v15, %v2661_v0  ;;  %v4207_v41 = vadd.f32 %v13124_v7, %v3994_v40  ;;  %v1922_v0 = vpack.c.bf16 %v11421_v30, %v11420_v4 }
 0x714   : > { %v3530_v35 = vpop.f32.mrf.mxu2 }
 0x715   : > { %v2891_v50 = vmax.f32 %v2662_v2, 0.0  ;;  %v4351_v32 = vmax.f32 %v4207_v41, 0.0 }
 0x716   : > { %v13414_v45 = vpop.f32.mrf.mxu0 }
 0x717   : > { %v13416_v51 = vpack.c.bf16 %v2891_v50, %v2890_v10 }
 0x718   : > { %v3995_v33 = vpop.f32.mrf.mxu3 }
 0x719   : > { %v3996_v34 = vadd.f32 %v3995_v33, %v3530_v35  ;;  %9731 = vmatmul.msk.bf16.gmra.mxu2 %vm3052_vm3, %v13416_v51 }
 0x71a   : > { %v2664_v62 = vpop.f32.mrf.mxu1 }
 0x71b   : > { %v4208_v43 = vadd.f32 %v13124_v7, %v3996_v34  ;;  %v2665_v10 = vadd.f32 %v13074_v15, %v2664_v62 }
 0x71c   : > { %v3533_v19 = vpop.f32.mrf.mxu2 }
 0x71d   : > { %v4352_v16 = vmax.f32 %v4208_v43, 0.0  ;;  %9652 = vmatmul.msk.bf16.gmra.mxu1 %vm1946_vm2, %v1922_v0  ;;  %9819 = vmatmul.msk.bf16.gmra.mxu3 %vm3052_vm3, %v13248_v26  ;;  %v2892_v4 = vmax.f32 %v2665_v10, 0.0 }
 0x71e   : > { %v13425_v2 = vpop.f32.mrf.mxu0 }
 0x71f   : > { %17355 = vst [vmem:[#allocation58_spill] sm:$0xff] %v13425_v2  ;;  %v13427_v47 = vpack.c.bf16 %v4352_v16, %v4351_v32 }
 0x720   : > { %v3998_v35 = vpop.f32.mrf.mxu3 }
 0x721   : > { %17356 = vst [vmem:[#allocation59_spill] sm:$0xff] %v13427_v47  ;;  %4717 = vmatmul.bf16.gmra.mxu0 %v13427_v47  ;;  %v3999_v43 = vadd.f32 %v3998_v35, %v3533_v19 }
 0x722   : > { %v2666_v30 = vpop.f32.mrf.mxu1 }
 0x723   : > { %v2667_v40 = vadd.f32 %v13074_v15, %v2666_v30  ;;  %v4209_v0 = vadd.f32 %v13124_v7, %v3999_v43 }
 0x724   : > { %v3535_v50 = vpop.f32.mrf.mxu2 }
 0x725   : > { %v2893_v33 = vmax.f32 %v2667_v40, 0.0  ;;  %v4353_v15 = vmax.f32 %v4209_v0, 0.0  ;;  %v13449_v40 = vld [vmem:[%s17150_s4] ss:$0 sm:$0xff] }
 0x726   : > { %v13432_v41 = vpop.f32.mrf.mxu0 }
 0x727   : > { %17357 = vst [vmem:[#allocation60_spill] sm:$0xff] %v13432_v41  ;;  %v13434_v34 = vpack.c.bf16 %v2893_v33, %v2892_v4 }
 0x728   : > { %v4000_v26 = vpop.f32.mrf.mxu3 }
 0x729   : > { %v4001_v32 = vadd.f32 %v4000_v26, %v3535_v50  ;;  %9732 = vmatmul.msk.bf16.gmra.mxu2 %vm3052_vm3, %v13434_v34 }
 0x72a   : > { %v2669_v62 = vpop.f32.mrf.mxu1 }
 0x72b   : > { %v4210_v16 = vadd.f32 %v13124_v7, %v4001_v32  ;;  %v2670_v50 = vadd.f32 %v13449_v40, %v2669_v62 }
 0x72c   : > { %v3538_v2 = vpop.f32.mrf.mxu2 }
 0x72d   : > { %v4354_v30 = vmax.f32 %v4210_v16, 0.0  ;;  %9820 = vmatmul.msk.bf16.gmra.mxu3 %vm3052_vm3, %v13266_v60  ;;  %v2894_v26 = vmax.f32 %v2670_v50, 0.0 }
 0x72e   : > { %v13442_v19 = vpop.f32.mrf.mxu0 }
 0x72f   : > { %17358 = vst [vmem:[#allocation61_spill] sm:$0xff] %v13442_v19  ;;  %v13444_v35 = vpack.c.bf16 %v4354_v30, %v4353_v15 }
 0x730   : > { %v4003_v10 = vpop.f32.mrf.mxu3 }
 0x731   : > { %17359 = vst [vmem:[#allocation62_spill] sm:$0xff] %v13444_v35  ;;  %4722 = vmatmul.bf16.gmra.mxu0 %v13444_v35  ;;  %v4004_v60 = vadd.f32 %v4003_v10, %v3538_v2 }
 0x732   : > { %v2671_v4 = vpop.f32.mrf.mxu1 }
 0x733   : > { %v2672_v43 = vadd.f32 %v13449_v40, %v2671_v4  ;;  %v4211_v30 = vadd.f32 %v13124_v7, %v4004_v60 }
 0x734   : > { %v3540_v33 = vpop.f32.mrf.mxu2 }
 0x735   : > { %v2895_v0 = vmax.f32 %v2672_v43, 0.0  ;;  %v4355_v4 = vmax.f32 %v4211_v30, 0.0 }
 0x736   : > { %v13454_v32 = vpop.f32.mrf.mxu0 }
 0x737   : > { %17360 = vst [vmem:[#allocation63_spill] sm:$0xff] %v13454_v32  ;;  %v13456_v16 = vpack.c.bf16 %v2895_v0, %v2894_v26 }
 0x738   : > { %v4005_v15 = vpop.f32.mrf.mxu3 }
 0x739   : > { %v4006_v19 = vadd.f32 %v4005_v15, %v3540_v33  ;;  %9733 = vmatmul.msk.bf16.gmra.mxu2 %vm3052_vm3, %v13456_v16 }
 0x73a   : > { %v2674_v62 = vpop.f32.mrf.mxu1 }
 0x73b   : > { %v4212_v35 = vadd.f32 %v13124_v7, %v4006_v19  ;;  %v2675_v43 = vadd.f32 %v13449_v40, %v2674_v62 }
 0x73c   : > { %v3543_v41 = vpop.f32.mrf.mxu2 }
 0x73d   : > { %v4356_v47 = vmax.f32 %v4212_v35, 0.0  ;;  %9821 = vmatmul.msk.bf16.gmra.mxu3 %vm3052_vm3, %v13284_v38  ;;  %v2896_v19 = vmax.f32 %v2675_v43, 0.0 }
 0x73e   : > { %v13464_v2 = vpop.f32.mrf.mxu0 }
 0x73f   : > { %17361 = vst [vmem:[#allocation64_spill] sm:$0xff] %v13464_v2  ;;  %v13466_v10 = vpack.c.bf16 %v4356_v47, %v4355_v4 }
 0x740   : > { %v4008_v50 = vpop.f32.mrf.mxu3 }
 0x741   : > { %17362 = vst [vmem:[#allocation65_spill] sm:$0xff] %v13466_v10  ;;  %4727 = vmatmul.bf16.gmra.mxu0 %v13466_v10  ;;  %v4009_v0 = vadd.f32 %v4008_v50, %v3543_v41 }
 0x742   : > { %v2676_v33 = vpop.f32.mrf.mxu1 }
 0x743   : > { %v2677_v26 = vadd.f32 %v13449_v40, %v2676_v33  ;;  %v4213_v47 = vadd.f32 %v13124_v7, %v4009_v0 }
 0x744   : > { %v3545_v60 = vpop.f32.mrf.mxu2 }
 0x745   : > { %v2897_v15 = vmax.f32 %v2677_v26, 0.0  ;;  %v4357_v33 = vmax.f32 %v4213_v47, 0.0 }
 0x746   : > { %v13471_v35 = vpop.f32.mrf.mxu0 }
 0x747   : > { %17363 = vst [vmem:[#allocation66_spill] sm:$0xff] %v13471_v35  ;;  %v13473_v30 = vpack.c.bf16 %v2897_v15, %v2896_v19 }
 0x748   : > { %v4010_v38 = vpop.f32.mrf.mxu3 }
 0x749   : > { %v4011_v4 = vadd.f32 %v4010_v38, %v3545_v60  ;;  %9734 = vmatmul.msk.bf16.gmra.mxu2 %vm3052_vm3, %v13473_v30 }
 0x74a   : > { %v2679_v62 = vpop.f32.mrf.mxu1 }
 0x74b   : > { %v4214_v2 = vadd.f32 %v13124_v7, %v4011_v4  ;;  %v2680_v26 = vadd.f32 %v13449_v40, %v2679_v62 }
 0x74c   : > { %v3548_v10 = vpop.f32.mrf.mxu2 }
 0x74d   : > { %v4358_v32 = vmax.f32 %v4214_v2, 0.0  ;;  %9822 = vmatmul.msk.bf16.gmra.mxu3 %vm3052_vm3, %v13308_v12  ;;  %v2898_v7 = vmax.f32 %v2680_v26, 0.0 }
 0x74e   : > { %v13481_v41 = vpop.f32.mrf.mxu0 }
 0x74f   : > { %17364 = vst [vmem:[#allocation67_spill] sm:$0xff] %v13481_v41  ;;  %v13483_v50 = vpack.c.bf16 %v4358_v32, %v4357_v33  ;;  %v13495_v32 = vld [vmem:[%s17153_s7] ss:$0 sm:$0xff] }
 0x750   : > { %v4013_v43 = vpop.f32.mrf.mxu3 }
 0x751   : > { %17365 = vst [vmem:[#allocation68_spill] sm:$0xff] %v13483_v50  ;;  %4732 = vmatmul.bf16.gmra.mxu0 %v13483_v50  ;;  %v4014_v15 = vadd.f32 %v4013_v43, %v3548_v10 }
 0x752   : > { %v2681_v60 = vpop.f32.mrf.mxu1 }
 0x753   : > { %v2682_v19 = vadd.f32 %v13449_v40, %v2681_v60  ;;  %v4215_v4 = vadd.f32 %v13495_v32, %v4014_v15 }
 0x754   : > { %v3550_v0 = vpop.f32.mrf.mxu2 }
 0x755   : > { %v2899_v38 = vmax.f32 %v2682_v19, 0.0  ;;  %v4359_v26 = vmax.f32 %v4215_v4, 0.0 }
 0x756   : > { %v13488_v2 = vpop.f32.mrf.mxu0 }
 0x757   : > { %17366 = vst [vmem:[#allocation69_spill] sm:$0xff] %v13488_v2  ;;  %v13490_v47 = vpack.c.bf16 %v2899_v38, %v2898_v7 }
 0x758   : > { %v4015_v12 = vpop.f32.mrf.mxu3 }
 0x759   : > { %v4016_v62 = vadd.f32 %v4015_v12, %v3550_v0  ;;  %9735 = vmatmul.msk.bf16.gmra.mxu2 %vm3052_vm3, %v13490_v47 }
 0x75a   : > { %v2684_v33 = vpop.f32.mrf.mxu1 }
 0x75b   : > { %v4216_v10 = vadd.f32 %v13495_v32, %v4016_v62  ;;  %v2685_v15 = vadd.f32 %v13449_v40, %v2684_v33  ;;  %v9908_v33 = vld [vmem:[%s17154_s8 + $0x18] sm:$0xf0] }
 0x75c   : > { %v3553_v43 = vpop.f32.mrf.mxu2 }
 0x75d   : > { %v4360_v60 = vmax.f32 %v4216_v10, 0.0  ;;  %9823 = vmatmul.msk.bf16.gmra.mxu3 %vm3052_vm3, %v13326_v28  ;;  %v2900_v62 = vmax.f32 %v2685_v15, 0.0  ;;  %v10823_v28 = vld [vmem:[%s17154_s8 + $0x14] sm:$0xf] }
 0x75e   : > { %v13503_v19 = vpop.f32.mrf.mxu0 }
 0x75f   : > { %17367 = vst [vmem:[#allocation70_spill] sm:$0xff] %v13503_v19  ;;  %v13505_v7 = vpack.c.bf16 %v4360_v60, %v4359_v26  ;;  %v9911_v60 = vor.u32 %v10823_v28, %v9908_v33 }
 0x760   : > { %v4018_v38 = vpop.f32.mrf.mxu3 }
 0x761   : > { %17368 = vst [vmem:[#allocation71_spill] sm:$0xff] %v13505_v7  ;;  %4737 = vmatmul.bf16.gmra.mxu0 %v13505_v7  ;;  %v4019_v41 = vadd.f32 %v4018_v38, %v3553_v43 }
 0x762   : > { %v2686_v0 = vpop.f32.mrf.mxu1  ;;  %5412 = vmatpush.bf16.msra.mxu0 %v9911_v60 }
 0x763   : > { %v2687_v12 = vadd.f32 %v13449_v40, %v2686_v0  ;;  %v4217_v19 = vadd.f32 %v13495_v32, %v4019_v41 }
 0x764   : > { %v3555_v2 = vpop.f32.mrf.mxu2 }
 0x765   : > { %v2901_v4 = vmax.f32 %v2687_v12, 0.0  ;;  %v4361_v12 = vmax.f32 %v4217_v19, 0.0 }
 0x766   : > { %v13510_v10 = vpop.f32.mrf.mxu0 }
 0x767   : > { %17369 = vst [vmem:[#allocation72_spill] sm:$0xff] %v13510_v10  ;;  %v3004_v50 = vpack.c.bf16 %v2901_v4, %v2900_v62 }
 0x768   : > { %v4020_v26 = vpop.f32.mrf.mxu3 }
 0x769   : > { %v4021_v0 = vadd.f32 %v4020_v26, %v3555_v2  ;;  %9736 = vmatmul.msk.bf16.gmra.mxu2 %vm3052_vm3, %v3004_v50 }
 0x76a   : > { %v2689_v43 = vpop.f32.mrf.mxu1 }
 0x76b   : > { %v4218_v38 = vadd.f32 %v13495_v32, %v4021_v0  ;;  %v2690_v41 = vadd.f32 %v13449_v40, %v2689_v43 }
 0x76c   : > { %v3558_v15 = vpop.f32.mrf.mxu2 }
 0x76d   : > { %v4362_v62 = vmax.f32 %v4218_v38, 0.0  ;;  %9824 = vmatmul.msk.bf16.gmra.mxu3 %vm3052_vm3, %v13344_v55  ;;  %v2902_v26 = vmax.f32 %v2690_v41, 0.0 }
 0x76e   : > { %v13523_v4 = vpop.f32.mrf.mxu0 }
 0x76f   : > { %17370 = vst [vmem:[#allocation73_spill] sm:$0xff] %v13523_v4  ;;  %v13525_v10 = vpack.c.bf16 %v4362_v62, %v4361_v12 }
 0x770   : > { %v4023_v28 = vpop.f32.mrf.mxu3 }
 0x771   : > { %17371 = vst [vmem:[#allocation74_spill] sm:$0xff] %v13525_v10  ;;  %4742 = vmatmul.bf16.gmra.mxu0 %v13525_v10  ;;  %v4024_v60 = vadd.f32 %v4023_v28, %v3558_v15  ;;  %v10837_v15 = vld [vmem:[%s17155_s9 + $0x4] sm:$0xf]  ;;  %v9836_v28 = vld [vmem:[%s17155_s9 + $0x8] sm:$0xf0] }
 0x772   : > { %v2691_v50 = vpop.f32.mrf.mxu1 }
 0x773   : > { %v2692_v2 = vadd.f32 %v13449_v40, %v2691_v50  ;;  %v4219_v4 = vadd.f32 %v13495_v32, %v4024_v60  ;;  %v9839_v50 = vor.u32 %v10837_v15, %v9836_v28 }
 0x774   : > { %v3560_v33 = vpop.f32.mrf.mxu2 }
 0x775   : > { %v2903_v19 = vmax.f32 %v2692_v2, 0.0  ;;  %v4363_v7 = vmax.f32 %v4219_v4, 0.0  ;;  %v9898_v2 = vld [vmem:[%s17154_s8] sm:$0xf]  ;;  %v10822_v4 = vld [vmem:[%s17154_s8 + $0x4] sm:$0xf0]  ;;  %4835 = vmatpush.bf16.msrb.mxu2 %v9839_v50 }
 0x776   : > { %v13530_v0 = vpop.f32.mrf.mxu0 }
 0x777   : > { %v3005_v38 = vpack.c.bf16 %v2903_v19, %v2902_v26 }
 0x778   : > { %v4025_v55 = vpop.f32.mrf.mxu3 }
 0x779   : > { %v4026_v12 = vadd.f32 %v4025_v55, %v3560_v33  ;;  %9737 = vmatmul.msk.bf16.gmra.mxu2 %vm3052_vm3, %v3005_v38  ;;  %v9899_v33 = vor.u32 %v10822_v4, %v9898_v2 }
 0x77a   : > { %v2694_v62 = vpop.f32.mrf.mxu1 }
 0x77b   : > { %v4220_v43 = vadd.f32 %v13495_v32, %v4026_v12  ;;  %v2695_v60 = vadd.f32 %v13449_v40, %v2694_v62  ;;  %5164 = vmatpush.bf16.msra.mxu3 %v9899_v33 }
 0x77c   : > { %v3563_v10 = vpop.f32.mrf.mxu2 }
 0x77d   : > { %v4364_v35 = vmax.f32 %v4220_v43, 0.0  ;;  %9825 = vmatmul.msk.bf16.gmra.mxu3 %vm3052_vm3, %v13374_v59  ;;  %v2904_v12 = vmax.f32 %v2695_v60, 0.0 }
 0x77e   : > { %v13543_v41 = vpop.f32.mrf.mxu0 }
 0x77f   : > { %17372 = vst [vmem:[#allocation75_spill] sm:$0xff] %v13543_v41  ;;  %v13551_v59 = vpack.c.bf16 %v4364_v35, %v4363_v7 }
 0x780   : > { %v4028_v26 = vpop.f32.mrf.mxu3 }
 0x781   : > { %17373 = vst [vmem:[#allocation76_spill] sm:$0xff] %v13551_v59  ;;  %4747 = vmatmul.bf16.gmra.mxu0 %v13551_v59  ;;  %v4029_v43 = vadd.f32 %v4028_v26, %v3563_v10 }
 0x782   : > { %v2696_v19 = vpop.f32.mrf.mxu1 }
 0x783   : > { %v2697_v38 = vadd.f32 %v13449_v40, %v2696_v19  ;;  %v4221_v7 = vadd.f32 %v13495_v32, %v4029_v43 }
 0x784   : > { %v3565_v55 = vpop.f32.mrf.mxu2 }
 0x785   : > { %v2905_v15 = vmax.f32 %v2697_v38, 0.0  ;;  %v4365_v33 = vmax.f32 %v4221_v7, 0.0 }
 0x786   : > { %v13556_v28 = vpop.f32.mrf.mxu0 }
 0x787   : > { %v3006_v41 = vpack.c.bf16 %v2905_v15, %v2904_v12 }
 0x788   : > { %v4030_v35 = vpop.f32.mrf.mxu3 }
 0x789   : > { %v4031_v2 = vadd.f32 %v4030_v35, %v3565_v55  ;;  %9738 = vmatmul.msk.bf16.gmra.mxu2 %vm3052_vm3, %v3006_v41 }
 0x78a   : > { %v2699_v62 = vpop.f32.mrf.mxu1 }
 0x78b   : > { %v4222_v50 = vadd.f32 %v13495_v32, %v4031_v2  ;;  %v2700_v19 = vadd.f32 %v13449_v40, %v2699_v62 }
 0x78c   : > { %v3568_v4 = vpop.f32.mrf.mxu2 }
 0x78d   : > { %v4366_v59 = vmax.f32 %v4222_v50, 0.0  ;;  %9826 = vmatmul.msk.bf16.gmra.mxu3 %vm3052_vm3, %v13392_v44  ;;  %v2906_v12 = vmax.f32 %v2700_v19, 0.0 }
 0x78e   : > { %v13563_v10 = vpop.f32.mrf.mxu0 }
 0x78f   : > { %17374 = vst [vmem:[#allocation77_spill] sm:$0xff] %v13563_v10  ;;  %v13565_v26 = vpack.c.bf16 %v4366_v59, %v4365_v33 }
 0x790   : > { %v4033_v60 = vpop.f32.mrf.mxu3 }
 0x791   : > { %17375 = vst [vmem:[#allocation78_spill] sm:$0xff] %v13565_v26  ;;  %4752 = vmatmul.bf16.gmra.mxu0 %v13565_v26  ;;  %v4034_v43 = vadd.f32 %v4033_v60, %v3568_v4 }
 0x792   : > { %v2701_v38 = vpop.f32.mrf.mxu1 }
 0x793   : > { %v2702_v41 = vadd.f32 %v13449_v40, %v2701_v38  ;;  %v4223_v2 = vadd.f32 %v13495_v32, %v4034_v43 }
 0x794   : > { %v3570_v55 = vpop.f32.mrf.mxu2 }
 0x795   : > { %v2907_v15 = vmax.f32 %v2702_v41, 0.0  ;;  %v4367_v10 = vmax.f32 %v4223_v2, 0.0 }
 0x796   : > { %v13570_v35 = vpop.f32.mrf.mxu0 }
 0x797   : > { %v3007_v7 = vpack.c.bf16 %v2907_v15, %v2906_v12 }
 0x798   : > { %v4035_v44 = vpop.f32.mrf.mxu3 }
 0x799   : > { %v4036_v59 = vadd.f32 %v4035_v44, %v3570_v55  ;;  %9739 = vmatmul.msk.bf16.gmra.mxu2 %vm3052_vm3, %v3007_v7 }
 0x79a   : > { %v2704_v50 = vpop.f32.mrf.mxu1 }
 0x79b   : > { %v4224_v62 = vadd.f32 %v13495_v32, %v4036_v59  ;;  %v2705_v38 = vadd.f32 %v13449_v40, %v2704_v50 }
 0x79c   : > { %v3573_v33 = vpop.f32.mrf.mxu2 }
 0x79d   : > { %v4368_v26 = vmax.f32 %v4224_v62, 0.0  ;;  %9827 = vmatmul.msk.bf16.gmra.mxu3 %vm3052_vm3, %v13416_v51  ;;  %v2908_v43 = vmax.f32 %v2705_v38, 0.0 }
 0x79e   : > { %v13577_v4 = vpop.f32.mrf.mxu0 }
 0x79f   : > { %17376 = vst [vmem:[#allocation79_spill] sm:$0xff] %v13577_v4  ;;  %v13579_v60 = vpack.c.bf16 %v4368_v26, %v4367_v10 }
 0x7a0   : > { %v4038_v19 = vpop.f32.mrf.mxu3 }
 0x7a1   : > { %4757 = vmatmul.bf16.gmra.mxu0 %v13579_v60  ;;  %v4039_v15 = vadd.f32 %v4038_v19, %v3573_v33 }
 0x7a2   : > { %v2706_v41 = vpop.f32.mrf.mxu1 }
 0x7a3   : > { %v2707_v55 = vadd.f32 %v13449_v40, %v2706_v41  ;;  %v4225_v59 = vadd.f32 %v13495_v32, %v4039_v15 }
 0x7a4   : > { %v3575_v12 = vpop.f32.mrf.mxu2 }
 0x7a5   : > { %v2909_v7 = vmax.f32 %v2707_v55, 0.0  ;;  %v4369_v62 = vmax.f32 %v4225_v59, 0.0  ;;  %v9900_v59 = vld [vmem:[%s17154_s8 + $0x8] sm:$0xf0] }
 0x7a6   : > { %v13584_v44 = vpop.f32.mrf.mxu0 }
 0x7a7   : > { %v3008_v2 = vpack.c.bf16 %v2909_v7, %v2908_v43 }
 0x7a8   : > { %v4040_v51 = vpop.f32.mrf.mxu3 }
 0x7a9   : > { %v4041_v10 = vadd.f32 %v4040_v51, %v3575_v12  ;;  %9740 = vmatmul.msk.bf16.gmra.mxu2 %vm3052_vm3, %v3008_v2  ;;  %v10821_v51 = vld [vmem:[%s17154_s8 + $0x4] sm:$0xf] }
 0x7ab   : > { %v4226_v26 = vadd.f32 %v13495_v32, %v4041_v10 }
 0x7ac   : > { %v3578_v50 = vpop.f32.mrf.mxu2 }
 0x7ad   : > { %v4370_v4 = vmax.f32 %v4226_v26, 0.0  ;;  %9828 = vmatmul.msk.bf16.gmra.mxu3 %vm3052_vm3, %v13434_v34  ;;  %v9903_v26 = vor.u32 %v10821_v51, %v9900_v59 }
 0x7ae   : > { %v13591_v40 = vpop.f32.mrf.mxu0 }
 0x7af   : > { %17377 = vst [vmem:[#allocation80_spill] sm:$0xff] %v13591_v40  ;;  %v13593_v33 = vpack.c.bf16 %v4370_v4, %v4369_v62  ;;  %5413 = vmatpush.bf16.msra.mxu0 %v9903_v26 }
 0x7b0   : > { %v4043_v19 = vpop.f32.mrf.mxu3 }
 0x7b1   : > { %17378 = vst [vmem:[#allocation81_spill] sm:$0xff] %v13593_v33  ;;  %4762 = vmatmul.bf16.gmra.mxu0 %v13593_v33  ;;  %v4044_v41 = vadd.f32 %v4043_v19, %v3578_v50 }
 0x7b3   : > { %v4227_v43 = vadd.f32 %v13495_v32, %v4044_v41 }
 0x7b4   : > { %v3580_v38 = vpop.f32.mrf.mxu2 }
 0x7b5   : > { %v4371_v2 = vmax.f32 %v4227_v43, 0.0 }
 0x7b6   : > { %v13596_v55 = vpop.f32.mrf.mxu0 }
 0x7b7   : > { %17379 = vst [vmem:[#allocation82_spill] sm:$0xff] %v13596_v55 }
 0x7b8   : > { %v4045_v12 = vpop.f32.mrf.mxu3 }
 0x7b9   : > { %v4046_v15 = vadd.f32 %v4045_v12, %v3580_v38  ;;  %9741 = vmatmul.msk.bf16.gmra.mxu2 %vm3052_vm3, %v12436_v9 }
 0x7bb   : > { %v4228_v34 = vadd.f32 %v13495_v32, %v4046_v15 }
 0x7bc   : > { %v3583_v7 = vpop.f32.mrf.mxu2 }
 0x7bd   : > { %v4372_v4 = vmax.f32 %v4228_v34, 0.0  ;;  %9829 = vmatmul.msk.bf16.gmra.mxu3 %vm3052_vm3, %v13456_v16 }
 0x7be   : > { %v13610_v10 = vpop.f32.mrf.mxu0 }
 0x7bf   : > { %17380 = vst [vmem:[#allocation83_spill] sm:$0xff] %v13610_v10  ;;  %v13612_v9 = vpack.c.bf16 %v4372_v4, %v4371_v2 }
 0x7c0   : > { %v4048_v50 = vpop.f32.mrf.mxu3 }
 0x7c1   : > { %17381 = vst [vmem:[#allocation84_spill] sm:$0xff] %v13612_v9  ;;  %4767 = vmatmul.bf16.gmra.mxu0 %v13612_v9  ;;  %v4049_v19 = vadd.f32 %v4048_v50, %v3583_v7 }
 0x7c3   : > { %v4229_v41 = vadd.f32 %v13495_v32, %v4049_v19 }
 0x7c4   : > { %v3585_v62 = vpop.f32.mrf.mxu2 }
 0x7c5   : > { %v4373_v34 = vmax.f32 %v4229_v41, 0.0 }
 0x7c6   : > { %v13615_v16 = vpop.f32.mrf.mxu0 }
 0x7c7   : > { %17382 = vst [vmem:[#allocation85_spill] sm:$0xff] %v13615_v16 }
 0x7c8   : > { %v4050_v38 = vpop.f32.mrf.mxu3 }
 0x7c9   : > { %v4051_v12 = vadd.f32 %v4050_v38, %v3585_v62  ;;  %9742 = vmatmul.msk.bf16.gmra.mxu2 %vm3052_vm3, %v12427_v52 }
 0x7cb   : > { %v4230_v43 = vadd.f32 %v13495_v32, %v4051_v12 }
 0x7cc   : > { %v3588_v15 = vpop.f32.mrf.mxu2 }
 0x7cd   : > { %v4374_v2 = vmax.f32 %v4230_v43, 0.0  ;;  %9830 = vmatmul.msk.bf16.gmra.mxu3 %vm3052_vm3, %v13473_v30 }
 0x7ce   : > { %v13623_v4 = vpop.f32.mrf.mxu0 }
 0x7cf   : > { %17383 = vst [vmem:[#allocation86_spill] sm:$0xff] %v13623_v4  ;;  %v13625_v7 = vpack.c.bf16 %v4374_v2, %v4373_v34 }
 0x7d0   : > { %v4053_v51 = vpop.f32.mrf.mxu3 }
 0x7d1   : > { %17384 = vst [vmem:[#allocation87_spill] sm:$0xff] %v13625_v7  ;;  %4772 = vmatmul.bf16.gmra.mxu0 %v13625_v7  ;;  %v4054_v26 = vadd.f32 %v4053_v51, %v3588_v15 }
 0x7d3   : > { %v4231_v62 = vadd.f32 %v13495_v32, %v4054_v26 }
 0x7d4   : > { %v3590_v59 = vpop.f32.mrf.mxu2 }
 0x7d5   : > { %v4375_v41 = vmax.f32 %v4231_v62, 0.0 }
 0x7d6   : > { %v13628_v50 = vpop.f32.mrf.mxu0 }
 0x7d7   : > { %17385 = vst [vmem:[#allocation88_spill] sm:$0xff] %v13628_v50 }
 0x7d8   : > { %v4055_v52 = vpop.f32.mrf.mxu3 }
 0x7d9   : > { %v4056_v19 = vadd.f32 %v4055_v52, %v3590_v59  ;;  %9743 = vmatmul.msk.bf16.gmra.mxu2 %vm3052_vm3, %v12450_v14 }
 0x7db   : > { %v4232_v30 = vadd.f32 %v13495_v32, %v4056_v19 }
 0x7dc   : > { %v3593_v38 = vpop.f32.mrf.mxu2 }
 0x7dd   : > { %v4376_v12 = vmax.f32 %v4232_v30, 0.0  ;;  %9831 = vmatmul.msk.bf16.gmra.mxu3 %vm3052_vm3, %v13490_v47 }
 0x7de   : > { %v13636_v43 = vpop.f32.mrf.mxu0 }
 0x7df   : > { %17386 = vst [vmem:[#allocation89_spill] sm:$0xff] %v13636_v43  ;;  %v13638_v15 = vpack.c.bf16 %v4376_v12, %v4375_v41 }
 0x7e0   : > { %v4058_v34 = vpop.f32.mrf.mxu3 }
 0x7e1   : > { %17387 = vst [vmem:[#allocation90_spill] sm:$0xff] %v13638_v15  ;;  %4777 = vmatmul.bf16.gmra.mxu0 %v13638_v15  ;;  %v4059_v51 = vadd.f32 %v4058_v34, %v3593_v38 }
 0x7e3   : > { %v4233_v26 = vadd.f32 %v13495_v32, %v4059_v51 }
 0x7e4   : > { %v3595_v2 = vpop.f32.mrf.mxu2 }
 0x7e5   : > { %v4377_v19 = vmax.f32 %v4233_v26, 0.0 }
 0x7e6   : > { %v13641_v59 = vpop.f32.mrf.mxu0 }
 0x7e7   : > { %17388 = vst [vmem:[#allocation91_spill] sm:$0xff] %v13641_v59 }
 0x7e8   : > { %v4060_v14 = vpop.f32.mrf.mxu3 }
 0x7e9   : > { %v4061_v52 = vadd.f32 %v4060_v14, %v3595_v2  ;;  %4836 = vmatmul.bf16.vlgmr.msrb.gmra.mxu2 %v12913_v3 }
 0x7eb   : > { %v4234_v62 = vadd.f32 %v13495_v32, %v4061_v52 }
 0x7ec   : > { %v3598_v47 = vpop.f32.mrf.mxu2 }
 0x7ed   : > { %v4378_v30 = vmax.f32 %v4234_v62, 0.0  ;;  %5165 = vmatmul.bf16.vlgmr.msra.gmra.mxu3 %v12471_v48 }
 0x7ee   : > { %v13647_v41 = vpop.f32.mrf.mxu0 }
 0x7ef   : > { %17389 = vst [vmem:[#allocation92_spill] sm:$0xff] %v13647_v41  ;;  %v13649_v12 = vpack.c.bf16 %v4378_v30, %v4377_v19 }
 0x7f0   : > { %v4063_v38 = vpop.f32.mrf.mxu3 }
 0x7f1   : > { %17390 = vst [vmem:[#allocation93_spill] sm:$0xff] %v13649_v12  ;;  %4782 = vmatmul.bf16.gmra.mxu0 %v13649_v12  ;;  %v4064_v59 = vadd.f32 %v4063_v38, %v3598_v47 }
 0x7f3   : > { %v4235_v14 = vadd.f32 %v13495_v32, %v4064_v59 }
 0x7f4   : > { %v3600_v34 = vpop.f32.mrf.mxu2 }
 0x7f5   : > { %v4379_v43 = vmax.f32 %v4235_v14, 0.0 }
 0x7f6   : > { %v13652_v51 = vpop.f32.mrf.mxu0 }
 0x7f7   : > { %17391 = vst [vmem:[#allocation94_spill] sm:$0xff] %v13652_v51 }
 0x7f8   : > { %v4065_v2 = vpop.f32.mrf.mxu3 }
 0x7f9   : > { %v4066_v52 = vadd.f32 %v4065_v2, %v3600_v34  ;;  %4841 = vmatmul.bf16.gmra.mxu2 %v12927_v24 }
 0x7fb   : > { %v4236_v26 = vadd.f32 %v13495_v32, %v4066_v52 }
 0x7fc   : > { %v3603_v62 = vpop.f32.mrf.mxu2 }
 0x7fd   : > { %v4380_v41 = vmax.f32 %v4236_v26, 0.0  ;;  %5170 = vmatmul.bf16.gmra.mxu3 %v12484_v36 }
 0x7fe   : > { %v13658_v19 = vpop.f32.mrf.mxu0 }
 0x7ff   : > { %17392 = vst [vmem:[#allocation95_spill] sm:$0xff] %v13658_v19  ;;  %v13660_v30 = vpack.c.bf16 %v4380_v41, %v4379_v43 }
 0x800   : > { %v4068_v47 = vpop.f32.mrf.mxu3 }
 0x801   : > { %17393 = vst [vmem:[#allocation96_spill] sm:$0xff] %v13660_v30  ;;  %4787 = vmatmul.bf16.gmra.mxu0 %v13660_v30  ;;  %v4069_v51 = vadd.f32 %v4068_v47, %v3603_v62  ;;  %v10146_v62 = vld [vmem:[%s17157_s11 + $0x170] sm:$0xf] }
 0x802   : > { %v10210_v47 = vld [vmem:[%s17157_s11 + $0x1f0] sm:$0xf] }
 0x803   : > { %v4237_v2 = vadd.f32 %v13495_v32, %v4069_v51  ;;  %v10900_v51 = vld [vmem:[%s17157_s11 + $0x174] sm:$0xf0] }
 0x804   : > { %v3605_v38 = vpop.f32.mrf.mxu2 }
 0x805   : > { %v4381_v12 = vmax.f32 %v4237_v2, 0.0  ;;  %v10916_v2 = vld [vmem:[%s17157_s11 + $0x1f4] sm:$0xf0] }
 0x806   : > { %v13663_v59 = vpop.f32.mrf.mxu0 }
 0x807   : > { %17394 = vst [vmem:[#allocation97_spill] sm:$0xff] %v13663_v59 }
 0x808   : > { %v4070_v34 = vpop.f32.mrf.mxu3 }
 0x809   : > { %v4071_v52 = vadd.f32 %v4070_v34, %v3605_v38  ;;  %4846 = vmatmul.bf16.gmra.mxu2 %v12941_v11  ;;  %v10147_v34 = vor.u32 %v10900_v51, %v10146_v62 }
 0x80b   : > { %v4238_v14 = vadd.f32 %v13495_v32, %v4071_v52  ;;  %6695 = vmatpush.bf16.msra.mxu2 %v10147_v34 }
 0x80c   : > { %v3608_v26 = vpop.f32.mrf.mxu2 }
 0x80d   : > { %v4382_v19 = vmax.f32 %v4238_v14, 0.0  ;;  %5175 = vmatmul.bf16.gmra.mxu3 %v12513_v22  ;;  %v10899_v14 = vld [vmem:[%s17157_s11 + $0x174] sm:$0xf] }
 0x80e   : > { %v13669_v43 = vpop.f32.mrf.mxu0 }
 0x80f   : > { %17395 = vst [vmem:[#allocation98_spill] sm:$0xff] %v13669_v43  ;;  %v13671_v41 = vpack.c.bf16 %v4382_v19, %v4381_v12  ;;  %v10211_v12 = vor.u32 %v10916_v2, %v10210_v47  ;;  %v10148_v43 = vld [vmem:[%s17157_s11 + $0x178] sm:$0xf0] }
 0x810   : > { %v4073_v38 = vpop.f32.mrf.mxu3  ;;  %v10151_v51 = vor.u32 %v10899_v14, %v10148_v43 }
 0x811   : > { %17396 = vst [vmem:[#allocation99_spill] sm:$0xff] %v13671_v41  ;;  %4792 = vmatmul.bf16.gmra.mxu0 %v13671_v41  ;;  %6744 = vmatpush.bf16.msrb.mxu3 %v10211_v12  ;;  %v4074_v52 = vadd.f32 %v4073_v38, %v3608_v26 }
 0x812   : > { %6793 = vmatpush.bf16.msrb.mxu0 %v10151_v51 }
 0x813   : > { %v4239_v41 = vadd.f32 %v13495_v32, %v4074_v52 }
 0x814   : > { %v3610_v19 = vpop.f32.mrf.mxu2 }
 0x815   : > { %v4383_v34 = vmax.f32 %v4239_v41, 0.0 }
 0x816   : > { %v13692_v62 = vpop.f32.mrf.mxu0 }
 0x817   : > { %17397 = vst [vmem:[#allocation100_spill] sm:$0xff] %v13692_v62 }
 0x818   : > { %v4075_v59 = vpop.f32.mrf.mxu3 }
 0x819   : > { %v4076_v47 = vadd.f32 %v4075_v59, %v3610_v19  ;;  %4851 = vmatmul.bf16.gmra.mxu2 %v12955_v54 }
 0x81b   : > { %v4240_v26 = vadd.f32 %v13495_v32, %v4076_v47 }
 0x81c   : > { %v3613_v38 = vpop.f32.mrf.mxu2 }
 0x81d   : > { %v4384_v2 = vmax.f32 %v4240_v26, 0.0  ;;  %5180 = vmatmul.bf16.gmra.mxu3 %v12538_v17 }
 0x81e   : > { %v13698_v12 = vpop.f32.mrf.mxu0 }
 0x81f   : > { %17398 = vst [vmem:[#allocation101_spill] sm:$0xff] %v13698_v12  ;;  %v13700_v30 = vpack.c.bf16 %v4384_v2, %v4383_v34 }
 0x820   : > { %v4078_v62 = vpop.f32.mrf.mxu3 }
 0x821   : > { %17399 = vst [vmem:[#allocation102_spill] sm:$0xff] %v13700_v30  ;;  %4797 = vmatmul.bf16.gmra.mxu0 %v13700_v30  ;;  %v4079_v14 = vadd.f32 %v4078_v62, %v3613_v38 }
 0x823   : > { %v4241_v19 = vadd.f32 %v13495_v32, %v4079_v14 }
 0x824   : > { %v3615_v43 = vpop.f32.mrf.mxu2 }
 0x825   : > { %v4385_v26 = vmax.f32 %v4241_v19, 0.0 }
 0x826   : > { %v13703_v52 = vpop.f32.mrf.mxu0 }
 0x827   : > { %17400 = vst [vmem:[#allocation103_spill] sm:$0xff] %v13703_v52 }
 0x828   : > { %v4080_v59 = vpop.f32.mrf.mxu3 }
 0x829   : > { %v4081_v51 = vadd.f32 %v4080_v59, %v3615_v43  ;;  %4856 = vmatmul.bf16.gmra.mxu2 %v12975_v42 }
 0x82b   : > { %v4242_v41 = vadd.f32 %v13495_v32, %v4081_v51 }
 0x82c   : > { %v3618_v47 = vpop.f32.mrf.mxu2 }
 0x82d   : > { %v4386_v12 = vmax.f32 %v4242_v41, 0.0  ;;  %5185 = vmatmul.bf16.gmra.mxu3 %v12557_v23 }
 0x82e   : > { %v13709_v34 = vpop.f32.mrf.mxu0 }
 0x82f   : > { %17401 = vst [vmem:[#allocation104_spill] sm:$0xff] %v13709_v34  ;;  %v13711_v2 = vpack.c.bf16 %v4386_v12, %v4385_v26 }
 0x830   : > { %v4083_v62 = vpop.f32.mrf.mxu3 }
 0x831   : > { %17402 = vst [vmem:[#allocation105_spill] sm:$0xff] %v13711_v2  ;;  %4802 = vmatmul.bf16.vlgmr.msrb.gmra.mxu1 %v13711_v2  ;;  %5414 = vmatmul.bf16.vlgmr.msra.gmra.mxu0 %v12471_v48  ;;  %v4084_v43 = vadd.f32 %v4083_v62, %v3618_v47  ;;  %v10018_v62 = vld [vmem:[%s17157_s11 + $0x70] sm:$0xf] }
 0x833   : > { %v4243_v51 = vadd.f32 %v13495_v32, %v4084_v43 }
 0x834   : > { %v3620_v38 = vpop.f32.mrf.mxu2 }
 0x835   : > { %v4387_v12 = vmax.f32 %v4243_v51, 0.0  ;;  %v10010_v51 = vld [vmem:[%s17157_s11 + $0x60] sm:$0xf] }
 0x836   : > { %v13715_v14 = vpop.f32.mrf.mxu0 }
 0x837   : > { %17403 = vst [vmem:[#allocation106_spill] sm:$0xff] %v13715_v14 }
 0x838   : > { %v4085_v59 = vpop.f32.mrf.mxu3 }
 0x839   : > { %v4086_v19 = vadd.f32 %v4085_v59, %v3620_v38  ;;  %4861 = vmatmul.bf16.gmra.mxu2 %v12989_v20  ;;  %v10868_v38 = vld [vmem:[%s17157_s11 + $0x74] sm:$0xf0] }
 0x83a   : > { %v10019_v43 = vor.u32 %v10868_v38, %v10018_v62  ;;  %v10864_v62 = vld [vmem:[%s17157_s11 + $0x54] sm:$0xf0] }
 0x83b   : > { %v4244_v41 = vadd.f32 %v13495_v32, %v4086_v19  ;;  %v10866_v19 = vld [vmem:[%s17157_s11 + $0x64] sm:$0xf0] }
 0x83c   : > { %v3623_v34 = vpop.f32.mrf.mxu2  ;;  %6254 = vmatpush.bf16.msra.mxu1 %v10019_v43 }
 0x83d   : > { %v4388_v26 = vmax.f32 %v4244_v41, 0.0  ;;  %5190 = vmatmul.bf16.gmra.mxu3 %v12576_v56 }
 0x83e   : > { %v13721_v2 = vpop.f32.mrf.mxu0 }
 0x83f   : > { %17404 = vst [vmem:[#allocation107_spill] sm:$0xff] %v13721_v2  ;;  %v13723_v48 = vpack.c.bf16 %v4388_v26, %v4387_v12  ;;  %v10011_v12 = vor.u32 %v10866_v19, %v10010_v51  ;;  %v9994_v51 = vld [vmem:[%s17157_s11 + $0x40] sm:$0xf]  ;;  %v10862_v19 = vld [vmem:[%s17157_s11 + $0x44] sm:$0xf0] }
 0x840   : > { %v4088_v47 = vpop.f32.mrf.mxu3 }
 0x841   : > { %17405 = vst [vmem:[#allocation108_spill] sm:$0xff] %v13723_v48  ;;  %4807 = vmatmul.bf16.gmra.mxu1 %v13723_v48  ;;  %5419 = vmatmul.bf16.gmra.mxu0 %v12484_v36  ;;  %v4089_v41 = vadd.f32 %v4088_v47, %v3623_v34  ;;  %v10002_v36 = vld [vmem:[%s17157_s11 + $0x50] sm:$0xf] }
 0x842   : > { %6255 = vmatpush.bf16.msra.mxu1 %v10011_v12  ;;  %v10003_v48 = vor.u32 %v10864_v62, %v10002_v36  ;;  %v9986_v36 = vld [vmem:[%s17157_s11 + $0x30] sm:$0xf]  ;;  %v10860_v62 = vld [vmem:[%s17157_s11 + $0x34] sm:$0xf0] }
 0x843   : > { %v4245_v38 = vadd.f32 %v13495_v32, %v4089_v41 }
 0x844   : > { %v3625_v59 = vpop.f32.mrf.mxu2 }
 0x845   : > { %v4389_v12 = vmax.f32 %v4245_v38, 0.0  ;;  %v9987_v38 = vor.u32 %v10860_v62, %v9986_v36  ;;  %v10856_v36 = vld [vmem:[%s17157_s11 + $0x14] sm:$0xf0] }
 0x846   : > { %v13739_v26 = vpop.f32.mrf.mxu0  ;;  %6256 = vmatpush.bf16.msra.mxu1 %v10003_v48 }
 0x847   : > { %17406 = vst [vmem:[#allocation109_spill] sm:$0xff] %v13739_v26 }
 0x848   : > { %v4090_v2 = vpop.f32.mrf.mxu3 }
 0x849   : > { %v4091_v43 = vadd.f32 %v4090_v2, %v3625_v59  ;;  %4866 = vmatmul.bf16.gmra.mxu2 %v13015_v39  ;;  %v9995_v2 = vor.u32 %v10862_v19, %v9994_v51 }
 0x84b   : > { %v4246_v34 = vadd.f32 %v13495_v32, %v4091_v43  ;;  %6257 = vmatpush.bf16.msra.mxu1 %v9995_v2 }
 0x84c   : > { %v3628_v47 = vpop.f32.mrf.mxu2 }
 0x84d   : > { %v4390_v26 = vmax.f32 %v4246_v34, 0.0  ;;  %5195 = vmatmul.bf16.gmra.mxu3 %v12595_v57  ;;  %v10858_v34 = vld [vmem:[%s17157_s11 + $0x24] sm:$0xf0] }
 0x84e   : > { %v13757_v59 = vpop.f32.mrf.mxu0 }
 0x84f   : > { %17407 = vst [vmem:[#allocation110_spill] sm:$0xff] %v13757_v59  ;;  %v13759_v41 = vpack.c.bf16 %v4390_v26, %v4389_v12  ;;  %6258 = vmatpush.bf16.msra.mxu1 %v9987_v38  ;;  %v9978_v26 = vld [vmem:[%s17157_s11 + $0x20] sm:$0xf] }
 0x850   : > { %v4093_v48 = vpop.f32.mrf.mxu3  ;;  %v9979_v19 = vor.u32 %v10858_v34, %v9978_v26  ;;  %v9962_v26 = vld [vmem:[%s17157_s11] sm:$0xf]  ;;  %v10854_v34 = vld [vmem:[%s17157_s11 + $0x4] sm:$0xf0] }
 0x851   : > { %17408 = vst [vmem:[#allocation111_spill] sm:$0xff] %v13759_v41  ;;  %4812 = vmatmul.bf16.gmra.mxu1 %v13759_v41  ;;  %5424 = vmatmul.bf16.gmra.mxu0 %v12513_v22  ;;  %v4094_v51 = vadd.f32 %v4093_v48, %v3628_v47  ;;  %v9970_v22 = vld [vmem:[%s17157_s11 + $0x10] sm:$0xf] }
 0x852   : > { %v9971_v59 = vor.u32 %v10856_v36, %v9970_v22 }
 0x853   : > { %6259 = vmatpush.bf16.msra.mxu1 %v9979_v19  ;;  %v4247_v62 = vadd.f32 %v13495_v32, %v4094_v51 }
 0x854   : > { %v3630_v43 = vpop.f32.mrf.mxu2 }
 0x855   : > { %v4391_v19 = vmax.f32 %v4247_v62, 0.0 }
 0x856   : > { %v13775_v12 = vpop.f32.mrf.mxu0 }
 0x857   : > { %17409 = vst [vmem:[#allocation112_spill] sm:$0xff] %v13775_v12  ;;  %6260 = vmatpush.bf16.msra.mxu1 %v9971_v59 }
 0x858   : > { %v4095_v2 = vpop.f32.mrf.mxu3 }
 0x859   : > { %v4096_v38 = vadd.f32 %v4095_v2, %v3630_v43  ;;  %4871 = vmatmul.bf16.gmra.mxu2 %v13029_v5  ;;  %v9963_v43 = vor.u32 %v10854_v34, %v9962_v26 }
 0x85b   : > { %v4248_v47 = vadd.f32 %v13495_v32, %v4096_v38  ;;  %6261 = vmatpush.bf16.msra.mxu1 %v9963_v43 }
 0x85c   : > { %v3633_v48 = vpop.f32.mrf.mxu2 }
 0x85d   : > { %v4392_v12 = vmax.f32 %v4248_v47, 0.0  ;;  %5200 = vmatmul.bf16.gmra.mxu3 %v12617_v25 }
 0x85e   : > { %v13793_v51 = vpop.f32.mrf.mxu0 }
 0x85f   : > { %17410 = vst [vmem:[#allocation113_spill] sm:$0xff] %v13793_v51  ;;  %v13795_v2 = vpack.c.bf16 %v4392_v12, %v4391_v19  ;;  %v17424_v51 = vld [vmem:[#allocation19_spill] sm:$0xff] }
 0x860   : > { %v4098_v59 = vpop.f32.mrf.mxu3 }
 0x861   : > { %17411 = vst [vmem:[#allocation114_spill] sm:$0xff] %v13795_v2  ;;  %4817 = vmatmul.bf16.gmra.mxu1 %v13795_v2  ;;  %5429 = vmatmul.bf16.gmra.mxu0 %v12538_v17  ;;  %v4099_v36 = vadd.f32 %v4098_v59, %v3633_v48  ;;  %v10138_v17 = vld [vmem:[%s17157_s11 + $0x160] sm:$0xf]  ;;  %v10898_v48 = vld [vmem:[%s17157_s11 + $0x164] sm:$0xf0] }
 0x862   : > { %v10914_v59 = vld [vmem:[%s17157_s11 + $0x1e4] sm:$0xf0]  ;;  %v17425_v2 = vld [vmem:[#allocation3_spill] sm:$0xff] }
 0x863   : > { %v4249_v62 = vadd.f32 %v13495_v32, %v4099_v36 }
 0x864   : > { %v3635_v22 = vpop.f32.mrf.mxu2 }
 0x865   : > { %v4393_v34 = vmax.f32 %v4249_v62, 0.0 }
 0x866   : > { %v13799_v38 = vpop.f32.mrf.mxu0 }
 0x867   : > { %17412 = vst [vmem:[#allocation115_spill] sm:$0xff] %v13799_v38 }
 0x868   : > { %v4100_v41 = vpop.f32.mrf.mxu3 }
 0x869   : > { %v4101_v47 = vadd.f32 %v4100_v41, %v3635_v22  ;;  %4876 = vmatmul.bf16.gmra.mxu2 %v13045_v31  ;;  %v10139_v41 = vor.u32 %v10898_v48, %v10138_v17 }
 0x86b   : > { %v4250_v26 = vadd.f32 %v13495_v32, %v4101_v47  ;;  %v10202_v32 = vld [vmem:[%s17157_s11 + $0x1e0] sm:$0xf]  ;;  %6696 = vmatpush.bf16.msra.mxu2 %v10139_v41 }
 0x86c   : > { %v13804_v12 = vpop.f32.mrf.mxu2  ;;  %v10203_v36 = vor.u32 %v10914_v59, %v10202_v32  ;;  %v13828_v47 = vld [vmem:[%s17156_s10] sm:$0x3] }
 0x86d   : > { %v4394_v19 = vmax.f32 %v4250_v26, 0.0  ;;  %5205 = vmatmul.bf16.gmra.mxu3 %v12633_v18 }
 0x86e   : > { %v13813_v43 = vpop.f32.mrf.mxu0  ;;  %6745 = vmatpush.bf16.msrb.mxu3 %v10203_v36 }
 0x86f   : > { %17413 = vst [vmem:[#allocation116_spill] sm:$0xff] %v13813_v43  ;;  %v13821_v22 = vpack.c.bf16 %v4394_v19, %v4393_v34  ;;  %v13834_v34 = vperm.slane %v13828_v47, 0  ;;  %v10897_v19 = vld [vmem:[%s17157_s11 + $0x164] sm:$0xf] }
 0x870   : > { %v5166_v62 = vpop.f32.mrf.mxu3 }
 0x871   : > { %17414 = vst [vmem:[#allocation117_spill] sm:$0xff] %v13821_v22  ;;  %4822 = vmatmul.bf16.gmra.mxu1 %v13821_v22  ;;  %5434 = vmatmul.bf16.gmra.mxu0 %v12557_v23  ;;  %v5167_v17 = vadd.f32 %v5166_v62, %v13043_v49  ;;  %v10140_v23 = vld [vmem:[%s17157_s11 + $0x168] sm:$0xf0] }
 0x872   : > { %v10143_v41 = vor.u32 %v10897_v19, %v10140_v23 }
 0x873   : > { %v5661_v59 = vadd.f32 %v13834_v34, %v5167_v17 }
 0x874   : > { %v13830_v26 = vpop.f32.mrf.mxu2  ;;  %6794 = vmatpush.bf16.msrb.mxu0 %v10143_v41 }
 0x875   : > { %v5853_v43 = vmax.f32 %v5661_v59, 0.0 }
 0x876   : > { %v13842_v48 = vpop.f32.mrf.mxu0 }
 0x877   : > { %17415 = vst [vmem:[#allocation118_spill] sm:$0xff] %v13842_v48 }
 0x878   : > { %v5168_v32 = vpop.f32.mrf.mxu3 }
 0x879   : > { %v5169_v49 = vadd.f32 %v5168_v32, %v13052_v46  ;;  %4881 = vmatmul.bf16.gmra.mxu2 %v13063_v58 }
 0x87b   : > { %v5663_v36 = vadd.f32 %v13834_v34, %v5169_v49 }
 0x87c   : > { %v13848_v62 = vpop.f32.mrf.mxu2 }
 0x87d   : > { %v5855_v22 = vmax.f32 %v5663_v36, 0.0  ;;  %5210 = vmatmul.bf16.gmra.mxu3 %v12649_v53 }
 0x87e   : > { %v13851_v38 = vpop.f32.mrf.mxu0 }
 0x87f   : > { %17416 = vst [vmem:[#allocation119_spill] sm:$0xff] %v13851_v38  ;;  %v13853_v48 = vpack.c.bf16 %v5855_v22, %v5853_v43 }
 0x880   : > { %v5171_v19 = vpop.f32.mrf.mxu3 }
 0x881   : > { %5439 = vmatmul.bf16.gmra.mxu0 %v12576_v56  ;;  %6262 = vmatmul.bf16.vlgmr.msra.gmra.mxu1 %v13853_v48  ;;  %v5172_v17 = vadd.f32 %v5171_v19, %v13061_v27 }
 0x883   : > { %v5665_v32 = vadd.f32 %v13834_v34, %v5172_v17 }
 0x884   : > { %v13857_v46 = vpop.f32.mrf.mxu2 }
 0x885   : > { %v5857_v56 = vmax.f32 %v5665_v32, 0.0 }
 0x886   : > { %v13860_v23 = vpop.f32.mrf.mxu0 }
 0x887   : > { %17417 = vst [vmem:[#allocation120_spill] sm:$0xff] %v13860_v23 }
 0x888   : > { %v5173_v41 = vpop.f32.mrf.mxu3 }
 0x889   : > { %v5174_v59 = vadd.f32 %v5173_v41, %v13081_v29  ;;  %4886 = vmatmul.bf16.gmra.mxu2 %v13092_v61 }
 0x88b   : > { %v5667_v43 = vadd.f32 %v13834_v34, %v5174_v59 }
 0x88c   : > { %v13866_v22 = vpop.f32.mrf.mxu2 }
 0x88d   : > { %v5859_v49 = vmax.f32 %v5667_v43, 0.0  ;;  %5215 = vmatmul.bf16.gmra.mxu3 %v12665_v6 }
 0x88e   : > { %v13869_v36 = vpop.f32.mrf.mxu0 }
 0x88f   : > { %17418 = vst [vmem:[#allocation121_spill] sm:$0xff] %v13869_v36  ;;  %v13871_v27 = vpack.c.bf16 %v5859_v49, %v5857_v56 }
 0x890   : > { %v5176_v19 = vpop.f32.mrf.mxu3 }
 0x891   : > { %5444 = vmatmul.bf16.gmra.mxu0 %v12595_v57  ;;  %6267 = vmatmul.bf16.gmra.mxu1 %v13871_v27  ;;  %v5177_v17 = vadd.f32 %v5176_v19, %v13090_v13 }
 0x893   : > { %v5669_v32 = vadd.f32 %v13834_v34, %v5177_v17  ;;  %v17421_v17 = vld [vmem:[#allocation15_spill] sm:$0xff] }
 0x894   : > { %v13875_v29 = vpop.f32.mrf.mxu2 }
 0x895   : > { %v5861_v57 = vmax.f32 %v5669_v32, 0.0 }
 0x896   : > { %v13878_v41 = vpop.f32.mrf.mxu0 }
 0x897   : > { %17419 = vst [vmem:[#allocation122_spill] sm:$0xff] %v13878_v41 }
 0x898   : > { %v5178_v59 = vpop.f32.mrf.mxu3 }
 0x899   : > { %v5179_v43 = vadd.f32 %v5178_v59, %v13099_v8  ;;  %4891 = vmatmul.bf16.gmra.mxu2 %v13110_v21 }
 0x89b   : > { %v5671_v56 = vadd.f32 %v13834_v34, %v5179_v43 }
 0x89c   : > { %v13884_v49 = vpop.f32.mrf.mxu2 }
 0x89d   : > { %v5863_v36 = vmax.f32 %v5671_v56, 0.0  ;;  %5220 = vmatmul.bf16.gmra.mxu3 %v12699_v63  ;;  %v17423_v56 = vld [vmem:[#allocation17_spill] sm:$0xff] }
 0x89e   : > { %v13887_v23 = vpop.f32.mrf.mxu0 }
 0x89f   : > { %17420 = vst [vmem:[#allocation123_spill] sm:$0xff] %v13887_v23  ;;  %v13889_v13 = vpack.c.bf16 %v5863_v36, %v5861_v57 }
 0x8a0   : > { %v5181_v19 = vpop.f32.mrf.mxu3 }
 0x8a1   : > { %5449 = vmatmul.bf16.gmra.mxu0 %v12617_v25  ;;  %6272 = vmatmul.bf16.gmra.mxu1 %v13889_v13  ;;  %v5182_v59 = vadd.f32 %v5181_v19, %v17421_v17 }
 0x8a3   : > { %v5673_v32 = vadd.f32 %v13834_v34, %v5182_v59 }
 0x8a4   : > { %v13893_v8 = vpop.f32.mrf.mxu2 }
 0x8a5   : > { %v5865_v25 = vmax.f32 %v5673_v32, 0.0  ;;  %v17427_v32 = vld [vmem:[#allocation18_spill] sm:$0xff] }
 0x8a6   : > { %v13896_v43 = vpop.f32.mrf.mxu0 }
 0x8a7   : > { %17422 = vst [vmem:[#allocation15_spill] sm:$0xff] %v13896_v43 }
 0x8a8   : > { %v5183_v41 = vpop.f32.mrf.mxu3 }
 0x8a9   : > { %v5184_v38 = vadd.f32 %v5183_v41, %v17423_v56  ;;  %4896 = vmatmul.bf16.gmra.mxu2 %v17424_v51 }
 0x8ab   : > { %v5675_v36 = vadd.f32 %v13834_v34, %v5184_v38  ;;  %v13913_v38 = vperm.slane %v13828_v47, 1  ;;  %v17429_v47 = vld [vmem:[#allocation21_spill] sm:$0xff] }
 0x8ac   : > { %v13902_v57 = vpop.f32.mrf.mxu2 }
 0x8ad   : > { %v5867_v23 = vmax.f32 %v5675_v36, 0.0  ;;  %5225 = vmatmul.bf16.gmra.mxu3 %v17425_v2 }
 0x8ae   : > { %v13905_v14 = vpop.f32.mrf.mxu1  ;;  %v5415_v19 = vpop.f32.mrf.mxu0 }
 0x8af   : > { %17426 = vst [vmem:[#allocation17_spill] sm:$0xff] %v13905_v14  ;;  %v5416_v17 = vadd.f32 %v5415_v19, %v13804_v12  ;;  %v13908_v43 = vpack.c.bf16 %v5867_v23, %v5865_v25 }
 0x8b0   : > { %v5186_v59 = vpop.f32.mrf.mxu3 }
 0x8b1   : > { %5454 = vmatmul.bf16.gmra.mxu0 %v12633_v18  ;;  %6277 = vmatmul.bf16.gmra.mxu1 %v13908_v43  ;;  %v5187_v56 = vadd.f32 %v5186_v59, %v17427_v32  ;;  %v5662_v52 = vadd.f32 %v13913_v38, %v5416_v17 }
 0x8b3   : > { %v5677_v25 = vadd.f32 %v13834_v34, %v5187_v56  ;;  %v5854_v30 = vmax.f32 %v5662_v52, 0.0  ;;  %v10082_v52 = vld [vmem:[%s17157_s11 + $0xf0] sm:$0xf] }
 0x8b4   : > { %v13915_v41 = vpop.f32.mrf.mxu2 }
 0x8b6   : > { %v13918_v36 = vpop.f32.mrf.mxu1  ;;  %v5417_v14 = vpop.f32.mrf.mxu0 }
 0x8b7   : > { %17428 = vst [vmem:[#allocation3_spill] sm:$0xff] %v13918_v36  ;;  %v5418_v12 = vadd.f32 %v5417_v14, %v13830_v26  ;;  %v5869_v36 = vmax.f32 %v5677_v25, 0.0  ;;  %v17430_v14 = vld [vmem:[#allocation4_spill] sm:$0xff] }
 0x8b8   : > { %v5188_v23 = vpop.f32.mrf.mxu3 }
 0x8b9   : > { %v5664_v18 = vadd.f32 %v13913_v38, %v5418_v12  ;;  %v5189_v19 = vadd.f32 %v5188_v23, %v13140_v37  ;;  %4901 = vmatmul.bf16.gmra.mxu2 %v17429_v47  ;;  %v10058_v47 = vld [vmem:[%s17157_s11 + $0xc0] sm:$0xf] }
 0x8bb   : > { %v5856_v15 = vmax.f32 %v5664_v18, 0.0  ;;  %v5679_v59 = vadd.f32 %v13834_v34, %v5189_v19  ;;  %v17432_v18 = vld [vmem:[#allocation20_spill] sm:$0xff] }
 0x8bc   : > { %v13927_v32 = vpop.f32.mrf.mxu2 }
 0x8bd   : > { %v13929_v50 = vpack.c.bf16 %v5856_v15, %v5854_v30  ;;  %v5871_v17 = vmax.f32 %v5679_v59, 0.0  ;;  %5230 = vmatmul.bf16.gmra.mxu3 %v17430_v14  ;;  %v10884_v15 = vld [vmem:[%s17157_s11 + $0xf4] sm:$0xf0] }
 0x8be   : > { %v13932_v26 = vpop.f32.mrf.mxu1  ;;  %v5420_v56 = vpop.f32.mrf.mxu0  ;;  %v10083_v30 = vor.u32 %v10884_v15, %v10082_v52 }
 0x8bf   : > { %17431 = vst [vmem:[#allocation18_spill] sm:$0xff] %v13932_v26  ;;  %v5421_v12 = vadd.f32 %v5420_v56, %v13848_v62  ;;  %v13935_v37 = vpack.c.bf16 %v5871_v17, %v5869_v36  ;;  %v10074_v62 = vld [vmem:[%s17157_s11 + $0xe0] sm:$0xf]  ;;  %v10882_v36 = vld [vmem:[%s17157_s11 + $0xe4] sm:$0xf0] }
 0x8c0   : > { %v5191_v23 = vpop.f32.mrf.mxu3  ;;  %6303 = vmatpush.bf16.msrb.mxu1 %v10083_v30  ;;  %v10075_v59 = vor.u32 %v10882_v36, %v10074_v62  ;;  %v10066_v30 = vld [vmem:[%s17157_s11 + $0xd0] sm:$0xf]  ;;  %v10880_v26 = vld [vmem:[%s17157_s11 + $0xd4] sm:$0xf0] }
 0x8c1   : > { %5459 = vmatmul.bf16.gmra.mxu0 %v12649_v53  ;;  %6282 = vmatmul.bf16.gmra.mxu1 %v13935_v37  ;;  %v5192_v19 = vadd.f32 %v5191_v23, %v17432_v18  ;;  %v5666_v56 = vadd.f32 %v13913_v38, %v5421_v12  ;;  %v17434_v36 = vld [vmem:[#allocation22_spill] sm:$0xff]  ;;  %v10067_v12 = vor.u32 %v10880_v26, %v10066_v30  ;;  %v10130_v26 = vld [vmem:[%s17157_s11 + $0x150] sm:$0xf] }
 0x8c3   : > { %v5681_v23 = vadd.f32 %v13834_v34, %v5192_v19  ;;  %v10878_v19 = vld [vmem:[%s17157_s11 + $0xc4] sm:$0xf0] }
 0x8c4   : > { %v13945_v25 = vpop.f32.mrf.mxu2  ;;  %6304 = vmatpush.bf16.msrb.mxu1 %v10075_v59  ;;  %v10059_v30 = vor.u32 %v10878_v19, %v10058_v47 }
 0x8c6   : > { %v13954_v17 = vpop.f32.mrf.mxu1  ;;  %v5422_v53 = vpop.f32.mrf.mxu0 }
 0x8c7   : > { %17433 = vst [vmem:[#allocation4_spill] sm:$0xff] %v13954_v17  ;;  %v5423_v52 = vadd.f32 %v5422_v53, %v13857_v46  ;;  %v17435_v17 = vld [vmem:[#allocation24_spill] sm:$0xff]  ;;  %v5858_v46 = vmax.f32 %v5666_v56, 0.0  ;;  %v10896_v56 = vld [vmem:[%s17157_s11 + $0x154] sm:$0xf0] }
 0x8c8   : > { %v5193_v15 = vpop.f32.mrf.mxu3  ;;  %6305 = vmatpush.bf16.msrb.mxu1 %v10067_v12 }
 0x8c9   : > { %v5668_v62 = vadd.f32 %v13913_v38, %v5423_v52  ;;  %v5194_v18 = vadd.f32 %v5193_v15, %v17434_v36  ;;  %4906 = vmatmul.bf16.gmra.mxu2 %v17435_v17  ;;  %v5873_v52 = vmax.f32 %v5681_v23, 0.0  ;;  %v17436_v36 = vld [vmem:[#allocation5_spill] sm:$0xff]  ;;  %v10131_v17 = vor.u32 %v10896_v56, %v10130_v26 }
 0x8ca   : > { %v10194_v23 = vld [vmem:[%s17157_s11 + $0x1d0] sm:$0xf] }
 0x8cb   : > { %v5860_v59 = vmax.f32 %v5668_v62, 0.0  ;;  %v5683_v53 = vadd.f32 %v13834_v34, %v5194_v18  ;;  %6697 = vmatpush.bf16.msra.mxu2 %v10131_v17  ;;  %v10042_v17 = vld [vmem:[%s17157_s11 + $0xa0] sm:$0xf] }
 0x8cc   : > { %v13969_v4 = vpop.f32.mrf.mxu2  ;;  %6306 = vmatpush.bf16.msrb.mxu1 %v10059_v30 }
 0x8cd   : > { %v5875_v15 = vmax.f32 %v5683_v53, 0.0  ;;  %5235 = vmatmul.bf16.gmra.mxu3 %v17436_v36  ;;  %v13984_v62 = vpack.c.bf16 %v5860_v59, %v5858_v46  ;;  %v10912_v53 = vld [vmem:[%s17157_s11 + $0x1d4] sm:$0xf0]  ;;  %v10050_v46 = vld [vmem:[%s17157_s11 + $0xb0] sm:$0xf] }
 0x8ce   : > { %v13986_v18 = vpop.f32.mrf.mxu1  ;;  %v5425_v12 = vpop.f32.mrf.mxu0  ;;  %v10195_v10 = vor.u32 %v10912_v53, %v10194_v23  ;;  %v10876_v59 = vld [vmem:[%s17157_s11 + $0xb4] sm:$0xf0] }
 0x8cf   : > { %17437 = vst [vmem:[#allocation20_spill] sm:$0xff] %v13986_v18  ;;  %v5426_v7 = vadd.f32 %v5425_v12, %v13866_v22  ;;  %v13995_v16 = vpack.c.bf16 %v5875_v15, %v5873_v52  ;;  %v10051_v19 = vor.u32 %v10876_v59, %v10050_v46  ;;  %v10874_v52 = vld [vmem:[%s17157_s11 + $0xa4] sm:$0xf0]  ;;  %v17438_v15 = vld [vmem:[#allocation23_spill] sm:$0xff] }
 0x8d0   : > { %v5196_v47 = vpop.f32.mrf.mxu3  ;;  %6746 = vmatpush.bf16.msrb.mxu3 %v10195_v10  ;;  %v10132_v10 = vld [vmem:[%s17157_s11 + $0x158] sm:$0xf0]  ;;  %v10043_v56 = vor.u32 %v10874_v52, %v10042_v17 }
 0x8d1   : > { %5464 = vmatmul.bf16.gmra.mxu0 %v12665_v6  ;;  %6287 = vmatmul.bf16.gmra.mxu1 %v13995_v16  ;;  %v5197_v26 = vadd.f32 %v5196_v47, %v17438_v15  ;;  %v10895_v6 = vld [vmem:[%s17157_s11 + $0x154] sm:$0xf]  ;;  %v5670_v53 = vadd.f32 %v13913_v38, %v5426_v7  ;;  %v10034_v47 = vld [vmem:[%s17157_s11 + $0x90] sm:$0xf]  ;;  %v17441_v7 = vld [vmem:[#allocation27_spill] sm:$0xff] }
 0x8d2   : > { %6307 = vmatpush.bf16.msrb.mxu1 %v10051_v19  ;;  %v10135_v23 = vor.u32 %v10895_v6, %v10132_v10  ;;  %v10872_v19 = vld [vmem:[%s17157_s11 + $0x94] sm:$0xf0]  ;;  %v17440_v15 = vld [vmem:[#allocation25_spill] sm:$0xff] }
 0x8d3   : > { %v5685_v17 = vadd.f32 %v13834_v34, %v5197_v26  ;;  %v5862_v10 = vmax.f32 %v5670_v53, 0.0  ;;  %v10870_v26 = vld [vmem:[%s17157_s11 + $0x84] sm:$0xf0] }
 0x8d4   : > { %v14005_v22 = vpop.f32.mrf.mxu2  ;;  %6795 = vmatpush.bf16.msrb.mxu0 %v10135_v23 }
 0x8d6   : > { %v14020_v30 = vpop.f32.mrf.mxu1  ;;  %v5427_v12 = vpop.f32.mrf.mxu0  ;;  %6308 = vmatpush.bf16.msrb.mxu1 %v10043_v56 }
 0x8d7   : > { %17439 = vst [vmem:[#allocation22_spill] sm:$0xff] %v14020_v30  ;;  %v5428_v46 = vadd.f32 %v5427_v12, %v13875_v29  ;;  %v10035_v29 = vor.u32 %v10872_v19, %v10034_v47  ;;  %v10026_v30 = vld [vmem:[%s17157_s11 + $0x80] sm:$0xf] }
 0x8d8   : > { %v5198_v59 = vpop.f32.mrf.mxu3  ;;  %v10027_v47 = vor.u32 %v10870_v26, %v10026_v30 }
 0x8d9   : > { %v5672_v52 = vadd.f32 %v13913_v38, %v5428_v46  ;;  %v5199_v6 = vadd.f32 %v5198_v59, %v17440_v15  ;;  %4911 = vmatmul.bf16.gmra.mxu2 %v17441_v7  ;;  %v5877_v46 = vmax.f32 %v5685_v17, 0.0  ;;  %v17442_v15 = vld [vmem:[#allocation6_spill] sm:$0xff] }
 0x8da   : > { %6309 = vmatpush.bf16.msrb.mxu1 %v10035_v29 }
 0x8db   : > { %v5864_v56 = vmax.f32 %v5672_v52, 0.0  ;;  %v5687_v12 = vadd.f32 %v13834_v34, %v5199_v6 }
 0x8dc   : > { %v14035_v23 = vpop.f32.mrf.mxu2 }
 0x8dd   : > { %v5879_v59 = vmax.f32 %v5687_v12, 0.0  ;;  %5240 = vmatmul.bf16.gmra.mxu3 %v17442_v15  ;;  %v14044_v53 = vpack.c.bf16 %v5864_v56, %v5862_v10  ;;  %v17445_v12 = vld [vmem:[#allocation26_spill] sm:$0xff] }
 0x8de   : > { %v14046_v19 = vpop.f32.mrf.mxu1  ;;  %v5430_v52 = vpop.f32.mrf.mxu0  ;;  %6310 = vmatpush.bf16.msrb.mxu1 %v10027_v47  ;;  %v17447_v47 = vld [vmem:[#allocation28_spill] sm:$0xff] }
 0x8df   : > { %17443 = vst [vmem:[#allocation5_spill] sm:$0xff] %v14044_v53  ;;  %v5431_v6 = vadd.f32 %v5430_v52, %v13884_v49  ;;  %v14049_v29 = vpack.c.bf16 %v5879_v59, %v5877_v46  ;;  %v17448_v52 = vld [vmem:[#allocation30_spill] sm:$0xff] }
 0x8e0   : > { %17444 = vst [vmem:[#allocation23_spill] sm:$0xff] %v14046_v19  ;;  %v5201_v18 = vpop.f32.mrf.mxu3 }
 0x8e1   : > { %5469 = vmatmul.bf16.gmra.mxu0 %v12699_v63  ;;  %6292 = vmatmul.bf16.gmra.mxu1 %v14049_v29  ;;  %v5202_v7 = vadd.f32 %v5201_v18, %v17445_v12  ;;  %v5674_v56 = vadd.f32 %v13913_v38, %v5431_v6  ;;  %v17449_v6 = vld [vmem:[#allocation7_spill] sm:$0xff] }
 0x8e3   : > { %v5689_v46 = vadd.f32 %v13834_v34, %v5202_v7  ;;  %v5866_v19 = vmax.f32 %v5674_v56, 0.0 }
 0x8e4   : > { %v14053_v17 = vpop.f32.mrf.mxu2 }
 0x8e6   : > { %v14056_v30 = vpop.f32.mrf.mxu1  ;;  %v5432_v10 = vpop.f32.mrf.mxu0 }
 0x8e7   : > { %17446 = vst [vmem:[#allocation25_spill] sm:$0xff] %v14056_v30  ;;  %v5433_v26 = vadd.f32 %v5432_v10, %v13893_v8  ;;  %v5881_v30 = vmax.f32 %v5689_v46, 0.0  ;;  %v17452_v46 = vld [vmem:[#allocation29_spill] sm:$0xff] }
 0x8e8   : > { %v5203_v49 = vpop.f32.mrf.mxu3 }
 0x8e9   : > { %v5676_v59 = vadd.f32 %v13913_v38, %v5433_v26  ;;  %v5204_v63 = vadd.f32 %v5203_v49, %v17447_v47  ;;  %4916 = vmatmul.bf16.gmra.mxu2 %v17448_v52 }
 0x8eb   : > { %v5868_v51 = vmax.f32 %v5676_v59, 0.0  ;;  %v5691_v18 = vadd.f32 %v13834_v34, %v5204_v63 }
 0x8ec   : > { %v14065_v12 = vpop.f32.mrf.mxu2 }
 0x8ed   : > { %v5883_v9 = vmax.f32 %v5691_v18, 0.0  ;;  %5245 = vmatmul.bf16.gmra.mxu3 %v17449_v6  ;;  %v14068_v8 = vpack.c.bf16 %v5868_v51, %v5866_v19 }
 0x8ee   : > { %v14070_v10 = vpop.f32.mrf.mxu1  ;;  %v5435_v7 = vpop.f32.mrf.mxu0 }
 0x8ef   : > { %17450 = vst [vmem:[#allocation6_spill] sm:$0xff] %v14068_v8  ;;  %v5436_v26 = vadd.f32 %v5435_v7, %v13902_v57  ;;  %v14073_v49 = vpack.c.bf16 %v5883_v9, %v5881_v30  ;;  %v17454_v30 = vld [vmem:[#allocation31_spill] sm:$0xff]  ;;  %v17455_v7 = vld [vmem:[#allocation33_spill] sm:$0xff] }
 0x8f0   : > { %17451 = vst [vmem:[#allocation26_spill] sm:$0xff] %v14070_v10  ;;  %v5206_v47 = vpop.f32.mrf.mxu3 }
 0x8f1   : > { %5474 = vmatmul.bf16.gmra.mxu0 %v17425_v2  ;;  %6297 = vmatmul.bf16.gmra.mxu1 %v14073_v49  ;;  %v5207_v59 = vadd.f32 %v5206_v47, %v17452_v46  ;;  %v5678_v19 = vadd.f32 %v13913_v38, %v5436_v26  ;;  %v17456_v26 = vld [vmem:[#allocation8_spill] sm:$0xff] }
 0x8f3   : > { %v5693_v9 = vadd.f32 %v13834_v34, %v5207_v59  ;;  %v5870_v52 = vmax.f32 %v5678_v19, 0.0 }
 0x8f4   : > { %v14077_v56 = vpop.f32.mrf.mxu2 }
 0x8f6   : > { %v14080_v63 = vpop.f32.mrf.mxu1  ;;  %v5437_v51 = vpop.f32.mrf.mxu0 }
 0x8f7   : > { %17453 = vst [vmem:[#allocation28_spill] sm:$0xff] %v14080_v63  ;;  %v5438_v18 = vadd.f32 %v5437_v51, %v13915_v41  ;;  %v5885_v63 = vmax.f32 %v5693_v9, 0.0  ;;  %v17459_v9 = vld [vmem:[#allocation32_spill] sm:$0xff] }
 0x8f8   : > { %v5208_v10 = vpop.f32.mrf.mxu3 }
 0x8f9   : > { %v5680_v57 = vadd.f32 %v13913_v38, %v5438_v18  ;;  %v5209_v2 = vadd.f32 %v5208_v10, %v17454_v30  ;;  %4921 = vmatmul.bf16.gmra.mxu2 %v17455_v7 }
 0x8fb   : > { %v5872_v55 = vmax.f32 %v5680_v57, 0.0  ;;  %v5695_v47 = vadd.f32 %v13834_v34, %v5209_v2 }
 0x8fc   : > { %v14089_v46 = vpop.f32.mrf.mxu2 }
 0x8fd   : > { %v5887_v40 = vmax.f32 %v5695_v47, 0.0  ;;  %5250 = vmatmul.bf16.gmra.mxu3 %v17456_v26  ;;  %v14092_v41 = vpack.c.bf16 %v5872_v55, %v5870_v52 }
 0x8fe   : > { %v5440_v51 = vpop.f32.mrf.mxu0  ;;  %v14094_v59 = vpop.f32.mrf.mxu1 }
 0x8ff   : > { %17457 = vst [vmem:[#allocation7_spill] sm:$0xff] %v14094_v59  ;;  %v14096_v18 = vpack.c.bf16 %v5887_v40, %v5885_v63  ;;  %v5441_v10 = vadd.f32 %v5440_v51, %v13927_v32  ;;  %v17461_v51 = vld [vmem:[#allocation34_spill] sm:$0xff]  ;;  %v17462_v59 = vld [vmem:[#allocation36_spill] sm:$0xff] }
 0x900   : > { %v5211_v30 = vpop.f32.mrf.mxu3 }
 0x901   : > { %17458 = vst [vmem:[#allocation29_spill] sm:$0xff] %v14096_v18  ;;  %5479 = vmatmul.bf16.gmra.mxu0 %v17430_v14  ;;  %6311 = vmatmul.bf16.vlgmr.msrb.gmra.mxu1 %v13929_v50  ;;  %v5212_v57 = vadd.f32 %v5211_v30, %v17459_v9  ;;  %v5682_v55 = vadd.f32 %v13913_v38, %v5441_v10  ;;  %v17463_v10 = vld [vmem:[#allocation9_spill] sm:$0xff] }
 0x903   : > { %v5697_v63 = vadd.f32 %v13834_v34, %v5212_v57  ;;  %v5874_v18 = vmax.f32 %v5682_v55, 0.0 }
 0x904   : > { %v14101_v19 = vpop.f32.mrf.mxu2 }
 0x906   : > { %v5442_v2 = vpop.f32.mrf.mxu0  ;;  %v14104_v47 = vpop.f32.mrf.mxu1 }
 0x907   : > { %17460 = vst [vmem:[#allocation31_spill] sm:$0xff] %v14104_v47  ;;  %v5443_v52 = vadd.f32 %v5442_v2, %v13945_v25  ;;  %v5889_v47 = vmax.f32 %v5697_v63, 0.0  ;;  %v17466_v63 = vld [vmem:[#allocation35_spill] sm:$0xff] }
 0x908   : > { %v5213_v40 = vpop.f32.mrf.mxu3 }
 0x909   : > { %v5684_v32 = vadd.f32 %v13913_v38, %v5443_v52  ;;  %v5214_v14 = vadd.f32 %v5213_v40, %v17461_v51  ;;  %4926 = vmatmul.bf16.gmra.mxu2 %v17462_v59 }
 0x90b   : > { %v5876_v7 = vmax.f32 %v5684_v32, 0.0  ;;  %v5699_v30 = vadd.f32 %v13834_v34, %v5214_v14 }
 0x90c   : > { %v14113_v9 = vpop.f32.mrf.mxu2 }
 0x90d   : > { %v5891_v21 = vmax.f32 %v5699_v30, 0.0  ;;  %5255 = vmatmul.bf16.gmra.mxu3 %v17463_v10  ;;  %v14116_v25 = vpack.c.bf16 %v5876_v7, %v5874_v18 }
 0x90e   : > { %v5445_v2 = vpop.f32.mrf.mxu0  ;;  %v14118_v57 = vpop.f32.mrf.mxu1 }
 0x90f   : > { %17464 = vst [vmem:[#allocation8_spill] sm:$0xff] %v14118_v57  ;;  %v5446_v52 = vadd.f32 %v5445_v2, %v13969_v4  ;;  %v14121_v40 = vpack.c.bf16 %v5891_v21, %v5889_v47  ;;  %v17468_v47 = vld [vmem:[#allocation37_spill] sm:$0xff]  ;;  %v17469_v2 = vld [vmem:[#allocation39_spill] sm:$0xff] }
 0x910   : > { %v5216_v51 = vpop.f32.mrf.mxu3 }
 0x911   : > { %17465 = vst [vmem:[#allocation32_spill] sm:$0xff] %v14121_v40  ;;  %5484 = vmatmul.bf16.gmra.mxu0 %v17436_v36  ;;  %6316 = vmatmul.bf16.gmra.mxu1 %v13984_v62  ;;  %v5217_v32 = vadd.f32 %v5216_v51, %v17466_v63  ;;  %v5686_v7 = vadd.f32 %v13913_v38, %v5446_v52  ;;  %v17470_v52 = vld [vmem:[#allocation10_spill] sm:$0xff] }
 0x913   : > { %v5701_v21 = vadd.f32 %v13834_v34, %v5217_v32  ;;  %v5878_v40 = vmax.f32 %v5686_v7, 0.0 }
 0x914   : > { %v14125_v55 = vpop.f32.mrf.mxu2 }
 0x916   : > { %v5447_v14 = vpop.f32.mrf.mxu0  ;;  %v14128_v30 = vpop.f32.mrf.mxu1 }
 0x917   : > { %17467 = vst [vmem:[#allocation34_spill] sm:$0xff] %v14128_v30  ;;  %v5448_v18 = vadd.f32 %v5447_v14, %v14005_v22  ;;  %v5893_v30 = vmax.f32 %v5701_v21, 0.0  ;;  %v17473_v21 = vld [vmem:[#allocation38_spill] sm:$0xff] }
 0x918   : > { %v5218_v57 = vpop.f32.mrf.mxu3 }
 0x919   : > { %v5688_v4 = vadd.f32 %v13913_v38, %v5448_v18  ;;  %v5219_v36 = vadd.f32 %v5218_v57, %v17468_v47  ;;  %4931 = vmatmul.bf16.gmra.mxu2 %v17469_v2 }
 0x91b   : > { %v5880_v59 = vmax.f32 %v5688_v4, 0.0  ;;  %v5703_v51 = vadd.f32 %v13834_v34, %v5219_v36 }
 0x91c   : > { %v14137_v63 = vpop.f32.mrf.mxu2 }
 0x91d   : > { %v5895_v33 = vmax.f32 %v5703_v51, 0.0  ;;  %5260 = vmatmul.bf16.gmra.mxu3 %v17470_v52  ;;  %v14140_v22 = vpack.c.bf16 %v5880_v59, %v5878_v40 }
 0x91e   : > { %v5450_v14 = vpop.f32.mrf.mxu0  ;;  %v14142_v32 = vpop.f32.mrf.mxu1 }
 0x91f   : > { %17471 = vst [vmem:[#allocation9_spill] sm:$0xff] %v14142_v32  ;;  %v5451_v18 = vadd.f32 %v5450_v14, %v14035_v23  ;;  %v14145_v57 = vpack.c.bf16 %v5895_v33, %v5893_v30  ;;  %v17475_v30 = vld [vmem:[#allocation40_spill] sm:$0xff] }
 0x920   : > { %v5221_v47 = vpop.f32.mrf.mxu3 }
 0x921   : > { %17472 = vst [vmem:[#allocation35_spill] sm:$0xff] %v14145_v57  ;;  %5489 = vmatmul.bf16.gmra.mxu0 %v17442_v15  ;;  %6321 = vmatmul.bf16.gmra.mxu1 %v14044_v53  ;;  %v5222_v4 = vadd.f32 %v5221_v47, %v17473_v21  ;;  %v5690_v59 = vadd.f32 %v13913_v38, %v5451_v18  ;;  %v17476_v18 = vld [vmem:[#allocation11_spill] sm:$0xff] }
 0x923   : > { %v5705_v33 = vadd.f32 %v13834_v34, %v5222_v4  ;;  %v5882_v14 = vmax.f32 %v5690_v59, 0.0 }
 0x924   : > { %v14149_v7 = vpop.f32.mrf.mxu2 }
 0x926   : > { %v5452_v36 = vpop.f32.mrf.mxu0  ;;  %v14152_v51 = vpop.f32.mrf.mxu1 }
 0x927   : > { %17474 = vst [vmem:[#allocation37_spill] sm:$0xff] %v14152_v51  ;;  %v5453_v40 = vadd.f32 %v5452_v36, %v14053_v17  ;;  %v5897_v51 = vmax.f32 %v5705_v33, 0.0  ;;  %v10122_v17 = vld [vmem:[%s17157_s11 + $0x140] sm:$0xf] }
 0x928   : > { %v5223_v32 = vpop.f32.mrf.mxu3  ;;  %v10186_v33 = vld [vmem:[%s17157_s11 + $0x1c0] sm:$0xf] }
 0x929   : > { %v5692_v23 = vadd.f32 %v13913_v38, %v5453_v40  ;;  %v5224_v15 = vadd.f32 %v5223_v32, %v17475_v30  ;;  %4936 = vmatmul.bf16.gmra.mxu2 %v13295_v1  ;;  %v10894_v32 = vld [vmem:[%s17157_s11 + $0x144] sm:$0xf0] }
 0x92a   : > { %v10123_v40 = vor.u32 %v10894_v32, %v10122_v17  ;;  %v10893_v32 = vld [vmem:[%s17157_s11 + $0x144] sm:$0xf] }
 0x92b   : > { %v5884_v57 = vmax.f32 %v5692_v23, 0.0  ;;  %v5707_v47 = vadd.f32 %v13834_v34, %v5224_v15  ;;  %v10910_v23 = vld [vmem:[%s17157_s11 + $0x1c4] sm:$0xf0] }
 0x92c   : > { %v14161_v21 = vpop.f32.mrf.mxu2  ;;  %v10187_v15 = vor.u32 %v10910_v23, %v10186_v33  ;;  %6698 = vmatpush.bf16.msra.mxu2 %v10123_v40 }
 0x92d   : > { %v5899_v2 = vmax.f32 %v5707_v47, 0.0  ;;  %5265 = vmatmul.bf16.gmra.mxu3 %v17476_v18  ;;  %v14170_v4 = vpack.c.bf16 %v5884_v57, %v5882_v14  ;;  %v17479_v14 = vld [vmem:[#allocation41_spill] sm:$0xff] }
 0x92e   : > { %v5455_v36 = vpop.f32.mrf.mxu0  ;;  %v14172_v59 = vpop.f32.mrf.mxu1  ;;  %6747 = vmatpush.bf16.msrb.mxu3 %v10187_v15  ;;  %v17481_v15 = vld [vmem:[#allocation43_spill] sm:$0xff] }
 0x92f   : > { %17477 = vst [vmem:[#allocation10_spill] sm:$0xff] %v14172_v59  ;;  %v5456_v30 = vadd.f32 %v5455_v36, %v14065_v12  ;;  %v14181_v47 = vpack.c.bf16 %v5899_v2, %v5897_v51  ;;  %v10124_v12 = vld [vmem:[%s17157_s11 + $0x148] sm:$0xf0]  ;;  %v17482_v59 = vld [vmem:[#allocation45_spill] sm:$0xff] }
 0x930   : > { %v5226_v1 = vpop.f32.mrf.mxu3  ;;  %v10127_v36 = vor.u32 %v10893_v32, %v10124_v12  ;;  %v17483_v12 = vld [vmem:[#allocation12_spill] sm:$0xff] }
 0x931   : > { %17478 = vst [vmem:[#allocation38_spill] sm:$0xff] %v14181_v47  ;;  %5494 = vmatmul.bf16.gmra.mxu0 %v17449_v6  ;;  %6326 = vmatmul.bf16.gmra.mxu1 %v14068_v8  ;;  %v5227_v17 = vadd.f32 %v5226_v1, %v17479_v14  ;;  %v5694_v6 = vadd.f32 %v13913_v38, %v5456_v30 }
 0x932   : > { %6796 = vmatpush.bf16.msrb.mxu0 %v10127_v36 }
 0x933   : > { %v5709_v1 = vadd.f32 %v13834_v34, %v5227_v17  ;;  %v5886_v47 = vmax.f32 %v5694_v6, 0.0  ;;  %v10867_v6 = vld [vmem:[%s17157_s11 + $0x74] sm:$0xf] }
 0x934   : > { %v14185_v57 = vpop.f32.mrf.mxu2 }
 0x935   : > { %v5901_v32 = vmax.f32 %v5709_v1, 0.0  ;;  %v10012_v1 = vld [vmem:[%s17157_s11 + $0x68] sm:$0xf0] }
 0x936   : > { %v5457_v2 = vpop.f32.mrf.mxu0  ;;  %v14194_v51 = vpop.f32.mrf.mxu1 }
 0x937   : > { %17480 = vst [vmem:[#allocation40_spill] sm:$0xff] %v14194_v51  ;;  %v5458_v40 = vadd.f32 %v5457_v2, %v14077_v56 }
 0x938   : > { %v5228_v33 = vpop.f32.mrf.mxu3 }
 0x939   : > { %v5696_v23 = vadd.f32 %v13913_v38, %v5458_v40  ;;  %v5229_v14 = vadd.f32 %v5228_v33, %v17481_v15  ;;  %4941 = vmatmul.bf16.gmra.mxu2 %v17482_v59  ;;  %v10859_v59 = vld [vmem:[%s17157_s11 + $0x34] sm:$0xf] }
 0x93b   : > { %v5888_v8 = vmax.f32 %v5696_v23, 0.0  ;;  %v5711_v53 = vadd.f32 %v13834_v34, %v5229_v14  ;;  %v17486_v23 = vld [vmem:[#allocation44_spill] sm:$0xff] }
 0x93c   : > { %v14203_v51 = vpop.f32.mrf.mxu2 }
 0x93d   : > { %v14205_v30 = vpack.c.bf16 %v5888_v8, %v5886_v47  ;;  %v5903_v56 = vmax.f32 %v5711_v53, 0.0  ;;  %5270 = vmatmul.bf16.gmra.mxu3 %v17483_v12  ;;  %v10020_v8 = vld [vmem:[%s17157_s11 + $0x78] sm:$0xf0] }
 0x93e   : > { %v5460_v2 = vpop.f32.mrf.mxu0  ;;  %v14208_v17 = vpop.f32.mrf.mxu1  ;;  %v10023_v53 = vor.u32 %v10867_v6, %v10020_v8  ;;  %v10863_v8 = vld [vmem:[%s17157_s11 + $0x54] sm:$0xf] }
 0x93f   : > { %17484 = vst [vmem:[#allocation11_spill] sm:$0xff] %v14208_v17  ;;  %v5461_v36 = vadd.f32 %v5460_v2, %v14089_v46  ;;  %v14211_v40 = vpack.c.bf16 %v5903_v56, %v5901_v32  ;;  %v10865_v46 = vld [vmem:[%s17157_s11 + $0x64] sm:$0xf] }
 0x940   : > { %v5231_v33 = vpop.f32.mrf.mxu3  ;;  %6352 = vmatpush.bf16.msra.mxu1 %v10023_v53  ;;  %v10015_v14 = vor.u32 %v10865_v46, %v10012_v1  ;;  %v10004_v53 = vld [vmem:[%s17157_s11 + $0x58] sm:$0xf0] }
 0x941   : > { %17485 = vst [vmem:[#allocation41_spill] sm:$0xff] %v14211_v40  ;;  %5499 = vmatmul.bf16.gmra.mxu0 %v17456_v26  ;;  %6331 = vmatmul.bf16.gmra.mxu1 %v14092_v41  ;;  %v5232_v15 = vadd.f32 %v5231_v33, %v17486_v23  ;;  %v5698_v26 = vadd.f32 %v13913_v38, %v5461_v36  ;;  %v17488_v1 = vld [vmem:[#allocation46_spill] sm:$0xff]  ;;  %v10861_v40 = vld [vmem:[%s17157_s11 + $0x44] sm:$0xf] }
 0x942   : > { %v10007_v36 = vor.u32 %v10863_v8, %v10004_v53 }
 0x943   : > { %v5713_v33 = vadd.f32 %v13834_v34, %v5232_v15  ;;  %v9996_v15 = vld [vmem:[%s17157_s11 + $0x48] sm:$0xf0] }
 0x944   : > { %v14221_v47 = vpop.f32.mrf.mxu2  ;;  %6353 = vmatpush.bf16.msra.mxu1 %v10015_v14  ;;  %v9999_v8 = vor.u32 %v10861_v40, %v9996_v15 }
 0x946   : > { %v5462_v32 = vpop.f32.mrf.mxu0  ;;  %v14230_v56 = vpop.f32.mrf.mxu1 }
 0x947   : > { %17487 = vst [vmem:[#allocation43_spill] sm:$0xff] %v14230_v56  ;;  %v5463_v2 = vadd.f32 %v5462_v32, %v14101_v19  ;;  %v17489_v56 = vld [vmem:[#allocation48_spill] sm:$0xff]  ;;  %v5890_v19 = vmax.f32 %v5698_v26, 0.0 }
 0x948   : > { %v5233_v6 = vpop.f32.mrf.mxu3  ;;  %6354 = vmatpush.bf16.msra.mxu1 %v10007_v36 }
 0x949   : > { %v5700_v46 = vadd.f32 %v13913_v38, %v5463_v2  ;;  %v5234_v23 = vadd.f32 %v5233_v6, %v17488_v1  ;;  %4946 = vmatmul.bf16.gmra.mxu2 %v17489_v56  ;;  %v5905_v2 = vmax.f32 %v5713_v33, 0.0  ;;  %v17490_v1 = vld [vmem:[#allocation13_spill] sm:$0xff]  ;;  %v9988_v33 = vld [vmem:[%s17157_s11 + $0x38] sm:$0xf0] }
 0x94a   : > { %v9991_v40 = vor.u32 %v10859_v59, %v9988_v33  ;;  %v10855_v33 = vld [vmem:[%s17157_s11 + $0x14] sm:$0xf] }
 0x94b   : > { %v5892_v14 = vmax.f32 %v5700_v46, 0.0  ;;  %v5715_v32 = vadd.f32 %v13834_v34, %v5234_v23 }
 0x94c   : > { %v14245_v17 = vpop.f32.mrf.mxu2  ;;  %6355 = vmatpush.bf16.msra.mxu1 %v9999_v8 }
 0x94d   : > { %v5907_v6 = vmax.f32 %v5715_v32, 0.0  ;;  %5275 = vmatmul.bf16.gmra.mxu3 %v17490_v1  ;;  %v14254_v26 = vpack.c.bf16 %v5892_v14, %v5890_v19  ;;  %v9980_v14 = vld [vmem:[%s17157_s11 + $0x28] sm:$0xf0]  ;;  %v17494_v32 = vld [vmem:[#allocation47_spill] sm:$0xff] }
 0x94e   : > { %v5465_v53 = vpop.f32.mrf.mxu0  ;;  %v14256_v46 = vpop.f32.mrf.mxu1 }
 0x94f   : > { %17491 = vst [vmem:[#allocation12_spill] sm:$0xff] %v14254_v26  ;;  %v5466_v23 = vadd.f32 %v5465_v53, %v14113_v9  ;;  %v14259_v36 = vpack.c.bf16 %v5907_v6, %v5905_v2  ;;  %v10857_v9 = vld [vmem:[%s17157_s11 + $0x24] sm:$0xf] }
 0x950   : > { %17492 = vst [vmem:[#allocation44_spill] sm:$0xff] %v14256_v46  ;;  %v5236_v56 = vpop.f32.mrf.mxu3  ;;  %6356 = vmatpush.bf16.msra.mxu1 %v9991_v40  ;;  %v9983_v2 = vor.u32 %v10857_v9, %v9980_v14  ;;  %v9972_v40 = vld [vmem:[%s17157_s11 + $0x18] sm:$0xf0]  ;;  %v17496_v14 = vld [vmem:[#allocation49_spill] sm:$0xff] }
 0x951   : > { %17493 = vst [vmem:[#allocation46_spill] sm:$0xff] %v14259_v36  ;;  %5504 = vmatmul.bf16.gmra.mxu0 %v17463_v10  ;;  %6336 = vmatmul.bf16.gmra.mxu1 %v14116_v25  ;;  %v5237_v15 = vadd.f32 %v5236_v56, %v17494_v32  ;;  %v5702_v10 = vadd.f32 %v13913_v38, %v5466_v23  ;;  %v10853_v36 = vld [vmem:[%s17157_s11 + $0x4] sm:$0xf] }
 0x952   : > { %v9975_v23 = vor.u32 %v10855_v33, %v9972_v40 }
 0x953   : > { %v5717_v56 = vadd.f32 %v13834_v34, %v5237_v15  ;;  %v9964_v15 = vld [vmem:[%s17157_s11 + $0x8] sm:$0xf0] }
 0x954   : > { %v14269_v19 = vpop.f32.mrf.mxu2  ;;  %6357 = vmatpush.bf16.msra.mxu1 %v9983_v2  ;;  %v9967_v33 = vor.u32 %v10853_v36, %v9964_v15 }
 0x956   : > { %v5467_v6 = vpop.f32.mrf.mxu0  ;;  %v14278_v8 = vpop.f32.mrf.mxu1 }
 0x957   : > { %17495 = vst [vmem:[#allocation13_spill] sm:$0xff] %v14278_v8  ;;  %v5468_v59 = vadd.f32 %v5467_v6, %v14125_v55  ;;  %v17497_v8 = vld [vmem:[#allocation51_spill] sm:$0xff]  ;;  %v5894_v55 = vmax.f32 %v5702_v10, 0.0 }
 0x958   : > { %v5238_v53 = vpop.f32.mrf.mxu3  ;;  %6358 = vmatpush.bf16.msra.mxu1 %v9975_v23 }
 0x959   : > { %v5704_v9 = vadd.f32 %v13913_v38, %v5468_v59  ;;  %v5239_v32 = vadd.f32 %v5238_v53, %v17496_v14  ;;  %4951 = vmatmul.bf16.gmra.mxu2 %v17497_v8  ;;  %v5909_v59 = vmax.f32 %v5717_v56, 0.0  ;;  %v17498_v14 = vld [vmem:[#allocation14_spill] sm:$0xff] }
 0x95b   : > { %v5896_v2 = vmax.f32 %v5704_v9, 0.0  ;;  %v5719_v6 = vadd.f32 %v13834_v34, %v5239_v32 }
 0x95c   : > { %v14293_v46 = vpop.f32.mrf.mxu2  ;;  %6359 = vmatpush.bf16.msra.mxu1 %v9967_v33  ;;  %v17504_v33 = vld [vmem:[#allocation52_spill] sm:$0xff] }
 0x95d   : > { %v5911_v53 = vmax.f32 %v5719_v6, 0.0  ;;  %5280 = vmatmul.bf16.gmra.mxu3 %v17498_v14  ;;  %v14302_v10 = vpack.c.bf16 %v5896_v2, %v5894_v55  ;;  %v17502_v6 = vld [vmem:[#allocation50_spill] sm:$0xff] }
 0x95e   : > { %v5470_v40 = vpop.f32.mrf.mxu0  ;;  %v14304_v9 = vpop.f32.mrf.mxu1 }
 0x95f   : > { %17499 = vst [vmem:[#allocation47_spill] sm:$0xff] %v14302_v10  ;;  %v5471_v32 = vadd.f32 %v5470_v40, %v14137_v63  ;;  %v14307_v23 = vpack.c.bf16 %v5911_v53, %v5909_v59  ;;  %v17505_v40 = vld [vmem:[#allocation54_spill] sm:$0xff] }
 0x960   : > { %17500 = vst [vmem:[#allocation49_spill] sm:$0xff] %v14304_v9  ;;  %v5241_v8 = vpop.f32.mrf.mxu3 }
 0x961   : > { %17501 = vst [vmem:[#allocation14_spill] sm:$0xff] %v14307_v23  ;;  %5509 = vmatmul.bf16.gmra.mxu0 %v17470_v52  ;;  %6341 = vmatmul.bf16.gmra.mxu1 %v14140_v22  ;;  %v5242_v26 = vadd.f32 %v5241_v8, %v17502_v6  ;;  %v5706_v2 = vadd.f32 %v13913_v38, %v5471_v32 }
 0x963   : > { %v5721_v59 = vadd.f32 %v13834_v34, %v5242_v26  ;;  %v5898_v9 = vmax.f32 %v5706_v2, 0.0 }
 0x964   : > { %v14311_v56 = vpop.f32.mrf.mxu2 }
 0x966   : > { %v5472_v36 = vpop.f32.mrf.mxu0  ;;  %v14314_v55 = vpop.f32.mrf.mxu1 }
 0x967   : > { %17503 = vst [vmem:[#allocation50_spill] sm:$0xff] %v14314_v55  ;;  %v5473_v15 = vadd.f32 %v5472_v36, %v14149_v7  ;;  %v5913_v55 = vmax.f32 %v5721_v59, 0.0  ;;  %v17508_v59 = vld [vmem:[#allocation53_spill] sm:$0xff] }
 0x968   : > { %v5243_v63 = vpop.f32.mrf.mxu3 }
 0x969   : > { %v5708_v53 = vadd.f32 %v13913_v38, %v5473_v15  ;;  %v5244_v52 = vadd.f32 %v5243_v63, %v17504_v33  ;;  %4956 = vmatmul.bf16.gmra.mxu2 %v17505_v40 }
 0x96b   : > { %v5900_v23 = vmax.f32 %v5708_v53, 0.0  ;;  %v5723_v8 = vadd.f32 %v13834_v34, %v5244_v52 }
 0x96c   : > { %v14323_v6 = vpop.f32.mrf.mxu2 }
 0x96d   : > { %v5915_v10 = vmax.f32 %v5723_v8, 0.0  ;;  %5285 = vmatmul.bf16.gmra.mxu3 %v12913_v3  ;;  %v14326_v7 = vpack.c.bf16 %v5900_v23, %v5898_v9  ;;  %v17511_v8 = vld [vmem:[#allocation57_spill] sm:$0xff] }
 0x96e   : > { %v5475_v32 = vpop.f32.mrf.mxu0  ;;  %v14328_v26 = vpop.f32.mrf.mxu1 }
 0x96f   : > { %17506 = vst [vmem:[#allocation52_spill] sm:$0xff] %v14328_v26  ;;  %v5476_v36 = vadd.f32 %v5475_v32, %v14161_v21  ;;  %v14331_v15 = vpack.c.bf16 %v5915_v10, %v5913_v55  ;;  %v17510_v55 = vld [vmem:[#allocation55_spill] sm:$0xff] }
 0x970   : > { %v5246_v63 = vpop.f32.mrf.mxu3 }
 0x971   : > { %17507 = vst [vmem:[#allocation54_spill] sm:$0xff] %v14331_v15  ;;  %5514 = vmatmul.bf16.gmra.mxu0 %v17476_v18  ;;  %6346 = vmatmul.bf16.gmra.mxu1 %v14170_v4  ;;  %v5247_v53 = vadd.f32 %v5246_v63, %v17508_v59  ;;  %v5710_v9 = vadd.f32 %v13913_v38, %v5476_v36 }
 0x973   : > { %v5725_v21 = vadd.f32 %v13834_v34, %v5247_v53  ;;  %v5902_v32 = vmax.f32 %v5710_v9, 0.0 }
 0x974   : > { %v14335_v2 = vpop.f32.mrf.mxu2 }
 0x976   : > { %v5477_v33 = vpop.f32.mrf.mxu0  ;;  %v14338_v52 = vpop.f32.mrf.mxu1 }
 0x977   : > { %17509 = vst [vmem:[#allocation53_spill] sm:$0xff] %v14338_v52  ;;  %v5478_v23 = vadd.f32 %v5477_v33, %v14185_v57  ;;  %v5917_v52 = vmax.f32 %v5725_v21, 0.0  ;;  %v17512_v21 = vld [vmem:[#allocation56_spill] sm:$0xff] }
 0x978   : > { %v5248_v40 = vpop.f32.mrf.mxu3 }
 0x979   : > { %v5712_v10 = vadd.f32 %v13913_v38, %v5478_v23  ;;  %v5249_v18 = vadd.f32 %v5248_v40, %v17510_v55  ;;  %4961 = vmatmul.bf16.gmra.mxu2 %v17511_v8 }
 0x97b   : > { %v5904_v26 = vmax.f32 %v5712_v10, 0.0  ;;  %v5727_v63 = vadd.f32 %v13834_v34, %v5249_v18 }
 0x97c   : > { %v14347_v59 = vpop.f32.mrf.mxu2 }
 0x97d   : > { %v5919_v15 = vmax.f32 %v5727_v63, 0.0  ;;  %5290 = vmatmul.bf16.gmra.mxu3 %v12927_v24  ;;  %v14350_v57 = vpack.c.bf16 %v5904_v26, %v5902_v32  ;;  %v17514_v32 = vld [vmem:[#allocation59_spill] sm:$0xff] }
 0x97e   : > { %v5480_v36 = vpop.f32.mrf.mxu0  ;;  %v14352_v53 = vpop.f32.mrf.mxu1 }
 0x97f   : > { %v14354_v33 = vpack.c.bf16 %v5919_v15, %v5917_v52  ;;  %v5481_v23 = vadd.f32 %v5480_v36, %v14203_v51 }
 0x980   : > { %v5251_v40 = vpop.f32.mrf.mxu3 }
 0x981   : > { %5519 = vmatmul.bf16.gmra.mxu0 %v17483_v12  ;;  %6360 = vmatmul.bf16.vlgmr.msra.gmra.mxu1 %v13853_v48  ;;  %v5252_v10 = vadd.f32 %v5251_v40, %v17512_v21  ;;  %v5714_v26 = vadd.f32 %v13913_v38, %v5481_v23 }
 0x983   : > { %v5729_v52 = vadd.f32 %v13834_v34, %v5252_v10  ;;  %v5906_v48 = vmax.f32 %v5714_v26, 0.0 }
 0x984   : > { %v14359_v9 = vpop.f32.mrf.mxu2 }
 0x985   : > { %v5921_v21 = vmax.f32 %v5729_v52, 0.0 }
 0x986   : > { %v5482_v55 = vpop.f32.mrf.mxu0  ;;  %v14362_v18 = vpop.f32.mrf.mxu1 }
 0x987   : > { %17513 = vst [vmem:[#allocation55_spill] sm:$0xff] %v14362_v18  ;;  %v5483_v8 = vadd.f32 %v5482_v55, %v14221_v47  ;;  %v10114_v47 = vld [vmem:[%s17157_s11 + $0x130] sm:$0xf] }
 0x988   : > { %v5253_v15 = vpop.f32.mrf.mxu3 }
 0x989   : > { %v5716_v51 = vadd.f32 %v13913_v38, %v5483_v8  ;;  %v5254_v12 = vadd.f32 %v5253_v15, %v13414_v45  ;;  %4966 = vmatmul.bf16.gmra.mxu2 %v17514_v32  ;;  %v10892_v45 = vld [vmem:[%s17157_s11 + $0x134] sm:$0xf0]  ;;  %v10178_v8 = vld [vmem:[%s17157_s11 + $0x1b0] sm:$0xf] }
 0x98a   : > { %v10115_v26 = vor.u32 %v10892_v45, %v10114_v47  ;;  %v10908_v15 = vld [vmem:[%s17157_s11 + $0x1b4] sm:$0xf0]  ;;  %v10891_v47 = vld [vmem:[%s17157_s11 + $0x134] sm:$0xf] }
 0x98b   : > { %v5908_v63 = vmax.f32 %v5716_v51, 0.0  ;;  %v5731_v36 = vadd.f32 %v13834_v34, %v5254_v12  ;;  %v10179_v51 = vor.u32 %v10908_v15, %v10178_v8  ;;  %v17519_v15 = vld [vmem:[#allocation60_spill] sm:$0xff] }
 0x98c   : > { %v14371_v40 = vpop.f32.mrf.mxu2  ;;  %6699 = vmatpush.bf16.msra.mxu2 %v10115_v26 }
 0x98d   : > { %v5923_v18 = vmax.f32 %v5731_v36, 0.0  ;;  %5295 = vmatmul.bf16.gmra.mxu3 %v12941_v11  ;;  %v14380_v23 = vpack.c.bf16 %v5908_v63, %v5906_v48  ;;  %v17517_v63 = vld [vmem:[#allocation58_spill] sm:$0xff] }
 0x98e   : > { %v5485_v10 = vpop.f32.mrf.mxu0  ;;  %v14382_v55 = vpop.f32.mrf.mxu1  ;;  %6748 = vmatpush.bf16.msrb.mxu3 %v10179_v51 }
 0x98f   : > { %17515 = vst [vmem:[#allocation57_spill] sm:$0xff] %v14382_v55  ;;  %v5486_v52 = vadd.f32 %v5485_v10, %v14245_v17  ;;  %v14391_v12 = vpack.c.bf16 %v5923_v18, %v5921_v21  ;;  %v10116_v17 = vld [vmem:[%s17157_s11 + $0x138] sm:$0xf0] }
 0x990   : > { %v5256_v32 = vpop.f32.mrf.mxu3  ;;  %v10119_v45 = vor.u32 %v10891_v47, %v10116_v17 }
 0x991   : > { %17516 = vst [vmem:[#allocation56_spill] sm:$0xff] %v14391_v12  ;;  %5524 = vmatmul.bf16.gmra.mxu0 %v17490_v1  ;;  %6365 = vmatmul.bf16.gmra.mxu1 %v13871_v27  ;;  %v5257_v36 = vadd.f32 %v5256_v32, %v17517_v63  ;;  %v5718_v1 = vadd.f32 %v13913_v38, %v5486_v52  ;;  %v17520_v32 = vld [vmem:[#allocation62_spill] sm:$0xff] }
 0x992   : > { %6797 = vmatpush.bf16.msrb.mxu0 %v10119_v45 }
 0x993   : > { %v5733_v26 = vadd.f32 %v13834_v34, %v5257_v36  ;;  %v5910_v63 = vmax.f32 %v5718_v1, 0.0 }
 0x994   : > { %v14395_v48 = vpop.f32.mrf.mxu2 }
 0x995   : > { %v5925_v47 = vmax.f32 %v5733_v26, 0.0 }
 0x996   : > { %v5487_v18 = vpop.f32.mrf.mxu0  ;;  %v14404_v21 = vpop.f32.mrf.mxu1 }
 0x997   : > { %17518 = vst [vmem:[#allocation59_spill] sm:$0xff] %v14404_v21  ;;  %v5488_v27 = vadd.f32 %v5487_v18, %v14269_v19 }
 0x998   : > { %v5258_v10 = vpop.f32.mrf.mxu3 }
 0x999   : > { %v5720_v8 = vadd.f32 %v13913_v38, %v5488_v27  ;;  %v5259_v51 = vadd.f32 %v5258_v10, %v17519_v15  ;;  %4971 = vmatmul.bf16.gmra.mxu2 %v17520_v32  ;;  %v17521_v10 = vld [vmem:[#allocation61_spill] sm:$0xff] }
 0x99b   : > { %v5912_v55 = vmax.f32 %v5720_v8, 0.0  ;;  %v5735_v12 = vadd.f32 %v13834_v34, %v5259_v51 }
 0x99c   : > { %v14413_v21 = vpop.f32.mrf.mxu2 }
 0x99d   : > { %v5927_v52 = vmax.f32 %v5735_v12, 0.0  ;;  %5300 = vmatmul.bf16.gmra.mxu3 %v12955_v54  ;;  %v14416_v19 = vpack.c.bf16 %v5912_v55, %v5910_v63  ;;  %v17523_v63 = vld [vmem:[#allocation63_spill] sm:$0xff] }
 0x99e   : > { %v5490_v17 = vpop.f32.mrf.mxu0  ;;  %v14418_v36 = vpop.f32.mrf.mxu1 }
 0x99f   : > { %v5491_v18 = vadd.f32 %v5490_v17, %v14293_v46  ;;  %v14421_v45 = vpack.c.bf16 %v5927_v52, %v5925_v47  ;;  %v17524_v47 = vld [vmem:[#allocation65_spill] sm:$0xff] }
 0x9a0   : > { %v5261_v27 = vpop.f32.mrf.mxu3 }
 0x9a1   : > { %5529 = vmatmul.bf16.gmra.mxu0 %v17498_v14  ;;  %6370 = vmatmul.bf16.gmra.mxu1 %v13889_v13  ;;  %v5262_v12 = vadd.f32 %v5261_v27, %v17521_v10  ;;  %v5722_v55 = vadd.f32 %v13913_v38, %v5491_v18 }
 0x9a3   : > { %v5737_v46 = vadd.f32 %v13834_v34, %v5262_v12  ;;  %v5914_v13 = vmax.f32 %v5722_v55, 0.0 }
 0x9a4   : > { %v14425_v1 = vpop.f32.mrf.mxu2 }
 0x9a5   : > { %v5929_v10 = vmax.f32 %v5737_v46, 0.0  ;;  %v17526_v46 = vld [vmem:[#allocation64_spill] sm:$0xff] }
 0x9a6   : > { %v5492_v26 = vpop.f32.mrf.mxu0  ;;  %v14428_v8 = vpop.f32.mrf.mxu1 }
 0x9a7   : > { %17522 = vst [vmem:[#allocation58_spill] sm:$0xff] %v14428_v8  ;;  %v5493_v15 = vadd.f32 %v5492_v26, %v14311_v56 }
 0x9a8   : > { %v5263_v51 = vpop.f32.mrf.mxu3 }
 0x9a9   : > { %v5724_v32 = vadd.f32 %v13913_v38, %v5493_v15  ;;  %v5264_v14 = vadd.f32 %v5263_v51, %v17523_v63  ;;  %4976 = vmatmul.bf16.gmra.mxu2 %v17524_v47 }
 0x9ab   : > { %v5916_v52 = vmax.f32 %v5724_v32, 0.0  ;;  %v5739_v17 = vadd.f32 %v13834_v34, %v5264_v14 }
 0x9ac   : > { %v14437_v27 = vpop.f32.mrf.mxu2 }
 0x9ad   : > { %v5931_v8 = vmax.f32 %v5739_v17, 0.0  ;;  %5305 = vmatmul.bf16.gmra.mxu3 %v12975_v42  ;;  %v14440_v56 = vpack.c.bf16 %v5916_v52, %v5914_v13  ;;  %v17528_v17 = vld [vmem:[#allocation66_spill] sm:$0xff] }
 0x9ae   : > { %v5495_v18 = vpop.f32.mrf.mxu0  ;;  %v14442_v12 = vpop.f32.mrf.mxu1 }
 0x9af   : > { %17525 = vst [vmem:[#allocation60_spill] sm:$0xff] %v14442_v12  ;;  %v5496_v26 = vadd.f32 %v5495_v18, %v14323_v6  ;;  %v14445_v15 = vpack.c.bf16 %v5931_v8, %v5929_v10  ;;  %v17529_v10 = vld [vmem:[#allocation68_spill] sm:$0xff] }
 0x9b0   : > { %v5266_v51 = vpop.f32.mrf.mxu3 }
 0x9b1   : > { %5534 = vmatmul.bf16.gmra.mxu0 %v12913_v3  ;;  %6375 = vmatmul.bf16.gmra.mxu1 %v13908_v43  ;;  %v5267_v32 = vadd.f32 %v5266_v51, %v17526_v46  ;;  %v5726_v47 = vadd.f32 %v13913_v38, %v5496_v26 }
 0x9b3   : > { %v5741_v6 = vadd.f32 %v13834_v34, %v5267_v32  ;;  %v5918_v43 = vmax.f32 %v5726_v47, 0.0  ;;  %v10883_v47 = vld [vmem:[%s17157_s11 + $0xf4] sm:$0xf] }
 0x9b4   : > { %v14449_v55 = vpop.f32.mrf.mxu2 }
 0x9b6   : > { %v5497_v63 = vpop.f32.mrf.mxu0  ;;  %v14452_v14 = vpop.f32.mrf.mxu1 }
 0x9b7   : > { %17527 = vst [vmem:[#allocation62_spill] sm:$0xff] %v14452_v14  ;;  %v5498_v13 = vadd.f32 %v5497_v63, %v14335_v2  ;;  %v5933_v14 = vmax.f32 %v5741_v6, 0.0  ;;  %v10084_v6 = vld [vmem:[%s17157_s11 + $0xf8] sm:$0xf0] }
 0x9b8   : > { %v5268_v52 = vpop.f32.mrf.mxu3 }
 0x9b9   : > { %v5728_v8 = vadd.f32 %v13913_v38, %v5498_v13  ;;  %v5269_v3 = vadd.f32 %v5268_v52, %v17528_v17  ;;  %4981 = vmatmul.bf16.gmra.mxu2 %v17529_v10 }
 0x9bb   : > { %v5920_v18 = vmax.f32 %v5728_v8, 0.0  ;;  %v5743_v51 = vadd.f32 %v13834_v34, %v5269_v3  ;;  %v10087_v8 = vor.u32 %v10883_v47, %v10084_v6  ;;  %v17530_v3 = vld [vmem:[#allocation67_spill] sm:$0xff]  ;;  %v10068_v47 = vld [vmem:[%s17157_s11 + $0xd8] sm:$0xf0] }
 0x9bc   : > { %v14461_v46 = vpop.f32.mrf.mxu2 }
 0x9bd   : > { %v14463_v12 = vpack.c.bf16 %v5920_v18, %v5918_v43  ;;  %v5935_v26 = vmax.f32 %v5743_v51, 0.0  ;;  %5310 = vmatmul.bf16.gmra.mxu3 %v12989_v20  ;;  %6401 = vmatpush.bf16.msrb.mxu1 %v10087_v8  ;;  %v17532_v8 = vld [vmem:[#allocation69_spill] sm:$0xff] }
 0x9be   : > { %v5500_v2 = vpop.f32.mrf.mxu0  ;;  %v14466_v32 = vpop.f32.mrf.mxu1 }
 0x9bf   : > { %v5501_v63 = vadd.f32 %v5500_v2, %v14347_v59  ;;  %v14469_v13 = vpack.c.bf16 %v5935_v26, %v5933_v14  ;;  %v10881_v59 = vld [vmem:[%s17157_s11 + $0xe4] sm:$0xf]  ;;  %v10076_v14 = vld [vmem:[%s17157_s11 + $0xe8] sm:$0xf0]  ;;  %v10879_v2 = vld [vmem:[%s17157_s11 + $0xd4] sm:$0xf] }
 0x9c0   : > { %v5271_v52 = vpop.f32.mrf.mxu3  ;;  %v10079_v43 = vor.u32 %v10881_v59, %v10076_v14  ;;  %v17533_v14 = vld [vmem:[#allocation71_spill] sm:$0xff] }
 0x9c1   : > { %5539 = vmatmul.bf16.gmra.mxu0 %v12927_v24  ;;  %6380 = vmatmul.bf16.gmra.mxu1 %v13935_v37  ;;  %v5272_v10 = vadd.f32 %v5271_v52, %v17530_v3  ;;  %v5730_v24 = vadd.f32 %v13913_v38, %v5501_v63  ;;  %v10071_v63 = vor.u32 %v10879_v2, %v10068_v47 }
 0x9c2   : > { %6402 = vmatpush.bf16.msrb.mxu1 %v10079_v43 }
 0x9c3   : > { %v5745_v52 = vadd.f32 %v13834_v34, %v5272_v10  ;;  %v10060_v10 = vld [vmem:[%s17157_s11 + $0xc8] sm:$0xf0] }
 0x9c4   : > { %v14479_v17 = vpop.f32.mrf.mxu2 }
 0x9c6   : > { %v5502_v18 = vpop.f32.mrf.mxu0  ;;  %v14488_v51 = vpop.f32.mrf.mxu1  ;;  %6403 = vmatpush.bf16.msrb.mxu1 %v10071_v63  ;;  %v10875_v63 = vld [vmem:[%s17157_s11 + $0xb4] sm:$0xf] }
 0x9c7   : > { %17531 = vst [vmem:[#allocation61_spill] sm:$0xff] %v14488_v51  ;;  %v5503_v37 = vadd.f32 %v5502_v18, %v14359_v9  ;;  %v5922_v9 = vmax.f32 %v5730_v24, 0.0  ;;  %v10877_v51 = vld [vmem:[%s17157_s11 + $0xc4] sm:$0xf] }
 0x9c8   : > { %v5273_v26 = vpop.f32.mrf.mxu3  ;;  %v10063_v2 = vor.u32 %v10877_v51, %v10060_v10 }
 0x9c9   : > { %v5732_v6 = vadd.f32 %v13913_v38, %v5503_v37  ;;  %v5274_v59 = vadd.f32 %v5273_v26, %v17532_v8  ;;  %4986 = vmatmul.bf16.gmra.mxu2 %v17533_v14  ;;  %v5937_v37 = vmax.f32 %v5745_v52, 0.0  ;;  %v10052_v52 = vld [vmem:[%s17157_s11 + $0xb8] sm:$0xf0] }
 0x9ca   : > { %6404 = vmatpush.bf16.msrb.mxu1 %v10063_v2  ;;  %v10055_v51 = vor.u32 %v10875_v63, %v10052_v52  ;;  %v10871_v63 = vld [vmem:[%s17157_s11 + $0x94] sm:$0xf]  ;;  %v10036_v52 = vld [vmem:[%s17157_s11 + $0x98] sm:$0xf0] }
 0x9cb   : > { %v5924_v3 = vmax.f32 %v5732_v6, 0.0  ;;  %v5747_v43 = vadd.f32 %v13834_v34, %v5274_v59 }
 0x9cc   : > { %v14503_v18 = vpop.f32.mrf.mxu2 }
 0x9cd   : > { %v5939_v26 = vmax.f32 %v5747_v43, 0.0  ;;  %5315 = vmatmul.bf16.gmra.mxu3 %v13015_v39  ;;  %v14512_v24 = vpack.c.bf16 %v5924_v3, %v5922_v9  ;;  %v10044_v3 = vld [vmem:[%s17157_s11 + $0xa8] sm:$0xf0]  ;;  %v17536_v43 = vld [vmem:[#allocation70_spill] sm:$0xff] }
 0x9ce   : > { %v5505_v47 = vpop.f32.mrf.mxu0  ;;  %v14514_v6 = vpop.f32.mrf.mxu1  ;;  %6405 = vmatpush.bf16.msrb.mxu1 %v10055_v51 }
 0x9cf   : > { %17534 = vst [vmem:[#allocation63_spill] sm:$0xff] %v14514_v6  ;;  %v5506_v8 = vadd.f32 %v5505_v47, %v14371_v40  ;;  %v14517_v59 = vpack.c.bf16 %v5939_v26, %v5937_v37  ;;  %v10873_v40 = vld [vmem:[%s17157_s11 + $0xa4] sm:$0xf] }
 0x9d0   : > { %v5276_v14 = vpop.f32.mrf.mxu3  ;;  %v10047_v37 = vor.u32 %v10873_v40, %v10044_v3  ;;  %v17538_v40 = vld [vmem:[#allocation72_spill] sm:$0xff]  ;;  %v10869_v6 = vld [vmem:[%s17157_s11 + $0x84] sm:$0xf] }
 0x9d1   : > { %17535 = vst [vmem:[#allocation65_spill] sm:$0xff] %v14517_v59  ;;  %5544 = vmatmul.bf16.gmra.mxu0 %v12941_v11  ;;  %6385 = vmatmul.bf16.gmra.mxu1 %v13995_v16  ;;  %v5277_v10 = vadd.f32 %v5276_v14, %v17536_v43  ;;  %v5734_v11 = vadd.f32 %v13913_v38, %v5506_v8  ;;  %v17539_v43 = vld [vmem:[#allocation74_spill] sm:$0xff] }
 0x9d2   : > { %6406 = vmatpush.bf16.msrb.mxu1 %v10047_v37  ;;  %v10039_v8 = vor.u32 %v10871_v63, %v10036_v52 }
 0x9d3   : > { %v5749_v14 = vadd.f32 %v13834_v34, %v5277_v10  ;;  %v10028_v10 = vld [vmem:[%s17157_s11 + $0x88] sm:$0xf0] }
 0x9d4   : > { %v14527_v9 = vpop.f32.mrf.mxu2  ;;  %v10031_v63 = vor.u32 %v10869_v6, %v10028_v10 }
 0x9d6   : > { %v5507_v26 = vpop.f32.mrf.mxu0  ;;  %v14536_v2 = vpop.f32.mrf.mxu1  ;;  %6407 = vmatpush.bf16.msrb.mxu1 %v10039_v8  ;;  %v17542_v8 = vld [vmem:[#allocation73_spill] sm:$0xff] }
 0x9d7   : > { %17537 = vst [vmem:[#allocation64_spill] sm:$0xff] %v14536_v2  ;;  %v5508_v16 = vadd.f32 %v5507_v26, %v14395_v48  ;;  %v5926_v48 = vmax.f32 %v5734_v11, 0.0 }
 0x9d8   : > { %v5278_v47 = vpop.f32.mrf.mxu3 }
 0x9d9   : > { %v5736_v51 = vadd.f32 %v13913_v38, %v5508_v16  ;;  %v5279_v3 = vadd.f32 %v5278_v47, %v17538_v40  ;;  %4991 = vmatmul.bf16.gmra.mxu2 %v17539_v43  ;;  %v5941_v16 = vmax.f32 %v5749_v14, 0.0 }
 0x9da   : > { %6408 = vmatpush.bf16.msrb.mxu1 %v10031_v63  ;;  %v17544_v63 = vld [vmem:[#allocation76_spill] sm:$0xff] }
 0x9db   : > { %v5928_v26 = vmax.f32 %v5736_v51, 0.0  ;;  %v5751_v37 = vadd.f32 %v13834_v34, %v5279_v3 }
 0x9dc   : > { %v14551_v2 = vpop.f32.mrf.mxu2 }
 0x9dd   : > { %v5943_v47 = vmax.f32 %v5751_v37, 0.0  ;;  %5320 = vmatmul.bf16.gmra.mxu3 %v13029_v5  ;;  %v14560_v11 = vpack.c.bf16 %v5928_v26, %v5926_v48 }
 0x9de   : > { %v5510_v52 = vpop.f32.mrf.mxu0  ;;  %v14562_v51 = vpop.f32.mrf.mxu1 }
 0x9df   : > { %17540 = vst [vmem:[#allocation66_spill] sm:$0xff] %v14562_v51  ;;  %v5511_v40 = vadd.f32 %v5510_v52, %v14413_v21  ;;  %v14565_v3 = vpack.c.bf16 %v5943_v47, %v5941_v16 }
 0x9e0   : > { %v5281_v43 = vpop.f32.mrf.mxu3 }
 0x9e1   : > { %17541 = vst [vmem:[#allocation68_spill] sm:$0xff] %v14565_v3  ;;  %5549 = vmatmul.bf16.gmra.mxu0 %v12955_v54  ;;  %6390 = vmatmul.bf16.gmra.mxu1 %v14049_v29  ;;  %v5282_v37 = vadd.f32 %v5281_v43, %v17542_v8  ;;  %v5738_v26 = vadd.f32 %v13913_v38, %v5511_v40 }
 0x9e3   : > { %v5753_v16 = vadd.f32 %v13834_v34, %v5282_v37  ;;  %v5930_v29 = vmax.f32 %v5738_v26, 0.0 }
 0x9e4   : > { %v14569_v14 = vpop.f32.mrf.mxu2 }
 0x9e6   : > { %v5512_v6 = vpop.f32.mrf.mxu0  ;;  %v14572_v48 = vpop.f32.mrf.mxu1 }
 0x9e7   : > { %17543 = vst [vmem:[#allocation67_spill] sm:$0xff] %v14572_v48  ;;  %v5513_v10 = vadd.f32 %v5512_v6, %v14425_v1  ;;  %v5945_v48 = vmax.f32 %v5753_v16, 0.0  ;;  %v10106_v1 = vld [vmem:[%s17157_s11 + $0x120] sm:$0xf] }
 0x9e8   : > { %v5283_v21 = vpop.f32.mrf.mxu3 }
 0x9e9   : > { %v5740_v47 = vadd.f32 %v13913_v38, %v5513_v10  ;;  %v5284_v54 = vadd.f32 %v5283_v21, %v13530_v0  ;;  %4996 = vmatmul.bf16.gmra.mxu2 %v17544_v63  ;;  %v10890_v0 = vld [vmem:[%s17157_s11 + $0x124] sm:$0xf0]  ;;  %v10170_v10 = vld [vmem:[%s17157_s11 + $0x1a0] sm:$0xf] }
 0x9ea   : > { %v10107_v26 = vor.u32 %v10890_v0, %v10106_v1  ;;  %v10906_v21 = vld [vmem:[%s17157_s11 + $0x1a4] sm:$0xf0]  ;;  %v10889_v1 = vld [vmem:[%s17157_s11 + $0x124] sm:$0xf] }
 0x9eb   : > { %v5932_v52 = vmax.f32 %v5740_v47, 0.0  ;;  %v5755_v43 = vadd.f32 %v13834_v34, %v5284_v54  ;;  %v10171_v47 = vor.u32 %v10906_v21, %v10170_v10 }
 0x9ec   : > { %v14581_v8 = vpop.f32.mrf.mxu2  ;;  %6700 = vmatpush.bf16.msra.mxu2 %v10107_v26 }
 0x9ed   : > { %v5947_v51 = vmax.f32 %v5755_v43, 0.0  ;;  %5325 = vmatmul.bf16.gmra.mxu3 %v13045_v31  ;;  %v14590_v40 = vpack.c.bf16 %v5932_v52, %v5930_v29  ;;  %v17547_v52 = vld [vmem:[#allocation75_spill] sm:$0xff] }
 0x9ee   : > { %v5515_v37 = vpop.f32.mrf.mxu0  ;;  %v14592_v6 = vpop.f32.mrf.mxu1  ;;  %6749 = vmatpush.bf16.msrb.mxu3 %v10171_v47  ;;  %v17549_v47 = vld [vmem:[#allocation78_spill] sm:$0xff] }
 0x9ef   : > { %17545 = vst [vmem:[#allocation69_spill] sm:$0xff] %v14592_v6  ;;  %v5516_v16 = vadd.f32 %v5515_v37, %v14437_v27  ;;  %v14601_v54 = vpack.c.bf16 %v5947_v51, %v5945_v48  ;;  %v10108_v27 = vld [vmem:[%s17157_s11 + $0x128] sm:$0xf0] }
 0x9f0   : > { %v5286_v63 = vpop.f32.mrf.mxu3  ;;  %v10111_v0 = vor.u32 %v10889_v1, %v10108_v27 }
 0x9f1   : > { %17546 = vst [vmem:[#allocation71_spill] sm:$0xff] %v14601_v54  ;;  %5554 = vmatmul.bf16.gmra.mxu0 %v12975_v42  ;;  %6395 = vmatmul.bf16.gmra.mxu1 %v14073_v49  ;;  %v5287_v43 = vadd.f32 %v5286_v63, %v17547_v52  ;;  %v5742_v42 = vadd.f32 %v13913_v38, %v5516_v16 }
 0x9f2   : > { %6798 = vmatpush.bf16.msrb.mxu0 %v10111_v0 }
 0x9f3   : > { %v5757_v26 = vadd.f32 %v13834_v34, %v5287_v43  ;;  %v5934_v63 = vmax.f32 %v5742_v42, 0.0 }
 0x9f4   : > { %v14605_v29 = vpop.f32.mrf.mxu2 }
 0x9f5   : > { %v5949_v1 = vmax.f32 %v5757_v26, 0.0 }
 0x9f6   : > { %v5517_v51 = vpop.f32.mrf.mxu0  ;;  %v14614_v48 = vpop.f32.mrf.mxu1 }
 0x9f7   : > { %17548 = vst [vmem:[#allocation70_spill] sm:$0xff] %v14614_v48  ;;  %v5518_v49 = vadd.f32 %v5517_v51, %v14449_v55 }
 0x9f8   : > { %v5288_v37 = vpop.f32.mrf.mxu3 }
 0x9f9   : > { %v5744_v10 = vadd.f32 %v13913_v38, %v5518_v49  ;;  %v5289_v21 = vadd.f32 %v5288_v37, %v13556_v28  ;;  %5001 = vmatmul.bf16.gmra.mxu2 %v17549_v47  ;;  %v17551_v49 = vld [vmem:[#allocation77_spill] sm:$0xff] }
 0x9fb   : > { %v5936_v52 = vmax.f32 %v5744_v10, 0.0  ;;  %v5759_v6 = vadd.f32 %v13834_v34, %v5289_v21 }
 0x9fc   : > { %v14623_v48 = vpop.f32.mrf.mxu2 }
 0x9fd   : > { %v5951_v16 = vmax.f32 %v5759_v6, 0.0  ;;  %5330 = vmatmul.bf16.gmra.mxu3 %v13063_v58  ;;  %v14626_v55 = vpack.c.bf16 %v5936_v52, %v5934_v63 }
 0x9fe   : > { %v5520_v27 = vpop.f32.mrf.mxu0  ;;  %v14628_v43 = vpop.f32.mrf.mxu1 }
 0x9ff   : > { %v14630_v51 = vpack.c.bf16 %v5951_v16, %v5949_v1  ;;  %v5521_v28 = vadd.f32 %v5520_v27, %v14461_v46 }
 0xa00   : > { %v5291_v0 = vpop.f32.mrf.mxu3 }
 0xa01   : > { %17550 = vst [vmem:[#allocation72_spill] sm:$0xff] %v14630_v51  ;;  %5559 = vmatmul.bf16.gmra.mxu0 %v12989_v20  ;;  %6409 = vmatmul.bf16.vlgmr.msrb.gmra.mxu1 %v13929_v50  ;;  %v5292_v6 = vadd.f32 %v5291_v0, %v17551_v49  ;;  %v5746_v10 = vadd.f32 %v13913_v38, %v5521_v28 }
 0xa03   : > { %v5761_v63 = vadd.f32 %v13834_v34, %v5292_v6  ;;  %v5938_v50 = vmax.f32 %v5746_v10, 0.0  ;;  %v17554_v10 = vld [vmem:[#allocation79_spill] sm:$0xff] }
 0xa04   : > { %v14635_v42 = vpop.f32.mrf.mxu2 }
 0xa05   : > { %v5953_v27 = vmax.f32 %v5761_v63, 0.0 }
 0xa06   : > { %v5522_v37 = vpop.f32.mrf.mxu0  ;;  %v14638_v26 = vpop.f32.mrf.mxu1 }
 0xa07   : > { %v5523_v21 = vadd.f32 %v5522_v37, %v14479_v17 }
 0xa08   : > { %v5293_v47 = vpop.f32.mrf.mxu3 }
 0xa09   : > { %v5748_v46 = vadd.f32 %v13913_v38, %v5523_v21  ;;  %v5294_v20 = vadd.f32 %v5293_v47, %v13570_v35  ;;  %5006 = vmatmul.bf16.gmra.mxu2 %v13579_v60 }
 0xa0b   : > { %v5940_v52 = vmax.f32 %v5748_v46, 0.0  ;;  %v5763_v1 = vadd.f32 %v13834_v34, %v5294_v20 }
 0xa0c   : > { %v14647_v16 = vpop.f32.mrf.mxu2 }
 0xa0d   : > { %v5955_v0 = vmax.f32 %v5763_v1, 0.0  ;;  %5335 = vmatmul.bf16.gmra.mxu3 %v13092_v61  ;;  %v14650_v17 = vpack.c.bf16 %v5940_v52, %v5938_v50  ;;  %v17556_v1 = vld [vmem:[#allocation81_spill] sm:$0xff] }
 0xa0e   : > { %v5525_v28 = vpop.f32.mrf.mxu0  ;;  %v14652_v49 = vpop.f32.mrf.mxu1 }
 0xa0f   : > { %17552 = vst [vmem:[#allocation74_spill] sm:$0xff] %v14652_v49  ;;  %v5526_v6 = vadd.f32 %v5525_v28, %v14503_v18  ;;  %v14655_v35 = vpack.c.bf16 %v5955_v0, %v5953_v27 }
 0xa10   : > { %v5296_v60 = vpop.f32.mrf.mxu3 }
 0xa11   : > { %17553 = vst [vmem:[#allocation73_spill] sm:$0xff] %v14655_v35  ;;  %5564 = vmatmul.bf16.gmra.mxu0 %v13015_v39  ;;  %6414 = vmatmul.bf16.gmra.mxu1 %v13984_v62  ;;  %v5297_v21 = vadd.f32 %v5296_v60, %v17554_v10  ;;  %v5750_v46 = vadd.f32 %v13913_v38, %v5526_v6  ;;  %v17557_v6 = vld [vmem:[#allocation16_spill] sm:$0xff] }
 0xa13   : > { %v5765_v18 = vadd.f32 %v13834_v34, %v5297_v21  ;;  %v5942_v62 = vmax.f32 %v5750_v46, 0.0  ;;  %v17560_v46 = vld [vmem:[#allocation5_spill] sm:$0xff] }
 0xa14   : > { %v14659_v37 = vpop.f32.mrf.mxu2 }
 0xa15   : > { %v5957_v60 = vmax.f32 %v5765_v18, 0.0  ;;  %v17561_v18 = vld [vmem:[#allocation80_spill] sm:$0xff] }
 0xa16   : > { %v5527_v47 = vpop.f32.mrf.mxu0  ;;  %v14662_v63 = vpop.f32.mrf.mxu1 }
 0xa17   : > { %17555 = vst [vmem:[#allocation76_spill] sm:$0xff] %v14662_v63  ;;  %v5528_v20 = vadd.f32 %v5527_v47, %v14527_v9 }
 0xa18   : > { %v5298_v50 = vpop.f32.mrf.mxu3 }
 0xa19   : > { %v5752_v52 = vadd.f32 %v13913_v38, %v5528_v20  ;;  %v5299_v39 = vadd.f32 %v5298_v50, %v13584_v44  ;;  %5011 = vmatmul.bf16.gmra.mxu2 %v17556_v1 }
 0xa1b   : > { %v5944_v27 = vmax.f32 %v5752_v52, 0.0  ;;  %v5767_v0 = vadd.f32 %v13834_v34, %v5299_v39 }
 0xa1c   : > { %v14671_v28 = vpop.f32.mrf.mxu2 }
 0xa1d   : > { %v5959_v10 = vmax.f32 %v5767_v0, 0.0  ;;  %5340 = vmatmul.bf16.gmra.mxu3 %v17557_v6  ;;  %v14674_v9 = vpack.c.bf16 %v5944_v27, %v5942_v62 }
 0xa1e   : > { %v5530_v47 = vpop.f32.mrf.mxu0  ;;  %v14676_v21 = vpop.f32.mrf.mxu1 }
 0xa1f   : > { %17558 = vst [vmem:[#allocation75_spill] sm:$0xff] %v14676_v21  ;;  %v5531_v20 = vadd.f32 %v5530_v47, %v14551_v2  ;;  %v14679_v44 = vpack.c.bf16 %v5959_v10, %v5957_v60  ;;  %v17563_v10 = vld [vmem:[#allocation82_spill] sm:$0xff]  ;;  %v17564_v47 = vld [vmem:[#allocation84_spill] sm:$0xff] }
 0xa20   : > { %v5301_v50 = vpop.f32.mrf.mxu3 }
 0xa21   : > { %17559 = vst [vmem:[#allocation78_spill] sm:$0xff] %v14679_v44  ;;  %5569 = vmatmul.bf16.gmra.mxu0 %v13029_v5  ;;  %6419 = vmatmul.bf16.gmra.mxu1 %v17560_v46  ;;  %v5302_v39 = vadd.f32 %v5301_v50, %v17561_v18  ;;  %v5754_v62 = vadd.f32 %v13913_v38, %v5531_v20  ;;  %v17565_v20 = vld [vmem:[#allocation19_spill] sm:$0xff] }
 0xa23   : > { %v5769_v2 = vadd.f32 %v13834_v34, %v5302_v39  ;;  %v5946_v46 = vmax.f32 %v5754_v62, 0.0  ;;  %v17568_v62 = vld [vmem:[#allocation6_spill] sm:$0xff] }
 0xa24   : > { %v14683_v52 = vpop.f32.mrf.mxu2 }
 0xa25   : > { %v5961_v51 = vmax.f32 %v5769_v2, 0.0  ;;  %v17569_v2 = vld [vmem:[#allocation83_spill] sm:$0xff] }
 0xa26   : > { %v5532_v1 = vpop.f32.mrf.mxu0  ;;  %v14686_v0 = vpop.f32.mrf.mxu1 }
 0xa27   : > { %17562 = vst [vmem:[#allocation77_spill] sm:$0xff] %v14686_v0  ;;  %v5533_v27 = vadd.f32 %v5532_v1, %v14569_v14 }
 0xa28   : > { %v5303_v35 = vpop.f32.mrf.mxu3 }
 0xa29   : > { %v5756_v60 = vadd.f32 %v13913_v38, %v5533_v27  ;;  %v5304_v5 = vadd.f32 %v5303_v35, %v17563_v10  ;;  %5016 = vmatmul.bf16.gmra.mxu2 %v17564_v47 }
 0xa2b   : > { %v5948_v44 = vmax.f32 %v5756_v60, 0.0  ;;  %v5771_v50 = vadd.f32 %v13834_v34, %v5304_v5 }
 0xa2c   : > { %v14695_v18 = vpop.f32.mrf.mxu2 }
 0xa2d   : > { %v5963_v54 = vmax.f32 %v5771_v50, 0.0  ;;  %5345 = vmatmul.bf16.gmra.mxu3 %v17565_v20  ;;  %v14698_v14 = vpack.c.bf16 %v5948_v44, %v5946_v46 }
 0xa2e   : > { %v5535_v1 = vpop.f32.mrf.mxu0  ;;  %v14700_v39 = vpop.f32.mrf.mxu1 }
 0xa2f   : > { %17566 = vst [vmem:[#allocation79_spill] sm:$0xff] %v14700_v39  ;;  %v5536_v27 = vadd.f32 %v5535_v1, %v14581_v8  ;;  %v14703_v35 = vpack.c.bf16 %v5963_v54, %v5961_v51  ;;  %v17571_v51 = vld [vmem:[#allocation85_spill] sm:$0xff]  ;;  %v17572_v1 = vld [vmem:[#allocation87_spill] sm:$0xff] }
 0xa30   : > { %v5306_v10 = vpop.f32.mrf.mxu3 }
 0xa31   : > { %17567 = vst [vmem:[#allocation81_spill] sm:$0xff] %v14703_v35  ;;  %5574 = vmatmul.bf16.gmra.mxu0 %v13045_v31  ;;  %6424 = vmatmul.bf16.gmra.mxu1 %v17568_v62  ;;  %v5307_v5 = vadd.f32 %v5306_v10, %v17569_v2  ;;  %v5758_v44 = vadd.f32 %v13913_v38, %v5536_v27 }
 0xa33   : > { %v5773_v8 = vadd.f32 %v13834_v34, %v5307_v5  ;;  %v5950_v62 = vmax.f32 %v5758_v44, 0.0  ;;  %v10915_v44 = vld [vmem:[%s17157_s11 + $0x1f4] sm:$0xf] }
 0xa34   : > { %v14707_v60 = vpop.f32.mrf.mxu2 }
 0xa36   : > { %v5537_v47 = vpop.f32.mrf.mxu0  ;;  %v14710_v50 = vpop.f32.mrf.mxu1 }
 0xa37   : > { %17570 = vst [vmem:[#allocation16_spill] sm:$0xff] %v14710_v50  ;;  %v5538_v46 = vadd.f32 %v5537_v47, %v14605_v29  ;;  %v5965_v50 = vmax.f32 %v5773_v8, 0.0  ;;  %v17573_v29 = vld [vmem:[#allocation21_spill] sm:$0xff] }
 0xa38   : > { %v5308_v39 = vpop.f32.mrf.mxu3 }
 0xa39   : > { %v5760_v54 = vadd.f32 %v13913_v38, %v5538_v46  ;;  %v5309_v31 = vadd.f32 %v5308_v39, %v17571_v51  ;;  %5021 = vmatmul.bf16.gmra.mxu2 %v17572_v1 }
 0xa3b   : > { %v5952_v35 = vmax.f32 %v5760_v54, 0.0  ;;  %v5775_v10 = vadd.f32 %v13834_v34, %v5309_v31  ;;  %v17576_v31 = vld [vmem:[#allocation86_spill] sm:$0xff] }
 0xa3c   : > { %v14719_v2 = vpop.f32.mrf.mxu2 }
 0xa3d   : > { %v14721_v0 = vpack.c.bf16 %v5952_v35, %v5950_v62  ;;  %v5967_v27 = vmax.f32 %v5775_v10, 0.0  ;;  %5350 = vmatmul.bf16.gmra.mxu3 %v17573_v29  ;;  %v10212_v35 = vld [vmem:[%s17157_s11 + $0x1f8] sm:$0xf0] }
 0xa3e   : > { %v5540_v47 = vpop.f32.mrf.mxu0  ;;  %v14724_v5 = vpop.f32.mrf.mxu1  ;;  %v10215_v8 = vor.u32 %v10915_v44, %v10212_v35  ;;  %v10911_v44 = vld [vmem:[%s17157_s11 + $0x1d4] sm:$0xf]  ;;  %v10196_v35 = vld [vmem:[%s17157_s11 + $0x1d8] sm:$0xf0] }
 0xa3f   : > { %17574 = vst [vmem:[#allocation5_spill] sm:$0xff] %v14724_v5  ;;  %v5541_v46 = vadd.f32 %v5540_v47, %v14623_v48  ;;  %v14727_v39 = vpack.c.bf16 %v5967_v27, %v5965_v50  ;;  %v10913_v48 = vld [vmem:[%s17157_s11 + $0x1e4] sm:$0xf]  ;;  %v10204_v50 = vld [vmem:[%s17157_s11 + $0x1e8] sm:$0xf0] }
 0xa40   : > { %v5311_v51 = vpop.f32.mrf.mxu3  ;;  %6842 = vmatpush.bf16.msra.mxu1 %v10215_v8  ;;  %v10207_v62 = vor.u32 %v10913_v48, %v10204_v50  ;;  %v17578_v48 = vld [vmem:[#allocation88_spill] sm:$0xff] }
 0xa41   : > { %17575 = vst [vmem:[#allocation80_spill] sm:$0xff] %v14727_v39  ;;  %5579 = vmatmul.bf16.gmra.mxu0 %v13063_v58  ;;  %6429 = vmatmul.bf16.gmra.mxu1 %v14092_v41  ;;  %v5312_v1 = vadd.f32 %v5311_v51, %v17576_v31  ;;  %v5762_v58 = vadd.f32 %v13913_v38, %v5541_v46  ;;  %v17579_v31 = vld [vmem:[#allocation90_spill] sm:$0xff] }
 0xa42   : > { %v10199_v46 = vor.u32 %v10911_v44, %v10196_v35  ;;  %v10888_v44 = vld [vmem:[%s17157_s11 + $0x114] sm:$0xf0] }
 0xa43   : > { %v5777_v51 = vadd.f32 %v13834_v34, %v5312_v1  ;;  %v10188_v1 = vld [vmem:[%s17157_s11 + $0x1c8] sm:$0xf0] }
 0xa44   : > { %v14737_v54 = vpop.f32.mrf.mxu2  ;;  %6843 = vmatpush.bf16.msra.mxu1 %v10207_v62 }
 0xa46   : > { %v5542_v10 = vpop.f32.mrf.mxu0  ;;  %v14746_v27 = vpop.f32.mrf.mxu1 }
 0xa47   : > { %17577 = vst [vmem:[#allocation82_spill] sm:$0xff] %v14746_v27  ;;  %v5543_v41 = vadd.f32 %v5542_v10, %v14635_v42  ;;  %v5954_v42 = vmax.f32 %v5762_v58, 0.0  ;;  %v10909_v27 = vld [vmem:[%s17157_s11 + $0x1c4] sm:$0xf]  ;;  %v10098_v58 = vld [vmem:[%s17157_s11 + $0x110] sm:$0xf] }
 0xa48   : > { %v5313_v47 = vpop.f32.mrf.mxu3  ;;  %6844 = vmatpush.bf16.msra.mxu1 %v10199_v46  ;;  %v10191_v35 = vor.u32 %v10909_v27, %v10188_v1  ;;  %v10099_v46 = vor.u32 %v10888_v44, %v10098_v58  ;;  %v17583_v58 = vld [vmem:[#allocation89_spill] sm:$0xff] }
 0xa49   : > { %v5764_v8 = vadd.f32 %v13913_v38, %v5543_v41  ;;  %v5314_v50 = vadd.f32 %v5313_v47, %v17578_v48  ;;  %5026 = vmatmul.bf16.gmra.mxu2 %v17579_v31  ;;  %v5969_v41 = vmax.f32 %v5777_v51, 0.0  ;;  %v17580_v48 = vld [vmem:[#allocation24_spill] sm:$0xff]  ;;  %v10162_v51 = vld [vmem:[%s17157_s11 + $0x190] sm:$0xf] }
 0xa4a   : > { %6701 = vmatpush.bf16.msra.mxu2 %v10099_v46 }
 0xa4b   : > { %v5956_v62 = vmax.f32 %v5764_v8, 0.0  ;;  %v5779_v10 = vadd.f32 %v13834_v34, %v5314_v50 }
 0xa4c   : > { %v14761_v39 = vpop.f32.mrf.mxu2  ;;  %6845 = vmatpush.bf16.msra.mxu1 %v10191_v35 }
 0xa4d   : > { %v5971_v47 = vmax.f32 %v5779_v10, 0.0  ;;  %5355 = vmatmul.bf16.gmra.mxu3 %v17580_v48  ;;  %v14776_v8 = vpack.c.bf16 %v5956_v62, %v5954_v42  ;;  %v10904_v10 = vld [vmem:[%s17157_s11 + $0x194] sm:$0xf0]  ;;  %v10907_v42 = vld [vmem:[%s17157_s11 + $0x1b4] sm:$0xf] }
 0xa4e   : > { %v5545_v50 = vpop.f32.mrf.mxu0  ;;  %v14778_v31 = vpop.f32.mrf.mxu1  ;;  %v10163_v21 = vor.u32 %v10904_v10, %v10162_v51  ;;  %v10180_v62 = vld [vmem:[%s17157_s11 + $0x1b8] sm:$0xf0] }
 0xa4f   : > { %17581 = vst [vmem:[#allocation84_spill] sm:$0xff] %v14778_v31  ;;  %v5546_v5 = vadd.f32 %v5545_v50, %v14647_v16  ;;  %v14787_v3 = vpack.c.bf16 %v5971_v47, %v5969_v41  ;;  %v10183_v1 = vor.u32 %v10907_v42, %v10180_v62  ;;  %v10905_v41 = vld [vmem:[%s17157_s11 + $0x1a4] sm:$0xf]  ;;  %v10172_v47 = vld [vmem:[%s17157_s11 + $0x1a8] sm:$0xf0] }
 0xa50   : > { %v5316_v27 = vpop.f32.mrf.mxu3  ;;  %6750 = vmatpush.bf16.msrb.mxu3 %v10163_v21  ;;  %v10175_v21 = vor.u32 %v10905_v41, %v10172_v47  ;;  %v10164_v62 = vld [vmem:[%s17157_s11 + $0x198] sm:$0xf0]  ;;  %v17585_v47 = vld [vmem:[#allocation91_spill] sm:$0xff] }
 0xa51   : > { %17582 = vst [vmem:[#allocation19_spill] sm:$0xff] %v14787_v3  ;;  %5584 = vmatmul.bf16.gmra.mxu0 %v13092_v61  ;;  %6434 = vmatmul.bf16.gmra.mxu1 %v14116_v25  ;;  %v5317_v44 = vadd.f32 %v5316_v27, %v17583_v58  ;;  %v10887_v61 = vld [vmem:[%s17157_s11 + $0x114] sm:$0xf]  ;;  %v10100_v25 = vld [vmem:[%s17157_s11 + $0x118] sm:$0xf0]  ;;  %v5766_v51 = vadd.f32 %v13913_v38, %v5546_v5 }
 0xa52   : > { %6846 = vmatpush.bf16.msra.mxu1 %v10183_v1  ;;  %v10103_v46 = vor.u32 %v10887_v61, %v10100_v25  ;;  %v10903_v27 = vld [vmem:[%s17157_s11 + $0x194] sm:$0xf] }
 0xa53   : > { %v5781_v1 = vadd.f32 %v13834_v34, %v5317_v44  ;;  %v17586_v5 = vld [vmem:[#allocation93_spill] sm:$0xff]  ;;  %v5958_v61 = vmax.f32 %v5766_v51, 0.0  ;;  %v10156_v44 = vld [vmem:[%s17157_s11 + $0x188] sm:$0xf0] }
 0xa54   : > { %v14797_v16 = vpop.f32.mrf.mxu2  ;;  %6799 = vmatpush.bf16.msrb.mxu0 %v10103_v46  ;;  %v10901_v46 = vld [vmem:[%s17157_s11 + $0x184] sm:$0xf] }
 0xa56   : > { %v5547_v35 = vpop.f32.mrf.mxu0  ;;  %v14812_v50 = vpop.f32.mrf.mxu1  ;;  %6847 = vmatpush.bf16.msra.mxu1 %v10175_v21 }
 0xa57   : > { %17584 = vst [vmem:[#allocation6_spill] sm:$0xff] %v14812_v50  ;;  %v5548_v10 = vadd.f32 %v5547_v35, %v14659_v37  ;;  %v10167_v37 = vor.u32 %v10903_v27, %v10164_v62  ;;  %v10159_v27 = vor.u32 %v10901_v46, %v10156_v44 }
 0xa58   : > { %v5318_v42 = vpop.f32.mrf.mxu3 }
 0xa59   : > { %v5768_v41 = vadd.f32 %v13913_v38, %v5548_v10  ;;  %v5319_v58 = vadd.f32 %v5318_v42, %v17585_v47  ;;  %5031 = vmatmul.bf16.gmra.mxu2 %v17586_v5  ;;  %v5973_v10 = vmax.f32 %v5781_v1, 0.0  ;;  %v17587_v47 = vld [vmem:[#allocation27_spill] sm:$0xff] }
 0xa5a   : > { %6848 = vmatpush.bf16.msra.mxu1 %v10167_v37 }
 0xa5b   : > { %v5960_v25 = vmax.f32 %v5768_v41, 0.0  ;;  %v5783_v21 = vadd.f32 %v13834_v34, %v5319_v58 }
 0xa5c   : > { %v14827_v35 = vpop.f32.mrf.mxu2 }
 0xa5d   : > { %v5975_v42 = vmax.f32 %v5783_v21, 0.0  ;;  %5360 = vmatmul.bf16.gmra.mxu3 %v17587_v47  ;;  %v14836_v51 = vpack.c.bf16 %v5960_v25, %v5958_v61  ;;  %v17590_v21 = vld [vmem:[#allocation92_spill] sm:$0xff] }
 0xa5e   : > { %v5550_v62 = vpop.f32.mrf.mxu0  ;;  %v14838_v41 = vpop.f32.mrf.mxu1  ;;  %6849 = vmatpush.bf16.msra.mxu1 %v10159_v27  ;;  %v17592_v27 = vld [vmem:[#allocation94_spill] sm:$0xff] }
 0xa5f   : > { %17588 = vst [vmem:[#allocation83_spill] sm:$0xff] %v14838_v41  ;;  %v5551_v58 = vadd.f32 %v5550_v62, %v14671_v28  ;;  %v14841_v5 = vpack.c.bf16 %v5975_v42, %v5973_v10  ;;  %v17593_v62 = vld [vmem:[#allocation96_spill] sm:$0xff] }
 0xa60   : > { %v5321_v37 = vpop.f32.mrf.mxu3 }
 0xa61   : > { %17589 = vst [vmem:[#allocation85_spill] sm:$0xff] %v14841_v5  ;;  %5589 = vmatmul.bf16.gmra.mxu0 %v17557_v6  ;;  %6439 = vmatmul.bf16.gmra.mxu1 %v14140_v22  ;;  %v5322_v3 = vadd.f32 %v5321_v37, %v17590_v21  ;;  %v5770_v25 = vadd.f32 %v13913_v38, %v5551_v58  ;;  %v17594_v58 = vld [vmem:[#allocation30_spill] sm:$0xff] }
 0xa63   : > { %v5785_v10 = vadd.f32 %v13834_v34, %v5322_v3  ;;  %v5962_v22 = vmax.f32 %v5770_v25, 0.0 }
 0xa64   : > { %v14845_v1 = vpop.f32.mrf.mxu2 }
 0xa66   : > { %v5552_v46 = vpop.f32.mrf.mxu0  ;;  %v14848_v61 = vpop.f32.mrf.mxu1 }
 0xa67   : > { %17591 = vst [vmem:[#allocation87_spill] sm:$0xff] %v14848_v61  ;;  %v5553_v44 = vadd.f32 %v5552_v46, %v14683_v52  ;;  %v5977_v61 = vmax.f32 %v5785_v10, 0.0  ;;  %v17597_v10 = vld [vmem:[#allocation95_spill] sm:$0xff] }
 0xa68   : > { %v5323_v28 = vpop.f32.mrf.mxu3 }
 0xa69   : > { %v5772_v42 = vadd.f32 %v13913_v38, %v5553_v44  ;;  %v5324_v6 = vadd.f32 %v5323_v28, %v17592_v27  ;;  %5036 = vmatmul.bf16.gmra.mxu2 %v17593_v62 }
 0xa6b   : > { %v5964_v5 = vmax.f32 %v5772_v42, 0.0  ;;  %v5787_v37 = vadd.f32 %v13834_v34, %v5324_v6 }
 0xa6c   : > { %v14857_v21 = vpop.f32.mrf.mxu2 }
 0xa6d   : > { %v5979_v41 = vmax.f32 %v5787_v37, 0.0  ;;  %5365 = vmatmul.bf16.gmra.mxu3 %v17594_v58  ;;  %v14860_v52 = vpack.c.bf16 %v5964_v5, %v5962_v22 }
 0xa6e   : > { %v5555_v46 = vpop.f32.mrf.mxu0  ;;  %v14862_v3 = vpop.f32.mrf.mxu1 }
 0xa6f   : > { %17595 = vst [vmem:[#allocation21_spill] sm:$0xff] %v14862_v3  ;;  %v5556_v44 = vadd.f32 %v5555_v46, %v14695_v18  ;;  %v14865_v28 = vpack.c.bf16 %v5979_v41, %v5977_v61  ;;  %v17599_v61 = vld [vmem:[#allocation97_spill] sm:$0xff]  ;;  %v17600_v46 = vld [vmem:[#allocation99_spill] sm:$0xff] }
 0xa70   : > { %v5326_v27 = vpop.f32.mrf.mxu3 }
 0xa71   : > { %17596 = vst [vmem:[#allocation86_spill] sm:$0xff] %v14865_v28  ;;  %5594 = vmatmul.bf16.gmra.mxu0 %v17565_v20  ;;  %6444 = vmatmul.bf16.gmra.mxu1 %v14170_v4  ;;  %v5327_v42 = vadd.f32 %v5326_v27, %v17597_v10  ;;  %v5774_v5 = vadd.f32 %v13913_v38, %v5556_v44  ;;  %v17601_v44 = vld [vmem:[#allocation33_spill] sm:$0xff] }
 0xa73   : > { %v5789_v18 = vadd.f32 %v13834_v34, %v5327_v42  ;;  %v5966_v4 = vmax.f32 %v5774_v5, 0.0 }
 0xa74   : > { %v14869_v25 = vpop.f32.mrf.mxu2 }
 0xa76   : > { %v5557_v6 = vpop.f32.mrf.mxu0  ;;  %v14872_v62 = vpop.f32.mrf.mxu1 }
 0xa77   : > { %17598 = vst [vmem:[#allocation88_spill] sm:$0xff] %v14872_v62  ;;  %v5558_v22 = vadd.f32 %v5557_v6, %v14707_v60  ;;  %v5981_v62 = vmax.f32 %v5789_v18, 0.0  ;;  %v17604_v18 = vld [vmem:[#allocation98_spill] sm:$0xff] }
 0xa78   : > { %v5328_v37 = vpop.f32.mrf.mxu3 }
 0xa79   : > { %v5776_v41 = vadd.f32 %v13913_v38, %v5558_v22  ;;  %v5329_v20 = vadd.f32 %v5328_v37, %v17599_v61  ;;  %5041 = vmatmul.bf16.gmra.mxu2 %v17600_v46 }
 0xa7b   : > { %v5968_v28 = vmax.f32 %v5776_v41, 0.0  ;;  %v5791_v27 = vadd.f32 %v13834_v34, %v5329_v20 }
 0xa7c   : > { %v14881_v10 = vpop.f32.mrf.mxu2 }
 0xa7d   : > { %v5983_v3 = vmax.f32 %v5791_v27, 0.0  ;;  %5370 = vmatmul.bf16.gmra.mxu3 %v17601_v44  ;;  %v14884_v60 = vpack.c.bf16 %v5968_v28, %v5966_v4  ;;  %v17605_v27 = vld [vmem:[#allocation100_spill] sm:$0xff] }
 0xa7e   : > { %v5560_v6 = vpop.f32.mrf.mxu0  ;;  %v14886_v42 = vpop.f32.mrf.mxu1 }
 0xa7f   : > { %17602 = vst [vmem:[#allocation90_spill] sm:$0xff] %v14884_v60  ;;  %v14888_v22 = vpack.c.bf16 %v5983_v3, %v5981_v62  ;;  %v5561_v37 = vadd.f32 %v5560_v6, %v14719_v2  ;;  %v17606_v6 = vld [vmem:[#allocation102_spill] sm:$0xff] }
 0xa80   : > { %v5331_v61 = vpop.f32.mrf.mxu3 }
 0xa81   : > { %17603 = vst [vmem:[#allocation24_spill] sm:$0xff] %v14888_v22  ;;  %5599 = vmatmul.bf16.gmra.mxu0 %v17573_v29  ;;  %6850 = vmatmul.bf16.vlgmr.msra.gmra.mxu1 %v14205_v30  ;;  %v5332_v41 = vadd.f32 %v5331_v61, %v17604_v18  ;;  %v5778_v28 = vadd.f32 %v13913_v38, %v5561_v37  ;;  %v17607_v37 = vld [vmem:[#allocation36_spill] sm:$0xff] }
 0xa83   : > { %v5793_v62 = vadd.f32 %v13834_v34, %v5332_v41  ;;  %v5970_v22 = vmax.f32 %v5778_v28, 0.0  ;;  %v17611_v28 = vld [vmem:[#allocation12_spill] sm:$0xff] }
 0xa84   : > { %v14893_v5 = vpop.f32.mrf.mxu2 }
 0xa85   : > { %v5985_v31 = vmax.f32 %v5793_v62, 0.0  ;;  %v17612_v62 = vld [vmem:[#allocation101_spill] sm:$0xff] }
 0xa86   : > { %v5562_v20 = vpop.f32.mrf.mxu0  ;;  %v14896_v46 = vpop.f32.mrf.mxu1 }
 0xa87   : > { %v5563_v4 = vadd.f32 %v5562_v20, %v14737_v54 }
 0xa88   : > { %v5333_v3 = vpop.f32.mrf.mxu3 }
 0xa89   : > { %v5780_v2 = vadd.f32 %v13913_v38, %v5563_v4  ;;  %v5334_v29 = vadd.f32 %v5333_v3, %v17605_v27  ;;  %5046 = vmatmul.bf16.gmra.mxu2 %v17606_v6 }
 0xa8b   : > { %v5972_v50 = vmax.f32 %v5780_v2, 0.0  ;;  %v5795_v61 = vadd.f32 %v13834_v34, %v5334_v29 }
 0xa8c   : > { %v14905_v18 = vpop.f32.mrf.mxu2 }
 0xa8d   : > { %v5987_v63 = vmax.f32 %v5795_v61, 0.0  ;;  %5375 = vmatmul.bf16.gmra.mxu3 %v17607_v37  ;;  %v14908_v54 = vpack.c.bf16 %v5972_v50, %v5970_v22 }
 0xa8e   : > { %v5565_v20 = vpop.f32.mrf.mxu0  ;;  %v14910_v41 = vpop.f32.mrf.mxu1 }
 0xa8f   : > { %17608 = vst [vmem:[#allocation89_spill] sm:$0xff] %v14908_v54  ;;  %v5566_v4 = vadd.f32 %v5565_v20, %v14761_v39  ;;  %v14913_v3 = vpack.c.bf16 %v5987_v63, %v5985_v31  ;;  %v17614_v31 = vld [vmem:[#allocation103_spill] sm:$0xff]  ;;  %v17615_v20 = vld [vmem:[#allocation105_spill] sm:$0xff] }
 0xa90   : > { %17609 = vst [vmem:[#allocation91_spill] sm:$0xff] %v14910_v41  ;;  %v5336_v27 = vpop.f32.mrf.mxu3 }
 0xa91   : > { %17610 = vst [vmem:[#allocation93_spill] sm:$0xff] %v14913_v3  ;;  %5604 = vmatmul.bf16.gmra.mxu0 %v17580_v48  ;;  %6855 = vmatmul.bf16.gmra.mxu1 %v17611_v28  ;;  %v5337_v29 = vadd.f32 %v5336_v27, %v17612_v62  ;;  %v5782_v50 = vadd.f32 %v13913_v38, %v5566_v4  ;;  %v17616_v4 = vld [vmem:[#allocation39_spill] sm:$0xff] }
 0xa93   : > { %v5797_v63 = vadd.f32 %v13834_v34, %v5337_v29  ;;  %v5974_v3 = vmax.f32 %v5782_v50, 0.0  ;;  %v17620_v50 = vld [vmem:[#allocation47_spill] sm:$0xff] }
 0xa94   : > { %v14917_v2 = vpop.f32.mrf.mxu2 }
 0xa96   : > { %v5567_v6 = vpop.f32.mrf.mxu0  ;;  %v14920_v61 = vpop.f32.mrf.mxu1 }
 0xa97   : > { %17613 = vst [vmem:[#allocation27_spill] sm:$0xff] %v14920_v61  ;;  %v5568_v22 = vadd.f32 %v5567_v6, %v14797_v16  ;;  %v5989_v61 = vmax.f32 %v5797_v63, 0.0  ;;  %v17621_v63 = vld [vmem:[#allocation104_spill] sm:$0xff] }
 0xa98   : > { %v5338_v54 = vpop.f32.mrf.mxu3 }
 0xa99   : > { %v5784_v39 = vadd.f32 %v13913_v38, %v5568_v22  ;;  %v5339_v48 = vadd.f32 %v5338_v54, %v17614_v31  ;;  %5051 = vmatmul.bf16.gmra.mxu2 %v17615_v20 }
 0xa9b   : > { %v5976_v60 = vmax.f32 %v5784_v39, 0.0  ;;  %v5799_v27 = vadd.f32 %v13834_v34, %v5339_v48 }
 0xa9c   : > { %v14929_v62 = vpop.f32.mrf.mxu2 }
 0xa9d   : > { %v5991_v41 = vmax.f32 %v5799_v27, 0.0  ;;  %5380 = vmatmul.bf16.gmra.mxu3 %v17616_v4  ;;  %v14932_v16 = vpack.c.bf16 %v5976_v60, %v5974_v3 }
 0xa9e   : > { %v5570_v6 = vpop.f32.mrf.mxu0  ;;  %v14934_v29 = vpop.f32.mrf.mxu1 }
 0xa9f   : > { %17617 = vst [vmem:[#allocation92_spill] sm:$0xff] %v14932_v16  ;;  %v5571_v22 = vadd.f32 %v5570_v6, %v14827_v35  ;;  %v14937_v54 = vpack.c.bf16 %v5991_v41, %v5989_v61  ;;  %v17623_v61 = vld [vmem:[#allocation106_spill] sm:$0xff]  ;;  %v17624_v6 = vld [vmem:[#allocation108_spill] sm:$0xff] }
 0xaa0   : > { %17618 = vst [vmem:[#allocation94_spill] sm:$0xff] %v14934_v29  ;;  %v5341_v31 = vpop.f32.mrf.mxu3 }
 0xaa1   : > { %17619 = vst [vmem:[#allocation96_spill] sm:$0xff] %v14937_v54  ;;  %5609 = vmatmul.bf16.gmra.mxu0 %v17587_v47  ;;  %6860 = vmatmul.bf16.gmra.mxu1 %v17620_v50  ;;  %v5342_v48 = vadd.f32 %v5341_v31, %v17621_v63  ;;  %v5786_v60 = vadd.f32 %v13913_v38, %v5571_v22  ;;  %v17625_v22 = vld [vmem:[#allocation42_spill] sm:$0xff] }
 0xaa3   : > { %v5801_v35 = vadd.f32 %v13834_v34, %v5342_v48  ;;  %v5978_v54 = vmax.f32 %v5786_v60, 0.0 }
 0xaa4   : > { %v14941_v39 = vpop.f32.mrf.mxu2 }
 0xaa6   : > { %v5572_v20 = vpop.f32.mrf.mxu0  ;;  %v14944_v27 = vpop.f32.mrf.mxu1 }
 0xaa7   : > { %17622 = vst [vmem:[#allocation30_spill] sm:$0xff] %v14944_v27  ;;  %v5573_v3 = vadd.f32 %v5572_v20, %v14845_v1  ;;  %v5993_v27 = vmax.f32 %v5801_v35, 0.0  ;;  %v10090_v1 = vld [vmem:[%s17157_s11 + $0x100] sm:$0xf] }
 0xaa8   : > { %v5343_v16 = vpop.f32.mrf.mxu3  ;;  %v10154_v35 = vld [vmem:[%s17157_s11 + $0x180] sm:$0xf] }
 0xaa9   : > { %v5788_v41 = vadd.f32 %v13913_v38, %v5573_v3  ;;  %v5344_v47 = vadd.f32 %v5343_v16, %v17623_v61  ;;  %5056 = vmatmul.bf16.gmra.mxu2 %v17624_v6  ;;  %v10886_v16 = vld [vmem:[%s17157_s11 + $0x104] sm:$0xf0] }
 0xaaa   : > { %v10091_v3 = vor.u32 %v10886_v16, %v10090_v1  ;;  %v10885_v16 = vld [vmem:[%s17157_s11 + $0x104] sm:$0xf] }
 0xaab   : > { %v5980_v29 = vmax.f32 %v5788_v41, 0.0  ;;  %v5803_v31 = vadd.f32 %v13834_v34, %v5344_v47  ;;  %v10902_v41 = vld [vmem:[%s17157_s11 + $0x184] sm:$0xf0] }
 0xaac   : > { %v14953_v63 = vpop.f32.mrf.mxu2  ;;  %v10155_v47 = vor.u32 %v10902_v41, %v10154_v35  ;;  %6702 = vmatpush.bf16.msra.mxu2 %v10091_v3 }
 0xaad   : > { %v5995_v49 = vmax.f32 %v5803_v31, 0.0  ;;  %5385 = vmatmul.bf16.gmra.mxu3 %v17625_v22  ;;  %v14962_v48 = vpack.c.bf16 %v5980_v29, %v5978_v54  ;;  %v17629_v54 = vld [vmem:[#allocation107_spill] sm:$0xff] }
 0xaae   : > { %v5575_v20 = vpop.f32.mrf.mxu0  ;;  %v14964_v60 = vpop.f32.mrf.mxu1  ;;  %6751 = vmatpush.bf16.msrb.mxu3 %v10155_v47 }
 0xaaf   : > { %17626 = vst [vmem:[#allocation95_spill] sm:$0xff] %v14962_v48  ;;  %v5576_v61 = vadd.f32 %v5575_v20, %v14857_v21  ;;  %v14973_v6 = vpack.c.bf16 %v5995_v49, %v5993_v27  ;;  %v10092_v49 = vld [vmem:[%s17157_s11 + $0x108] sm:$0xf0] }
 0xab0   : > { %17627 = vst [vmem:[#allocation97_spill] sm:$0xff] %v14964_v60  ;;  %v5346_v31 = vpop.f32.mrf.mxu3  ;;  %v10095_v20 = vor.u32 %v10885_v16, %v10092_v49  ;;  %v17634_v49 = vld [vmem:[#allocation45_spill] sm:$0xff] }
 0xab1   : > { %17628 = vst [vmem:[#allocation99_spill] sm:$0xff] %v14973_v6  ;;  %5614 = vmatmul.bf16.gmra.mxu0 %v17594_v58  ;;  %6865 = vmatmul.bf16.gmra.mxu1 %v14326_v7  ;;  %v5347_v1 = vadd.f32 %v5346_v31, %v17629_v54  ;;  %v5790_v58 = vadd.f32 %v13913_v38, %v5576_v61  ;;  %v17631_v31 = vld [vmem:[#allocation109_spill] sm:$0xff]  ;;  %v17632_v6 = vld [vmem:[#allocation111_spill] sm:$0xff] }
 0xab2   : > { %6800 = vmatpush.bf16.msrb.mxu0 %v10095_v20 }
 0xab3   : > { %v5805_v41 = vadd.f32 %v13834_v34, %v5347_v1  ;;  %v5982_v48 = vmax.f32 %v5790_v58, 0.0  ;;  %v10947_v58 = vld [vmem:[%s17157_s11 + $0x2f4] sm:$0xf] }
 0xab4   : > { %v14977_v29 = vpop.f32.mrf.mxu2 }
 0xab5   : > { %v5997_v16 = vmax.f32 %v5805_v41, 0.0  ;;  %v17637_v41 = vld [vmem:[#allocation110_spill] sm:$0xff] }
 0xab6   : > { %v5577_v21 = vpop.f32.mrf.mxu0  ;;  %v14986_v27 = vpop.f32.mrf.mxu1 }
 0xab7   : > { %17630 = vst [vmem:[#allocation33_spill] sm:$0xff] %v14986_v27  ;;  %v5578_v3 = vadd.f32 %v5577_v21, %v14869_v25 }
 0xab8   : > { %v5348_v35 = vpop.f32.mrf.mxu3 }
 0xab9   : > { %v5792_v47 = vadd.f32 %v13913_v38, %v5578_v3  ;;  %v5349_v54 = vadd.f32 %v5348_v35, %v17631_v31  ;;  %5061 = vmatmul.bf16.gmra.mxu2 %v17632_v6  ;;  %v10332_v35 = vld [vmem:[%s17157_s11 + $0x2e8] sm:$0xf0] }
 0xabb   : > { %v5984_v60 = vmax.f32 %v5792_v47, 0.0  ;;  %v5807_v59 = vadd.f32 %v13834_v34, %v5349_v54 }
 0xabc   : > { %v14995_v27 = vpop.f32.mrf.mxu2 }
 0xabd   : > { %v14997_v61 = vpack.c.bf16 %v5984_v60, %v5982_v48  ;;  %v5999_v25 = vmax.f32 %v5807_v59, 0.0  ;;  %5390 = vmatmul.bf16.gmra.mxu3 %v17634_v49  ;;  %v10340_v48 = vld [vmem:[%s17157_s11 + $0x2f8] sm:$0xf0] }
 0xabe   : > { %v5580_v21 = vpop.f32.mrf.mxu0  ;;  %v15000_v1 = vpop.f32.mrf.mxu1  ;;  %v10343_v59 = vor.u32 %v10947_v58, %v10340_v48  ;;  %v10943_v58 = vld [vmem:[%s17157_s11 + $0x2d4] sm:$0xf]  ;;  %v10324_v48 = vld [vmem:[%s17157_s11 + $0x2d8] sm:$0xf0] }
 0xabf   : > { %17633 = vst [vmem:[#allocation98_spill] sm:$0xff] %v14997_v61  ;;  %v5581_v20 = vadd.f32 %v5580_v21, %v14881_v10  ;;  %v15003_v3 = vpack.c.bf16 %v5999_v25, %v5997_v16  ;;  %v10945_v10 = vld [vmem:[%s17157_s11 + $0x2e4] sm:$0xf] }
 0xac0   : > { %17635 = vst [vmem:[#allocation100_spill] sm:$0xff] %v15000_v1  ;;  %v5351_v6 = vpop.f32.mrf.mxu3  ;;  %7278 = vmatpush.bf16.msrb.mxu1 %v10343_v59  ;;  %v10335_v31 = vor.u32 %v10945_v10, %v10332_v35  ;;  %v17639_v10 = vld [vmem:[#allocation112_spill] sm:$0xff]  ;;  %v10941_v61 = vld [vmem:[%s17157_s11 + $0x2c4] sm:$0xf] }
 0xac1   : > { %17636 = vst [vmem:[#allocation102_spill] sm:$0xff] %v15003_v3  ;;  %5619 = vmatmul.bf16.gmra.mxu0 %v17601_v44  ;;  %6870 = vmatmul.bf16.gmra.mxu1 %v14350_v57  ;;  %v5352_v47 = vadd.f32 %v5351_v6, %v17637_v41  ;;  %v5794_v44 = vadd.f32 %v13913_v38, %v5581_v20  ;;  %v17640_v41 = vld [vmem:[#allocation114_spill] sm:$0xff] }
 0xac2   : > { %v10327_v20 = vor.u32 %v10943_v58, %v10324_v48 }
 0xac3   : > { %v5809_v6 = vadd.f32 %v13834_v34, %v5352_v47  ;;  %v10316_v47 = vld [vmem:[%s17157_s11 + $0x2c8] sm:$0xf0] }
 0xac4   : > { %v15013_v60 = vpop.f32.mrf.mxu2  ;;  %7279 = vmatpush.bf16.msrb.mxu1 %v10335_v31  ;;  %v10319_v58 = vor.u32 %v10941_v61, %v10316_v47 }
 0xac6   : > { %v5582_v54 = vpop.f32.mrf.mxu0  ;;  %v15022_v16 = vpop.f32.mrf.mxu1 }
 0xac7   : > { %17638 = vst [vmem:[#allocation36_spill] sm:$0xff] %v15022_v16  ;;  %v5583_v25 = vadd.f32 %v5582_v54, %v14893_v5  ;;  %v5986_v5 = vmax.f32 %v5794_v44, 0.0  ;;  %v10939_v16 = vld [vmem:[%s17157_s11 + $0x2b4] sm:$0xf] }
 0xac8   : > { %v5353_v21 = vpop.f32.mrf.mxu3  ;;  %7280 = vmatpush.bf16.msrb.mxu1 %v10327_v20 }
 0xac9   : > { %v5796_v59 = vadd.f32 %v13913_v38, %v5583_v25  ;;  %v5354_v35 = vadd.f32 %v5353_v21, %v17639_v10  ;;  %5066 = vmatmul.bf16.gmra.mxu2 %v17640_v41  ;;  %v6001_v25 = vmax.f32 %v5809_v6, 0.0  ;;  %v17641_v10 = vld [vmem:[#allocation48_spill] sm:$0xff]  ;;  %v10308_v6 = vld [vmem:[%s17157_s11 + $0x2b8] sm:$0xf0] }
 0xaca   : > { %v10311_v61 = vor.u32 %v10939_v16, %v10308_v6  ;;  %v10935_v6 = vld [vmem:[%s17157_s11 + $0x294] sm:$0xf] }
 0xacb   : > { %v5988_v54 = vmax.f32 %v5796_v59, 0.0  ;;  %v5811_v31 = vadd.f32 %v13834_v34, %v5354_v35 }
 0xacc   : > { %v15037_v3 = vpop.f32.mrf.mxu2  ;;  %7281 = vmatpush.bf16.msrb.mxu1 %v10319_v58 }
 0xacd   : > { %v6003_v21 = vmax.f32 %v5811_v31, 0.0  ;;  %5395 = vmatmul.bf16.gmra.mxu3 %v17641_v10  ;;  %v15046_v44 = vpack.c.bf16 %v5988_v54, %v5986_v5  ;;  %v10300_v54 = vld [vmem:[%s17157_s11 + $0x2a8] sm:$0xf0]  ;;  %v17645_v31 = vld [vmem:[#allocation113_spill] sm:$0xff] }
 0xace   : > { %v5585_v48 = vpop.f32.mrf.mxu0  ;;  %v15048_v59 = vpop.f32.mrf.mxu1 }
 0xacf   : > { %17642 = vst [vmem:[#allocation12_spill] sm:$0xff] %v15046_v44  ;;  %v5586_v35 = vadd.f32 %v5585_v48, %v14905_v18  ;;  %v15051_v41 = vpack.c.bf16 %v6003_v21, %v6001_v25  ;;  %v10937_v18 = vld [vmem:[%s17157_s11 + $0x2a4] sm:$0xf] }
 0xad0   : > { %17643 = vst [vmem:[#allocation101_spill] sm:$0xff] %v15048_v59  ;;  %v5356_v20 = vpop.f32.mrf.mxu3  ;;  %7282 = vmatpush.bf16.msrb.mxu1 %v10311_v61  ;;  %v10303_v25 = vor.u32 %v10937_v18, %v10300_v54  ;;  %v10292_v61 = vld [vmem:[%s17157_s11 + $0x298] sm:$0xf0]  ;;  %v17647_v54 = vld [vmem:[#allocation115_spill] sm:$0xff] }
 0xad1   : > { %17644 = vst [vmem:[#allocation103_spill] sm:$0xff] %v15051_v41  ;;  %5624 = vmatmul.bf16.gmra.mxu0 %v17607_v37  ;;  %6875 = vmatmul.bf16.gmra.mxu1 %v14380_v23  ;;  %v5357_v47 = vadd.f32 %v5356_v20, %v17645_v31  ;;  %v5798_v37 = vadd.f32 %v13913_v38, %v5586_v35  ;;  %v17648_v41 = vld [vmem:[#allocation117_spill] sm:$0xff] }
 0xad2   : > { %v10295_v35 = vor.u32 %v10935_v6, %v10292_v61 }
 0xad3   : > { %v5813_v20 = vadd.f32 %v13834_v34, %v5357_v47  ;;  %v10284_v47 = vld [vmem:[%s17157_s11 + $0x288] sm:$0xf0] }
 0xad4   : > { %v15061_v5 = vpop.f32.mrf.mxu2  ;;  %7283 = vmatpush.bf16.msrb.mxu1 %v10303_v25 }
 0xad6   : > { %v5587_v21 = vpop.f32.mrf.mxu0  ;;  %v15070_v58 = vpop.f32.mrf.mxu1 }
 0xad7   : > { %17646 = vst [vmem:[#allocation105_spill] sm:$0xff] %v15070_v58  ;;  %v5588_v16 = vadd.f32 %v5587_v21, %v14917_v2  ;;  %v5990_v2 = vmax.f32 %v5798_v37, 0.0  ;;  %v10933_v58 = vld [vmem:[%s17157_s11 + $0x284] sm:$0xf] }
 0xad8   : > { %v5358_v48 = vpop.f32.mrf.mxu3  ;;  %7284 = vmatpush.bf16.msrb.mxu1 %v10295_v35 }
 0xad9   : > { %v5800_v18 = vadd.f32 %v13913_v38, %v5588_v16  ;;  %v5359_v31 = vadd.f32 %v5358_v48, %v17647_v54  ;;  %5071 = vmatmul.bf16.gmra.mxu2 %v17648_v41  ;;  %v6005_v16 = vmax.f32 %v5813_v20, 0.0  ;;  %v17649_v54 = vld [vmem:[#allocation51_spill] sm:$0xff]  ;;  %v10287_v41 = vor.u32 %v10933_v58, %v10284_v47 }
 0xadb   : > { %v5992_v21 = vmax.f32 %v5800_v18, 0.0  ;;  %v5815_v25 = vadd.f32 %v13834_v34, %v5359_v31 }
 0xadc   : > { %v15085_v44 = vpop.f32.mrf.mxu2  ;;  %7285 = vmatpush.bf16.msrb.mxu1 %v10287_v41  ;;  %v17655_v41 = vld [vmem:[#allocation118_spill] sm:$0xff] }
 0xadd   : > { %v6007_v48 = vmax.f32 %v5815_v25, 0.0  ;;  %5400 = vmatmul.bf16.gmra.mxu3 %v17649_v54  ;;  %v15094_v37 = vpack.c.bf16 %v5992_v21, %v5990_v2  ;;  %v17653_v25 = vld [vmem:[#allocation116_spill] sm:$0xff] }
 0xade   : > { %v5590_v6 = vpop.f32.mrf.mxu0  ;;  %v15096_v61 = vpop.f32.mrf.mxu1 }
 0xadf   : > { %17650 = vst [vmem:[#allocation39_spill] sm:$0xff] %v15094_v37  ;;  %v5591_v18 = vadd.f32 %v5590_v6, %v14929_v62  ;;  %v15099_v31 = vpack.c.bf16 %v6007_v48, %v6005_v16  ;;  %v17656_v6 = vld [vmem:[#allocation29_spill] sm:$0xff] }
 0xae0   : > { %17651 = vst [vmem:[#allocation47_spill] sm:$0xff] %v15096_v61  ;;  %v5361_v35 = vpop.f32.mrf.mxu3 }
 0xae1   : > { %17652 = vst [vmem:[#allocation104_spill] sm:$0xff] %v15099_v31  ;;  %5629 = vmatmul.bf16.gmra.mxu0 %v17616_v4  ;;  %6880 = vmatmul.bf16.gmra.mxu1 %v14416_v19  ;;  %v5362_v59 = vadd.f32 %v5361_v35, %v17653_v25  ;;  %v5802_v21 = vadd.f32 %v13913_v38, %v5591_v18 }
 0xae3   : > { %v5817_v16 = vadd.f32 %v13834_v34, %v5362_v59  ;;  %v5994_v31 = vmax.f32 %v5802_v21, 0.0 }
 0xae4   : > { %v15103_v20 = vpop.f32.mrf.mxu2 }
 0xae6   : > { %v5592_v58 = vpop.f32.mrf.mxu0  ;;  %v15106_v2 = vpop.f32.mrf.mxu1 }
 0xae7   : > { %17654 = vst [vmem:[#allocation106_spill] sm:$0xff] %v15106_v2  ;;  %v5593_v47 = vadd.f32 %v5592_v58, %v14941_v39  ;;  %v6009_v2 = vmax.f32 %v5817_v16, 0.0  ;;  %v17660_v16 = vld [vmem:[#allocation119_spill] sm:$0xff] }
 0xae8   : > { %v5363_v62 = vpop.f32.mrf.mxu3 }
 0xae9   : > { %v5804_v48 = vadd.f32 %v13913_v38, %v5593_v47  ;;  %v5364_v4 = vadd.f32 %v5363_v62, %v17655_v41  ;;  %6703 = vmatmul.bf16.vlgmr.msra.gmra.mxu2 %v17656_v6 }
 0xaeb   : > { %v5996_v37 = vmax.f32 %v5804_v48, 0.0  ;;  %v5819_v35 = vadd.f32 %v13834_v34, %v5364_v4 }
 0xaec   : > { %v15115_v25 = vpop.f32.mrf.mxu2 }
 0xaed   : > { %v6011_v61 = vmax.f32 %v5819_v35, 0.0  ;;  %6752 = vmatmul.bf16.vlgmr.msrb.gmra.mxu3 %v14205_v30  ;;  %v15118_v39 = vpack.c.bf16 %v5996_v37, %v5994_v31  ;;  %v17663_v35 = vld [vmem:[#allocation32_spill] sm:$0xff] }
 0xaee   : > { %v5595_v18 = vpop.f32.mrf.mxu0  ;;  %v15120_v59 = vpop.f32.mrf.mxu1 }
 0xaef   : > { %17657 = vst [vmem:[#allocation108_spill] sm:$0xff] %v15118_v39  ;;  %v5596_v58 = vadd.f32 %v5595_v18, %v14953_v63  ;;  %v15123_v47 = vpack.c.bf16 %v6011_v61, %v6009_v2  ;;  %v17662_v2 = vld [vmem:[#allocation120_spill] sm:$0xff] }
 0xaf0   : > { %17658 = vst [vmem:[#allocation42_spill] sm:$0xff] %v15120_v59  ;;  %v5366_v62 = vpop.f32.mrf.mxu3 }
 0xaf1   : > { %17659 = vst [vmem:[#allocation107_spill] sm:$0xff] %v15123_v47  ;;  %5634 = vmatmul.bf16.gmra.mxu0 %v17625_v22  ;;  %6885 = vmatmul.bf16.gmra.mxu1 %v14440_v56  ;;  %v5367_v48 = vadd.f32 %v5366_v62, %v17660_v16  ;;  %v5806_v37 = vadd.f32 %v13913_v38, %v5596_v58 }
 0xaf3   : > { %v5821_v63 = vadd.f32 %v13834_v34, %v5367_v48  ;;  %v5998_v18 = vmax.f32 %v5806_v37, 0.0 }
 0xaf4   : > { %v15127_v21 = vpop.f32.mrf.mxu2 }
 0xaf5   : > { %v6013_v39 = vmax.f32 %v5821_v63, 0.0  ;;  %v17666_v63 = vld [vmem:[#allocation121_spill] sm:$0xff] }
 0xaf6   : > { %v5597_v41 = vpop.f32.mrf.mxu0  ;;  %v15130_v30 = vpop.f32.mrf.mxu1 }
 0xaf7   : > { %17661 = vst [vmem:[#allocation109_spill] sm:$0xff] %v15130_v30  ;;  %v5598_v31 = vadd.f32 %v5597_v41, %v14977_v29 }
 0xaf8   : > { %v5368_v4 = vpop.f32.mrf.mxu3 }
 0xaf9   : > { %v5808_v61 = vadd.f32 %v13913_v38, %v5598_v31  ;;  %v5369_v22 = vadd.f32 %v5368_v4, %v17662_v2  ;;  %6708 = vmatmul.bf16.gmra.mxu2 %v17663_v35 }
 0xafb   : > { %v6000_v47 = vmax.f32 %v5808_v61, 0.0  ;;  %v5823_v62 = vadd.f32 %v13834_v34, %v5369_v22 }
 0xafc   : > { %v15139_v16 = vpop.f32.mrf.mxu2 }
 0xafd   : > { %v6015_v30 = vmax.f32 %v5823_v62, 0.0  ;;  %6757 = vmatmul.bf16.gmra.mxu3 %v17611_v28  ;;  %v15142_v29 = vpack.c.bf16 %v6000_v47, %v5998_v18  ;;  %v17667_v18 = vld [vmem:[#allocation122_spill] sm:$0xff]  ;;  %v17668_v62 = vld [vmem:[#allocation35_spill] sm:$0xff] }
 0xafe   : > { %v5600_v58 = vpop.f32.mrf.mxu0  ;;  %v15144_v48 = vpop.f32.mrf.mxu1 }
 0xaff   : > { %17664 = vst [vmem:[#allocation111_spill] sm:$0xff] %v15142_v29  ;;  %v15146_v41 = vpack.c.bf16 %v6015_v30, %v6013_v39  ;;  %v5601_v31 = vadd.f32 %v5600_v58, %v14995_v27 }
 0xb00   : > { %v5371_v4 = vpop.f32.mrf.mxu3 }
 0xb01   : > { %17665 = vst [vmem:[#allocation45_spill] sm:$0xff] %v15146_v41  ;;  %5639 = vmatmul.bf16.gmra.mxu0 %v17634_v49  ;;  %7286 = vmatmul.bf16.vlgmr.msrb.gmra.mxu1 %v14463_v12  ;;  %v5372_v61 = vadd.f32 %v5371_v4, %v17666_v63  ;;  %v5810_v47 = vadd.f32 %v13913_v38, %v5601_v31  ;;  %v10932_v31 = vld [vmem:[%s17157_s11 + $0x274] sm:$0xf0] }
 0xb03   : > { %v5825_v30 = vadd.f32 %v13834_v34, %v5372_v61  ;;  %v6002_v58 = vmax.f32 %v5810_v47, 0.0 }
 0xb04   : > { %v15151_v37 = vpop.f32.mrf.mxu2 }
 0xb05   : > { %v6017_v29 = vmax.f32 %v5825_v30, 0.0 }
 0xb06   : > { %v5602_v2 = vpop.f32.mrf.mxu0  ;;  %v15154_v28 = vpop.f32.mrf.mxu1 }
 0xb07   : > { %v5603_v22 = vadd.f32 %v5602_v2, %v15013_v60  ;;  %v10274_v60 = vld [vmem:[%s17157_s11 + $0x270] sm:$0xf] }
 0xb08   : > { %v5373_v39 = vpop.f32.mrf.mxu3 }
 0xb09   : > { %v5812_v27 = vadd.f32 %v13913_v38, %v5603_v22  ;;  %v5374_v49 = vadd.f32 %v5373_v39, %v17667_v18  ;;  %6713 = vmatmul.bf16.gmra.mxu2 %v17668_v62  ;;  %v10275_v22 = vor.u32 %v10932_v31, %v10274_v60  ;;  %v10338_v39 = vld [vmem:[%s17157_s11 + $0x2f0] sm:$0xf]  ;;  %v10931_v60 = vld [vmem:[%s17157_s11 + $0x274] sm:$0xf] }
 0xb0b   : > { %v6004_v41 = vmax.f32 %v5812_v27, 0.0  ;;  %v5827_v4 = vadd.f32 %v13834_v34, %v5374_v49  ;;  %7131 = vmatpush.bf16.msrb.mxu2 %v10275_v22 }
 0xb0c   : > { %v15163_v63 = vpop.f32.mrf.mxu2 }
 0xb0d   : > { %v6019_v59 = vmax.f32 %v5827_v4, 0.0  ;;  %6762 = vmatmul.bf16.gmra.mxu3 %v17620_v50  ;;  %v15172_v61 = vpack.c.bf16 %v6004_v41, %v6002_v58  ;;  %v10948_v50 = vld [vmem:[%s17157_s11 + $0x2f4] sm:$0xf0]  ;;  %v17671_v58 = vld [vmem:[#allocation123_spill] sm:$0xff] }
 0xb0e   : > { %v5605_v2 = vpop.f32.mrf.mxu0  ;;  %v15174_v47 = vpop.f32.mrf.mxu1  ;;  %v10339_v27 = vor.u32 %v10948_v50, %v10338_v39 }
 0xb0f   : > { %17669 = vst [vmem:[#allocation110_spill] sm:$0xff] %v15172_v61  ;;  %v5606_v30 = vadd.f32 %v5605_v2, %v15037_v3  ;;  %v15183_v18 = vpack.c.bf16 %v6019_v59, %v6017_v29  ;;  %v10276_v3 = vld [vmem:[%s17157_s11 + $0x278] sm:$0xf0] }
 0xb10   : > { %v5376_v49 = vpop.f32.mrf.mxu3  ;;  %7180 = vmatpush.bf16.msra.mxu3 %v10339_v27  ;;  %v10279_v31 = vor.u32 %v10931_v60, %v10276_v3  ;;  %v17673_v27 = vld [vmem:[#allocation15_spill] sm:$0xff] }
 0xb11   : > { %17670 = vst [vmem:[#allocation112_spill] sm:$0xff] %v15183_v18  ;;  %5644 = vmatmul.bf16.gmra.mxu0 %v17641_v10  ;;  %7291 = vmatmul.bf16.gmra.mxu1 %v14512_v24  ;;  %v5377_v4 = vadd.f32 %v5376_v49, %v17671_v58  ;;  %v5814_v10 = vadd.f32 %v13913_v38, %v5606_v30  ;;  %v17674_v58 = vld [vmem:[#allocation38_spill] sm:$0xff] }
 0xb12   : > { %7229 = vmatpush.bf16.msra.mxu0 %v10279_v31 }
 0xb13   : > { %v5829_v39 = vadd.f32 %v13834_v34, %v5377_v4  ;;  %v6006_v18 = vmax.f32 %v5814_v10, 0.0  ;;  %v10930_v4 = vld [vmem:[%s17157_s11 + $0x264] sm:$0xf0] }
 0xb14   : > { %v15187_v41 = vpop.f32.mrf.mxu2 }
 0xb15   : > { %v6021_v60 = vmax.f32 %v5829_v39, 0.0 }
 0xb16   : > { %v5607_v59 = vpop.f32.mrf.mxu0  ;;  %v15196_v29 = vpop.f32.mrf.mxu1 }
 0xb17   : > { %17672 = vst [vmem:[#allocation114_spill] sm:$0xff] %v15196_v29  ;;  %v5608_v2 = vadd.f32 %v5607_v59, %v15061_v5  ;;  %v10266_v5 = vld [vmem:[%s17157_s11 + $0x260] sm:$0xf] }
 0xb18   : > { %v5378_v22 = vpop.f32.mrf.mxu3  ;;  %v10267_v10 = vor.u32 %v10930_v4, %v10266_v5 }
 0xb19   : > { %v5816_v50 = vadd.f32 %v13913_v38, %v5608_v2  ;;  %v5379_v49 = vadd.f32 %v5378_v22, %v17673_v27  ;;  %6718 = vmatmul.bf16.gmra.mxu2 %v17674_v58 }
 0xb1a   : > { %7132 = vmatpush.bf16.msrb.mxu2 %v10267_v10 }
 0xb1b   : > { %v6008_v61 = vmax.f32 %v5816_v50, 0.0  ;;  %v5831_v1 = vadd.f32 %v13834_v34, %v5379_v49  ;;  %v10929_v49 = vld [vmem:[%s17157_s11 + $0x264] sm:$0xf] }
 0xb1c   : > { %v15205_v29 = vpop.f32.mrf.mxu2 }
 0xb1d   : > { %v6023_v30 = vmax.f32 %v5831_v1, 0.0  ;;  %6767 = vmatmul.bf16.gmra.mxu3 %v14326_v7  ;;  %v15214_v3 = vpack.c.bf16 %v6008_v61, %v6006_v18  ;;  %v10330_v1 = vld [vmem:[%s17157_s11 + $0x2e0] sm:$0xf]  ;;  %v10946_v7 = vld [vmem:[%s17157_s11 + $0x2e4] sm:$0xf0]  ;;  %v17677_v18 = vld [vmem:[#allocation17_spill] sm:$0xff] }
 0xb1e   : > { %v5610_v59 = vpop.f32.mrf.mxu0  ;;  %v15216_v31 = vpop.f32.mrf.mxu1  ;;  %v10331_v22 = vor.u32 %v10946_v7, %v10330_v1  ;;  %v17679_v7 = vld [vmem:[#allocation3_spill] sm:$0xff] }
 0xb1f   : > { %17675 = vst [vmem:[#allocation48_spill] sm:$0xff] %v15214_v3  ;;  %v5611_v2 = vadd.f32 %v5610_v59, %v15085_v44  ;;  %v15225_v39 = vpack.c.bf16 %v6023_v30, %v6021_v60  ;;  %v10268_v44 = vld [vmem:[%s17157_s11 + $0x268] sm:$0xf0] }
 0xb20   : > { %v5381_v50 = vpop.f32.mrf.mxu3  ;;  %7181 = vmatpush.bf16.msra.mxu3 %v10331_v22  ;;  %v10271_v5 = vor.u32 %v10929_v49, %v10268_v44 }
 0xb21   : > { %17676 = vst [vmem:[#allocation113_spill] sm:$0xff] %v15225_v39  ;;  %5649 = vmatmul.bf16.gmra.mxu0 %v17649_v54  ;;  %7296 = vmatmul.bf16.gmra.mxu1 %v14560_v11  ;;  %v5382_v27 = vadd.f32 %v5381_v50, %v17677_v18  ;;  %v5818_v54 = vadd.f32 %v13913_v38, %v5611_v2  ;;  %v17680_v50 = vld [vmem:[#allocation41_spill] sm:$0xff] }
 0xb22   : > { %7230 = vmatpush.bf16.msra.mxu0 %v10271_v5 }
 0xb23   : > { %v5833_v10 = vadd.f32 %v13834_v34, %v5382_v27  ;;  %v6010_v18 = vmax.f32 %v5818_v54, 0.0  ;;  %v10928_v27 = vld [vmem:[%s17157_s11 + $0x254] sm:$0xf0] }
 0xb24   : > { %v15229_v61 = vpop.f32.mrf.mxu2 }
 0xb25   : > { %v6025_v49 = vmax.f32 %v5833_v10, 0.0 }
 0xb26   : > { %v5612_v60 = vpop.f32.mrf.mxu0  ;;  %v15238_v30 = vpop.f32.mrf.mxu1 }
 0xb27   : > { %17678 = vst [vmem:[#allocation115_spill] sm:$0xff] %v15238_v30  ;;  %v5613_v4 = vadd.f32 %v5612_v60, %v15103_v20  ;;  %v10258_v20 = vld [vmem:[%s17157_s11 + $0x250] sm:$0xf] }
 0xb28   : > { %v5383_v59 = vpop.f32.mrf.mxu3  ;;  %v10259_v54 = vor.u32 %v10928_v27, %v10258_v20 }
 0xb29   : > { %v5820_v1 = vadd.f32 %v13913_v38, %v5613_v4  ;;  %v5384_v22 = vadd.f32 %v5383_v59, %v17679_v7  ;;  %6723 = vmatmul.bf16.gmra.mxu2 %v17680_v50  ;;  %v10250_v7 = vld [vmem:[%s17157_s11 + $0x240] sm:$0xf] }
 0xb2a   : > { %7133 = vmatpush.bf16.msrb.mxu2 %v10259_v54 }
 0xb2b   : > { %v6012_v39 = vmax.f32 %v5820_v1, 0.0  ;;  %v5835_v3 = vadd.f32 %v13834_v34, %v5384_v22  ;;  %v17684_v22 = vld [vmem:[#allocation18_spill] sm:$0xff] }
 0xb2c   : > { %v15247_v30 = vpop.f32.mrf.mxu2 }
 0xb2d   : > { %v6027_v2 = vmax.f32 %v5835_v3, 0.0  ;;  %6772 = vmatmul.bf16.gmra.mxu3 %v14350_v57  ;;  %v15256_v44 = vpack.c.bf16 %v6012_v39, %v6010_v18  ;;  %v10322_v3 = vld [vmem:[%s17157_s11 + $0x2d0] sm:$0xf]  ;;  %v10944_v57 = vld [vmem:[%s17157_s11 + $0x2d4] sm:$0xf0] }
 0xb2e   : > { %v5615_v60 = vpop.f32.mrf.mxu0  ;;  %v15258_v5 = vpop.f32.mrf.mxu1  ;;  %v10323_v59 = vor.u32 %v10944_v57, %v10322_v3 }
 0xb2f   : > { %17681 = vst [vmem:[#allocation117_spill] sm:$0xff] %v15256_v44  ;;  %v5616_v4 = vadd.f32 %v5615_v60, %v15115_v25  ;;  %v15267_v10 = vpack.c.bf16 %v6027_v2, %v6025_v49  ;;  %v10926_v25 = vld [vmem:[%s17157_s11 + $0x244] sm:$0xf0]  ;;  %v10927_v49 = vld [vmem:[%s17157_s11 + $0x254] sm:$0xf] }
 0xb30   : > { %17682 = vst [vmem:[#allocation51_spill] sm:$0xff] %v15258_v5  ;;  %v5386_v1 = vpop.f32.mrf.mxu3  ;;  %7182 = vmatpush.bf16.msra.mxu3 %v10323_v59  ;;  %v10251_v2 = vor.u32 %v10926_v25, %v10250_v7  ;;  %v10314_v59 = vld [vmem:[%s17157_s11 + $0x2c0] sm:$0xf]  ;;  %v10242_v7 = vld [vmem:[%s17157_s11 + $0x230] sm:$0xf] }
 0xb31   : > { %17683 = vst [vmem:[#allocation116_spill] sm:$0xff] %v15267_v10  ;;  %6801 = vmatmul.bf16.vlgmr.msrb.gmra.mxu0 %v17656_v6  ;;  %7301 = vmatmul.bf16.gmra.mxu1 %v14590_v40  ;;  %v5387_v18 = vadd.f32 %v5386_v1, %v17684_v22  ;;  %v10260_v6 = vld [vmem:[%s17157_s11 + $0x258] sm:$0xf0]  ;;  %v5822_v54 = vadd.f32 %v13913_v38, %v5616_v4  ;;  %v10942_v1 = vld [vmem:[%s17157_s11 + $0x2c4] sm:$0xf0] }
 0xb32   : > { %v10263_v60 = vor.u32 %v10927_v49, %v10260_v6  ;;  %7134 = vmatpush.bf16.msrb.mxu2 %v10251_v2  ;;  %v17687_v49 = vld [vmem:[#allocation46_spill] sm:$0xff]  ;;  %v10315_v6 = vor.u32 %v10942_v1, %v10314_v59 }
 0xb33   : > { %v5837_v25 = vadd.f32 %v13834_v34, %v5387_v18  ;;  %v10924_v2 = vld [vmem:[%s17157_s11 + $0x234] sm:$0xf0]  ;;  %v10234_v18 = vld [vmem:[%s17157_s11 + $0x220] sm:$0xf] }
 0xb34   : > { %v15271_v39 = vpop.f32.mrf.mxu2  ;;  %7231 = vmatpush.bf16.msra.mxu0 %v10263_v60  ;;  %v6014_v60 = vmax.f32 %v5822_v54, 0.0  ;;  %7183 = vmatpush.bf16.msra.mxu3 %v10315_v6 }
 0xb35   : > { %v6029_v54 = vmax.f32 %v5837_v25, 0.0  ;;  %v10938_v25 = vld [vmem:[%s17157_s11 + $0x2a4] sm:$0xf0] }
 0xb36   : > { %v5617_v20 = vpop.f32.mrf.mxu0  ;;  %v15286_v27 = vpop.f32.mrf.mxu1 }
 0xb37   : > { %17685 = vst [vmem:[#allocation118_spill] sm:$0xff] %v15286_v27  ;;  %v5618_v3 = vadd.f32 %v5617_v20, %v15127_v21  ;;  %v17686_v21 = vld [vmem:[#allocation4_spill] sm:$0xff]  ;;  %v10243_v20 = vor.u32 %v10924_v2, %v10242_v7 }
 0xb38   : > { %v5388_v57 = vpop.f32.mrf.mxu3 }
 0xb39   : > { %v5824_v4 = vadd.f32 %v13913_v38, %v5618_v3  ;;  %v5389_v22 = vadd.f32 %v5388_v57, %v17686_v21  ;;  %6728 = vmatmul.bf16.gmra.mxu2 %v17687_v49  ;;  %v10922_v3 = vld [vmem:[%s17157_s11 + $0x224] sm:$0xf0]  ;;  %v10306_v57 = vld [vmem:[%s17157_s11 + $0x2b0] sm:$0xf] }
 0xb3a   : > { %7135 = vmatpush.bf16.msrb.mxu2 %v10243_v20  ;;  %v10235_v7 = vor.u32 %v10922_v3, %v10234_v18  ;;  %v10468_v18 = vld [vmem:[%s17157_s11 + $0x3f8] sm:$0xf0] }
 0xb3b   : > { %v6016_v10 = vmax.f32 %v5824_v4, 0.0  ;;  %v5839_v44 = vadd.f32 %v13834_v34, %v5389_v22  ;;  %v10940_v4 = vld [vmem:[%s17157_s11 + $0x2b4] sm:$0xf0] }
 0xb3c   : > { %v15307_v27 = vpop.f32.mrf.mxu2  ;;  %v10307_v6 = vor.u32 %v10940_v4, %v10306_v57  ;;  %v17691_v4 = vld [vmem:[#allocation20_spill] sm:$0xff] }
 0xb3d   : > { %v15318_v59 = vpack.c.bf16 %v6016_v10, %v6014_v60  ;;  %v6031_v1 = vmax.f32 %v5839_v44, 0.0  ;;  %6777 = vmatmul.bf16.gmra.mxu3 %v14380_v23  ;;  %v10226_v23 = vld [vmem:[%s17157_s11 + $0x210] sm:$0xf]  ;;  %v10920_v44 = vld [vmem:[%s17157_s11 + $0x214] sm:$0xf0] }
 0xb3e   : > { %v5620_v21 = vpop.f32.mrf.mxu0  ;;  %v15324_v22 = vpop.f32.mrf.mxu1  ;;  %7136 = vmatpush.bf16.msrb.mxu2 %v10235_v7  ;;  %7184 = vmatpush.bf16.msra.mxu3 %v10307_v6  ;;  %v10298_v10 = vld [vmem:[%s17157_s11 + $0x2a0] sm:$0xf]  ;;  %v10979_v60 = vld [vmem:[%s17157_s11 + $0x3f4] sm:$0xf]  ;;  %v10290_v7 = vld [vmem:[%s17157_s11 + $0x290] sm:$0xf] }
 0xb3f   : > { %17688 = vst [vmem:[#allocation29_spill] sm:$0xff] %v15318_v59  ;;  %v5621_v2 = vadd.f32 %v5620_v21, %v15139_v16  ;;  %v15327_v20 = vpack.c.bf16 %v6031_v1, %v6029_v54  ;;  %v10227_v16 = vor.u32 %v10920_v44, %v10226_v23  ;;  %v10299_v3 = vor.u32 %v10938_v25, %v10298_v10  ;;  %v10918_v1 = vld [vmem:[%s17157_s11 + $0x204] sm:$0xf0]  ;;  %v10925_v6 = vld [vmem:[%s17157_s11 + $0x244] sm:$0xf] }
 0xb40   : > { %17689 = vst [vmem:[#allocation119_spill] sm:$0xff] %v15324_v22  ;;  %v5391_v5 = vpop.f32.mrf.mxu3  ;;  %v10471_v57 = vor.u32 %v10979_v60, %v10468_v18  ;;  %v10252_v23 = vld [vmem:[%s17157_s11 + $0x248] sm:$0xf0]  ;;  %v10936_v60 = vld [vmem:[%s17157_s11 + $0x294] sm:$0xf0] }
 0xb41   : > { %17690 = vst [vmem:[#allocation120_spill] sm:$0xff] %v15327_v20  ;;  %6806 = vmatmul.bf16.gmra.mxu0 %v17663_v35  ;;  %7306 = vmatmul.bf16.gmra.mxu1 %v14626_v55  ;;  %v10218_v35 = vld [vmem:[%s17157_s11 + $0x200] sm:$0xf]  ;;  %v5392_v21 = vadd.f32 %v5391_v5, %v17691_v4  ;;  %v10255_v25 = vor.u32 %v10925_v6, %v10252_v23  ;;  %v10977_v5 = vld [vmem:[%s17157_s11 + $0x3e4] sm:$0xf] }
 0xb42   : > { %7137 = vmatpush.bf16.msrb.mxu2 %v10227_v16  ;;  %7185 = vmatpush.bf16.msra.mxu3 %v10299_v3  ;;  %v10219_v44 = vor.u32 %v10918_v1, %v10218_v35  ;;  %v10460_v18 = vld [vmem:[%s17157_s11 + $0x3e8] sm:$0xf0]  ;;  %v5826_v3 = vadd.f32 %v13913_v38, %v5621_v2  ;;  %v10291_v35 = vor.u32 %v10936_v60, %v10290_v7  ;;  %v10282_v6 = vld [vmem:[%s17157_s11 + $0x280] sm:$0xf]  ;;  %v10934_v23 = vld [vmem:[%s17157_s11 + $0x284] sm:$0xf0] }
 0xb43   : > { %7714 = vmatpush.bf16.msra.mxu1 %v10471_v57  ;;  %v10463_v1 = vor.u32 %v10977_v5, %v10460_v18  ;;  %7232 = vmatpush.bf16.msra.mxu0 %v10255_v25  ;;  %v10975_v20 = vld [vmem:[%s17157_s11 + $0x3d4] sm:$0xf]  ;;  %v5841_v2 = vadd.f32 %v13834_v34, %v5392_v21  ;;  %v17693_v7 = vld [vmem:[#allocation22_spill] sm:$0xff]  ;;  %v10283_v60 = vor.u32 %v10934_v23, %v10282_v6  ;;  %v10973_v21 = vld [vmem:[%s17157_s11 + $0x3c4] sm:$0xf] }
 0xb44   : > { %v15349_v54 = vpop.f32.mrf.mxu2  ;;  %v17694_v25 = vld [vmem:[#allocation14_spill] sm:$0xff]  ;;  %v6018_v18 = vmax.f32 %v5826_v3, 0.0 }
 0xb46   : > { %v5622_v10 = vpop.f32.mrf.mxu0  ;;  %v15367_v16 = vpop.f32.mrf.mxu1  ;;  %7138 = vmatpush.bf16.msrb.mxu2 %v10219_v44  ;;  %7186 = vmatpush.bf16.msra.mxu3 %v10291_v35  ;;  %v10452_v44 = vld [vmem:[%s17157_s11 + $0x3d8] sm:$0xf0]  ;;  %v6033_v35 = vmax.f32 %v5841_v2, 0.0  ;;  %v10971_v2 = vld [vmem:[%s17157_s11 + $0x3b4] sm:$0xf] }
 0xb47   : > { %17692 = vst [vmem:[#allocation32_spill] sm:$0xff] %v15367_v16  ;;  %v5623_v57 = vadd.f32 %v5622_v10, %v15151_v37  ;;  %7715 = vmatpush.bf16.msra.mxu1 %v10463_v1  ;;  %v10455_v5 = vor.u32 %v10975_v20, %v10452_v44 }
 0xb48   : > { %v5393_v4 = vpop.f32.mrf.mxu3 }
 0xb49   : > { %v5828_v37 = vadd.f32 %v13913_v38, %v5623_v57  ;;  %v5394_v10 = vadd.f32 %v5393_v4, %v17693_v7  ;;  %6733 = vmatmul.bf16.gmra.mxu2 %v17694_v25  ;;  %v10444_v57 = vld [vmem:[%s17157_s11 + $0x3c8] sm:$0xf0] }
 0xb4a   : > { %7187 = vmatpush.bf16.msra.mxu3 %v10283_v60  ;;  %v10447_v6 = vor.u32 %v10973_v21, %v10444_v57  ;;  %v10969_v60 = vld [vmem:[%s17157_s11 + $0x3a4] sm:$0xf] }
 0xb4b   : > { %v6020_v59 = vmax.f32 %v5828_v37, 0.0  ;;  %v5843_v16 = vadd.f32 %v13834_v34, %v5394_v10  ;;  %7716 = vmatpush.bf16.msra.mxu1 %v10455_v5  ;;  %v17697_v5 = vld [vmem:[#allocation23_spill] sm:$0xff] }
 0xb4c   : > { %v15397_v22 = vpop.f32.mrf.mxu2 }
 0xb4d   : > { %v6035_v4 = vmax.f32 %v5843_v16, 0.0  ;;  %6782 = vmatmul.bf16.gmra.mxu3 %v14416_v19  ;;  %v15406_v1 = vpack.c.bf16 %v6020_v59, %v6018_v18  ;;  %v10436_v19 = vld [vmem:[%s17157_s11 + $0x3b8] sm:$0xf0] }
 0xb4e   : > { %v5625_v20 = vpop.f32.mrf.mxu0  ;;  %v15408_v3 = vpop.f32.mrf.mxu1  ;;  %v10439_v59 = vor.u32 %v10971_v2, %v10436_v19  ;;  %v10244_v16 = vld [vmem:[%s17157_s11 + $0x238] sm:$0xf0]  ;;  %v10967_v2 = vld [vmem:[%s17157_s11 + $0x394] sm:$0xf] }
 0xb4f   : > { %17695 = vst [vmem:[#allocation121_spill] sm:$0xff] %v15406_v1  ;;  %v5626_v23 = vadd.f32 %v5625_v20, %v15163_v63  ;;  %v15411_v37 = vpack.c.bf16 %v6035_v4, %v6033_v35  ;;  %7717 = vmatpush.bf16.msra.mxu1 %v10447_v6  ;;  %v10923_v63 = vld [vmem:[%s17157_s11 + $0x234] sm:$0xf]  ;;  %v10420_v19 = vld [vmem:[%s17157_s11 + $0x398] sm:$0xf0] }
 0xb50   : > { %v5396_v7 = vpop.f32.mrf.mxu3  ;;  %v10247_v44 = vor.u32 %v10923_v63, %v10244_v16  ;;  %v17698_v16 = vld [vmem:[#allocation25_spill] sm:$0xff] }
 0xb51   : > { %17696 = vst [vmem:[#allocation122_spill] sm:$0xff] %v15411_v37  ;;  %6811 = vmatmul.bf16.gmra.mxu0 %v17668_v62  ;;  %7311 = vmatmul.bf16.gmra.mxu1 %v14650_v17  ;;  %v10428_v62 = vld [vmem:[%s17157_s11 + $0x3a8] sm:$0xf0]  ;;  %v5397_v18 = vadd.f32 %v5396_v7, %v17697_v5  ;;  %v5830_v4 = vadd.f32 %v13913_v38, %v5626_v23 }
 0xb52   : > { %7233 = vmatpush.bf16.msra.mxu0 %v10247_v44  ;;  %v10431_v35 = vor.u32 %v10969_v60, %v10428_v62  ;;  %v17699_v44 = vld [vmem:[#allocation54_spill] sm:$0xff]  ;;  %v10423_v23 = vor.u32 %v10967_v2, %v10420_v19 }
 0xb53   : > { %7718 = vmatpush.bf16.msra.mxu1 %v10439_v59  ;;  %v5845_v7 = vadd.f32 %v13834_v34, %v5397_v18  ;;  %v10412_v18 = vld [vmem:[%s17157_s11 + $0x388] sm:$0xf0] }
 0xb54   : > { %v15427_v10 = vpop.f32.mrf.mxu2 }
 0xb56   : > { %v5627_v21 = vpop.f32.mrf.mxu0  ;;  %v15436_v57 = vpop.f32.mrf.mxu1 }
 0xb57   : > { %v5628_v20 = vadd.f32 %v5627_v21, %v15187_v41  ;;  %7719 = vmatpush.bf16.msra.mxu1 %v10431_v35  ;;  %v6022_v41 = vmax.f32 %v5830_v4, 0.0  ;;  %v10965_v21 = vld [vmem:[%s17157_s11 + $0x384] sm:$0xf] }
 0xb58   : > { %v5398_v6 = vpop.f32.mrf.mxu3  ;;  %v10415_v19 = vor.u32 %v10965_v21, %v10412_v18 }
 0xb59   : > { %v5832_v63 = vadd.f32 %v13913_v38, %v5628_v20  ;;  %v5399_v59 = vadd.f32 %v5398_v6, %v17698_v16  ;;  %6738 = vmatmul.bf16.gmra.mxu2 %v17699_v44  ;;  %v6037_v20 = vmax.f32 %v5845_v7, 0.0  ;;  %v10236_v7 = vld [vmem:[%s17157_s11 + $0x228] sm:$0xf0] }
 0xb5b   : > { %v6024_v60 = vmax.f32 %v5832_v63, 0.0  ;;  %v5847_v62 = vadd.f32 %v13834_v34, %v5399_v59  ;;  %7720 = vmatpush.bf16.msra.mxu1 %v10423_v23 }
 0xb5c   : > { %v15451_v5 = vpop.f32.mrf.mxu2 }
 0xb5d   : > { %v6039_v6 = vmax.f32 %v5847_v62, 0.0  ;;  %6787 = vmatmul.bf16.gmra.mxu3 %v14440_v56  ;;  %v15460_v35 = vpack.c.bf16 %v6024_v60, %v6022_v41  ;;  %v10921_v56 = vld [vmem:[%s17157_s11 + $0x224] sm:$0xf] }
 0xb5e   : > { %v5630_v4 = vpop.f32.mrf.mxu0  ;;  %v15462_v2 = vpop.f32.mrf.mxu1  ;;  %v10239_v41 = vor.u32 %v10921_v56, %v10236_v7  ;;  %v17703_v56 = vld [vmem:[#allocation28_spill] sm:$0xff] }
 0xb5f   : > { %17700 = vst [vmem:[#allocation35_spill] sm:$0xff] %v15460_v35  ;;  %v5631_v63 = vadd.f32 %v5630_v4, %v15205_v29  ;;  %v15465_v16 = vpack.c.bf16 %v6039_v6, %v6037_v20  ;;  %7721 = vmatpush.bf16.msra.mxu1 %v10415_v19  ;;  %v17702_v29 = vld [vmem:[#allocation26_spill] sm:$0xff]  ;;  %v15485_v6 = vld [vmem:[%s17158_s12] sm:$0x3] }
 0xb60   : > { %v5401_v59 = vpop.f32.mrf.mxu3  ;;  %7234 = vmatpush.bf16.msra.mxu0 %v10239_v41 }
 0xb61   : > { %17701 = vst [vmem:[#allocation123_spill] sm:$0xff] %v15465_v16  ;;  %6816 = vmatmul.bf16.gmra.mxu0 %v17674_v58  ;;  %7316 = vmatmul.bf16.gmra.mxu1 %v14674_v9  ;;  %v5402_v60 = vadd.f32 %v5401_v59, %v17702_v29  ;;  %v5834_v58 = vadd.f32 %v13913_v38, %v5631_v63 }
 0xb63   : > { %v5849_v4 = vadd.f32 %v13834_v34, %v5402_v60  ;;  %v6026_v7 = vmax.f32 %v5834_v58, 0.0 }
 0xb64   : > { %v15475_v23 = vpop.f32.mrf.mxu2 }
 0xb65   : > { %v6041_v37 = vmax.f32 %v5849_v4, 0.0  ;;  %v17707_v4 = vld [vmem:[#allocation31_spill] sm:$0xff] }
 0xb66   : > { %v5632_v62 = vpop.f32.mrf.mxu0  ;;  %v15478_v21 = vpop.f32.mrf.mxu1 }
 0xb67   : > { %v5633_v18 = vadd.f32 %v5632_v62, %v15229_v61  ;;  %v15493_v61 = vperm.slane %v15485_v6, 0  ;;  %v17704_v62 = vld [vmem:[#allocation7_spill] sm:$0xff] }
 0xb68   : > { %v5403_v20 = vpop.f32.mrf.mxu3  ;;  %v6313_v16 = vadd.f32 %v14352_v53, %v17704_v62 }
 0xb69   : > { %v5836_v19 = vadd.f32 %v13913_v38, %v5633_v18  ;;  %v5404_v59 = vadd.f32 %v5403_v20, %v17703_v56  ;;  %7139 = vmatmul.bf16.vlgmr.msrb.gmra.mxu2 %v14354_v33 }
 0xb6a   : > { %v6455_v56 = vadd.f32 %v15493_v61, %v6313_v16 }
 0xb6b   : > { %v6028_v41 = vmax.f32 %v5836_v19, 0.0  ;;  %v5851_v63 = vadd.f32 %v13834_v34, %v5404_v59 }
 0xb6c   : > { %v6704_v29 = vpop.f32.mrf.mxu2 }
 0xb6d   : > { %v6043_v35 = vmax.f32 %v5851_v63, 0.0  ;;  %7188 = vmatmul.bf16.vlgmr.msra.gmra.mxu3 %v14463_v12  ;;  %v15498_v60 = vpack.c.bf16 %v6028_v41, %v6026_v7  ;;  %v10919_v12 = vld [vmem:[%s17157_s11 + $0x214] sm:$0xf]  ;;  %v17708_v7 = vld [vmem:[#allocation55_spill] sm:$0xff] }
 0xb6e   : > { %v5635_v18 = vpop.f32.mrf.mxu0  ;;  %v15500_v20 = vpop.f32.mrf.mxu1  ;;  %v6315_v16 = vadd.f32 %v17708_v7, %v17707_v4  ;;  %v17710_v7 = vld [vmem:[#allocation8_spill] sm:$0xff] }
 0xb6f   : > { %17705 = vst [vmem:[#allocation15_spill] sm:$0xff] %v15498_v60  ;;  %v5636_v58 = vadd.f32 %v5635_v18, %v15247_v30  ;;  %v15503_v19 = vpack.c.bf16 %v6043_v35, %v6041_v37  ;;  %v10228_v30 = vld [vmem:[%s17157_s11 + $0x218] sm:$0xf0]  ;;  %v17711_v60 = vld [vmem:[#allocation57_spill] sm:$0xff] }
 0xb70   : > { %v6753_v34 = vpop.f32.mrf.mxu3  ;;  %v10231_v35 = vor.u32 %v10919_v12, %v10228_v30  ;;  %v6457_v18 = vadd.f32 %v15493_v61, %v6315_v16 }
 0xb71   : > { %17706 = vst [vmem:[#allocation38_spill] sm:$0xff] %v15503_v19  ;;  %v6754_v59 = vadd.f32 %v6753_v34, %v6704_v29  ;;  %6821 = vmatmul.bf16.gmra.mxu0 %v17680_v50  ;;  %7321 = vmatmul.bf16.gmra.mxu1 %v14698_v14  ;;  %v5838_v50 = vadd.f32 %v13913_v38, %v5636_v58 }
 0xb72   : > { %7235 = vmatpush.bf16.msra.mxu0 %v10231_v35  ;;  %v6318_v35 = vadd.f32 %v17711_v60, %v17710_v7  ;;  %v10220_v60 = vld [vmem:[%s17157_s11 + $0x208] sm:$0xf0] }
 0xb73   : > { %v15508_v53 = vadd.f32 %v6754_v59, %v6455_v56  ;;  %v17709_v59 = vld [vmem:[#allocation56_spill] sm:$0xff]  ;;  %v6030_v12 = vmax.f32 %v5838_v50, 0.0 }
 0xb74   : > { %v6706_v37 = vpop.f32.mrf.mxu2 }
 0xb76   : > { %v5637_v41 = vpop.f32.mrf.mxu0  ;;  %v15518_v63 = vpop.f32.mrf.mxu1 }
 0xb77   : > { %v5638_v29 = vadd.f32 %v5637_v41, %v15271_v39 }
 0xb78   : > { %v6755_v62 = vpop.f32.mrf.mxu3 }
 0xb79   : > { %v5840_v34 = vadd.f32 %v13913_v38, %v5638_v29  ;;  %v6756_v56 = vadd.f32 %v6755_v62, %v6706_v37  ;;  %7144 = vmatmul.bf16.gmra.mxu2 %v17709_v59  ;;  %v6459_v29 = vadd.f32 %v15493_v61, %v6318_v35 }
 0xb7b   : > { %v6032_v30 = vmax.f32 %v5840_v34, 0.0  ;;  %v15525_v19 = vadd.f32 %v6756_v56, %v6457_v18  ;;  %v17713_v34 = vld [vmem:[#allocation34_spill] sm:$0xff]  ;;  %v17714_v56 = vld [vmem:[#allocation59_spill] sm:$0xff] }
 0xb7c   : > { %v6709_v4 = vpop.f32.mrf.mxu2 }
 0xb7d   : > { %7193 = vmatmul.bf16.gmra.mxu3 %v14512_v24  ;;  %v15530_v58 = vpack.c.bf16 %v6032_v30, %v6030_v12  ;;  %v10917_v24 = vld [vmem:[%s17157_s11 + $0x204] sm:$0xf]  ;;  %v6320_v12 = vadd.f32 %v17714_v56, %v17713_v34  ;;  %v10980_v56 = vld [vmem:[%s17157_s11 + $0x3f4] sm:$0xf0] }
 0xb7e   : > { %v5640_v39 = vpop.f32.mrf.mxu0  ;;  %v15532_v41 = vpop.f32.mrf.mxu1 }
 0xb7f   : > { %17712 = vst [vmem:[#allocation17_spill] sm:$0xff] %v15530_v58  ;;  %v5641_v16 = vadd.f32 %v5640_v39, %v15307_v27  ;;  %v10223_v27 = vor.u32 %v10917_v24, %v10220_v60  ;;  %v6461_v39 = vadd.f32 %v15493_v61, %v6320_v12  ;;  %v17715_v12 = vld [vmem:[#allocation9_spill] sm:$0xff]  ;;  %v10966_v58 = vld [vmem:[%s17157_s11 + $0x384] sm:$0xf0] }
 0xb80   : > { %v6758_v37 = vpop.f32.mrf.mxu3 }
 0xb81   : > { %v6759_v50 = vadd.f32 %v6758_v37, %v6709_v4  ;;  %6826 = vmatmul.bf16.gmra.mxu0 %v17687_v49  ;;  %7722 = vmatmul.bf16.vlgmr.msra.gmra.mxu1 %v14721_v0  ;;  %v5842_v49 = vadd.f32 %v13913_v38, %v5641_v16 }
 0xb82   : > { %7236 = vmatpush.bf16.msra.mxu0 %v10223_v27  ;;  %v10402_v27 = vld [vmem:[%s17157_s11 + $0x370] sm:$0xf] }
 0xb83   : > { %v15538_v62 = vadd.f32 %v6759_v50, %v6459_v29  ;;  %v6034_v50 = vmax.f32 %v5842_v49, 0.0 }
 0xb84   : > { %v6711_v18 = vpop.f32.mrf.mxu2 }
 0xb86   : > { %v5642_v30 = vpop.f32.mrf.mxu0  ;;  %v15548_v4 = vpop.f32.mrf.mxu1 }
 0xb87   : > { %v5643_v7 = vadd.f32 %v5642_v30, %v15349_v54  ;;  %v10964_v54 = vld [vmem:[%s17157_s11 + $0x374] sm:$0xf0]  ;;  %v6323_v30 = vadd.f32 %v14418_v36, %v17715_v12 }
 0xb88   : > { %v6760_v35 = vpop.f32.mrf.mxu3  ;;  %v10403_v34 = vor.u32 %v10964_v54, %v10402_v27 }
 0xb89   : > { %v5844_v37 = vadd.f32 %v13913_v38, %v5643_v7  ;;  %v6761_v29 = vadd.f32 %v6760_v35, %v6711_v18  ;;  %7149 = vmatmul.bf16.gmra.mxu2 %v14421_v45  ;;  %v10466_v18 = vld [vmem:[%s17157_s11 + $0x3f0] sm:$0xf]  ;;  %v6463_v27 = vadd.f32 %v15493_v61, %v6323_v30 }
 0xb8a   : > { %v10467_v49 = vor.u32 %v10980_v56, %v10466_v18  ;;  %7567 = vmatpush.bf16.msra.mxu2 %v10403_v34  ;;  %v17717_v34 = vld [vmem:[#allocation37_spill] sm:$0xff]  ;;  %v17718_v18 = vld [vmem:[#allocation58_spill] sm:$0xff] }
 0xb8b   : > { %v6036_v24 = vmax.f32 %v5844_v37, 0.0  ;;  %v15555_v60 = vadd.f32 %v6761_v29, %v6461_v39  ;;  %v6325_v56 = vadd.f32 %v17718_v18, %v17717_v34  ;;  %v10978_v18 = vld [vmem:[%s17157_s11 + $0x3e4] sm:$0xf0] }
 0xb8c   : > { %v6714_v16 = vpop.f32.mrf.mxu2  ;;  %7616 = vmatpush.bf16.msrb.mxu3 %v10467_v49 }
 0xb8d   : > { %7198 = vmatmul.bf16.gmra.mxu3 %v14560_v11  ;;  %v15572_v7 = vpack.c.bf16 %v6036_v24, %v6034_v50  ;;  %v10963_v11 = vld [vmem:[%s17157_s11 + $0x374] sm:$0xf]  ;;  %v10404_v50 = vld [vmem:[%s17157_s11 + $0x378] sm:$0xf0] }
 0xb8e   : > { %v5645_v35 = vpop.f32.mrf.mxu0  ;;  %v15574_v39 = vpop.f32.mrf.mxu1  ;;  %v10407_v24 = vor.u32 %v10963_v11, %v10404_v50 }
 0xb8f   : > { %17716 = vst [vmem:[#allocation3_spill] sm:$0xff] %v15572_v7  ;;  %v5646_v37 = vadd.f32 %v5645_v35, %v15397_v22  ;;  %v6465_v35 = vadd.f32 %v15493_v61, %v6325_v56  ;;  %v17719_v56 = vld [vmem:[#allocation10_spill] sm:$0xff] }
 0xb90   : > { %v6763_v29 = vpop.f32.mrf.mxu3  ;;  %7665 = vmatpush.bf16.msrb.mxu0 %v10407_v24  ;;  %v10394_v24 = vld [vmem:[%s17157_s11 + $0x360] sm:$0xf] }
 0xb91   : > { %v6764_v54 = vadd.f32 %v6763_v29, %v6714_v16  ;;  %6831 = vmatmul.bf16.gmra.mxu0 %v17694_v25  ;;  %7727 = vmatmul.bf16.gmra.mxu1 %v14776_v8  ;;  %v5846_v25 = vadd.f32 %v13913_v38, %v5646_v37 }
 0xb93   : > { %v15580_v36 = vadd.f32 %v6764_v54, %v6463_v27  ;;  %v6038_v54 = vmax.f32 %v5846_v25, 0.0 }
 0xb94   : > { %v6716_v22 = vpop.f32.mrf.mxu2 }
 0xb96   : > { %v5647_v16 = vpop.f32.mrf.mxu0  ;;  %v15590_v12 = vpop.f32.mrf.mxu1 }
 0xb97   : > { %v5648_v30 = vadd.f32 %v5647_v16, %v15427_v10  ;;  %v10962_v10 = vld [vmem:[%s17157_s11 + $0x364] sm:$0xf0] }
 0xb98   : > { %v6765_v49 = vpop.f32.mrf.mxu3  ;;  %v10395_v34 = vor.u32 %v10962_v10, %v10394_v24  ;;  %v17720_v16 = vld [vmem:[#allocation60_spill] sm:$0xff] }
 0xb99   : > { %v5848_v29 = vadd.f32 %v13913_v38, %v5648_v30  ;;  %v6766_v27 = vadd.f32 %v6765_v49, %v6716_v22  ;;  %7154 = vmatmul.bf16.gmra.mxu2 %v14445_v15  ;;  %v10458_v22 = vld [vmem:[%s17157_s11 + $0x3e0] sm:$0xf]  ;;  %v6328_v25 = vadd.f32 %v17720_v16, %v17719_v56 }
 0xb9a   : > { %v10459_v30 = vor.u32 %v10978_v18, %v10458_v22  ;;  %7568 = vmatpush.bf16.msra.mxu2 %v10395_v34  ;;  %v17722_v34 = vld [vmem:[#allocation40_spill] sm:$0xff]  ;;  %v17723_v22 = vld [vmem:[#allocation62_spill] sm:$0xff] }
 0xb9b   : > { %v6040_v11 = vmax.f32 %v5848_v29, 0.0  ;;  %v15597_v50 = vadd.f32 %v6766_v27, %v6465_v35  ;;  %v6467_v10 = vadd.f32 %v15493_v61, %v6328_v25  ;;  %v6330_v18 = vadd.f32 %v17723_v22, %v17722_v34 }
 0xb9c   : > { %v6719_v37 = vpop.f32.mrf.mxu2  ;;  %7617 = vmatpush.bf16.msrb.mxu3 %v10459_v30 }
 0xb9d   : > { %7203 = vmatmul.bf16.gmra.mxu3 %v14590_v40  ;;  %v15614_v49 = vpack.c.bf16 %v6040_v11, %v6038_v54  ;;  %v10961_v40 = vld [vmem:[%s17157_s11 + $0x364] sm:$0xf]  ;;  %v10396_v54 = vld [vmem:[%s17157_s11 + $0x368] sm:$0xf0]  ;;  %v6469_v30 = vadd.f32 %v15493_v61, %v6330_v18 }
 0xb9e   : > { %v5650_v35 = vpop.f32.mrf.mxu0  ;;  %v15616_v29 = vpop.f32.mrf.mxu1  ;;  %v10399_v11 = vor.u32 %v10961_v40, %v10396_v54  ;;  %v6411_v40 = vadd.f32 %v14886_v42, %v14628_v43  ;;  %v10976_v43 = vld [vmem:[%s17157_s11 + $0x3d4] sm:$0xf0]  ;;  %v17724_v42 = vld [vmem:[#allocation11_spill] sm:$0xff] }
 0xb9f   : > { %17721 = vst [vmem:[#allocation41_spill] sm:$0xff] %v15614_v49  ;;  %v5651_v27 = vadd.f32 %v5650_v35, %v15451_v5  ;;  %v6333_v22 = vadd.f32 %v14466_v32, %v17724_v42 }
 0xba0   : > { %v6768_v24 = vpop.f32.mrf.mxu3  ;;  %7666 = vmatpush.bf16.msrb.mxu0 %v10399_v11 }
 0xba1   : > { %v6769_v7 = vadd.f32 %v6768_v24, %v6719_v37  ;;  %6836 = vmatmul.bf16.gmra.mxu0 %v17699_v44  ;;  %7732 = vmatmul.bf16.gmra.mxu1 %v14836_v51  ;;  %v5850_v44 = vadd.f32 %v13913_v38, %v5651_v27 }
 0xba3   : > { %v15622_v56 = vadd.f32 %v6769_v7, %v6467_v10  ;;  %v15640_v10 = vperm.slane %v15485_v6, 1  ;;  %v6042_v54 = vmax.f32 %v5850_v44, 0.0  ;;  %v10450_v6 = vld [vmem:[%s17157_s11 + $0x3d0] sm:$0xf] }
 0xba4   : > { %v6721_v5 = vpop.f32.mrf.mxu2  ;;  %v10451_v18 = vor.u32 %v10976_v43, %v10450_v6 }
 0xba6   : > { %v5652_v37 = vpop.f32.mrf.mxu0  ;;  %v15632_v16 = vpop.f32.mrf.mxu1  ;;  %7618 = vmatpush.bf16.msrb.mxu3 %v10451_v18 }
 0xba7   : > { %v5653_v7 = vadd.f32 %v5652_v37, %v15475_v23  ;;  %v10386_v23 = vld [vmem:[%s17157_s11 + $0x350] sm:$0xf] }
 0xba8   : > { %v6770_v25 = vpop.f32.mrf.mxu3 }
 0xba9   : > { %v5852_v35 = vadd.f32 %v13913_v38, %v5653_v7  ;;  %v6771_v24 = vadd.f32 %v6770_v25, %v6721_v5  ;;  %7159 = vmatmul.bf16.gmra.mxu2 %v14469_v13  ;;  %v10960_v38 = vld [vmem:[%s17157_s11 + $0x354] sm:$0xf0]  ;;  %v6456_v25 = vadd.f32 %v15640_v10, %v6411_v40  ;;  %v10388_v40 = vld [vmem:[%s17157_s11 + $0x358] sm:$0xf0] }
 0xbaa   : > { %v10387_v5 = vor.u32 %v10960_v38, %v10386_v23 }
 0xbab   : > { %v6044_v11 = vmax.f32 %v5852_v35, 0.0  ;;  %v15644_v34 = vadd.f32 %v6771_v24, %v6469_v30  ;;  %v6471_v24 = vadd.f32 %v15493_v61, %v6333_v22 }
 0xbac   : > { %v6724_v27 = vpop.f32.mrf.mxu2  ;;  %7569 = vmatpush.bf16.msra.mxu2 %v10387_v5 }
 0xbad   : > { %7208 = vmatmul.bf16.gmra.mxu3 %v14626_v55  ;;  %v15661_v37 = vpack.c.bf16 %v6044_v11, %v6042_v54  ;;  %v6413_v55 = vadd.f32 %v14896_v46, %v14638_v26  ;;  %v10958_v26 = vld [vmem:[%s17157_s11 + $0x344] sm:$0xf0]  ;;  %v17727_v46 = vld [vmem:[#allocation43_spill] sm:$0xff] }
 0xbae   : > { %v6802_v44 = vpop.f32.mrf.mxu0  ;;  %v15663_v7 = vpop.f32.mrf.mxu1 }
 0xbaf   : > { %17725 = vst [vmem:[#allocation18_spill] sm:$0xff] %v15661_v37  ;;  %v6852_v30 = vadd.f32 %v15144_v48, %v6802_v44  ;;  %v10959_v48 = vld [vmem:[%s17157_s11 + $0x354] sm:$0xf]  ;;  %v6458_v22 = vadd.f32 %v15640_v10, %v6413_v55 }
 0xbb0   : > { %17726 = vst [vmem:[#allocation4_spill] sm:$0xff] %v15663_v7  ;;  %v6773_v35 = vpop.f32.mrf.mxu3  ;;  %v10391_v38 = vor.u32 %v10959_v48, %v10388_v40  ;;  %v10956_v40 = vld [vmem:[%s17157_s11 + $0x334] sm:$0xf0]  ;;  %v17763_v7 = vld [vmem:[#allocation92_spill] sm:$0xff] }
 0xbb1   : > { %v15668_v23 = vadd.f32 %v6852_v30, %v6456_v25  ;;  %v6774_v32 = vadd.f32 %v6773_v35, %v6724_v27  ;;  %7237 = vmatmul.bf16.vlgmr.msra.gmra.mxu0 %v14354_v33  ;;  %7737 = vmatmul.bf16.gmra.mxu1 %v14860_v52  ;;  %v10378_v33 = vld [vmem:[%s17157_s11 + $0x340] sm:$0xf]  ;;  %v17728_v27 = vld [vmem:[#allocation61_spill] sm:$0xff]  ;;  %v10974_v30 = vld [vmem:[%s17157_s11 + $0x3c4] sm:$0xf0] }
 0xbb2   : > { %v6335_v5 = vadd.f32 %v17728_v27, %v17727_v46  ;;  %v10379_v6 = vor.u32 %v10958_v26, %v10378_v33  ;;  %7667 = vmatpush.bf16.msrb.mxu0 %v10391_v38  ;;  %v10442_v25 = vld [vmem:[%s17157_s11 + $0x3c0] sm:$0xf]  ;;  %v10370_v35 = vld [vmem:[%s17157_s11 + $0x330] sm:$0xf]  ;;  %v17731_v33 = vld [vmem:[#allocation74_spill] sm:$0xff] }
 0xbb3   : > { %v15674_v54 = vadd.f32 %v6774_v32, %v6471_v24  ;;  %v10443_v48 = vor.u32 %v10974_v30, %v10442_v25  ;;  %v10371_v38 = vor.u32 %v10956_v40, %v10370_v35  ;;  %v17732_v26 = vld [vmem:[#allocation91_spill] sm:$0xff]  ;;  %v10972_v30 = vld [vmem:[%s17157_s11 + $0x3b4] sm:$0xf0] }
 0xbb4   : > { %v6726_v11 = vpop.f32.mrf.mxu2  ;;  %7570 = vmatpush.bf16.msra.mxu2 %v10379_v6  ;;  %v6473_v24 = vadd.f32 %v15493_v61, %v6335_v5  ;;  %v6416_v46 = vadd.f32 %v17732_v26, %v17731_v33  ;;  %v17733_v6 = vld [vmem:[#allocation44_spill] sm:$0xff]  ;;  %v10952_v26 = vld [vmem:[%s17157_s11 + $0x314] sm:$0xf0] }
 0xbb5   : > { %7619 = vmatpush.bf16.msrb.mxu3 %v10443_v48 }
 0xbb6   : > { %v6804_v43 = vpop.f32.mrf.mxu0  ;;  %v15690_v42 = vpop.f32.mrf.mxu1  ;;  %v6460_v48 = vadd.f32 %v15640_v10, %v6416_v46 }
 0xbb7   : > { %17729 = vst [vmem:[#allocation46_spill] sm:$0xff] %v15690_v42  ;;  %v6854_v18 = vadd.f32 %v15154_v28, %v6804_v43  ;;  %v17730_v28 = vld [vmem:[#allocation65_spill] sm:$0xff]  ;;  %v17734_v43 = vld [vmem:[#allocation63_spill] sm:$0xff] }
 0xbb8   : > { %v6775_v44 = vpop.f32.mrf.mxu3  ;;  %v6338_v5 = vadd.f32 %v17734_v43, %v17733_v6  ;;  %7571 = vmatpush.bf16.msra.mxu2 %v10371_v38  ;;  %v10426_v6 = vld [vmem:[%s17157_s11 + $0x3a0] sm:$0xf]  ;;  %v17736_v43 = vld [vmem:[#allocation90_spill] sm:$0xff]  ;;  %v10997_v42 = vld [vmem:[%s17157_s11 + $0x484] sm:$0xf] }
 0xbb9   : > { %v15704_v32 = vadd.f32 %v6854_v18, %v6458_v22  ;;  %v6776_v55 = vadd.f32 %v6775_v44, %v6726_v11  ;;  %7164 = vmatmul.bf16.gmra.mxu2 %v17730_v28  ;;  %v10362_v11 = vld [vmem:[%s17157_s11 + $0x320] sm:$0xf]  ;;  %v10954_v18 = vld [vmem:[%s17157_s11 + $0x324] sm:$0xf0]  ;;  %v10434_v44 = vld [vmem:[%s17157_s11 + $0x3b0] sm:$0xf] }
 0xbba   : > { %v10363_v25 = vor.u32 %v10954_v18, %v10362_v11  ;;  %v6475_v38 = vadd.f32 %v15493_v61, %v6338_v5  ;;  %v10970_v11 = vld [vmem:[%s17157_s11 + $0x3a4] sm:$0xf0]  ;;  %v11011_v18 = vld [vmem:[%s17157_s11 + $0x4f4] sm:$0xf] }
 0xbbb   : > { %v15712_v27 = vadd.f32 %v6776_v55, %v6473_v24  ;;  %v10435_v55 = vor.u32 %v10972_v30, %v10434_v44  ;;  %v10596_v44 = vld [vmem:[%s17157_s11 + $0x4f8] sm:$0xf0] }
 0xbbc   : > { %v6729_v22 = vpop.f32.mrf.mxu2  ;;  %7572 = vmatpush.bf16.msra.mxu2 %v10363_v25  ;;  %v10427_v25 = vor.u32 %v10970_v11, %v10426_v6  ;;  %v10599_v30 = vor.u32 %v11011_v18, %v10596_v44  ;;  %v10950_v6 = vld [vmem:[%s17157_s11 + $0x304] sm:$0xf0]  ;;  %v10968_v18 = vld [vmem:[%s17157_s11 + $0x394] sm:$0xf0]  ;;  %v10588_v44 = vld [vmem:[%s17157_s11 + $0x4e8] sm:$0xf0] }
 0xbbd   : > { %7213 = vmatmul.bf16.gmra.mxu3 %v14650_v17  ;;  %v10354_v17 = vld [vmem:[%s17157_s11 + $0x310] sm:$0xf] }
 0xbbe   : > { %v6807_v35 = vpop.f32.mrf.mxu0  ;;  %v15729_v24 = vpop.f32.mrf.mxu1  ;;  %7620 = vmatpush.bf16.msrb.mxu3 %v10435_v55  ;;  %v10355_v5 = vor.u32 %v10952_v26, %v10354_v17  ;;  %v17740_v17 = vld [vmem:[#allocation64_spill] sm:$0xff]  ;;  %8150 = vmatpush.bf16.msrb.mxu1 %v10599_v30 }
 0xbbf   : > { %17735 = vst [vmem:[#allocation20_spill] sm:$0xff] %v15729_v24  ;;  %v6857_v40 = vadd.f32 %v15174_v47, %v6807_v35  ;;  %v17738_v35 = vld [vmem:[#allocation27_spill] sm:$0xff] }
 0xbc0   : > { %v6778_v33 = vpop.f32.mrf.mxu3  ;;  %7573 = vmatpush.bf16.msra.mxu2 %v10355_v5  ;;  %v11009_v5 = vld [vmem:[%s17157_s11 + $0x4e4] sm:$0xf] }
 0xbc1   : > { %v15743_v46 = vadd.f32 %v6857_v40, %v6460_v48  ;;  %v6779_v47 = vadd.f32 %v6778_v33, %v6729_v22  ;;  %7242 = vmatmul.bf16.gmra.mxu0 %v17709_v59  ;;  %7742 = vmatmul.bf16.gmra.mxu1 %v17736_v43  ;;  %v17737_v22 = vld [vmem:[#allocation76_spill] sm:$0xff]  ;;  %v10957_v48 = vld [vmem:[%s17157_s11 + $0x344] sm:$0xf]  ;;  %v17739_v33 = vld [vmem:[#allocation13_spill] sm:$0xff] }
 0xbc2   : > { %v6418_v59 = vadd.f32 %v17738_v35, %v17737_v22  ;;  %v10380_v40 = vld [vmem:[%s17157_s11 + $0x348] sm:$0xf0]  ;;  %v6340_v26 = vadd.f32 %v17740_v17, %v17739_v33  ;;  %7621 = vmatpush.bf16.msrb.mxu3 %v10427_v25 }
 0xbc3   : > { %v15758_v55 = vadd.f32 %v6779_v47, %v6475_v38  ;;  %v10383_v49 = vor.u32 %v10957_v48, %v10380_v40  ;;  %v10346_v38 = vld [vmem:[%s17157_s11 + $0x300] sm:$0xf]  ;;  %v10418_v47 = vld [vmem:[%s17157_s11 + $0x390] sm:$0xf]  ;;  %v10591_v48 = vor.u32 %v11009_v5, %v10588_v44  ;;  %v17742_v40 = vld [vmem:[#allocation114_spill] sm:$0xff] }
 0xbc4   : > { %v6731_v37 = vpop.f32.mrf.mxu2  ;;  %v10347_v11 = vor.u32 %v10950_v6, %v10346_v38  ;;  %v10419_v35 = vor.u32 %v10968_v18, %v10418_v47  ;;  %v6462_v30 = vadd.f32 %v15640_v10, %v6418_v59  ;;  %v6477_v17 = vadd.f32 %v15493_v61, %v6340_v26  ;;  %v10410_v6 = vld [vmem:[%s17157_s11 + $0x380] sm:$0xf]  ;;  %v17743_v18 = vld [vmem:[#allocation68_spill] sm:$0xff] }
 0xbc5   : > { %7668 = vmatpush.bf16.msrb.mxu0 %v10383_v49  ;;  %v11007_v49 = vld [vmem:[%s17157_s11 + $0x4d4] sm:$0xf]  ;;  %8151 = vmatpush.bf16.msrb.mxu1 %v10591_v48  ;;  %v10411_v26 = vor.u32 %v10966_v58, %v10410_v6  ;;  %v17744_v44 = vld [vmem:[#allocation75_spill] sm:$0xff]  ;;  %v10572_v58 = vld [vmem:[%s17157_s11 + $0x4c8] sm:$0xf0] }
 0xbc6   : > { %v6809_v25 = vpop.f32.mrf.mxu0  ;;  %v15786_v22 = vpop.f32.mrf.mxu1  ;;  %7574 = vmatpush.bf16.msra.mxu2 %v10347_v11  ;;  %7622 = vmatpush.bf16.msrb.mxu3 %v10419_v35  ;;  %v10580_v11 = vld [vmem:[%s17157_s11 + $0x4d8] sm:$0xf0]  ;;  %v17746_v48 = vld [vmem:[#allocation49_spill] sm:$0xff] }
 0xbc7   : > { %17741 = vst [vmem:[#allocation22_spill] sm:$0xff] %v15786_v22  ;;  %v6859_v33 = vadd.f32 %v17742_v40, %v6809_v25  ;;  %v10583_v5 = vor.u32 %v11007_v49, %v10580_v11  ;;  %v17745_v25 = vld [vmem:[#allocation94_spill] sm:$0xff]  ;;  %v11003_v11 = vld [vmem:[%s17157_s11 + $0x4b4] sm:$0xf] }
 0xbc8   : > { %v6780_v38 = vpop.f32.mrf.mxu3  ;;  %v6421_v35 = vadd.f32 %v17745_v25, %v17744_v44  ;;  %v10564_v44 = vld [vmem:[%s17157_s11 + $0x4b8] sm:$0xf0] }
 0xbc9   : > { %v15800_v59 = vadd.f32 %v6859_v33, %v6462_v30  ;;  %v6781_v47 = vadd.f32 %v6780_v38, %v6731_v37  ;;  %7169 = vmatmul.bf16.gmra.mxu2 %v17743_v18  ;;  %v11005_v37 = vld [vmem:[%s17157_s11 + $0x4c4] sm:$0xf]  ;;  %v17747_v30 = vld [vmem:[#allocation66_spill] sm:$0xff]  ;;  %8152 = vmatpush.bf16.msrb.mxu1 %v10583_v5 }
 0xbca   : > { %7623 = vmatpush.bf16.msrb.mxu3 %v10411_v26  ;;  %v6343_v33 = vadd.f32 %v17747_v30, %v17746_v48  ;;  %v10575_v6 = vor.u32 %v11005_v37, %v10572_v58  ;;  %v17750_v37 = vld [vmem:[#allocation77_spill] sm:$0xff]  ;;  %v17751_v58 = vld [vmem:[#allocation30_spill] sm:$0xff] }
 0xbcb   : > { %v15808_v40 = vadd.f32 %v6781_v47, %v6477_v17  ;;  %v6464_v17 = vadd.f32 %v15640_v10, %v6421_v35  ;;  %v17749_v35 = vld [vmem:[#allocation89_spill] sm:$0xff]  ;;  %v6423_v48 = vadd.f32 %v17751_v58, %v17750_v37  ;;  %v17754_v37 = vld [vmem:[#allocation115_spill] sm:$0xff] }
 0xbcc   : > { %v6734_v1 = vpop.f32.mrf.mxu2 }
 0xbcd   : > { %7218 = vmatmul.bf16.gmra.mxu3 %v14674_v9  ;;  %v6479_v9 = vadd.f32 %v15493_v61, %v6343_v33  ;;  %8153 = vmatpush.bf16.msrb.mxu1 %v10575_v6  ;;  %v10372_v33 = vld [vmem:[%s17157_s11 + $0x338] sm:$0xf0]  ;;  %v10556_v6 = vld [vmem:[%s17157_s11 + $0x4a8] sm:$0xf0] }
 0xbce   : > { %v6812_v38 = vpop.f32.mrf.mxu0  ;;  %v15821_v47 = vpop.f32.mrf.mxu1 }
 0xbcf   : > { %v6862_v49 = vadd.f32 %v15216_v31, %v6812_v38  ;;  %17748 = vst [vmem:[#allocation14_spill] sm:$0xff] %v15821_v47  ;;  %v10567_v31 = vor.u32 %v11003_v11, %v10564_v44  ;;  %v10955_v38 = vld [vmem:[%s17157_s11 + $0x334] sm:$0xf]  ;;  %v10548_v47 = vld [vmem:[%s17157_s11 + $0x498] sm:$0xf0] }
 0xbd0   : > { %v6783_v26 = vpop.f32.mrf.mxu3 }
 0xbd1   : > { %v15830_v5 = vadd.f32 %v6862_v49, %v6464_v17  ;;  %v6784_v25 = vadd.f32 %v6783_v26, %v6734_v1  ;;  %7247 = vmatmul.bf16.gmra.mxu0 %v14421_v45  ;;  %7747 = vmatmul.bf16.gmra.mxu1 %v17749_v35  ;;  %v10375_v17 = vor.u32 %v10955_v38, %v10372_v33  ;;  %v11001_v45 = vld [vmem:[%s17157_s11 + $0x4a4] sm:$0xf]  ;;  %v17752_v49 = vld [vmem:[#allocation50_spill] sm:$0xff]  ;;  %v10999_v33 = vld [vmem:[%s17157_s11 + $0x494] sm:$0xf] }
 0xbd2   : > { %v17753_v26 = vld [vmem:[#allocation67_spill] sm:$0xff]  ;;  %8154 = vmatpush.bf16.msrb.mxu1 %v10567_v31 }
 0xbd3   : > { %v15836_v30 = vadd.f32 %v6784_v25, %v6479_v9  ;;  %v6345_v11 = vadd.f32 %v17753_v26, %v17752_v49  ;;  %7669 = vmatpush.bf16.msrb.mxu0 %v10375_v17  ;;  %v10559_v9 = vor.u32 %v11001_v45, %v10556_v6  ;;  %v6466_v25 = vadd.f32 %v15640_v10, %v6423_v48  ;;  %v17756_v45 = vld [vmem:[#allocation71_spill] sm:$0xff]  ;;  %v17758_v26 = vld [vmem:[#allocation97_spill] sm:$0xff] }
 0xbd4   : > { %v6736_v1 = vpop.f32.mrf.mxu2  ;;  %v10551_v48 = vor.u32 %v10999_v33, %v10548_v47  ;;  %v17757_v6 = vld [vmem:[#allocation79_spill] sm:$0xff] }
 0xbd5   : > { %v6481_v22 = vadd.f32 %v15493_v61, %v6345_v11  ;;  %v10540_v11 = vld [vmem:[%s17157_s11 + $0x488] sm:$0xf0] }
 0xbd6   : > { %v6814_v44 = vpop.f32.mrf.mxu0  ;;  %v15863_v17 = vpop.f32.mrf.mxu1  ;;  %8155 = vmatpush.bf16.msrb.mxu1 %v10559_v9  ;;  %v10543_v9 = vor.u32 %v10997_v42, %v10540_v11 }
 0xbd7   : > { %v6864_v58 = vadd.f32 %v17754_v37, %v6814_v44  ;;  %17755 = vst [vmem:[#allocation23_spill] sm:$0xff] %v15863_v17  ;;  %v6426_v44 = vadd.f32 %v17758_v26, %v17757_v6 }
 0xbd8   : > { %v6785_v38 = vpop.f32.mrf.mxu3 }
 0xbd9   : > { %v15861_v49 = vadd.f32 %v6864_v58, %v6466_v25  ;;  %v6786_v31 = vadd.f32 %v6785_v38, %v6736_v1  ;;  %7174 = vmatmul.bf16.gmra.mxu2 %v17756_v45  ;;  %v17759_v25 = vld [vmem:[#allocation52_spill] sm:$0xff]  ;;  %v17760_v1 = vld [vmem:[#allocation69_spill] sm:$0xff]  ;;  %v17761_v38 = vld [vmem:[#allocation51_spill] sm:$0xff] }
 0xbda   : > { %v6348_v58 = vadd.f32 %v17760_v1, %v17759_v25  ;;  %8156 = vmatpush.bf16.msrb.mxu1 %v10551_v48  ;;  %v17764_v25 = vld [vmem:[#allocation16_spill] sm:$0xff] }
 0xbdb   : > { %v15868_v37 = vadd.f32 %v6786_v31, %v6481_v22  ;;  %v6468_v22 = vadd.f32 %v15640_v10, %v6426_v44  ;;  %v10953_v44 = vld [vmem:[%s17157_s11 + $0x324] sm:$0xf] }
 0xbdc   : > { %v6739_v24 = vpop.f32.mrf.mxu2  ;;  %v6483_v6 = vadd.f32 %v15493_v61, %v6348_v58  ;;  %v17768_v58 = vld [vmem:[#allocation53_spill] sm:$0xff] }
 0xbdd   : > { %7223 = vmatmul.bf16.gmra.mxu3 %v14698_v14  ;;  %v17765_v14 = vld [vmem:[#allocation33_spill] sm:$0xff] }
 0xbde   : > { %v6817_v47 = vpop.f32.mrf.mxu0  ;;  %8157 = vmatpush.bf16.msrb.mxu1 %v10543_v9  ;;  %v6428_v1 = vadd.f32 %v17765_v14, %v17764_v25  ;;  %v15888_v48 = vpop.f32.mrf.mxu1 }
 0xbdf   : > { %v6867_v33 = vadd.f32 %v17761_v38, %v6817_v47  ;;  %17766 = vst [vmem:[#allocation54_spill] sm:$0xff] %v15888_v48  ;;  %v17769_v47 = vld [vmem:[#allocation70_spill] sm:$0xff]  ;;  %v17771_v48 = vld [vmem:[#allocation72_spill] sm:$0xff] }
 0xbe0   : > { %v6788_v31 = vpop.f32.mrf.mxu3  ;;  %v6350_v9 = vadd.f32 %v17769_v47, %v17768_v58  ;;  %v6470_v38 = vadd.f32 %v15640_v10, %v6428_v1 }
 0xbe1   : > { %v15882_v26 = vadd.f32 %v6867_v33, %v6468_v22  ;;  %v6789_v17 = vadd.f32 %v6788_v31, %v6739_v24  ;;  %7252 = vmatmul.bf16.gmra.mxu0 %v14445_v15  ;;  %7752 = vmatmul.bf16.gmra.mxu1 %v17763_v7  ;;  %v10364_v24 = vld [vmem:[%s17157_s11 + $0x328] sm:$0xf0]  ;;  %v17770_v33 = vld [vmem:[#allocation118_spill] sm:$0xff] }
 0xbe2   : > { %v10367_v15 = vor.u32 %v10953_v44, %v10364_v24 }
 0xbe3   : > { %17762 = vst [vmem:[#allocation25_spill] sm:$0xff] %v15882_v26  ;;  %v15890_v42 = vadd.f32 %v6789_v17, %v6483_v6  ;;  %v6485_v6 = vadd.f32 %v15493_v61, %v6350_v9  ;;  %v17773_v26 = vld [vmem:[#allocation100_spill] sm:$0xff] }
 0xbe4   : > { %v6741_v11 = vpop.f32.mrf.mxu2  ;;  %7670 = vmatpush.bf16.msrb.mxu0 %v10367_v15 }
 0xbe5   : > { %17767 = vst [vmem:[#allocation26_spill] sm:$0xff] %v15890_v42  ;;  %v17772_v42 = vld [vmem:[#allocation5_spill] sm:$0xff] }
 0xbe6   : > { %v6819_v22 = vpop.f32.mrf.mxu0  ;;  %v6431_v44 = vadd.f32 %v17773_v26, %v17772_v42  ;;  %v15910_v47 = vpop.f32.mrf.mxu1  ;;  %v17777_v26 = vld [vmem:[#allocation82_spill] sm:$0xff]  ;;  %v17778_v42 = vld [vmem:[#allocation36_spill] sm:$0xff] }
 0xbe7   : > { %v6869_v17 = vadd.f32 %v17770_v33, %v6819_v22  ;;  %17774 = vst [vmem:[#allocation28_spill] sm:$0xff] %v15910_v47  ;;  %v17775_v22 = vld [vmem:[#allocation119_spill] sm:$0xff] }
 0xbe8   : > { %v6790_v31 = vpop.f32.mrf.mxu3  ;;  %v6472_v15 = vadd.f32 %v15640_v10, %v6431_v44  ;;  %v17776_v33 = vld [vmem:[#allocation95_spill] sm:$0xff] }
 0xbe9   : > { %v15903_v25 = vadd.f32 %v6869_v17, %v6470_v38  ;;  %v6791_v14 = vadd.f32 %v6790_v31, %v6741_v11  ;;  %7575 = vmatmul.bf16.vlgmr.msra.gmra.mxu2 %v17771_v48  ;;  %v6433_v17 = vadd.f32 %v17778_v42, %v17777_v26  ;;  %v17783_v26 = vld [vmem:[#allocation84_spill] sm:$0xff]  ;;  %v17784_v42 = vld [vmem:[#allocation101_spill] sm:$0xff] }
 0xbea   : > { %v6436_v47 = vadd.f32 %v17784_v42, %v17783_v26 }
 0xbeb   : > { %v15908_v24 = vadd.f32 %v6791_v14, %v6485_v6  ;;  %v10356_v6 = vld [vmem:[%s17157_s11 + $0x318] sm:$0xf0] }
 0xbec   : > { %v7140_v58 = vpop.f32.mrf.mxu2 }
 0xbed   : > { %7624 = vmatmul.bf16.vlgmr.msrb.gmra.mxu3 %v14721_v0  ;;  %v10951_v0 = vld [vmem:[%s17157_s11 + $0x314] sm:$0xf] }
 0xbee   : > { %v6822_v1 = vpop.f32.mrf.mxu0  ;;  %v10359_v44 = vor.u32 %v10951_v0, %v10356_v6  ;;  %v6476_v6 = vadd.f32 %v15640_v10, %v6436_v47  ;;  %v10348_v47 = vld [vmem:[%s17157_s11 + $0x308] sm:$0xf0] }
 0xbef   : > { %v6872_v61 = vadd.f32 %v17775_v22, %v6822_v1  ;;  %v15931_v1 = vpop.f32.mrf.mxu1 }
 0xbf0   : > { %v7189_v9 = vpop.f32.mrf.mxu3  ;;  %7671 = vmatpush.bf16.msrb.mxu0 %v10359_v44  ;;  %17780 = vst [vmem:[#allocation31_spill] sm:$0xff] %v15931_v1 }
 0xbf1   : > { %v15915_v38 = vadd.f32 %v6872_v61, %v6472_v15  ;;  %v7190_v11 = vadd.f32 %v7189_v9, %v7140_v58  ;;  %7257 = vmatmul.bf16.gmra.mxu0 %v14469_v13  ;;  %7757 = vmatmul.bf16.gmra.mxu1 %v17776_v33  ;;  %v6474_v13 = vadd.f32 %v15640_v10, %v6433_v17  ;;  %v17781_v15 = vld [vmem:[#allocation32_spill] sm:$0xff] }
 0xbf3   : > { %v15922_v31 = vadd.f32 %v7190_v11, %v15508_v53  ;;  %v17782_v11 = vld [vmem:[#allocation73_spill] sm:$0xff] }
 0xbf4   : > { %v7142_v14 = vpop.f32.mrf.mxu2 }
 0xbf5   : > { %17779 = vst [vmem:[#allocation7_spill] sm:$0xff] %v15922_v31 }
 0xbf6   : > { %v6824_v58 = vpop.f32.mrf.mxu0 }
 0xbf7   : > { %v6874_v22 = vadd.f32 %v17781_v15, %v6824_v58 }
 0xbf8   : > { %v7191_v53 = vpop.f32.mrf.mxu3 }
 0xbf9   : > { %v15934_v61 = vadd.f32 %v6874_v22, %v6474_v13  ;;  %v7192_v9 = vadd.f32 %v7191_v53, %v7142_v14  ;;  %7580 = vmatmul.bf16.gmra.mxu2 %v17782_v11  ;;  %v15945_v13 = vpop.f32.mrf.mxu1  ;;  %v17786_v22 = vld [vmem:[#allocation98_spill] sm:$0xff]  ;;  %v17788_v53 = vld [vmem:[#allocation105_spill] sm:$0xff] }
 0xbfa   : > { %17785 = vst [vmem:[#allocation55_spill] sm:$0xff] %v15945_v13 }
 0xbfb   : > { %v15940_v31 = vadd.f32 %v7192_v9, %v15525_v19  ;;  %v17787_v19 = vld [vmem:[#allocation6_spill] sm:$0xff] }
 0xbfc   : > { %v7145_v0 = vpop.f32.mrf.mxu2  ;;  %v6438_v9 = vadd.f32 %v17788_v53, %v17787_v19  ;;  %v17791_v19 = vld [vmem:[#allocation47_spill] sm:$0xff] }
 0xbfd   : > { %7629 = vmatmul.bf16.gmra.mxu3 %v14776_v8 }
 0xbfe   : > { %v6827_v17 = vpop.f32.mrf.mxu0 }
 0xbff   : > { %v6877_v44 = vadd.f32 %v15408_v3, %v6827_v17  ;;  %v10949_v3 = vld [vmem:[%s17157_s11 + $0x304] sm:$0xf] }
 0xc00   : > { %v7194_v58 = vpop.f32.mrf.mxu3  ;;  %v10351_v42 = vor.u32 %v10949_v3, %v10348_v47  ;;  %v10594_v3 = vld [vmem:[%s17157_s11 + $0x4f0] sm:$0xf] }
 0xc01   : > { %v15947_v14 = vadd.f32 %v6877_v44, %v6476_v6  ;;  %v7195_v15 = vadd.f32 %v7194_v58, %v7145_v0  ;;  %7262 = vmatmul.bf16.gmra.mxu0 %v17730_v28  ;;  %8158 = vmatmul.bf16.vlgmr.msrb.gmra.mxu1 %v17786_v22  ;;  %v6478_v28 = vadd.f32 %v15640_v10, %v6438_v9  ;;  %v17789_v58 = vld [vmem:[#allocation78_spill] sm:$0xff]  ;;  %v15969_v13 = vpop.f32.mrf.mxu1  ;;  %v10530_v9 = vld [vmem:[%s17157_s11 + $0x470] sm:$0xf] }
 0xc02   : > { %7672 = vmatpush.bf16.msrb.mxu0 %v10351_v42  ;;  %17792 = vst [vmem:[#allocation56_spill] sm:$0xff] %v15969_v13  ;;  %v11012_v42 = vld [vmem:[%s17157_s11 + $0x4f4] sm:$0xf0] }
 0xc03   : > { %v15954_v8 = vadd.f32 %v7195_v15, %v15538_v62  ;;  %v17790_v15 = vld [vmem:[#allocation83_spill] sm:$0xff] }
 0xc04   : > { %v7147_v26 = vpop.f32.mrf.mxu2  ;;  %v6441_v53 = vadd.f32 %v17791_v19, %v17790_v15  ;;  %v17793_v19 = vld [vmem:[#allocation12_spill] sm:$0xff] }
 0xc06   : > { %v6829_v0 = vpop.f32.mrf.mxu0 }
 0xc07   : > { %v6879_v17 = vadd.f32 %v15436_v57, %v6829_v0  ;;  %v10996_v57 = vld [vmem:[%s17157_s11 + $0x474] sm:$0xf0] }
 0xc08   : > { %v7196_v6 = vpop.f32.mrf.mxu3 }
 0xc09   : > { %v15964_v44 = vadd.f32 %v6879_v17, %v6478_v28  ;;  %v7197_v62 = vadd.f32 %v7196_v6, %v7147_v26  ;;  %7585 = vmatmul.bf16.gmra.mxu2 %v17789_v58  ;;  %v10531_v26 = vor.u32 %v10996_v57, %v10530_v9  ;;  %v6480_v28 = vadd.f32 %v15640_v10, %v6441_v53  ;;  %v17794_v9 = vld [vmem:[#allocation87_spill] sm:$0xff]  ;;  %v17795_v57 = vld [vmem:[#allocation106_spill] sm:$0xff]  ;;  %v10995_v53 = vld [vmem:[%s17157_s11 + $0x474] sm:$0xf] }
 0xc0a   : > { %v6443_v13 = vadd.f32 %v17795_v57, %v17794_v9 }
 0xc0b   : > { %v15972_v1 = vadd.f32 %v7197_v62, %v15555_v60  ;;  %v10595_v60 = vor.u32 %v11012_v42, %v10594_v3  ;;  %8003 = vmatpush.bf16.msrb.mxu2 %v10531_v26  ;;  %v16004_v26 = vpop.f32.mrf.mxu1 }
 0xc0c   : > { %v7150_v47 = vpop.f32.mrf.mxu2  ;;  %v6482_v42 = vadd.f32 %v15640_v10, %v6443_v13  ;;  %v10586_v13 = vld [vmem:[%s17157_s11 + $0x4e0] sm:$0xf] }
 0xc0d   : > { %7634 = vmatmul.bf16.gmra.mxu3 %v14836_v51 }
 0xc0e   : > { %v6832_v0 = vpop.f32.mrf.mxu0  ;;  %8052 = vmatpush.bf16.msra.mxu3 %v10595_v60 }
 0xc0f   : > { %v6882_v17 = vadd.f32 %v15462_v2, %v6832_v0  ;;  %v10532_v2 = vld [vmem:[%s17157_s11 + $0x478] sm:$0xf0] }
 0xc10   : > { %v7199_v6 = vpop.f32.mrf.mxu3 }
 0xc11   : > { %v15989_v62 = vadd.f32 %v6882_v17, %v6480_v28  ;;  %v7200_v15 = vadd.f32 %v7199_v6, %v7150_v47  ;;  %7267 = vmatmul.bf16.gmra.mxu0 %v17743_v18  ;;  %8163 = vmatmul.bf16.gmra.mxu1 %v17793_v19  ;;  %v10535_v47 = vor.u32 %v10995_v53, %v10532_v2  ;;  %v17796_v17 = vld [vmem:[#allocation81_spill] sm:$0xff]  ;;  %v10522_v53 = vld [vmem:[%s17157_s11 + $0x460] sm:$0xf] }
 0xc12   : > { %v17797_v6 = vld [vmem:[#allocation21_spill] sm:$0xff] }
 0xc13   : > { %v15996_v51 = vadd.f32 %v7200_v15, %v15580_v36  ;;  %8101 = vmatpush.bf16.msra.mxu0 %v10535_v47  ;;  %v17798_v15 = vld [vmem:[#allocation42_spill] sm:$0xff]  ;;  %v11010_v47 = vld [vmem:[%s17157_s11 + $0x4e4] sm:$0xf0] }
 0xc14   : > { %v7152_v3 = vpop.f32.mrf.mxu2  ;;  %v6446_v9 = vadd.f32 %v17798_v15, %v17797_v6 }
 0xc16   : > { %v6834_v18 = vpop.f32.mrf.mxu0 }
 0xc17   : > { %v6884_v60 = vadd.f32 %v15478_v21, %v6834_v18  ;;  %v10994_v21 = vld [vmem:[%s17157_s11 + $0x464] sm:$0xf0] }
 0xc18   : > { %v7201_v36 = vpop.f32.mrf.mxu3 }
 0xc19   : > { %v16008_v0 = vadd.f32 %v6884_v60, %v6482_v42  ;;  %v7202_v28 = vadd.f32 %v7201_v36, %v7152_v3  ;;  %7590 = vmatmul.bf16.gmra.mxu2 %v17796_v17  ;;  %v10523_v3 = vor.u32 %v10994_v21, %v10522_v53  ;;  %v6484_v42 = vadd.f32 %v15640_v10, %v6446_v9  ;;  %v16030_v60 = vpop.f32.mrf.mxu1  ;;  %v17799_v53 = vld [vmem:[#allocation39_spill] sm:$0xff]  ;;  %v17800_v21 = vld [vmem:[#allocation88_spill] sm:$0xff] }
 0xc1a   : > { %v10993_v9 = vld [vmem:[%s17157_s11 + $0x464] sm:$0xf] }
 0xc1b   : > { %v16014_v57 = vadd.f32 %v7202_v28, %v15597_v50  ;;  %v10587_v50 = vor.u32 %v11010_v47, %v10586_v13  ;;  %8004 = vmatpush.bf16.msrb.mxu2 %v10523_v3 }
 0xc1c   : > { %v7155_v2 = vpop.f32.mrf.mxu2 }
 0xc1d   : > { %7639 = vmatmul.bf16.gmra.mxu3 %v14860_v52  ;;  %v17801_v52 = vld [vmem:[#allocation109_spill] sm:$0xff] }
 0xc1e   : > { %v6837_v18 = vpop.f32.mrf.mxu0  ;;  %8053 = vmatpush.bf16.msra.mxu3 %v10587_v50  ;;  %v6448_v13 = vadd.f32 %v17801_v52, %v17800_v21  ;;  %v10514_v52 = vld [vmem:[%s17157_s11 + $0x450] sm:$0xf] }
 0xc1f   : > { %v6887_v36 = vadd.f32 %v15500_v20, %v6837_v18  ;;  %v10524_v20 = vld [vmem:[%s17157_s11 + $0x468] sm:$0xf0] }
 0xc20   : > { %v7204_v28 = vpop.f32.mrf.mxu3 }
 0xc21   : > { %v16033_v6 = vadd.f32 %v6887_v36, %v6484_v42  ;;  %v7205_v15 = vadd.f32 %v7204_v28, %v7155_v2  ;;  %7272 = vmatmul.bf16.gmra.mxu0 %v17756_v45  ;;  %8168 = vmatmul.bf16.gmra.mxu1 %v17799_v53  ;;  %v10527_v2 = vor.u32 %v10993_v9, %v10524_v20  ;;  %v16050_v36 = vpop.f32.mrf.mxu1  ;;  %v11008_v20 = vld [vmem:[%s17157_s11 + $0x4d4] sm:$0xf0] }
 0xc22   : > { %v6486_v45 = vadd.f32 %v15640_v10, %v6448_v13  ;;  %v10992_v10 = vld [vmem:[%s17157_s11 + $0x454] sm:$0xf0] }
 0xc23   : > { %v16040_v3 = vadd.f32 %v7205_v15, %v15622_v56  ;;  %8102 = vmatpush.bf16.msra.mxu0 %v10527_v2  ;;  %v17802_v15 = vld [vmem:[#allocation80_spill] sm:$0xff]  ;;  %v10515_v9 = vor.u32 %v10992_v10, %v10514_v52 }
 0xc24   : > { %v7157_v47 = vpop.f32.mrf.mxu2 }
 0xc25   : > { %8005 = vmatpush.bf16.msrb.mxu2 %v10515_v9 }
 0xc26   : > { %v6839_v50 = vpop.f32.mrf.mxu0 }
 0xc27   : > { %v6889_v18 = vadd.f32 %v15518_v63, %v6839_v50  ;;  %v10578_v63 = vld [vmem:[%s17157_s11 + $0x4d0] sm:$0xf] }
 0xc28   : > { %v7206_v42 = vpop.f32.mrf.mxu3 }
 0xc29   : > { %v16052_v56 = vadd.f32 %v6889_v18, %v6486_v45  ;;  %v7207_v28 = vadd.f32 %v7206_v42, %v7157_v47  ;;  %7595 = vmatmul.bf16.gmra.mxu2 %v17802_v15  ;;  %v17803_v42 = vld [vmem:[#allocation108_spill] sm:$0xff] }
 0xc2b   : > { %v16056_v21 = vadd.f32 %v7207_v28, %v15644_v34  ;;  %v10579_v34 = vor.u32 %v11008_v20, %v10578_v63  ;;  %v16077_v28 = vpop.f32.mrf.mxu1  ;;  %v10990_v63 = vld [vmem:[%s17157_s11 + $0x444] sm:$0xf0] }
 0xc2c   : > { %v7160_v13 = vpop.f32.mrf.mxu2 }
 0xc2d   : > { %7644 = vmatmul.bf16.gmra.mxu3 %v17736_v43  ;;  %v10991_v43 = vld [vmem:[%s17157_s11 + $0x454] sm:$0xf] }
 0xc2e   : > { %v7238_v47 = vpop.f32.mrf.mxu0  ;;  %8054 = vmatpush.bf16.msra.mxu3 %v10579_v34  ;;  %v10570_v34 = vld [vmem:[%s17157_s11 + $0x4c0] sm:$0xf] }
 0xc2f   : > { %v7288_v2 = vadd.f32 %v15532_v41, %v7238_v47  ;;  %v10516_v41 = vld [vmem:[%s17157_s11 + $0x458] sm:$0xf0]  ;;  %v11006_v47 = vld [vmem:[%s17157_s11 + $0x4c4] sm:$0xf0] }
 0xc30   : > { %v7209_v50 = vpop.f32.mrf.mxu3  ;;  %v10519_v10 = vor.u32 %v10991_v43, %v10516_v41  ;;  %v17804_v43 = vld [vmem:[#allocation19_spill] sm:$0xff]  ;;  %v10988_v41 = vld [vmem:[%s17157_s11 + $0x434] sm:$0xf0] }
 0xc31   : > { %v16073_v45 = vadd.f32 %v7288_v2, %v15668_v23  ;;  %v7210_v18 = vadd.f32 %v7209_v50, %v7160_v13  ;;  %7673 = vmatmul.bf16.vlgmr.msrb.gmra.mxu0 %v17771_v48  ;;  %8173 = vmatmul.bf16.gmra.mxu1 %v17803_v42  ;;  %v10506_v48 = vld [vmem:[%s17157_s11 + $0x440] sm:$0xf]  ;;  %v10498_v2 = vld [vmem:[%s17157_s11 + $0x430] sm:$0xf] }
 0xc32   : > { %8103 = vmatpush.bf16.msra.mxu0 %v10519_v10  ;;  %v10499_v10 = vor.u32 %v10988_v41, %v10498_v2 }
 0xc33   : > { %v16080_v52 = vadd.f32 %v7210_v18, %v15674_v54  ;;  %v10507_v54 = vor.u32 %v10990_v63, %v10506_v48 }
 0xc34   : > { %v7162_v23 = vpop.f32.mrf.mxu2 }
 0xc35   : > { %8006 = vmatpush.bf16.msrb.mxu2 %v10507_v54  ;;  %v10562_v54 = vld [vmem:[%s17157_s11 + $0x4b0] sm:$0xf] }
 0xc36   : > { %v7240_v13 = vpop.f32.mrf.mxu0 }
 0xc37   : > { %v7290_v9 = vadd.f32 %v15548_v4, %v7240_v13  ;;  %v10571_v4 = vor.u32 %v11006_v47, %v10570_v34  ;;  %v16123_v13 = vpop.f32.mrf.mxu1 }
 0xc38   : > { %v7211_v20 = vpop.f32.mrf.mxu3 }
 0xc39   : > { %v16105_v50 = vadd.f32 %v7290_v9, %v15704_v32  ;;  %v7212_v18 = vadd.f32 %v7211_v20, %v7162_v23  ;;  %7600 = vmatmul.bf16.gmra.mxu2 %v17804_v43  ;;  %8055 = vmatpush.bf16.msra.mxu3 %v10571_v4  ;;  %v10490_v32 = vld [vmem:[%s17157_s11 + $0x420] sm:$0xf]  ;;  %v10986_v23 = vld [vmem:[%s17157_s11 + $0x424] sm:$0xf0]  ;;  %v11004_v9 = vld [vmem:[%s17157_s11 + $0x4b4] sm:$0xf0] }
 0xc3a   : > { %8007 = vmatpush.bf16.msrb.mxu2 %v10499_v10  ;;  %v10563_v34 = vor.u32 %v11004_v9, %v10562_v54  ;;  %v10554_v4 = vld [vmem:[%s17157_s11 + $0x4a0] sm:$0xf]  ;;  %v11043_v54 = vld [vmem:[%s17157_s11 + $0x5f4] sm:$0xf] }
 0xc3b   : > { %v16112_v48 = vadd.f32 %v7212_v18, %v15712_v27  ;;  %v10491_v27 = vor.u32 %v10986_v23, %v10490_v32  ;;  %v10482_v18 = vld [vmem:[%s17157_s11 + $0x410] sm:$0xf]  ;;  %v11002_v23 = vld [vmem:[%s17157_s11 + $0x4a4] sm:$0xf0] }
 0xc3c   : > { %v7165_v63 = vpop.f32.mrf.mxu2 }
 0xc3d   : > { %7649 = vmatmul.bf16.gmra.mxu3 %v17749_v35  ;;  %v10984_v35 = vld [vmem:[%s17157_s11 + $0x414] sm:$0xf0] }
 0xc3e   : > { %v7243_v20 = vpop.f32.mrf.mxu0  ;;  %8008 = vmatpush.bf16.msrb.mxu2 %v10491_v27  ;;  %8056 = vmatpush.bf16.msra.mxu3 %v10563_v34  ;;  %v10483_v32 = vor.u32 %v10984_v35, %v10482_v18  ;;  %v10724_v27 = vld [vmem:[%s17157_s11 + $0x5f8] sm:$0xf0]  ;;  %v10546_v18 = vld [vmem:[%s17157_s11 + $0x490] sm:$0xf] }
 0xc3f   : > { %v7293_v47 = vadd.f32 %v15574_v39, %v7243_v20  ;;  %v17805_v39 = vld [vmem:[#allocation111_spill] sm:$0xff]  ;;  %v10727_v9 = vor.u32 %v11043_v54, %v10724_v27  ;;  %v10508_v20 = vld [vmem:[%s17157_s11 + $0x448] sm:$0xf0] }
 0xc40   : > { %v7214_v2 = vpop.f32.mrf.mxu3 }
 0xc41   : > { %v16140_v41 = vadd.f32 %v7293_v47, %v15743_v46  ;;  %v7215_v10 = vadd.f32 %v7214_v2, %v7165_v63  ;;  %7678 = vmatmul.bf16.gmra.mxu0 %v17782_v11  ;;  %8178 = vmatmul.bf16.gmra.mxu1 %v17805_v39  ;;  %v10555_v46 = vor.u32 %v11002_v23, %v10554_v4  ;;  %v10989_v11 = vld [vmem:[%s17157_s11 + $0x444] sm:$0xf]  ;;  %v10474_v2 = vld [vmem:[%s17157_s11 + $0x400] sm:$0xf]  ;;  %v11000_v4 = vld [vmem:[%s17157_s11 + $0x494] sm:$0xf0] }
 0xc42   : > { %v10511_v47 = vor.u32 %v10989_v11, %v10508_v20  ;;  %8009 = vmatpush.bf16.msrb.mxu2 %v10483_v32  ;;  %8586 = vmatpush.bf16.msra.mxu1 %v10727_v9  ;;  %v10716_v32 = vld [vmem:[%s17157_s11 + $0x5e8] sm:$0xf0]  ;;  %v10547_v54 = vor.u32 %v11000_v4, %v10546_v18  ;;  %v10538_v20 = vld [vmem:[%s17157_s11 + $0x480] sm:$0xf]  ;;  %v10708_v4 = vld [vmem:[%s17157_s11 + $0x5d8] sm:$0xf0] }
 0xc43   : > { %v16154_v63 = vadd.f32 %v7215_v10, %v15758_v55  ;;  %8057 = vmatpush.bf16.msra.mxu3 %v10555_v46  ;;  %v10982_v55 = vld [vmem:[%s17157_s11 + $0x404] sm:$0xf0]  ;;  %v11041_v10 = vld [vmem:[%s17157_s11 + $0x5e4] sm:$0xf]  ;;  %v16180_v46 = vpop.f32.mrf.mxu1 }
 0xc44   : > { %v7167_v34 = vpop.f32.mrf.mxu2  ;;  %v10475_v35 = vor.u32 %v10982_v55, %v10474_v2  ;;  %8104 = vmatpush.bf16.msra.mxu0 %v10511_v47  ;;  %v10719_v27 = vor.u32 %v11041_v10, %v10716_v32  ;;  %v10998_v2 = vld [vmem:[%s17157_s11 + $0x484] sm:$0xf0]  ;;  %v11039_v47 = vld [vmem:[%s17157_s11 + $0x5d4] sm:$0xf] }
 0xc45   : > { %v10711_v10 = vor.u32 %v11039_v47, %v10708_v4  ;;  %v10987_v4 = vld [vmem:[%s17157_s11 + $0x434] sm:$0xf] }
 0xc46   : > { %v7245_v23 = vpop.f32.mrf.mxu0  ;;  %8010 = vmatpush.bf16.msrb.mxu2 %v10475_v35  ;;  %8587 = vmatpush.bf16.msra.mxu1 %v10719_v27  ;;  %v10539_v35 = vor.u32 %v10998_v2, %v10538_v20  ;;  %v10692_v20 = vld [vmem:[%s17157_s11 + $0x5b8] sm:$0xf0] }
 0xc47   : > { %v7295_v9 = vadd.f32 %v15590_v12, %v7245_v23  ;;  %8058 = vmatpush.bf16.msra.mxu3 %v10547_v54  ;;  %v17806_v12 = vld [vmem:[#allocation85_spill] sm:$0xff] }
 0xc48   : > { %v7216_v11 = vpop.f32.mrf.mxu3 }
 0xc49   : > { %v16193_v55 = vadd.f32 %v7295_v9, %v15800_v59  ;;  %v7217_v18 = vadd.f32 %v7216_v11, %v7167_v34  ;;  %7605 = vmatmul.bf16.gmra.mxu2 %v17806_v12  ;;  %v11037_v59 = vld [vmem:[%s17157_s11 + $0x5c4] sm:$0xf]  ;;  %v10700_v34 = vld [vmem:[%s17157_s11 + $0x5c8] sm:$0xf0] }
 0xc4a   : > { %8588 = vmatpush.bf16.msra.mxu1 %v10711_v10  ;;  %v10703_v27 = vor.u32 %v11037_v59, %v10700_v34  ;;  %v10500_v10 = vld [vmem:[%s17157_s11 + $0x438] sm:$0xf0] }
 0xc4b   : > { %v16200_v32 = vadd.f32 %v7217_v18, %v15808_v40  ;;  %8059 = vmatpush.bf16.msra.mxu3 %v10539_v35  ;;  %v11035_v40 = vld [vmem:[%s17157_s11 + $0x5b4] sm:$0xf]  ;;  %v16216_v2 = vpop.f32.mrf.mxu1  ;;  %v17807_v18 = vld [vmem:[#allocation110_spill] sm:$0xff]  ;;  %v10503_v59 = vor.u32 %v10987_v4, %v10500_v10 }
 0xc4c   : > { %v7170_v23 = vpop.f32.mrf.mxu2 }
 0xc4d   : > { %7654 = vmatmul.bf16.gmra.mxu3 %v17763_v7  ;;  %8105 = vmatpush.bf16.msra.mxu0 %v10503_v59  ;;  %v11029_v59 = vld [vmem:[%s17157_s11 + $0x584] sm:$0xf] }
 0xc4e   : > { %v7248_v54 = vpop.f32.mrf.mxu0  ;;  %8589 = vmatpush.bf16.msra.mxu1 %v10703_v27 }
 0xc4f   : > { %v7298_v9 = vadd.f32 %v15616_v29, %v7248_v54  ;;  %v10695_v29 = vor.u32 %v11035_v40, %v10692_v20 }
 0xc50   : > { %v7219_v11 = vpop.f32.mrf.mxu3 }
 0xc51   : > { %v16219_v47 = vadd.f32 %v7298_v9, %v15830_v5  ;;  %v7220_v7 = vadd.f32 %v7219_v11, %v7170_v23  ;;  %7683 = vmatmul.bf16.gmra.mxu0 %v17789_v58  ;;  %8183 = vmatmul.bf16.gmra.mxu1 %v17807_v18  ;;  %v11033_v58 = vld [vmem:[%s17157_s11 + $0x5a4] sm:$0xf]  ;;  %v10684_v23 = vld [vmem:[%s17157_s11 + $0x5a8] sm:$0xf0]  ;;  %v11031_v9 = vld [vmem:[%s17157_s11 + $0x594] sm:$0xf] }
 0xc52   : > { %8590 = vmatpush.bf16.msra.mxu1 %v10695_v29  ;;  %v10687_v34 = vor.u32 %v11033_v58, %v10684_v23  ;;  %v10676_v11 = vld [vmem:[%s17157_s11 + $0x598] sm:$0xf0]  ;;  %v17810_v23 = vld [vmem:[#allocation4_spill] sm:$0xff] }
 0xc53   : > { %v16224_v35 = vadd.f32 %v7220_v7, %v15836_v30  ;;  %v17808_v7 = vld [vmem:[#allocation86_spill] sm:$0xff]  ;;  %v10679_v29 = vor.u32 %v11031_v9, %v10676_v11  ;;  %v16249_v4 = vpop.f32.mrf.mxu1  ;;  %v17812_v9 = vld [vmem:[#allocation48_spill] sm:$0xff] }
 0xc54   : > { %v7172_v5 = vpop.f32.mrf.mxu2  ;;  %17809 = vst [vmem:[#allocation8_spill] sm:$0xff] %v16249_v4  ;;  %v17813_v11 = vld [vmem:[#allocation26_spill] sm:$0xff] }
 0xc56   : > { %v7250_v30 = vpop.f32.mrf.mxu0  ;;  %8591 = vmatpush.bf16.msra.mxu1 %v10687_v34 }
 0xc57   : > { %v7300_v54 = vadd.f32 %v15632_v16, %v7250_v30 }
 0xc58   : > { %v7221_v27 = vpop.f32.mrf.mxu3 }
 0xc59   : > { %v16246_v40 = vadd.f32 %v7300_v54, %v15861_v49  ;;  %v7222_v20 = vadd.f32 %v7221_v27, %v7172_v5  ;;  %7610 = vmatmul.bf16.gmra.mxu2 %v17808_v7  ;;  %v10668_v49 = vld [vmem:[%s17157_s11 + $0x588] sm:$0xf0]  ;;  %v17811_v54 = vld [vmem:[#allocation25_spill] sm:$0xff] }
 0xc5a   : > { %8592 = vmatpush.bf16.msra.mxu1 %v10679_v29  ;;  %v10671_v58 = vor.u32 %v11029_v59, %v10668_v49  ;;  %v10492_v29 = vld [vmem:[%s17157_s11 + $0x428] sm:$0xf0] }
 0xc5b   : > { %v16252_v16 = vadd.f32 %v7222_v20, %v15868_v37 }
 0xc5c   : > { %v7175_v10 = vpop.f32.mrf.mxu2 }
 0xc5d   : > { %7659 = vmatmul.bf16.gmra.mxu3 %v17776_v33  ;;  %v10985_v33 = vld [vmem:[%s17157_s11 + $0x424] sm:$0xf] }
 0xc5e   : > { %v7253_v5 = vpop.f32.mrf.mxu0  ;;  %8593 = vmatpush.bf16.msra.mxu1 %v10671_v58  ;;  %v10495_v49 = vor.u32 %v10985_v33, %v10492_v29 }
 0xc5f   : > { %v7303_v30 = vadd.f32 %v17810_v23, %v7253_v5  ;;  %v16276_v5 = vpop.f32.mrf.mxu1 }
 0xc60   : > { %v7224_v34 = vpop.f32.mrf.mxu3  ;;  %17814 = vst [vmem:[#allocation57_spill] sm:$0xff] %v16276_v5  ;;  %8106 = vmatpush.bf16.msra.mxu0 %v10495_v49  ;;  %v17818_v5 = vld [vmem:[#allocation20_spill] sm:$0xff] }
 0xc61   : > { %v16263_v37 = vadd.f32 %v7303_v30, %v17811_v54  ;;  %v7225_v27 = vadd.f32 %v7224_v34, %v7175_v10  ;;  %7688 = vmatmul.bf16.gmra.mxu0 %v17796_v17  ;;  %8188 = vmatmul.bf16.gmra.mxu1 %v17812_v9  ;;  %v17815_v17 = vld [vmem:[#allocation46_spill] sm:$0xff]  ;;  %v17816_v54 = vld [vmem:[#allocation24_spill] sm:$0xff] }
 0xc63   : > { %v16268_v20 = vadd.f32 %v7225_v27, %v17813_v11 }
 0xc64   : > { %v7177_v59 = vpop.f32.mrf.mxu2 }
 0xc66   : > { %v7255_v10 = vpop.f32.mrf.mxu0 }
 0xc67   : > { %v7305_v23 = vadd.f32 %v17815_v17, %v7255_v10  ;;  %v16287_v29 = vpop.f32.mrf.mxu1  ;;  %v17820_v17 = vld [vmem:[#allocation7_spill] sm:$0xff] }
 0xc68   : > { %v7226_v58 = vpop.f32.mrf.mxu3  ;;  %17817 = vst [vmem:[#allocation34_spill] sm:$0xff] %v16287_v29 }
 0xc69   : > { %v16280_v30 = vadd.f32 %v7305_v23, %v15903_v25  ;;  %v7227_v34 = vadd.f32 %v7226_v58, %v7177_v59  ;;  %8011 = vmatmul.bf16.vlgmr.msrb.gmra.mxu2 %v17816_v54  ;;  %v17819_v59 = vld [vmem:[#allocation117_spill] sm:$0xff] }
 0xc6b   : > { %v16284_v27 = vadd.f32 %v7227_v34, %v15908_v24 }
 0xc6c   : > { %v7576_v11 = vpop.f32.mrf.mxu2 }
 0xc6d   : > { %8060 = vmatmul.bf16.vlgmr.msra.gmra.mxu3 %v17786_v22  ;;  %v10983_v22 = vld [vmem:[%s17157_s11 + $0x414] sm:$0xf] }
 0xc6e   : > { %v7258_v33 = vpop.f32.mrf.mxu0 }
 0xc6f   : > { %v7308_v49 = vadd.f32 %v17818_v5, %v7258_v33  ;;  %v10484_v5 = vld [vmem:[%s17157_s11 + $0x418] sm:$0xf0] }
 0xc70   : > { %v7625_v4 = vpop.f32.mrf.mxu3  ;;  %v10487_v58 = vor.u32 %v10983_v22, %v10484_v5  ;;  %v17824_v5 = vld [vmem:[#allocation14_spill] sm:$0xff] }
 0xc71   : > { %v16291_v10 = vadd.f32 %v7308_v49, %v15915_v38  ;;  %v7626_v25 = vadd.f32 %v7625_v4, %v7576_v11  ;;  %7693 = vmatmul.bf16.gmra.mxu0 %v17802_v15  ;;  %8193 = vmatmul.bf16.gmra.mxu1 %v17819_v59  ;;  %v17822_v4 = vld [vmem:[#allocation22_spill] sm:$0xff]  ;;  %v16305_v11 = vpop.f32.mrf.mxu1 }
 0xc72   : > { %8107 = vmatpush.bf16.msra.mxu0 %v10487_v58 }
 0xc73   : > { %v16296_v24 = vadd.f32 %v7626_v25, %v17820_v17  ;;  %v17823_v25 = vld [vmem:[#allocation93_spill] sm:$0xff] }
 0xc74   : > { %v7578_v23 = vpop.f32.mrf.mxu2 }
 0xc75   : > { %17821 = vst [vmem:[#allocation59_spill] sm:$0xff] %v16296_v24 }
 0xc76   : > { %v7260_v38 = vpop.f32.mrf.mxu0 }
 0xc77   : > { %v7310_v34 = vadd.f32 %v17822_v4, %v7260_v38 }
 0xc78   : > { %v7627_v15 = vpop.f32.mrf.mxu3 }
 0xc79   : > { %v16308_v33 = vadd.f32 %v7310_v34, %v15934_v61  ;;  %v7628_v49 = vadd.f32 %v7627_v15, %v7578_v23  ;;  %8016 = vmatmul.bf16.gmra.mxu2 %v17823_v25  ;;  %v17825_v61 = vld [vmem:[#allocation29_spill] sm:$0xff]  ;;  %v16321_v23 = vpop.f32.mrf.mxu1  ;;  %v10476_v34 = vld [vmem:[%s17157_s11 + $0x408] sm:$0xf0] }
 0xc7a   : > { %17826 = vst [vmem:[#allocation9_spill] sm:$0xff] %v16321_v23 }
 0xc7b   : > { %v16312_v17 = vadd.f32 %v7628_v49, %v15940_v31 }
 0xc7c   : > { %v7581_v29 = vpop.f32.mrf.mxu2 }
 0xc7d   : > { %8065 = vmatmul.bf16.gmra.mxu3 %v17793_v19  ;;  %v10981_v19 = vld [vmem:[%s17157_s11 + $0x404] sm:$0xf] }
 0xc7e   : > { %v7263_v22 = vpop.f32.mrf.mxu0  ;;  %v10479_v15 = vor.u32 %v10981_v19, %v10476_v34  ;;  %v11028_v19 = vld [vmem:[%s17157_s11 + $0x574] sm:$0xf0]  ;;  %v10722_v34 = vld [vmem:[%s17157_s11 + $0x5f0] sm:$0xf] }
 0xc7f   : > { %v7313_v58 = vadd.f32 %v17824_v5, %v7263_v22  ;;  %v17828_v5 = vld [vmem:[#allocation96_spill] sm:$0xff] }
 0xc80   : > { %v7630_v24 = vpop.f32.mrf.mxu3  ;;  %8108 = vmatpush.bf16.msra.mxu0 %v10479_v15 }
 0xc81   : > { %v16317_v38 = vadd.f32 %v7313_v58, %v15947_v14  ;;  %v7631_v4 = vadd.f32 %v7630_v24, %v7581_v29  ;;  %7698 = vmatmul.bf16.gmra.mxu0 %v17804_v43  ;;  %8594 = vmatmul.bf16.vlgmr.msra.gmra.mxu1 %v17825_v61  ;;  %v17827_v43 = vld [vmem:[#allocation23_spill] sm:$0xff] }
 0xc83   : > { %v16324_v31 = vadd.f32 %v7631_v4, %v15954_v8  ;;  %v10658_v4 = vld [vmem:[%s17157_s11 + $0x570] sm:$0xf] }
 0xc84   : > { %v7583_v14 = vpop.f32.mrf.mxu2  ;;  %v10659_v15 = vor.u32 %v11028_v19, %v10658_v4  ;;  %v17831_v4 = vld [vmem:[#allocation121_spill] sm:$0xff] }
 0xc86   : > { %v7265_v29 = vpop.f32.mrf.mxu0  ;;  %8439 = vmatpush.bf16.msra.mxu2 %v10659_v15 }
 0xc87   : > { %v7315_v24 = vadd.f32 %v17827_v43, %v7265_v29 }
 0xc88   : > { %v7632_v49 = vpop.f32.mrf.mxu3 }
 0xc89   : > { %v16334_v22 = vadd.f32 %v7315_v24, %v15964_v44  ;;  %v7633_v8 = vadd.f32 %v7632_v49, %v7583_v14  ;;  %8021 = vmatmul.bf16.gmra.mxu2 %v17828_v5  ;;  %v11044_v14 = vld [vmem:[%s17157_s11 + $0x5f4] sm:$0xf0] }
 0xc8a   : > { %v10723_v29 = vor.u32 %v11044_v14, %v10722_v34  ;;  %v17830_v24 = vld [vmem:[#allocation54_spill] sm:$0xff] }
 0xc8b   : > { %v16338_v58 = vadd.f32 %v7633_v8, %v15972_v1  ;;  %v16352_v1 = vpop.f32.mrf.mxu1  ;;  %v10660_v34 = vld [vmem:[%s17157_s11 + $0x578] sm:$0xf0] }
 0xc8c   : > { %v7586_v44 = vpop.f32.mrf.mxu2  ;;  %8488 = vmatpush.bf16.msrb.mxu3 %v10723_v29 }
 0xc8d   : > { %17829 = vst [vmem:[#allocation37_spill] sm:$0xff] %v16338_v58  ;;  %8070 = vmatmul.bf16.gmra.mxu3 %v17799_v53  ;;  %v11027_v53 = vld [vmem:[%s17157_s11 + $0x574] sm:$0xf] }
 0xc8e   : > { %v7268_v43 = vpop.f32.mrf.mxu0  ;;  %v10663_v14 = vor.u32 %v11027_v53, %v10660_v34  ;;  %v11026_v53 = vld [vmem:[%s17157_s11 + $0x564] sm:$0xf0]  ;;  %v10714_v34 = vld [vmem:[%s17157_s11 + $0x5e0] sm:$0xf] }
 0xc8f   : > { %v7318_v49 = vadd.f32 %v17830_v24, %v7268_v43  ;;  %v17834_v24 = vld [vmem:[#allocation99_spill] sm:$0xff] }
 0xc90   : > { %v7635_v8 = vpop.f32.mrf.mxu3  ;;  %8537 = vmatpush.bf16.msrb.mxu0 %v10663_v14 }
 0xc91   : > { %v16357_v23 = vadd.f32 %v7318_v49, %v15989_v62  ;;  %v7636_v58 = vadd.f32 %v7635_v8, %v7586_v44  ;;  %7703 = vmatmul.bf16.gmra.mxu0 %v17806_v12  ;;  %8599 = vmatmul.bf16.gmra.mxu1 %v17831_v4  ;;  %v17833_v12 = vld [vmem:[#allocation28_spill] sm:$0xff]  ;;  %v10650_v8 = vld [vmem:[%s17157_s11 + $0x560] sm:$0xf] }
 0xc92   : > { %v10651_v14 = vor.u32 %v11026_v53, %v10650_v8  ;;  %v17837_v8 = vld [vmem:[#allocation35_spill] sm:$0xff] }
 0xc93   : > { %v16362_v19 = vadd.f32 %v7636_v58, %v15996_v51  ;;  %v16370_v44 = vpop.f32.mrf.mxu1 }
 0xc94   : > { %v7588_v15 = vpop.f32.mrf.mxu2  ;;  %17832 = vst [vmem:[#allocation58_spill] sm:$0xff] %v16370_v44  ;;  %8440 = vmatpush.bf16.msra.mxu2 %v10651_v14 }
 0xc96   : > { %v7270_v62 = vpop.f32.mrf.mxu0 }
 0xc97   : > { %v7320_v29 = vadd.f32 %v17833_v12, %v7270_v62  ;;  %v17836_v12 = vld [vmem:[#allocation31_spill] sm:$0xff] }
 0xc98   : > { %v7637_v43 = vpop.f32.mrf.mxu3 }
 0xc99   : > { %v16374_v51 = vadd.f32 %v7320_v29, %v16008_v0  ;;  %v7638_v58 = vadd.f32 %v7637_v43, %v7588_v15  ;;  %8026 = vmatmul.bf16.gmra.mxu2 %v17834_v24  ;;  %v11042_v15 = vld [vmem:[%s17157_s11 + $0x5e4] sm:$0xf0] }
 0xc9b   : > { %v16378_v49 = vadd.f32 %v7638_v58, %v16014_v57  ;;  %v10715_v57 = vor.u32 %v11042_v15, %v10714_v34  ;;  %v16394_v58 = vpop.f32.mrf.mxu1  ;;  %v10652_v34 = vld [vmem:[%s17157_s11 + $0x568] sm:$0xf0] }
 0xc9c   : > { %v7591_v0 = vpop.f32.mrf.mxu2 }
 0xc9d   : > { %17835 = vst [vmem:[#allocation10_spill] sm:$0xff] %v16378_v49  ;;  %8075 = vmatmul.bf16.gmra.mxu3 %v17803_v42  ;;  %v11025_v42 = vld [vmem:[%s17157_s11 + $0x564] sm:$0xf] }
 0xc9e   : > { %v7273_v62 = vpop.f32.mrf.mxu0  ;;  %8489 = vmatpush.bf16.msrb.mxu3 %v10715_v57  ;;  %v10655_v15 = vor.u32 %v11025_v42, %v10652_v34  ;;  %v11024_v42 = vld [vmem:[%s17157_s11 + $0x554] sm:$0xf0] }
 0xc9f   : > { %v7323_v29 = vadd.f32 %v17836_v12, %v7273_v62 }
 0xca0   : > { %v7640_v43 = vpop.f32.mrf.mxu3  ;;  %8538 = vmatpush.bf16.msrb.mxu0 %v10655_v15  ;;  %v11040_v15 = vld [vmem:[%s17157_s11 + $0x5d4] sm:$0xf0] }
 0xca1   : > { %v16397_v44 = vadd.f32 %v7323_v29, %v16033_v6  ;;  %v7641_v49 = vadd.f32 %v7640_v43, %v7591_v0  ;;  %7708 = vmatmul.bf16.gmra.mxu0 %v17808_v7  ;;  %8604 = vmatmul.bf16.gmra.mxu1 %v17837_v8  ;;  %v17838_v0 = vld [vmem:[#allocation55_spill] sm:$0xff]  ;;  %v10642_v43 = vld [vmem:[%s17157_s11 + $0x550] sm:$0xf] }
 0xca3   : > { %v16402_v53 = vadd.f32 %v7641_v49, %v16040_v3  ;;  %v17839_v49 = vld [vmem:[#allocation102_spill] sm:$0xff]  ;;  %v16415_v12 = vpop.f32.mrf.mxu1 }
 0xca4   : > { %v7593_v14 = vpop.f32.mrf.mxu2  ;;  %17840 = vst [vmem:[#allocation60_spill] sm:$0xff] %v16415_v12 }
 0xca6   : > { %v7275_v6 = vpop.f32.mrf.mxu0 }
 0xca7   : > { %v7325_v57 = vadd.f32 %v17838_v0, %v7275_v6  ;;  %v17841_v0 = vld [vmem:[#allocation56_spill] sm:$0xff] }
 0xca8   : > { %v7642_v7 = vpop.f32.mrf.mxu3 }
 0xca9   : > { %v16412_v62 = vadd.f32 %v7325_v57, %v16052_v56  ;;  %v7643_v3 = vadd.f32 %v7642_v7, %v7593_v14  ;;  %8031 = vmatmul.bf16.gmra.mxu2 %v17839_v49  ;;  %v10706_v56 = vld [vmem:[%s17157_s11 + $0x5d0] sm:$0xf]  ;;  %v10643_v14 = vor.u32 %v11024_v42, %v10642_v43  ;;  %v17842_v43 = vld [vmem:[#allocation15_spill] sm:$0xff] }
 0xcab   : > { %v16418_v29 = vadd.f32 %v7643_v3, %v16056_v21  ;;  %v10707_v21 = vor.u32 %v11040_v15, %v10706_v56  ;;  %8441 = vmatpush.bf16.msra.mxu2 %v10643_v14  ;;  %v10644_v56 = vld [vmem:[%s17157_s11 + $0x558] sm:$0xf0] }
 0xcac   : > { %v7596_v34 = vpop.f32.mrf.mxu2 }
 0xcad   : > { %8080 = vmatmul.bf16.gmra.mxu3 %v17805_v39  ;;  %v11023_v39 = vld [vmem:[%s17157_s11 + $0x554] sm:$0xf] }
 0xcae   : > { %v7674_v6 = vpop.f32.mrf.mxu0  ;;  %8490 = vmatpush.bf16.msrb.mxu3 %v10707_v21  ;;  %v10647_v15 = vor.u32 %v11023_v39, %v10644_v56 }
 0xcaf   : > { %v7724_v57 = vadd.f32 %v17841_v0, %v7674_v6  ;;  %v10698_v0 = vld [vmem:[%s17157_s11 + $0x5c0] sm:$0xf] }
 0xcb0   : > { %v7645_v7 = vpop.f32.mrf.mxu3  ;;  %8539 = vmatpush.bf16.msrb.mxu0 %v10647_v15  ;;  %v17843_v15 = vld [vmem:[#allocation103_spill] sm:$0xff] }
 0xcb1   : > { %v16435_v3 = vadd.f32 %v7724_v57, %v16073_v45  ;;  %v7646_v12 = vadd.f32 %v7645_v7, %v7596_v34  ;;  %8109 = vmatmul.bf16.vlgmr.msra.gmra.mxu0 %v17816_v54  ;;  %8609 = vmatmul.bf16.gmra.mxu1 %v17842_v43  ;;  %v10634_v45 = vld [vmem:[%s17157_s11 + $0x540] sm:$0xf]  ;;  %v11022_v54 = vld [vmem:[%s17157_s11 + $0x544] sm:$0xf0]  ;;  %v10626_v7 = vld [vmem:[%s17157_s11 + $0x530] sm:$0xf] }
 0xcb2   : > { %v11038_v57 = vld [vmem:[%s17157_s11 + $0x5c4] sm:$0xf0] }
 0xcb3   : > { %v16440_v42 = vadd.f32 %v7646_v12, %v16080_v52  ;;  %v16454_v52 = vpop.f32.mrf.mxu1  ;;  %v10635_v12 = vor.u32 %v11022_v54, %v10634_v45  ;;  %v11020_v45 = vld [vmem:[%s17157_s11 + $0x534] sm:$0xf0] }
 0xcb4   : > { %v7598_v14 = vpop.f32.mrf.mxu2  ;;  %v10627_v54 = vor.u32 %v11020_v45, %v10626_v7  ;;  %v10610_v45 = vld [vmem:[%s17157_s11 + $0x510] sm:$0xf] }
 0xcb5   : > { %8442 = vmatpush.bf16.msra.mxu2 %v10635_v12 }
 0xcb6   : > { %v7676_v34 = vpop.f32.mrf.mxu0 }
 0xcb7   : > { %v7726_v21 = vadd.f32 %v16004_v26, %v7676_v34  ;;  %v10699_v26 = vor.u32 %v11038_v57, %v10698_v0 }
 0xcb8   : > { %v7647_v6 = vpop.f32.mrf.mxu3 }
 0xcb9   : > { %v16467_v39 = vadd.f32 %v7726_v21, %v16105_v50  ;;  %v7648_v56 = vadd.f32 %v7647_v6, %v7598_v14  ;;  %8036 = vmatmul.bf16.gmra.mxu2 %v17843_v15  ;;  %8491 = vmatpush.bf16.msrb.mxu3 %v10699_v26  ;;  %v10618_v50 = vld [vmem:[%s17157_s11 + $0x520] sm:$0xf]  ;;  %v11018_v14 = vld [vmem:[%s17157_s11 + $0x524] sm:$0xf0]  ;;  %v10690_v21 = vld [vmem:[%s17157_s11 + $0x5b0] sm:$0xf] }
 0xcba   : > { %8443 = vmatpush.bf16.msra.mxu2 %v10627_v54  ;;  %v10619_v6 = vor.u32 %v11018_v14, %v10618_v50  ;;  %v10682_v54 = vld [vmem:[%s17157_s11 + $0x5a0] sm:$0xf] }
 0xcbb   : > { %v16474_v12 = vadd.f32 %v7648_v56, %v16112_v48  ;;  %v11036_v48 = vld [vmem:[%s17157_s11 + $0x5b4] sm:$0xf0]  ;;  %v16489_v7 = vpop.f32.mrf.mxu1 }
 0xcbc   : > { %v7601_v34 = vpop.f32.mrf.mxu2  ;;  %v10691_v57 = vor.u32 %v11036_v48, %v10690_v21 }
 0xcbd   : > { %17844 = vst [vmem:[#allocation40_spill] sm:$0xff] %v16474_v12  ;;  %8085 = vmatmul.bf16.gmra.mxu3 %v17807_v18  ;;  %v11016_v18 = vld [vmem:[%s17157_s11 + $0x514] sm:$0xf0] }
 0xcbe   : > { %v7679_v0 = vpop.f32.mrf.mxu0  ;;  %8444 = vmatpush.bf16.msra.mxu2 %v10619_v6  ;;  %8492 = vmatpush.bf16.msrb.mxu3 %v10691_v57  ;;  %v10611_v21 = vor.u32 %v11016_v18, %v10610_v45  ;;  %v11034_v6 = vld [vmem:[%s17157_s11 + $0x5a4] sm:$0xf0]  ;;  %v11021_v57 = vld [vmem:[%s17157_s11 + $0x544] sm:$0xf]  ;;  %v11032_v18 = vld [vmem:[%s17157_s11 + $0x594] sm:$0xf0] }
 0xcbf   : > { %v7729_v56 = vadd.f32 %v16030_v60, %v7679_v0  ;;  %v17845_v60 = vld [vmem:[#allocation17_spill] sm:$0xff]  ;;  %v10683_v48 = vor.u32 %v11034_v6, %v10682_v54 }
 0xcc0   : > { %v7650_v26 = vpop.f32.mrf.mxu3 }
 0xcc1   : > { %v16502_v50 = vadd.f32 %v7729_v56, %v16140_v41  ;;  %v7651_v14 = vadd.f32 %v7650_v26, %v7601_v34  ;;  %8114 = vmatmul.bf16.gmra.mxu0 %v17823_v25  ;;  %8614 = vmatmul.bf16.gmra.mxu1 %v17845_v60  ;;  %v10636_v41 = vld [vmem:[%s17157_s11 + $0x548] sm:$0xf0]  ;;  %v10602_v56 = vld [vmem:[%s17157_s11 + $0x500] sm:$0xf]  ;;  %v10674_v26 = vld [vmem:[%s17157_s11 + $0x590] sm:$0xf] }
 0xcc2   : > { %v10639_v34 = vor.u32 %v11021_v57, %v10636_v41  ;;  %8445 = vmatpush.bf16.msra.mxu2 %v10611_v21  ;;  %8493 = vmatpush.bf16.msrb.mxu3 %v10683_v48  ;;  %v10666_v48 = vld [vmem:[%s17157_s11 + $0x580] sm:$0xf]  ;;  %v11030_v57 = vld [vmem:[%s17157_s11 + $0x584] sm:$0xf0] }
 0xcc3   : > { %v16510_v0 = vadd.f32 %v7651_v14, %v16154_v63  ;;  %v11014_v63 = vld [vmem:[%s17157_s11 + $0x504] sm:$0xf0]  ;;  %v10675_v14 = vor.u32 %v11032_v18, %v10674_v26  ;;  %v16537_v41 = vpop.f32.mrf.mxu1 }
 0xcc4   : > { %v7603_v25 = vpop.f32.mrf.mxu2  ;;  %v10603_v45 = vor.u32 %v11014_v63, %v10602_v56  ;;  %8540 = vmatpush.bf16.msrb.mxu0 %v10639_v34  ;;  %v17846_v63 = vld [vmem:[#allocation104_spill] sm:$0xff] }
 0xcc6   : > { %v7681_v54 = vpop.f32.mrf.mxu0  ;;  %8446 = vmatpush.bf16.msra.mxu2 %v10603_v45  ;;  %8494 = vmatpush.bf16.msrb.mxu3 %v10675_v14 }
 0xcc7   : > { %v7731_v21 = vadd.f32 %v16050_v36, %v7681_v54  ;;  %v10667_v36 = vor.u32 %v11030_v57, %v10666_v48 }
 0xcc8   : > { %v7652_v6 = vpop.f32.mrf.mxu3 }
 0xcc9   : > { %v16540_v56 = vadd.f32 %v7731_v21, %v16193_v55  ;;  %v7653_v34 = vadd.f32 %v7652_v6, %v7603_v25  ;;  %8041 = vmatmul.bf16.gmra.mxu2 %v17846_v63  ;;  %v17847_v25 = vld [vmem:[#allocation3_spill] sm:$0xff] }
 0xcca   : > { %8495 = vmatpush.bf16.msrb.mxu3 %v10667_v36  ;;  %v17848_v36 = vld [vmem:[#allocation107_spill] sm:$0xff] }
 0xccb   : > { %v16544_v26 = vadd.f32 %v7653_v34, %v16200_v32  ;;  %v16553_v21 = vpop.f32.mrf.mxu1 }
 0xccc   : > { %v7606_v45 = vpop.f32.mrf.mxu2 }
 0xccd   : > { %8090 = vmatmul.bf16.gmra.mxu3 %v17812_v9  ;;  %v11019_v9 = vld [vmem:[%s17157_s11 + $0x534] sm:$0xf] }
 0xcce   : > { %v7684_v18 = vpop.f32.mrf.mxu0 }
 0xccf   : > { %v7734_v54 = vadd.f32 %v16077_v28, %v7684_v18  ;;  %v10628_v28 = vld [vmem:[%s17157_s11 + $0x538] sm:$0xf0] }
 0xcd0   : > { %v7655_v14 = vpop.f32.mrf.mxu3  ;;  %v10631_v6 = vor.u32 %v11019_v9, %v10628_v28  ;;  %v17849_v28 = vld [vmem:[#allocation41_spill] sm:$0xff] }
 0xcd1   : > { %v16549_v12 = vadd.f32 %v7734_v54, %v16219_v47  ;;  %v7656_v55 = vadd.f32 %v7655_v14, %v7606_v45  ;;  %8119 = vmatmul.bf16.gmra.mxu0 %v17828_v5  ;;  %8619 = vmatmul.bf16.gmra.mxu1 %v17847_v25 }
 0xcd2   : > { %8541 = vmatpush.bf16.msrb.mxu0 %v10631_v6 }
 0xcd3   : > { %v16556_v32 = vadd.f32 %v7656_v55, %v16224_v35  ;;  %v16572_v54 = vpop.f32.mrf.mxu1 }
 0xcd4   : > { %v7608_v47 = vpop.f32.mrf.mxu2 }
 0xcd6   : > { %v7686_v48 = vpop.f32.mrf.mxu0 }
 0xcd7   : > { %v7736_v5 = vadd.f32 %v16123_v13, %v7686_v48 }
 0xcd8   : > { %v7657_v57 = vpop.f32.mrf.mxu3 }
 0xcd9   : > { %v16566_v34 = vadd.f32 %v7736_v5, %v16246_v40  ;;  %v7658_v35 = vadd.f32 %v7657_v57, %v7608_v47  ;;  %8046 = vmatmul.bf16.gmra.mxu2 %v17848_v36  ;;  %v11017_v47 = vld [vmem:[%s17157_s11 + $0x524] sm:$0xf] }
 0xcdb   : > { %v16570_v45 = vadd.f32 %v7658_v35, %v16252_v16  ;;  %v16590_v48 = vpop.f32.mrf.mxu1  ;;  %v17850_v35 = vld [vmem:[#allocation45_spill] sm:$0xff] }
 0xcdc   : > { %v7611_v18 = vpop.f32.mrf.mxu2 }
 0xcdd   : > { %8095 = vmatmul.bf16.gmra.mxu3 %v17819_v59 }
 0xcde   : > { %v7689_v14 = vpop.f32.mrf.mxu0 }
 0xcdf   : > { %v7739_v55 = vadd.f32 %v16180_v46, %v7689_v14  ;;  %v10620_v46 = vld [vmem:[%s17157_s11 + $0x528] sm:$0xf0] }
 0xce0   : > { %v7660_v9 = vpop.f32.mrf.mxu3  ;;  %v10623_v6 = vor.u32 %v11017_v47, %v10620_v46 }
 0xce1   : > { %v16577_v13 = vadd.f32 %v7739_v55, %v16263_v37  ;;  %v7661_v40 = vadd.f32 %v7660_v9, %v7611_v18  ;;  %8124 = vmatmul.bf16.gmra.mxu0 %v17834_v24  ;;  %8624 = vmatmul.bf16.gmra.mxu1 %v17849_v28  ;;  %v17852_v9 = vld [vmem:[#allocation8_spill] sm:$0xff] }
 0xce2   : > { %8542 = vmatpush.bf16.msrb.mxu0 %v10623_v6  ;;  %v17854_v6 = vld [vmem:[#allocation59_spill] sm:$0xff] }
 0xce3   : > { %v16582_v16 = vadd.f32 %v7661_v40, %v16268_v20  ;;  %v16602_v46 = vpop.f32.mrf.mxu1 }
 0xce4   : > { %v7613_v59 = vpop.f32.mrf.mxu2 }
 0xce6   : > { %v7691_v37 = vpop.f32.mrf.mxu0 }
 0xce7   : > { %v7741_v24 = vadd.f32 %v16216_v2, %v7691_v37  ;;  %v10612_v37 = vld [vmem:[%s17157_s11 + $0x518] sm:$0xf0] }
 0xce8   : > { %v7662_v5 = vpop.f32.mrf.mxu3 }
 0xce9   : > { %v16594_v20 = vadd.f32 %v7741_v24, %v16280_v30  ;;  %v7663_v57 = vadd.f32 %v7662_v5, %v7613_v59  ;;  %8447 = vmatmul.bf16.vlgmr.msra.gmra.mxu2 %v17850_v35  ;;  %v17853_v59 = vld [vmem:[#allocation18_spill] sm:$0xff] }
 0xceb   : > { %v16598_v18 = vadd.f32 %v7663_v57, %v16284_v27  ;;  %v17855_v57 = vld [vmem:[#allocation57_spill] sm:$0xff] }
 0xcec   : > { %v8012_v14 = vpop.f32.mrf.mxu2 }
 0xced   : > { %17851 = vst [vmem:[#allocation62_spill] sm:$0xff] %v16598_v18  ;;  %8496 = vmatmul.bf16.vlgmr.msrb.gmra.mxu3 %v17825_v61  ;;  %v11015_v61 = vld [vmem:[%s17157_s11 + $0x514] sm:$0xf]  ;;  %v17857_v18 = vld [vmem:[#allocation34_spill] sm:$0xff] }
 0xcee   : > { %v7694_v55 = vpop.f32.mrf.mxu0  ;;  %v10615_v5 = vor.u32 %v11015_v61, %v10612_v37 }
 0xcef   : > { %v7744_v40 = vadd.f32 %v17852_v9, %v7694_v55 }
 0xcf0   : > { %v8061_v47 = vpop.f32.mrf.mxu3  ;;  %8543 = vmatpush.bf16.msrb.mxu0 %v10615_v5 }
 0xcf1   : > { %v16605_v2 = vadd.f32 %v7744_v40, %v16291_v10  ;;  %v8062_v30 = vadd.f32 %v8061_v47, %v8012_v14  ;;  %8129 = vmatmul.bf16.gmra.mxu0 %v17839_v49  ;;  %8629 = vmatmul.bf16.gmra.mxu1 %v17853_v59  ;;  %v17856_v40 = vld [vmem:[#allocation112_spill] sm:$0xff] }
 0xcf3   : > { %v16610_v27 = vadd.f32 %v8062_v30, %v17854_v6 }
 0xcf4   : > { %v8014_v24 = vpop.f32.mrf.mxu2 }
 0xcf6   : > { %v7696_v10 = vpop.f32.mrf.mxu0 }
 0xcf7   : > { %v7746_v14 = vadd.f32 %v17855_v57, %v7696_v10 }
 0xcf8   : > { %v8063_v49 = vpop.f32.mrf.mxu3 }
 0xcf9   : > { %v16620_v55 = vadd.f32 %v7746_v14, %v16308_v33  ;;  %v8064_v9 = vadd.f32 %v8063_v49, %v8014_v24  ;;  %8452 = vmatmul.bf16.gmra.mxu2 %v17856_v40  ;;  %v17858_v49 = vld [vmem:[#allocation113_spill] sm:$0xff] }
 0xcfb   : > { %v16624_v47 = vadd.f32 %v8064_v9, %v16312_v17  ;;  %v11013_v17 = vld [vmem:[%s17157_s11 + $0x504] sm:$0xf]  ;;  %v17859_v9 = vld [vmem:[#allocation37_spill] sm:$0xff] }
 0xcfc   : > { %v8017_v30 = vpop.f32.mrf.mxu2 }
 0xcfd   : > { %8501 = vmatmul.bf16.gmra.mxu3 %v17831_v4  ;;  %v10604_v4 = vld [vmem:[%s17157_s11 + $0x508] sm:$0xf0] }
 0xcfe   : > { %v7699_v6 = vpop.f32.mrf.mxu0 }
 0xcff   : > { %v7749_v61 = vadd.f32 %v17857_v18, %v7699_v6  ;;  %v10607_v18 = vor.u32 %v11013_v17, %v10604_v4 }
 0xd00   : > { %v8066_v37 = vpop.f32.mrf.mxu3 }
 0xd01   : > { %v16629_v5 = vadd.f32 %v7749_v61, %v16317_v38  ;;  %v8067_v10 = vadd.f32 %v8066_v37, %v8017_v30  ;;  %8134 = vmatmul.bf16.gmra.mxu0 %v17843_v15  ;;  %v17860_v37 = vld [vmem:[#allocation9_spill] sm:$0xff] }
 0xd02   : > { %8544 = vmatpush.bf16.msrb.mxu0 %v10607_v18 }
 0xd03   : > { %v16633_v33 = vadd.f32 %v8067_v10, %v16324_v31 }
 0xd04   : > { %v8019_v24 = vpop.f32.mrf.mxu2 }
 0xd06   : > { %v7701_v57 = vpop.f32.mrf.mxu0 }
 0xd07   : > { %v7751_v38 = vadd.f32 %v16305_v11, %v7701_v57 }
 0xd08   : > { %v8068_v14 = vpop.f32.mrf.mxu3 }
 0xd09   : > { %v16643_v15 = vadd.f32 %v7751_v38, %v16334_v22  ;;  %v8069_v31 = vadd.f32 %v8068_v14, %v8019_v24  ;;  %8457 = vmatmul.bf16.gmra.mxu2 %v17858_v49 }
 0xd0b   : > { %v16647_v30 = vadd.f32 %v8069_v31, %v17859_v9  ;;  %v17861_v31 = vld [vmem:[#allocation116_spill] sm:$0xff]  ;;  %v17862_v9 = vld [vmem:[#allocation10_spill] sm:$0xff] }
 0xd0c   : > { %v8022_v6 = vpop.f32.mrf.mxu2 }
 0xd0d   : > { %8506 = vmatmul.bf16.gmra.mxu3 %v17837_v8 }
 0xd0e   : > { %v7704_v61 = vpop.f32.mrf.mxu0 }
 0xd0f   : > { %v7754_v10 = vadd.f32 %v17860_v37, %v7704_v61 }
 0xd10   : > { %v8071_v17 = vpop.f32.mrf.mxu3 }
 0xd11   : > { %v16652_v4 = vadd.f32 %v7754_v10, %v16357_v23  ;;  %v8072_v11 = vadd.f32 %v8071_v17, %v8022_v6  ;;  %8139 = vmatmul.bf16.gmra.mxu0 %v17846_v63 }
 0xd13   : > { %v16656_v22 = vadd.f32 %v8072_v11, %v16362_v19  ;;  %v17863_v19 = vld [vmem:[#allocation58_spill] sm:$0xff] }
 0xd14   : > { %v8024_v24 = vpop.f32.mrf.mxu2 }
 0xd16   : > { %v7706_v18 = vpop.f32.mrf.mxu0 }
 0xd17   : > { %v7756_v57 = vadd.f32 %v16352_v1, %v7706_v18 }
 0xd18   : > { %v8073_v38 = vpop.f32.mrf.mxu3 }
 0xd19   : > { %v16660_v8 = vadd.f32 %v7756_v57, %v16374_v51  ;;  %v8074_v14 = vadd.f32 %v8073_v38, %v8024_v24  ;;  %8462 = vmatmul.bf16.gmra.mxu2 %v17861_v31  ;;  %v11052_v51 = vld [vmem:[%s17159_s13 + $0x38] sm:$0xff]  ;;  %v17865_v38 = vld [vmem:[#allocation120_spill] sm:$0xff] }
 0xd1a   : > { %8911 = vmatpush.bf16.msrb.mxu2 %v11052_v51 }
 0xd1b   : > { %v16664_v23 = vadd.f32 %v8074_v14, %v17862_v9 }
 0xd1c   : > { %v8027_v6 = vpop.f32.mrf.mxu2 }
 0xd1d   : > { %8511 = vmatmul.bf16.gmra.mxu3 %v17842_v43  ;;  %v11060_v43 = vld [vmem:[%s17159_s13 + $0x78] sm:$0xff] }
 0xd1e   : > { %v7709_v63 = vpop.f32.mrf.mxu0  ;;  %8960 = vmatpush.bf16.msra.mxu3 %v11060_v43  ;;  %v17867_v43 = vld [vmem:[#allocation122_spill] sm:$0xff] }
 0xd1f   : > { %v7759_v61 = vadd.f32 %v17863_v19, %v7709_v63 }
 0xd20   : > { %v8076_v37 = vpop.f32.mrf.mxu3 }
 0xd21   : > { %v16669_v10 = vadd.f32 %v7759_v61, %v16397_v44  ;;  %v8077_v1 = vadd.f32 %v8076_v37, %v8027_v6  ;;  %8144 = vmatmul.bf16.gmra.mxu0 %v17848_v36  ;;  %v17866_v6 = vld [vmem:[#allocation60_spill] sm:$0xff] }
 0xd23   : > { %v16676_v17 = vadd.f32 %v8077_v1, %v16402_v53 }
 0xd24   : > { %v8029_v11 = vpop.f32.mrf.mxu2 }
 0xd26   : > { %v7711_v24 = vpop.f32.mrf.mxu0 }
 0xd27   : > { %v7761_v44 = vadd.f32 %v16394_v58, %v7711_v24 }
 0xd28   : > { %v8078_v18 = vpop.f32.mrf.mxu3 }
 0xd29   : > { %v16683_v36 = vadd.f32 %v7761_v44, %v16412_v62  ;;  %v8079_v57 = vadd.f32 %v8078_v18, %v8029_v11  ;;  %8467 = vmatmul.bf16.gmra.mxu2 %v17865_v38  ;;  %v11051_v62 = vld [vmem:[%s17159_s13 + $0x30] sm:$0xff]  ;;  %v16715_v44 = vpop.f32.mrf.mxu1 }
 0xd2a   : > { %8912 = vmatpush.bf16.msrb.mxu2 %v11051_v62  ;;  %v11049_v62 = vld [vmem:[%s17159_s13 + $0x20] sm:$0xff] }
 0xd2b   : > { %17864 = vst [vmem:[#allocation11_spill] sm:$0xff] %v16683_v36  ;;  %v16687_v53 = vadd.f32 %v8079_v57, %v16418_v29 }
 0xd2c   : > { %v8032_v14 = vpop.f32.mrf.mxu2 }
 0xd2d   : > { %8516 = vmatmul.bf16.gmra.mxu3 %v17845_v60  ;;  %v11059_v60 = vld [vmem:[%s17159_s13 + $0x70] sm:$0xff] }
 0xd2e   : > { %v8110_v9 = vpop.f32.mrf.mxu0  ;;  %8961 = vmatpush.bf16.msra.mxu3 %v11059_v60 }
 0xd2f   : > { %v8160_v63 = vadd.f32 %v17866_v6, %v8110_v9 }
 0xd30   : > { %v8081_v19 = vpop.f32.mrf.mxu3 }
 0xd31   : > { %v16692_v61 = vadd.f32 %v8160_v63, %v16435_v3  ;;  %v8082_v58 = vadd.f32 %v8081_v19, %v8032_v14  ;;  %8545 = vmatmul.bf16.vlgmr.msrb.gmra.mxu0 %v17850_v35  ;;  %v17868_v63 = vld [vmem:[#allocation123_spill] sm:$0xff] }
 0xd33   : > { %v16699_v29 = vadd.f32 %v8082_v58, %v16440_v42 }
 0xd34   : > { %v16704_v37 = vpop.f32.mrf.mxu2 }
 0xd36   : > { %v8112_v3 = vpop.f32.mrf.mxu0 }
 0xd37   : > { %v8162_v1 = vadd.f32 %v16454_v52, %v8112_v3 }
 0xd38   : > { %v16707_v51 = vpop.f32.mrf.mxu3 }
 0xd39   : > { %v16710_v35 = vadd.f32 %v8162_v1, %v16467_v39  ;;  %8472 = vmatmul.bf16.gmra.mxu2 %v17867_v43  ;;  %v11050_v39 = vld [vmem:[%s17159_s13 + $0x28] sm:$0xff]  ;;  %v11048_v1 = vld [vmem:[%s17159_s13 + $0x18] sm:$0xff] }
 0xd3a   : > { %8913 = vmatpush.bf16.msrb.mxu2 %v11050_v39  ;;  %v11046_v39 = vld [vmem:[%s17159_s13 + $0x8] sm:$0xff] }
 0xd3c   : > { %v8037_v42 = vpop.f32.mrf.mxu2 }
 0xd3d   : > { %8521 = vmatmul.bf16.gmra.mxu3 %v17847_v25 }
 0xd3e   : > { %v8115_v11 = vpop.f32.mrf.mxu0  ;;  %8914 = vmatpush.bf16.msrb.mxu2 %v11049_v62 }
 0xd3f   : > { %v8165_v24 = vadd.f32 %v16489_v7, %v8115_v11  ;;  %v11058_v7 = vld [vmem:[%s17159_s13 + $0x68] sm:$0xff] }
 0xd40   : > { %v8086_v18 = vpop.f32.mrf.mxu3  ;;  %8962 = vmatpush.bf16.msra.mxu3 %v11058_v7 }
 0xd41   : > { %v16718_v57 = vadd.f32 %v8165_v24, %v16502_v50  ;;  %v8087_v52 = vadd.f32 %v8086_v18, %v8037_v42  ;;  %8550 = vmatmul.bf16.gmra.mxu0 %v17856_v40 }
 0xd42   : > { %8915 = vmatpush.bf16.msrb.mxu2 %v11048_v1 }
 0xd43   : > { %v16725_v14 = vadd.f32 %v8087_v52, %v16510_v0  ;;  %v16739_v0 = vpop.f32.mrf.mxu1  ;;  %v17869_v52 = vld [vmem:[#allocation38_spill] sm:$0xff] }
 0xd44   : > { %v16730_v25 = vpop.f32.mrf.mxu2 }
 0xd46   : > { %v8117_v50 = vpop.f32.mrf.mxu0 }
 0xd47   : > { %v8167_v9 = vadd.f32 %v16537_v41, %v8117_v50 }
 0xd48   : > { %v16733_v6 = vpop.f32.mrf.mxu3 }
 0xd49   : > { %v16736_v40 = vadd.f32 %v8167_v9, %v16540_v56  ;;  %8477 = vmatmul.bf16.gmra.mxu2 %v17868_v63  ;;  %v11045_v9 = vld [vmem:[%s17159_s13] sm:$0xff] }
 0xd4b   : > { %v8184_v42 = vpop.f32.mrf.mxu1 }
 0xd4c   : > { %v8042_v19 = vpop.f32.mrf.mxu2 }
 0xd4d   : > { %8526 = vmatmul.bf16.gmra.mxu3 %v17849_v28 }
 0xd4e   : > { %v8120_v58 = vpop.f32.mrf.mxu0 }
 0xd4f   : > { %v8170_v60 = vadd.f32 %v16553_v21, %v8120_v58 }
 0xd50   : > { %v8091_v41 = vpop.f32.mrf.mxu3 }
 0xd51   : > { %v16747_v3 = vadd.f32 %v8170_v60, %v16549_v12  ;;  %v8092_v56 = vadd.f32 %v8091_v41, %v8042_v19  ;;  %8555 = vmatmul.bf16.gmra.mxu0 %v17858_v49  ;;  %v11047_v12 = vld [vmem:[%s17159_s13 + $0x10] sm:$0xff]  ;;  %v11057_v49 = vld [vmem:[%s17159_s13 + $0x60] sm:$0xff]  ;;  %v11056_v41 = vld [vmem:[%s17159_s13 + $0x58] sm:$0xff] }
 0xd52   : > { %8916 = vmatpush.bf16.msrb.mxu2 %v11047_v12  ;;  %8963 = vmatpush.bf16.msra.mxu3 %v11057_v49 }
 0xd53   : > { %v16754_v28 = vadd.f32 %v8092_v56, %v16556_v32 }
 0xd54   : > { %v16756_v11 = vpop.f32.mrf.mxu2 }
 0xd56   : > { %v8122_v21 = vpop.f32.mrf.mxu0  ;;  %8917 = vmatpush.bf16.msrb.mxu2 %v11046_v39  ;;  %8964 = vmatpush.bf16.msra.mxu3 %v11056_v41 }
 0xd57   : > { %v8172_v24 = vadd.f32 %v16572_v54, %v8122_v21  ;;  %v16775_v54 = vpop.f32.mrf.mxu1 }
 0xd58   : > { %v16765_v18 = vpop.f32.mrf.mxu3 }
 0xd59   : > { %v16768_v32 = vadd.f32 %v8172_v24, %v16566_v34  ;;  %8482 = vmatmul.bf16.gmra.mxu2 %v17869_v52 }
 0xd5a   : > { %8918 = vmatpush.bf16.msrb.mxu2 %v11045_v9 }
 0xd5c   : > { %v8047_v7 = vpop.f32.mrf.mxu2 }
 0xd5d   : > { %8531 = vmatmul.bf16.gmra.mxu3 %v17853_v59 }
 0xd5e   : > { %v8125_v50 = vpop.f32.mrf.mxu0 }
 0xd5f   : > { %v8175_v34 = vadd.f32 %v16590_v48, %v8125_v50  ;;  %v8189_v1 = vpop.f32.mrf.mxu1  ;;  %v11055_v50 = vld [vmem:[%s17159_s13 + $0x50] sm:$0xff] }
 0xd60   : > { %v8096_v19 = vpop.f32.mrf.mxu3  ;;  %8965 = vmatpush.bf16.msra.mxu3 %v11055_v50 }
 0xd61   : > { %v16782_v58 = vadd.f32 %v8175_v34, %v16577_v13  ;;  %v8097_v62 = vadd.f32 %v8096_v19, %v8047_v7  ;;  %8560 = vmatmul.bf16.gmra.mxu0 %v17861_v31 }
 0xd63   : > { %v16786_v60 = vadd.f32 %v8097_v62, %v16582_v16 }
 0xd64   : > { %v16788_v59 = vpop.f32.mrf.mxu2 }
 0xd66   : > { %v8127_v56 = vpop.f32.mrf.mxu0 }
 0xd67   : > { %v8177_v48 = vadd.f32 %v16602_v46, %v8127_v56  ;;  %v16804_v39 = vpop.f32.mrf.mxu1 }
 0xd68   : > { %v16794_v21 = vpop.f32.mrf.mxu3 }
 0xd69   : > { %v16797_v13 = vadd.f32 %v8177_v48, %v16594_v20 }
 0xd6c   : > { %v8448_v31 = vpop.f32.mrf.mxu2 }
 0xd6e   : > { %v8130_v12 = vpop.f32.mrf.mxu0 }
 0xd6f   : > { %v8180_v16 = vadd.f32 %v16715_v44, %v8130_v12  ;;  %v8194_v62 = vpop.f32.mrf.mxu1 }
 0xd70   : > { %v8497_v24 = vpop.f32.mrf.mxu3 }
 0xd71   : > { %v16801_v49 = vadd.f32 %v8180_v16, %v16605_v2  ;;  %8565 = vmatmul.bf16.gmra.mxu0 %v17865_v38  ;;  %v8498_v46 = vadd.f32 %v8497_v24, %v8448_v31 }
 0xd73   : > { %v8635_v9 = vadd.f32 %v8498_v46, %v16610_v27 }
 0xd74   : > { %v8450_v7 = vpop.f32.mrf.mxu2 }
 0xd75   : > { %v8699_v19 = vmul.f32 0.01, %v8635_v9  ;;  %vm8667_vm4 = vcmp.ge.f32.partialorder %v8635_v9, 0.0 }
 0xd76   : > { %v16809_v20 = vpop.f32.mrf.mxu0 }
 0xd77   : > { %v8731_v48 = vsel %vm8667_vm4, %v8635_v9, %v8699_v19 }
 0xd78   : > { %v8499_v44 = vpop.f32.mrf.mxu3 }
 0xd79   : > { %v8500_v34 = vadd.f32 %v8499_v44, %v8450_v7  ;;  %v16820_v7 = vpop.f32.mrf.mxu1 }
 0xd7b   : > { %v8637_v2 = vadd.f32 %v8500_v34, %v16624_v47  ;;  %v11054_v47 = vld [vmem:[%s17159_s13 + $0x48] sm:$0xff] }
 0xd7c   : > { %v8453_v38 = vpop.f32.mrf.mxu2  ;;  %8966 = vmatpush.bf16.msra.mxu3 %v11054_v47 }
 0xd7d   : > { %vm8669_vm5 = vcmp.ge.f32.partialorder %v8637_v2, 0.0  ;;  %v8701_v41 = vmul.f32 0.01, %v8637_v2 }
 0xd7e   : > { %v8135_v56 = vpop.f32.mrf.mxu0 }
 0xd7f   : > { %v8733_v31 = vsel %vm8669_vm5, %v8637_v2, %v8701_v41  ;;  %v8185_v12 = vadd.f32 %v8184_v42, %v8135_v56 }
 0xd80   : > { %v8763_v16 = vpack.c.bf16 %v8733_v31, %v8731_v48  ;;  %v8502_v24 = vpop.f32.mrf.mxu3 }
 0xd81   : > { %v16814_v36 = vadd.f32 %v8185_v12, %v16629_v5  ;;  %8570 = vmatmul.bf16.gmra.mxu0 %v17867_v43  ;;  %v8503_v27 = vadd.f32 %v8502_v24, %v8453_v38  ;;  %v8595_v48 = vpop.f32.mrf.mxu1 }
 0xd82   : > { %8919 = vmatmul.bf16.vlgmr.msrb.gmra.mxu2 %v8763_v16 }
 0xd83   : > { %v8639_v42 = vadd.f32 %v8503_v27, %v16633_v33 }
 0xd84   : > { %v8455_v46 = vpop.f32.mrf.mxu2 }
 0xd85   : > { %v8703_v5 = vmul.f32 0.01, %v8639_v42  ;;  %vm8671_vm6 = vcmp.ge.f32.partialorder %v8639_v42, 0.0 }
 0xd86   : > { %v16822_v50 = vpop.f32.mrf.mxu0 }
 0xd87   : > { %v8735_v41 = vsel %vm8671_vm6, %v8639_v42, %v8703_v5 }
 0xd88   : > { %v8504_v9 = vpop.f32.mrf.mxu3 }
 0xd89   : > { %v8505_v44 = vadd.f32 %v8504_v9, %v8455_v46  ;;  %v8597_v42 = vpop.f32.mrf.mxu1 }
 0xd8b   : > { %v8641_v34 = vadd.f32 %v8505_v44, %v16647_v30  ;;  %v11053_v30 = vld [vmem:[%s17159_s13 + $0x40] sm:$0xff] }
 0xd8c   : > { %v8458_v43 = vpop.f32.mrf.mxu2  ;;  %8967 = vmatpush.bf16.msra.mxu3 %v11053_v30 }
 0xd8d   : > { %v8705_v19 = vmul.f32 0.01, %v8641_v34  ;;  %vm8673_vm7 = vcmp.ge.f32.partialorder %v8641_v34, 0.0 }
 0xd8e   : > { %v8140_v2 = vpop.f32.mrf.mxu0 }
 0xd8f   : > { %v8190_v38 = vadd.f32 %v8189_v1, %v8140_v2  ;;  %v8737_v56 = vsel %vm8673_vm7, %v8641_v34, %v8705_v19 }
 0xd90   : > { %v8507_v31 = vpop.f32.mrf.mxu3  ;;  %v8765_v12 = vpack.c.bf16 %v8737_v56, %v8735_v41 }
 0xd91   : > { %v16827_v16 = vadd.f32 %v8190_v38, %v16652_v4  ;;  %8575 = vmatmul.bf16.gmra.mxu0 %v17868_v63  ;;  %v8508_v33 = vadd.f32 %v8507_v31, %v8458_v43  ;;  %v8600_v56 = vpop.f32.mrf.mxu1 }
 0xd92   : > { %8924 = vmatmul.bf16.gmra.mxu2 %v8765_v12 }
 0xd93   : > { %v8643_v1 = vadd.f32 %v8508_v33, %v16656_v22 }
 0xd94   : > { %v8460_v24 = vpop.f32.mrf.mxu2 }
 0xd95   : > { %v8707_v9 = vmul.f32 0.01, %v8643_v1  ;;  %vm8675_vm8 = vcmp.ge.f32.partialorder %v8643_v1, 0.0 }
 0xd96   : > { %v16833_v27 = vpop.f32.mrf.mxu0 }
 0xd97   : > { %v8739_v43 = vsel %vm8675_vm8, %v8643_v1, %v8707_v9 }
 0xd98   : > { %v8509_v46 = vpop.f32.mrf.mxu3 }
 0xd99   : > { %v8510_v47 = vadd.f32 %v8509_v46, %v8460_v24 }
 0xd9b   : > { %v8645_v4 = vadd.f32 %v8510_v47, %v16664_v23 }
 0xd9c   : > { %v8463_v63 = vpop.f32.mrf.mxu2 }
 0xd9d   : > { %v8709_v44 = vmul.f32 0.01, %v8645_v4  ;;  %vm8677_vm9 = vcmp.ge.f32.partialorder %v8645_v4, 0.0 }
 0xd9e   : > { %v8145_v5 = vpop.f32.mrf.mxu0 }
 0xd9f   : > { %v8195_v34 = vadd.f32 %v8194_v62, %v8145_v5  ;;  %v8741_v19 = vsel %vm8677_vm9, %v8645_v4, %v8709_v44 }
 0xda0   : > { %v8512_v2 = vpop.f32.mrf.mxu3  ;;  %v8767_v38 = vpack.c.bf16 %v8741_v19, %v8739_v43 }
 0xda1   : > { %v16838_v41 = vadd.f32 %v8195_v34, %v16669_v10  ;;  %8580 = vmatmul.bf16.gmra.mxu0 %v17869_v52  ;;  %v8513_v22 = vadd.f32 %v8512_v2, %v8463_v63  ;;  %v8602_v10 = vpop.f32.mrf.mxu1 }
 0xda2   : > { %8929 = vmatmul.bf16.gmra.mxu2 %v8767_v38 }
 0xda3   : > { %v8647_v12 = vadd.f32 %v8513_v22, %v16676_v17  ;;  %v8084_v17 = vadd.f32 %v16707_v51, %v16704_v37 }
 0xda4   : > { %v8465_v31 = vpop.f32.mrf.mxu2 }
 0xda5   : > { %v8711_v62 = vmul.f32 0.01, %v8647_v12  ;;  %vm8679_vm10 = vcmp.ge.f32.partialorder %v8647_v12, 0.0 }
 0xda6   : > { %v16841_v23 = vpop.f32.mrf.mxu0 }
 0xda7   : > { %v8743_v52 = vsel %vm8679_vm10, %v8647_v12, %v8711_v62 }
 0xda8   : > { %v8514_v33 = vpop.f32.mrf.mxu3 }
 0xda9   : > { %v8515_v24 = vadd.f32 %v8514_v33, %v8465_v31  ;;  %v8605_v22 = vpop.f32.mrf.mxu1 }
 0xdab   : > { %v8649_v30 = vadd.f32 %v8515_v24, %v16687_v53  ;;  %v11062_v53 = vld [vmem:[%s17161_s15 + $0x8] sm:$0xff] }
 0xdac   : > { %v8468_v1 = vpop.f32.mrf.mxu2  ;;  %9115 = vmatpush.bf16.msra.mxu0 %v11062_v53 }
 0xdad   : > { %v8713_v46 = vmul.f32 0.01, %v8649_v30  ;;  %vm8681_vm11 = vcmp.ge.f32.partialorder %v8649_v30, 0.0 }
 0xdae   : > { %v8546_v47 = vpop.f32.mrf.mxu0 }
 0xdaf   : > { %v8745_v9 = vsel %vm8681_vm11, %v8649_v30, %v8713_v46  ;;  %v8596_v44 = vadd.f32 %v8595_v48, %v8546_v47  ;;  %v17870_v48 = vld [vmem:[#allocation40_spill] sm:$0xff] }
 0xdb0   : > { %v8517_v4 = vpop.f32.mrf.mxu3  ;;  %v8769_v63 = vpack.c.bf16 %v8745_v9, %v8743_v52  ;;  %v8217_v12 = vadd.f32 %v8084_v17, %v17870_v48  ;;  %v8089_v17 = vadd.f32 %v16733_v6, %v16730_v25 }
 0xdb1   : > { %v8518_v5 = vadd.f32 %v8517_v4, %v8468_v1  ;;  %v8636_v43 = vadd.f32 %v8596_v44, %v16692_v61  ;;  %v8607_v44 = vpop.f32.mrf.mxu1 }
 0xdb2   : > { %8934 = vmatmul.bf16.gmra.mxu2 %v8769_v63 }
 0xdb3   : > { %v8651_v2 = vadd.f32 %v8518_v5, %v16699_v29  ;;  %v8700_v33 = vmul.f32 0.01, %v8636_v43  ;;  %vm8668_vm12 = vcmp.ge.f32.partialorder %v8636_v43, 0.0 }
 0xdb4   : > { %v8470_v34 = vpop.f32.mrf.mxu2 }
 0xdb5   : > { %v8715_v37 = vmul.f32 0.01, %v8651_v2  ;;  %vm8683_vm14 = vcmp.ge.f32.partialorder %v8651_v2, 0.0  ;;  %v8732_v1 = vsel %vm8668_vm12, %v8636_v43, %v8700_v33 }
 0xdb6   : > { %v8548_v19 = vpop.f32.mrf.mxu0 }
 0xdb7   : > { %v8598_v38 = vadd.f32 %v8597_v42, %v8548_v19  ;;  %v8747_v52 = vsel %vm8683_vm14, %v8651_v2, %v8715_v37  ;;  %v8221_v2 = vadd.f32 %v8089_v17, %v16544_v26 }
 0xdb8   : > { %v8519_v31 = vpop.f32.mrf.mxu3 }
 0xdb9   : > { %v8638_v24 = vadd.f32 %v8598_v38, %v16710_v35  ;;  %v8520_v62 = vadd.f32 %v8519_v31, %v8470_v34  ;;  %v8610_v37 = vpop.f32.mrf.mxu1 }
 0xdbb   : > { %vm8670_vm13 = vcmp.ge.f32.partialorder %v8638_v24, 0.0  ;;  %v8702_v61 = vmul.f32 0.01, %v8638_v24  ;;  %v8653_v51 = vadd.f32 %v8520_v62, %v8217_v12 }
 0xdbc   : > { %v8473_v30 = vpop.f32.mrf.mxu2 }
 0xdbd   : > { %v8734_v46 = vsel %vm8670_vm13, %v8638_v24, %v8702_v61  ;;  %vm8685_vm15 = vcmp.ge.f32.partialorder %v8653_v51, 0.0  ;;  %v8717_v29 = vmul.f32 0.01, %v8653_v51 }
 0xdbe   : > { %v8764_v42 = vpack.c.bf16 %v8734_v46, %v8732_v1  ;;  %v8551_v47 = vpop.f32.mrf.mxu0 }
 0xdbf   : > { %v8749_v9 = vsel %vm8685_vm15, %v8653_v51, %v8717_v29  ;;  %v8601_v35 = vadd.f32 %v8600_v56, %v8551_v47 }
 0xdc0   : > { %v8522_v4 = vpop.f32.mrf.mxu3  ;;  %8968 = vmatmul.bf16.vlgmr.msra.gmra.mxu3 %v8764_v42  ;;  %v8771_v63 = vpack.c.bf16 %v8749_v9, %v8747_v52  ;;  %v8094_v42 = vadd.f32 %v16765_v18, %v16756_v11 }
 0xdc1   : > { %v8523_v5 = vadd.f32 %v8522_v4, %v8473_v30  ;;  %v8640_v43 = vadd.f32 %v8601_v35, %v16718_v57  ;;  %v8612_v52 = vpop.f32.mrf.mxu1 }
 0xdc2   : > { %8939 = vmatmul.bf16.gmra.mxu2 %v8771_v63 }
 0xdc3   : > { %v8655_v19 = vadd.f32 %v8523_v5, %v16725_v14  ;;  %v8704_v48 = vmul.f32 0.01, %v8640_v43  ;;  %vm8672_vm0 = vcmp.ge.f32.partialorder %v8640_v43, 0.0  ;;  %v8225_v5 = vadd.f32 %v8094_v42, %v16570_v45 }
 0xdc4   : > { %v8475_v34 = vpop.f32.mrf.mxu2 }
 0xdc5   : > { %v8719_v33 = vmul.f32 0.01, %v8655_v19  ;;  %vm8687_vm4 = vcmp.ge.f32.partialorder %v8655_v19, 0.0  ;;  %v8736_v6 = vsel %vm8672_vm0, %v8640_v43, %v8704_v48 }
 0xdc6   : > { %v8553_v53 = vpop.f32.mrf.mxu0 }
 0xdc7   : > { %v8603_v38 = vadd.f32 %v8602_v10, %v8553_v53  ;;  %v8751_v51 = vsel %vm8687_vm4, %v8655_v19, %v8719_v33  ;;  %v8099_v33 = vadd.f32 %v16794_v21, %v16788_v59 }
 0xdc8   : > { %v8524_v31 = vpop.f32.mrf.mxu3 }
 0xdc9   : > { %v8642_v12 = vadd.f32 %v8603_v38, %v16736_v40  ;;  %v8525_v56 = vadd.f32 %v8524_v31, %v8475_v34  ;;  %v8615_v45 = vpop.f32.mrf.mxu1 }
 0xdcb   : > { %v8706_v24 = vmul.f32 0.01, %v8642_v12  ;;  %v8657_v62 = vadd.f32 %v8525_v56, %v8221_v2  ;;  %vm8674_vm3 = vcmp.ge.f32.partialorder %v8642_v12, 0.0 }
 0xdcc   : > { %v8478_v25 = vpop.f32.mrf.mxu2 }
 0xdcd   : > { %vm8689_vm5 = vcmp.ge.f32.partialorder %v8657_v62, 0.0  ;;  %v8721_v57 = vmul.f32 0.01, %v8657_v62  ;;  %v8738_v14 = vsel %vm8674_vm3, %v8642_v12, %v8706_v24 }
 0xdce   : > { %v8556_v10 = vpop.f32.mrf.mxu0  ;;  %v8766_v61 = vpack.c.bf16 %v8738_v14, %v8736_v6 }
 0xdcf   : > { %v8753_v26 = vsel %vm8689_vm5, %v8657_v62, %v8721_v57  ;;  %v8606_v1 = vadd.f32 %v8605_v22, %v8556_v10  ;;  %v17871_v10 = vld [vmem:[#allocation62_spill] sm:$0xff] }
 0xdd0   : > { %v8527_v30 = vpop.f32.mrf.mxu3  ;;  %8973 = vmatmul.bf16.gmra.mxu3 %v8766_v61  ;;  %v8773_v40 = vpack.c.bf16 %v8753_v26, %v8751_v51  ;;  %v8229_v61 = vadd.f32 %v8099_v33, %v17871_v10 }
 0xdd1   : > { %v8528_v46 = vadd.f32 %v8527_v30, %v8478_v25  ;;  %v8644_v47 = vadd.f32 %v8606_v1, %v16747_v3 }
 0xdd2   : > { %8944 = vmatmul.bf16.gmra.mxu2 %v8773_v40 }
 0xdd3   : > { %v8659_v4 = vadd.f32 %v8528_v46, %v16754_v28  ;;  %v8708_v34 = vmul.f32 0.01, %v8644_v47  ;;  %vm8676_vm6 = vcmp.ge.f32.partialorder %v8644_v47, 0.0 }
 0xdd4   : > { %v8480_v29 = vpop.f32.mrf.mxu2 }
 0xdd5   : > { %v8723_v43 = vmul.f32 0.01, %v8659_v4  ;;  %vm8691_vm8 = vcmp.ge.f32.partialorder %v8659_v4, 0.0  ;;  %v8740_v11 = vsel %vm8676_vm6, %v8644_v47, %v8708_v34 }
 0xdd6   : > { %v8558_v9 = vpop.f32.mrf.mxu0 }
 0xdd7   : > { %v8608_v63 = vadd.f32 %v8607_v44, %v8558_v9  ;;  %v8755_v31 = vsel %vm8691_vm8, %v8659_v4, %v8723_v43  ;;  %v11061_v4 = vld [vmem:[%s17161_s15] sm:$0xff] }
 0xdd8   : > { %v8529_v35 = vpop.f32.mrf.mxu3  ;;  %9116 = vmatpush.bf16.msra.mxu0 %v11061_v4 }
 0xdd9   : > { %v8646_v17 = vadd.f32 %v8608_v63, %v16768_v32  ;;  %v8530_v22 = vadd.f32 %v8529_v35, %v8480_v29 }
 0xddb   : > { %v8710_v53 = vmul.f32 0.01, %v8646_v17  ;;  %v8661_v19 = vadd.f32 %v8530_v22, %v8225_v5  ;;  %vm8678_vm7 = vcmp.ge.f32.partialorder %v8646_v17, 0.0 }
 0xddc   : > { %v8483_v38 = vpop.f32.mrf.mxu2 }
 0xddd   : > { %vm8693_vm9 = vcmp.ge.f32.partialorder %v8661_v19, 0.0  ;;  %v8725_v3 = vmul.f32 0.01, %v8661_v19  ;;  %v8742_v18 = vsel %vm8678_vm7, %v8646_v17, %v8710_v53 }
 0xdde   : > { %v8561_v28 = vpop.f32.mrf.mxu0  ;;  %v8768_v44 = vpack.c.bf16 %v8742_v18, %v8740_v11 }
 0xddf   : > { %v8757_v2 = vsel %vm8693_vm9, %v8661_v19, %v8725_v3  ;;  %v8611_v12 = vadd.f32 %v8610_v37, %v8561_v28  ;;  %v8617_v37 = vpop.f32.mrf.mxu1 }
 0xde0   : > { %v8532_v48 = vpop.f32.mrf.mxu3  ;;  %8978 = vmatmul.bf16.gmra.mxu3 %v8768_v44  ;;  %v8775_v32 = vpack.c.bf16 %v8757_v2, %v8755_v31 }
 0xde1   : > { %v8533_v56 = vadd.f32 %v8532_v48, %v8483_v38  ;;  %v8648_v24 = vadd.f32 %v8611_v12, %v16782_v58 }
 0xde2   : > { %8949 = vmatmul.bf16.gmra.mxu2 %v8775_v32 }
 0xde3   : > { %v8663_v25 = vadd.f32 %v8533_v56, %v16786_v60  ;;  %v8712_v51 = vmul.f32 0.01, %v8648_v24  ;;  %vm8680_vm10 = vcmp.ge.f32.partialorder %v8648_v24, 0.0 }
 0xde4   : > { %v8485_v6 = vpop.f32.mrf.mxu2 }
 0xde5   : > { %v8727_v40 = vmul.f32 0.01, %v8663_v25  ;;  %vm8695_vm12 = vcmp.ge.f32.partialorder %v8663_v25, 0.0  ;;  %v8744_v59 = vsel %vm8680_vm10, %v8648_v24, %v8712_v51 }
 0xde6   : > { %v8563_v62 = vpop.f32.mrf.mxu0 }
 0xde7   : > { %v8613_v57 = vadd.f32 %v8612_v52, %v8563_v62  ;;  %v8759_v42 = vsel %vm8695_vm12, %v8663_v25, %v8727_v40  ;;  %v8620_v63 = vpop.f32.mrf.mxu1 }
 0xde8   : > { %v8534_v14 = vpop.f32.mrf.mxu3 }
 0xde9   : > { %v8650_v26 = vadd.f32 %v8613_v57, %v16797_v13  ;;  %v8535_v30 = vadd.f32 %v8534_v14, %v8485_v6  ;;  %v8182_v13 = vadd.f32 %v16739_v0, %v16809_v20 }
 0xdeb   : > { %v8714_v1 = vmul.f32 0.01, %v8650_v26  ;;  %v8665_v46 = vadd.f32 %v8535_v30, %v8229_v61  ;;  %vm8682_vm11 = vcmp.ge.f32.partialorder %v8650_v26, 0.0  ;;  %v8218_v34 = vadd.f32 %v8182_v13, %v16620_v55 }
 0xded   : > { %vm8697_vm13 = vcmp.ge.f32.partialorder %v8665_v46, 0.0  ;;  %v8729_v58 = vmul.f32 0.01, %v8665_v46  ;;  %v8746_v60 = vsel %vm8682_vm11, %v8650_v26, %v8714_v1  ;;  %v17872_v1 = vld [vmem:[#allocation11_spill] sm:$0xff] }
 0xdee   : > { %v8566_v21 = vpop.f32.mrf.mxu0  ;;  %v8770_v29 = vpack.c.bf16 %v8746_v60, %v8744_v59 }
 0xdef   : > { %v8761_v47 = vsel %vm8697_vm13, %v8665_v46, %v8729_v58  ;;  %v8616_v9 = vadd.f32 %v8615_v45, %v8566_v21  ;;  %v8622_v0 = vpop.f32.mrf.mxu1 }
 0xdf0   : > { %8983 = vmatmul.bf16.gmra.mxu3 %v8770_v29  ;;  %v8777_v52 = vpack.c.bf16 %v8761_v47, %v8759_v42 }
 0xdf1   : > { %v8652_v35 = vadd.f32 %v8616_v9, %v16801_v49  ;;  %v8187_v49 = vadd.f32 %v16775_v54, %v16822_v50 }
 0xdf2   : > { %8954 = vmatmul.bf16.gmra.mxu2 %v8777_v52 }
 0xdf3   : > { %v8716_v22 = vmul.f32 0.01, %v8652_v35  ;;  %vm8684_vm14 = vcmp.ge.f32.partialorder %v8652_v35, 0.0  ;;  %v8222_v55 = vadd.f32 %v8187_v49, %v16643_v15 }
 0xdf5   : > { %v8748_v19 = vsel %vm8684_vm14, %v8652_v35, %v8716_v22 }
 0xdf6   : > { %v8568_v5 = vpop.f32.mrf.mxu0 }
 0xdf7   : > { %v8618_v17 = vadd.f32 %v8617_v37, %v8568_v5  ;;  %v8625_v31 = vpop.f32.mrf.mxu1 }
 0xdf9   : > { %v8654_v43 = vadd.f32 %v8618_v17, %v8218_v34 }
 0xdfb   : > { %vm8686_vm15 = vcmp.ge.f32.partialorder %v8654_v43, 0.0  ;;  %v8718_v53 = vmul.f32 0.01, %v8654_v43 }
 0xdfd   : > { %v8750_v3 = vsel %vm8686_vm15, %v8654_v43, %v8718_v53 }
 0xdfe   : > { %v8571_v20 = vpop.f32.mrf.mxu0  ;;  %v8772_v11 = vpack.c.bf16 %v8750_v3, %v8748_v19 }
 0xdff   : > { %v8621_v18 = vadd.f32 %v8620_v63, %v8571_v20  ;;  %v8627_v62 = vpop.f32.mrf.mxu1 }
 0xe00   : > { %8988 = vmatmul.bf16.gmra.mxu3 %v8772_v11 }
 0xe01   : > { %v8656_v38 = vadd.f32 %v8621_v18, %v16814_v36  ;;  %v8192_v36 = vadd.f32 %v16804_v39, %v16833_v27  ;;  %v8197_v39 = vadd.f32 %v16820_v7, %v16841_v23  ;;  %v16894_v7 = vld [vmem:[%s17160_s14] ss:$0 sm:$0xff] }
 0xe03   : > { %v8720_v2 = vmul.f32 0.01, %v8656_v38  ;;  %vm8688_vm0 = vcmp.ge.f32.partialorder %v8656_v38, 0.0  ;;  %v8226_v50 = vadd.f32 %v8192_v36, %v16660_v8  ;;  %v8230_v46 = vadd.f32 %v8197_v39, %v17872_v1 }
 0xe05   : > { %v8752_v32 = vsel %vm8688_vm0, %v8656_v38, %v8720_v2  ;;  %v8920_v37 = vpop.f32.mrf.mxu2 }
 0xe06   : > { %v8573_v28 = vpop.f32.mrf.mxu0  ;;  %v8921_v23 = vadd.f32 %v16894_v7, %v8920_v37 }
 0xe07   : > { %v8623_v44 = vadd.f32 %v8622_v0, %v8573_v28  ;;  %v8630_v10 = vpop.f32.mrf.mxu1 }
 0xe09   : > { %v8658_v45 = vadd.f32 %v8623_v44, %v8222_v55 }
 0xe0b   : > { %vm8690_vm3 = vcmp.ge.f32.partialorder %v8658_v45, 0.0  ;;  %v8722_v48 = vmul.f32 0.01, %v8658_v45 }
 0xe0d   : > { %v8754_v12 = vsel %vm8690_vm3, %v8658_v45, %v8722_v48  ;;  %v8922_v21 = vpop.f32.mrf.mxu2 }
 0xe0e   : > { %v8576_v56 = vpop.f32.mrf.mxu0  ;;  %v8774_v33 = vpack.c.bf16 %v8754_v12, %v8752_v32  ;;  %v8923_v35 = vadd.f32 %v16894_v7, %v8922_v21 }
 0xe0f   : > { %v8626_v24 = vadd.f32 %v8625_v31, %v8576_v56  ;;  %v8632_v8 = vpop.f32.mrf.mxu1 }
 0xe10   : > { %8993 = vmatmul.bf16.gmra.mxu3 %v8774_v33 }
 0xe11   : > { %v8660_v54 = vadd.f32 %v8626_v24, %v16827_v16 }
 0xe13   : > { %v8724_v57 = vmul.f32 0.01, %v8660_v54  ;;  %vm8692_vm4 = vcmp.ge.f32.partialorder %v8660_v54, 0.0 }
 0xe15   : > { %v8756_v61 = vsel %vm8692_vm4, %v8660_v54, %v8724_v57  ;;  %v8925_v9 = vpop.f32.mrf.mxu2 }
 0xe16   : > { %v8578_v15 = vpop.f32.mrf.mxu0  ;;  %v8926_v20 = vadd.f32 %v16894_v7, %v8925_v9 }
 0xe17   : > { %v8628_v25 = vadd.f32 %v8627_v62, %v8578_v15 }
 0xe19   : > { %v8662_v6 = vadd.f32 %v8628_v25, %v8226_v50 }
 0xe1b   : > { %vm8694_vm5 = vcmp.ge.f32.partialorder %v8662_v6, 0.0  ;;  %v8726_v14 = vmul.f32 0.01, %v8662_v6 }
 0xe1d   : > { %v8758_v51 = vsel %vm8694_vm5, %v8662_v6, %v8726_v14  ;;  %v8927_v13 = vpop.f32.mrf.mxu2 }
 0xe1e   : > { %v8581_v26 = vpop.f32.mrf.mxu0  ;;  %v8776_v30 = vpack.c.bf16 %v8758_v51, %v8756_v61  ;;  %v8928_v18 = vadd.f32 %v16894_v7, %v8927_v13 }
 0xe1f   : > { %v8631_v40 = vadd.f32 %v8630_v10, %v8581_v26 }
 0xe20   : > { %8998 = vmatmul.bf16.gmra.mxu3 %v8776_v30 }
 0xe21   : > { %v8664_v16 = vadd.f32 %v8631_v40, %v16838_v41 }
 0xe23   : > { %v8728_v59 = vmul.f32 0.01, %v8664_v16  ;;  %vm8696_vm6 = vcmp.ge.f32.partialorder %v8664_v16, 0.0 }
 0xe25   : > { %v8760_v42 = vsel %vm8696_vm6, %v8664_v16, %v8728_v59  ;;  %v8930_v63 = vpop.f32.mrf.mxu2 }
 0xe26   : > { %v8583_v27 = vpop.f32.mrf.mxu0  ;;  %v8931_v32 = vadd.f32 %v16894_v7, %v8930_v63 }
 0xe27   : > { %v8633_v58 = vadd.f32 %v8632_v8, %v8583_v27 }
 0xe29   : > { %v8666_v60 = vadd.f32 %v8633_v58, %v8230_v46 }
 0xe2b   : > { %vm8698_vm7 = vcmp.ge.f32.partialorder %v8666_v60, 0.0  ;;  %v8730_v29 = vmul.f32 0.01, %v8666_v60 }
 0xe2d   : > { %v8762_v47 = vsel %vm8698_vm7, %v8666_v60, %v8730_v29  ;;  %v8932_v3 = vpop.f32.mrf.mxu2 }
 0xe2e   : > { %v8778_v52 = vpack.c.bf16 %v8762_v47, %v8760_v42  ;;  %v8933_v33 = vadd.f32 %v16894_v7, %v8932_v3 }
 0xe30   : > { %9003 = vmatmul.bf16.gmra.mxu3 %v8778_v52 }
 0xe35   : > { %v8935_v55 = vpop.f32.mrf.mxu2 }
 0xe36   : > { %v8936_v14 = vadd.f32 %v16894_v7, %v8935_v55 }
 0xe3d   : > { %v8937_v12 = vpop.f32.mrf.mxu2 }
 0xe3e   : > { %v8938_v61 = vadd.f32 %v16894_v7, %v8937_v12 }
 0xe43   : > { %v8969_v41 = vpop.f32.mrf.mxu3 }
 0xe44   : > { %v8970_v4 = vadd.f32 %v8969_v41, %v8921_v23 }
 0xe45   : > { %v8940_v25 = vpop.f32.mrf.mxu2 }
 0xe46   : > { %v9025_v34 = vmul.f32 0.01, %v8970_v4  ;;  %vm9009_vm8 = vcmp.ge.f32.partialorder %v8970_v4, 0.0  ;;  %v8941_v46 = vadd.f32 %v16894_v7, %v8940_v25 }
 0xe48   : > { %v9041_v43 = vsel %vm9009_vm8, %v8970_v4, %v9025_v34 }
 0xe4b   : > { %v8971_v5 = vpop.f32.mrf.mxu3 }
 0xe4c   : > { %v8972_v17 = vadd.f32 %v8971_v5, %v8923_v35 }
 0xe4d   : > { %v8942_v51 = vpop.f32.mrf.mxu2 }
 0xe4e   : > { %vm9010_vm9 = vcmp.ge.f32.partialorder %v8972_v17, 0.0  ;;  %v9026_v22 = vmul.f32 0.01, %v8972_v17  ;;  %v8943_v59 = vadd.f32 %v16894_v7, %v8942_v51 }
 0xe50   : > { %v9042_v53 = vsel %vm9010_vm9, %v8972_v17, %v9026_v22 }
 0xe51   : > { %v9057_v19 = vpack.c.bf16 %v9042_v53, %v9041_v43 }
 0xe53   : > { %v8974_v0 = vpop.f32.mrf.mxu3  ;;  %10800 = vmatmul.msk.bf16.vlgmr.msra.gmra.mxu0 %vm1946_vm2, %v9057_v19 }
 0xe54   : > { %v8975_v11 = vadd.f32 %v8974_v0, %v8926_v20 }
 0xe55   : > { %v8945_v1 = vpop.f32.mrf.mxu2 }
 0xe56   : > { %v9027_v38 = vmul.f32 0.01, %v8975_v11  ;;  %vm9011_vm10 = vcmp.ge.f32.partialorder %v8975_v11, 0.0  ;;  %v8946_v23 = vadd.f32 %v16894_v7, %v8945_v1 }
 0xe58   : > { %v9043_v31 = vsel %vm9011_vm10, %v8975_v11, %v9027_v38 }
 0xe5b   : > { %v8976_v49 = vpop.f32.mrf.mxu3 }
 0xe5c   : > { %v8977_v28 = vadd.f32 %v8976_v49, %v8928_v18 }
 0xe5d   : > { %v8947_v47 = vpop.f32.mrf.mxu2 }
 0xe5e   : > { %vm9012_vm11 = vcmp.ge.f32.partialorder %v8977_v28, 0.0  ;;  %v9028_v44 = vmul.f32 0.01, %v8977_v28  ;;  %v8948_v35 = vadd.f32 %v16894_v7, %v8947_v47 }
 0xe60   : > { %v9044_v2 = vsel %vm9012_vm11, %v8977_v28, %v9028_v44 }
 0xe61   : > { %v9058_v45 = vpack.c.bf16 %v9044_v2, %v9043_v31 }
 0xe63   : > { %v8979_v48 = vpop.f32.mrf.mxu3  ;;  %10801 = vmatmul.msk.bf16.gmra.mxu0 %vm1946_vm2, %v9058_v45 }
 0xe64   : > { %v8980_v56 = vadd.f32 %v8979_v48, %v8931_v32 }
 0xe65   : > { %v8950_v63 = vpop.f32.mrf.mxu2 }
 0xe66   : > { %v9029_v62 = vmul.f32 0.01, %v8980_v56  ;;  %vm9013_vm12 = vcmp.ge.f32.partialorder %v8980_v56, 0.0  ;;  %v8951_v20 = vadd.f32 %v16894_v7, %v8950_v63 }
 0xe68   : > { %v9045_v15 = vsel %vm9013_vm12, %v8980_v56, %v9029_v62 }
 0xe6b   : > { %v8981_v24 = vpop.f32.mrf.mxu3 }
 0xe6c   : > { %v8982_v36 = vadd.f32 %v8981_v24, %v8933_v33 }
 0xe6d   : > { %v8952_v3 = vpop.f32.mrf.mxu2 }
 0xe6e   : > { %vm9014_vm13 = vcmp.ge.f32.partialorder %v8982_v36, 0.0  ;;  %v9030_v54 = vmul.f32 0.01, %v8982_v36  ;;  %v8953_v18 = vadd.f32 %v16894_v7, %v8952_v3 }
 0xe70   : > { %v9046_v50 = vsel %vm9014_vm13, %v8982_v36, %v9030_v54 }
 0xe71   : > { %v9059_v57 = vpack.c.bf16 %v9046_v50, %v9045_v15 }
 0xe73   : > { %v8984_v6 = vpop.f32.mrf.mxu3  ;;  %10802 = vmatmul.msk.bf16.gmra.mxu0 %vm1946_vm2, %v9059_v57  ;;  %v16923_v57 = vld [vmem:[%s17162_s16] ss:$0 sm:$0xff] }
 0xe74   : > { %v8985_v10 = vadd.f32 %v8984_v6, %v8936_v14 }
 0xe75   : > { %v8955_v55 = vpop.f32.mrf.mxu2 }
 0xe76   : > { %v9031_v30 = vmul.f32 0.01, %v8985_v10  ;;  %vm9015_vm14 = vcmp.ge.f32.partialorder %v8985_v10, 0.0  ;;  %v8956_v32 = vadd.f32 %v16894_v7, %v8955_v55 }
 0xe78   : > { %v9047_v39 = vsel %vm9015_vm14, %v8985_v10, %v9031_v30 }
 0xe7b   : > { %v8986_v26 = vpop.f32.mrf.mxu3 }
 0xe7c   : > { %v8987_v37 = vadd.f32 %v8986_v26, %v8938_v61 }
 0xe7d   : > { %v8957_v12 = vpop.f32.mrf.mxu2 }
 0xe7e   : > { %vm9016_vm15 = vcmp.ge.f32.partialorder %v8987_v37, 0.0  ;;  %v9032_v40 = vmul.f32 0.01, %v8987_v37  ;;  %v8958_v33 = vadd.f32 %v16894_v7, %v8957_v12 }
 0xe80   : > { %v9048_v16 = vsel %vm9016_vm15, %v8987_v37, %v9032_v40 }
 0xe81   : > { %v9060_v8 = vpack.c.bf16 %v9048_v16, %v9047_v39 }
 0xe83   : > { %v8989_v27 = vpop.f32.mrf.mxu3  ;;  %10803 = vmatmul.msk.bf16.gmra.mxu0 %vm1946_vm2, %v9060_v8 }
 0xe84   : > { %v8990_v58 = vadd.f32 %v8989_v27, %v8941_v46 }
 0xe86   : > { %v9033_v21 = vmul.f32 0.01, %v8990_v58  ;;  %vm9017_vm0 = vcmp.ge.f32.partialorder %v8990_v58, 0.0 }
 0xe88   : > { %v9049_v52 = vsel %vm9017_vm0, %v8990_v58, %v9033_v21 }
 0xe8b   : > { %v8991_v60 = vpop.f32.mrf.mxu3 }
 0xe8c   : > { %v8992_v29 = vadd.f32 %v8991_v60, %v8943_v59 }
 0xe8e   : > { %vm9018_vm3 = vcmp.ge.f32.partialorder %v8992_v29, 0.0  ;;  %v9034_v42 = vmul.f32 0.01, %v8992_v29 }
 0xe90   : > { %v9050_v9 = vsel %vm9018_vm3, %v8992_v29, %v9034_v42 }
 0xe91   : > { %v9061_v13 = vpack.c.bf16 %v9050_v9, %v9049_v52 }
 0xe93   : > { %v8994_v41 = vpop.f32.mrf.mxu3  ;;  %10804 = vmatmul.msk.bf16.gmra.mxu0 %vm1946_vm2, %v9061_v13 }
 0xe94   : > { %v8995_v4 = vadd.f32 %v8994_v41, %v8946_v23 }
 0xe96   : > { %v9035_v34 = vmul.f32 0.01, %v8995_v4  ;;  %vm9019_vm4 = vcmp.ge.f32.partialorder %v8995_v4, 0.0 }
 0xe98   : > { %v9051_v43 = vsel %vm9019_vm4, %v8995_v4, %v9035_v34 }
 0xe9b   : > { %v8996_v5 = vpop.f32.mrf.mxu3 }
 0xe9c   : > { %v8997_v17 = vadd.f32 %v8996_v5, %v8948_v35 }
 0xe9e   : > { %vm9020_vm5 = vcmp.ge.f32.partialorder %v8997_v17, 0.0  ;;  %v9036_v22 = vmul.f32 0.01, %v8997_v17 }
 0xea0   : > { %v9052_v53 = vsel %vm9020_vm5, %v8997_v17, %v9036_v22 }
 0xea1   : > { %v9062_v19 = vpack.c.bf16 %v9052_v53, %v9051_v43 }
 0xea3   : > { %v8999_v0 = vpop.f32.mrf.mxu3  ;;  %10805 = vmatmul.msk.bf16.gmra.mxu0 %vm1946_vm2, %v9062_v19 }
 0xea4   : > { %v9000_v11 = vadd.f32 %v8999_v0, %v8951_v20 }
 0xea6   : > { %v9037_v38 = vmul.f32 0.01, %v9000_v11  ;;  %vm9021_vm6 = vcmp.ge.f32.partialorder %v9000_v11, 0.0 }
 0xea8   : > { %v9053_v31 = vsel %vm9021_vm6, %v9000_v11, %v9037_v38 }
 0xeab   : > { %v9001_v49 = vpop.f32.mrf.mxu3 }
 0xeac   : > { %v9002_v28 = vadd.f32 %v9001_v49, %v8953_v18 }
 0xeae   : > { %vm9022_vm7 = vcmp.ge.f32.partialorder %v9002_v28, 0.0  ;;  %v9038_v44 = vmul.f32 0.01, %v9002_v28 }
 0xeb0   : > { %v9054_v2 = vsel %vm9022_vm7, %v9002_v28, %v9038_v44 }
 0xeb1   : > { %v9063_v45 = vpack.c.bf16 %v9054_v2, %v9053_v31 }
 0xeb3   : > { %v9004_v48 = vpop.f32.mrf.mxu3  ;;  %10806 = vmatmul.msk.bf16.gmra.mxu0 %vm1946_vm2, %v9063_v45 }
 0xeb4   : > { %v9005_v56 = vadd.f32 %v9004_v48, %v8956_v32 }
 0xeb6   : > { %v9039_v62 = vmul.f32 0.01, %v9005_v56  ;;  %vm9023_vm8 = vcmp.ge.f32.partialorder %v9005_v56, 0.0 }
 0xeb8   : > { %v9055_v15 = vsel %vm9023_vm8, %v9005_v56, %v9039_v62 }
 0xebb   : > { %v9006_v24 = vpop.f32.mrf.mxu3 }
 0xebc   : > { %v9007_v36 = vadd.f32 %v9006_v24, %v8958_v33 }
 0xebe   : > { %vm9024_vm9 = vcmp.ge.f32.partialorder %v9007_v36, 0.0  ;;  %v9040_v54 = vmul.f32 0.01, %v9007_v36 }
 0xec0   : > { %v9056_v50 = vsel %vm9024_vm9, %v9007_v36, %v9040_v54 }
 0xec1   : > { %v9064_v25 = vpack.c.bf16 %v9056_v50, %v9055_v15 }
 0xec3   : > { %10807 = vmatmul.msk.bf16.gmra.mxu0 %vm1946_vm2, %v9064_v25 }
 0xed0   : > { %v9118_v6 = vpop.f32.mrf.mxu0 }
 0xed1   : > { %v9119_v14 = vadd.f32 %v16923_v57, %v9118_v6 }
 0xed3   : > { %v9158_v7 = vsel %vm912_vm1, %v9119_v14, -inf }
 0xed4   : > { %9159 = vmax.xlane.f32.xlu1 %v9158_v7 }
 0xed8   : > { %v9120_v10 = vpop.f32.mrf.mxu0 }
 0xed9   : > { %v16928_v61 = vadd.f32 %v16923_v57, %v9120_v10 }
 0xedb   : > { %v9161_v51 = vsel %vm912_vm1, %v16928_v61, -inf }
 0xedc   : > { %9162 = vmax.xlane.f32.xlu2 %v9161_v51 }
 0xee0   : > { %v9123_v26 = vpop.f32.mrf.mxu0 }
 0xee1   : > { %v16933_v30 = vadd.f32 %v16923_v57, %v9123_v26 }
 0xee3   : > { %v9164_v37 = vsel %vm912_vm1, %v16933_v30, -inf }
 0xee4   : > { %9165 = vmax.xlane.f32.xlu0 %v9164_v37 }
 0xee8   : > { %v9125_v40 = vpop.f32.mrf.mxu0 }
 0xee9   : > { %v16938_v39 = vadd.f32 %v16923_v57, %v9125_v40 }
 0xeeb   : > { %v9167_v16 = vsel %vm912_vm1, %v16938_v39, -inf }
 0xeec   : > { %9168 = vmax.xlane.f32.xlu2 %v9167_v16 }
 0xef0   : > { %v9128_v8 = vpop.f32.mrf.mxu0 }
 0xef1   : > { %v16943_v27 = vadd.f32 %v16923_v57, %v9128_v8 }
 0xef3   : > { %v9170_v1 = vsel %vm912_vm1, %v16943_v27, -inf }
 0xef4   : > { %9171 = vmax.xlane.f32.xlu1 %v9170_v1 }
 0xef8   : > { %v9130_v46 = vpop.f32.mrf.mxu0 }
 0xef9   : > { %v16948_v58 = vadd.f32 %v16923_v57, %v9130_v46 }
 0xefb   : > { %v9173_v59 = vsel %vm912_vm1, %v16948_v58, -inf }
 0xefc   : > { %9174 = vmax.xlane.f32.xlu2 %v9173_v59 }
 0xf00   : > { %v9133_v60 = vpop.f32.mrf.mxu0 }
 0xf01   : > { %v16953_v21 = vadd.f32 %v16923_v57, %v9133_v60 }
 0xf03   : > { %v9176_v29 = vsel %vm912_vm1, %v16953_v21, -inf }
 0xf04   : > { %9177 = vmax.xlane.f32.xlu0 %v9176_v29 }
 0xf08   : > { %v9135_v42 = vpop.f32.mrf.mxu0 }
 0xf09   : > { %v16958_v47 = vadd.f32 %v16923_v57, %v9135_v42 }
 0xf0b   : > { %v9179_v52 = vsel %vm912_vm1, %v16958_v47, -inf }
 0xf0c   : > { %9180 = vmax.xlane.f32.xlu1 %v9179_v52 }
 0xf10   : > { %v9138_v9 = vpop.f32.mrf.mxu0 }
 0xf11   : > { %v16963_v13 = vadd.f32 %v16923_v57, %v9138_v9 }
 0xf13   : > { %v9182_v41 = vsel %vm912_vm1, %v16963_v13, -inf }
 0xf14   : > { %9183 = vmax.xlane.f32.xlu2 %v9182_v41 }
 0xf18   : > { %v9140_v23 = vpop.f32.mrf.mxu0 }
 0xf19   : > { %v16968_v4 = vadd.f32 %v16923_v57, %v9140_v23 }
 0xf1b   : > { %v9185_v63 = vsel %vm912_vm1, %v16968_v4, -inf }
 0xf1c   : > { %9186 = vmax.xlane.f32.xlu0 %v9185_v63 }
 0xf20   : > { %v9143_v35 = vpop.f32.mrf.mxu0 }
 0xf21   : > { %v16973_v5 = vadd.f32 %v16923_v57, %v9143_v35 }
 0xf23   : > { %v9188_v34 = vsel %vm912_vm1, %v16973_v5, -inf }
 0xf24   : > { %9189 = vmax.xlane.f32.xlu1 %v9188_v34 }
 0xf28   : > { %v9145_v17 = vpop.f32.mrf.mxu0 }
 0xf29   : > { %v16978_v22 = vadd.f32 %v16923_v57, %v9145_v17 }
 0xf2b   : > { %v9191_v43 = vsel %vm912_vm1, %v16978_v22, -inf }
 0xf2c   : > { %9192 = vmax.xlane.f32.xlu2 %v9191_v43 }
 0xf30   : > { %v9148_v53 = vpop.f32.mrf.mxu0 }
 0xf31   : > { %v16983_v19 = vadd.f32 %v16923_v57, %v9148_v53 }
 0xf33   : > { %v9194_v3 = vsel %vm912_vm1, %v16983_v19, -inf }
 0xf34   : > { %9195 = vmax.xlane.f32.xlu0 %v9194_v3 }
 0xf38   : > { %v9150_v0 = vpop.f32.mrf.mxu0 }
 0xf39   : > { %v16988_v20 = vadd.f32 %v16923_v57, %v9150_v0 }
 0xf3b   : > { %v9197_v11 = vsel %vm912_vm1, %v16988_v20, -inf }
 0xf3c   : > { %9198 = vmax.xlane.f32.xlu1 %v9197_v11 }
 0xf40   : > { %v9153_v18 = vpop.f32.mrf.mxu0 }
 0xf41   : > { %v16993_v49 = vadd.f32 %v16923_v57, %v9153_v18 }
 0xf43   : > { %v9200_v38 = vsel %vm912_vm1, %v16993_v49, -inf }
 0xf44   : > { %9201 = vmax.xlane.f32.xlu2 %v9200_v38 }
 0xf47   : > { %v9160_v28 = vpop.xlane.xlu1 %9159 }
 0xf48   : > { %v16997_v55 = vsub.f32 %v9119_v14, %v9160_v28  ;;  %v9155_v44 = vpop.f32.mrf.mxu0 }
 0xf49   : > { %v17000_v31 = vadd.f32 %v16923_v57, %v9155_v44 }
 0xf4a   : > { %v9222_v2 = vmul.f32 1.442695, %v16997_v55 }
 0xf4b   : > { %v9203_v45 = vsel %vm912_vm1, %v17000_v31, -inf }
 0xf4c   : > { %11427 = vpow2.f32 %v9222_v2  ;;  %9204 = vmax.xlane.f32.xlu0 %v9203_v45 }
 0xf4f   : > { %v9163_v48 = vpop.xlane.xlu2 %9162 }
 0xf50   : > { %v17006_v32 = vsub.f32 %v16928_v61, %v9163_v48 }
 0xf52   : > { %v11428_v12 = vpop.eup %11427  ;;  %v9224_v56 = vmul.f32 1.442695, %v17006_v32 }
 0xf53   : > { %v9254_v33 = vsel %vm912_vm1, %v11428_v12, 0.0 }
 0xf54   : > { %11429 = vpow2.f32 %v9224_v56  ;;  %9255 = vadd.xlane.f32.xlu1 %v9254_v33 }
 0xf57   : > { %v9166_v24 = vpop.xlane.xlu0 %9165 }
 0xf58   : > { %v17011_v62 = vsub.f32 %v16933_v30, %v9166_v24 }
 0xf5a   : > { %v11430_v36 = vpop.eup %11429  ;;  %v9226_v54 = vmul.f32 1.442695, %v17011_v62 }
 0xf5b   : > { %v9257_v15 = vsel %vm912_vm1, %v11430_v36, 0.0 }
 0xf5c   : > { %11431 = vpow2.f32 %v9226_v54  ;;  %9258 = vadd.xlane.f32.xlu2 %v9257_v15 }
 0xf5f   : > { %v9169_v50 = vpop.xlane.xlu2 %9168 }
 0xf60   : > { %v17016_v25 = vsub.f32 %v16938_v39, %v9169_v50 }
 0xf62   : > { %v11432_v57 = vpop.eup %11431  ;;  %v9228_v6 = vmul.f32 1.442695, %v17016_v25 }
 0xf63   : > { %v9260_v14 = vsel %vm912_vm1, %v11432_v57, 0.0 }
 0xf64   : > { %11433 = vpow2.f32 %v9228_v6  ;;  %9261 = vadd.xlane.f32.xlu0 %v9260_v14 }
 0xf67   : > { %v9172_v7 = vpop.xlane.xlu1 %9171 }
 0xf68   : > { %v17021_v10 = vsub.f32 %v16943_v27, %v9172_v7 }
 0xf6a   : > { %v11434_v61 = vpop.eup %11433  ;;  %v9230_v51 = vmul.f32 1.442695, %v17021_v10 }
 0xf6b   : > { %v9263_v26 = vsel %vm912_vm1, %v11434_v61, 0.0 }
 0xf6c   : > { %11435 = vpow2.f32 %v9230_v51  ;;  %9264 = vadd.xlane.f32.xlu1 %v9263_v26 }
 0xf6f   : > { %v9175_v30 = vpop.xlane.xlu2 %9174 }
 0xf70   : > { %v17026_v37 = vsub.f32 %v16948_v58, %v9175_v30 }
 0xf72   : > { %v11436_v40 = vpop.eup %11435  ;;  %v9232_v39 = vmul.f32 1.442695, %v17026_v37 }
 0xf73   : > { %v9266_v16 = vsel %vm912_vm1, %v11436_v40, 0.0 }
 0xf74   : > { %11437 = vpow2.f32 %v9232_v39  ;;  %9267 = vadd.xlane.f32.xlu2 %v9266_v16 }
 0xf77   : > { %v9178_v8 = vpop.xlane.xlu0 %9177 }
 0xf78   : > { %v17031_v27 = vsub.f32 %v16953_v21, %v9178_v8 }
 0xf7a   : > { %v11438_v1 = vpop.eup %11437  ;;  %v9234_v46 = vmul.f32 1.442695, %v17031_v27 }
 0xf7b   : > { %v9269_v59 = vsel %vm912_vm1, %v11438_v1, 0.0 }
 0xf7c   : > { %11439 = vpow2.f32 %v9234_v46  ;;  %9270 = vadd.xlane.f32.xlu0 %v9269_v59 }
 0xf7f   : > { %v9181_v58 = vpop.xlane.xlu1 %9180 }
 0xf80   : > { %v17036_v60 = vsub.f32 %v16958_v47, %v9181_v58 }
 0xf82   : > { %v11440_v29 = vpop.eup %11439  ;;  %v9236_v42 = vmul.f32 1.442695, %v17036_v60 }
 0xf83   : > { %v9272_v52 = vsel %vm912_vm1, %v11440_v29, 0.0 }
 0xf84   : > { %11441 = vpow2.f32 %v9236_v42  ;;  %9273 = vadd.xlane.f32.xlu1 %v9272_v52 }
 0xf87   : > { %v9184_v21 = vpop.xlane.xlu2 %9183 }
 0xf88   : > { %v17041_v9 = vsub.f32 %v16963_v13, %v9184_v21 }
 0xf8a   : > { %v11442_v41 = vpop.eup %11441  ;;  %v9238_v23 = vmul.f32 1.442695, %v17041_v9 }
 0xf8b   : > { %v9275_v63 = vsel %vm912_vm1, %v11442_v41, 0.0 }
 0xf8c   : > { %11443 = vpow2.f32 %v9238_v23  ;;  %9276 = vadd.xlane.f32.xlu2 %v9275_v63 }
 0xf8f   : > { %v9187_v47 = vpop.xlane.xlu0 %9186 }
 0xf90   : > { %v17046_v35 = vsub.f32 %v16968_v4, %v9187_v47 }
 0xf92   : > { %v11444_v34 = vpop.eup %11443  ;;  %v9240_v17 = vmul.f32 1.442695, %v17046_v35 }
 0xf93   : > { %v9278_v43 = vsel %vm912_vm1, %v11444_v34, 0.0 }
 0xf94   : > { %11445 = vpow2.f32 %v9240_v17  ;;  %9279 = vadd.xlane.f32.xlu0 %v9278_v43 }
 0xf97   : > { %v9190_v13 = vpop.xlane.xlu1 %9189 }
 0xf98   : > { %v17051_v53 = vsub.f32 %v16973_v5, %v9190_v13 }
 0xf9a   : > { %v11446_v3 = vpop.eup %11445  ;;  %v9242_v0 = vmul.f32 1.442695, %v17051_v53 }
 0xf9b   : > { %v9281_v11 = vsel %vm912_vm1, %v11446_v3, 0.0 }
 0xf9c   : > { %11447 = vpow2.f32 %v9242_v0  ;;  %9282 = vadd.xlane.f32.xlu1 %v9281_v11 }
 0xf9f   : > { %v9193_v4 = vpop.xlane.xlu2 %9192 }
 0xfa0   : > { %v17056_v18 = vsub.f32 %v16978_v22, %v9193_v4 }
 0xfa2   : > { %v11448_v38 = vpop.eup %11447  ;;  %v9244_v28 = vmul.f32 1.442695, %v17056_v18 }
 0xfa3   : > { %v9284_v44 = vsel %vm912_vm1, %v11448_v38, 0.0 }
 0xfa4   : > { %11449 = vpow2.f32 %v9244_v28  ;;  %9285 = vadd.xlane.f32.xlu2 %v9284_v44 }
 0xfa7   : > { %v9196_v5 = vpop.xlane.xlu0 %9195 }
 0xfa8   : > { %v17061_v2 = vsub.f32 %v16983_v19, %v9196_v5 }
 0xfaa   : > { %v11450_v45 = vpop.eup %11449  ;;  %v9246_v48 = vmul.f32 1.442695, %v17061_v2 }
 0xfab   : > { %v9287_v12 = vsel %vm912_vm1, %v11450_v45, 0.0 }
 0xfac   : > { %11451 = vpow2.f32 %v9246_v48  ;;  %9288 = vadd.xlane.f32.xlu0 %v9287_v12 }
 0xfaf   : > { %v9199_v22 = vpop.xlane.xlu1 %9198 }
 0xfb0   : > { %v17066_v56 = vsub.f32 %v16988_v20, %v9199_v22 }
 0xfb2   : > { %v11452_v33 = vpop.eup %11451  ;;  %v9248_v24 = vmul.f32 1.442695, %v17066_v56 }
 0xfb3   : > { %v9290_v36 = vsel %vm912_vm1, %v11452_v33, 0.0 }
 0xfb4   : > { %11453 = vpow2.f32 %v9248_v24  ;;  %9291 = vadd.xlane.f32.xlu1 %v9290_v36 }
 0xfb7   : > { %v9202_v19 = vpop.xlane.xlu2 %9201 }
 0xfb8   : > { %v17071_v54 = vsub.f32 %v16993_v49, %v9202_v19 }
 0xfba   : > { %v11454_v15 = vpop.eup %11453  ;;  %v9250_v50 = vmul.f32 1.442695, %v17071_v54 }
 0xfbb   : > { %v9293_v57 = vsel %vm912_vm1, %v11454_v15, 0.0 }
 0xfbc   : > { %11455 = vpow2.f32 %v9250_v50  ;;  %9294 = vadd.xlane.f32.xlu2 %v9293_v57 }
 0xfbf   : > { %v9205_v20 = vpop.xlane.xlu0 %9204 }
 0xfc0   : > { %v17076_v6 = vsub.f32 %v17000_v31, %v9205_v20 }
 0xfc2   : > { %v11456_v14 = vpop.eup %11455  ;;  %v9252_v7 = vmul.f32 1.442695, %v17076_v6 }
 0xfc3   : > { %v9296_v61 = vsel %vm912_vm1, %v11456_v14, 0.0 }
 0xfc4   : > { %11457 = vpow2.f32 %v9252_v7  ;;  %9297 = vadd.xlane.f32.xlu0 %v9296_v61 }
 0xfc7   : > { %v9256_v49 = vpop.xlane.xlu1 %9255 }
 0xfc8   : > { %11459 = vlog2.f32 %v9256_v49 }
 0xfca   : > { %v11458_v51 = vpop.eup %11457 }
 0xfcb   : > { %v9299_v26 = vsel %vm912_vm1, %v11458_v51, 0.0 }
 0xfcc   : > { %9300 = vadd.xlane.f32.xlu1 %v9299_v26 }
 0xfce   : > { %v11460_v31 = vpop.eup %11459 }
 0xfcf   : > { %v9303_v30 = vmul.f32 0.6931472, %v11460_v31  ;;  %v9259_v40 = vpop.xlane.xlu2 %9258 }
 0xfd0   : > { %11461 = vlog2.f32 %v9259_v40 }
 0xfd1   : > { %v9334_v39 = vsub.f32 %v16997_v55, %v9303_v30 }
 0xfd3   : > { %9350 = vst.msk [vmem:[%s17086_s26] sm:$0xff] %vm912_vm1, %v9334_v39 }
 0xfd6   : > { %v11462_v16 = vpop.eup %11461 }
 0xfd7   : > { %v9305_v8 = vmul.f32 0.6931472, %v11462_v16  ;;  %v9262_v1 = vpop.xlane.xlu0 %9261 }
 0xfd8   : > { %11463 = vlog2.f32 %v9262_v1 }
 0xfd9   : > { %v9335_v46 = vsub.f32 %v17006_v32, %v9305_v8 }
 0xfdb   : > { %9351 = vst.msk [vmem:[%s17086_s26 + $0x8] sm:$0xff] %vm912_vm1, %v9335_v46 }
 0xfde   : > { %v11464_v59 = vpop.eup %11463 }
 0xfdf   : > { %v9307_v58 = vmul.f32 0.6931472, %v11464_v59  ;;  %v9265_v29 = vpop.xlane.xlu1 %9264 }
 0xfe0   : > { %11465 = vlog2.f32 %v9265_v29 }
 0xfe1   : > { %v9336_v42 = vsub.f32 %v17011_v62, %v9307_v58 }
 0xfe3   : > { %9352 = vst.msk [vmem:[%s17086_s26 + $0x10] sm:$0xff] %vm912_vm1, %v9336_v42 }
 0xfe6   : > { %v11466_v55 = vpop.eup %11465 }
 0xfe7   : > { %v9309_v52 = vmul.f32 0.6931472, %v11466_v55  ;;  %v9268_v21 = vpop.xlane.xlu2 %9267 }
 0xfe8   : > { %11467 = vlog2.f32 %v9268_v21 }
 0xfe9   : > { %v9337_v41 = vsub.f32 %v17016_v25, %v9309_v52 }
 0xfeb   : > { %9353 = vst.msk [vmem:[%s17086_s26 + $0x18] sm:$0xff] %vm912_vm1, %v9337_v41 }
 0xfee   : > { %v11468_v32 = vpop.eup %11467 }
 0xfef   : > { %v9311_v23 = vmul.f32 0.6931472, %v11468_v32  ;;  %v9271_v63 = vpop.xlane.xlu0 %9270 }
 0xff0   : > { %11469 = vlog2.f32 %v9271_v63 }
 0xff1   : > { %v9338_v47 = vsub.f32 %v17021_v10, %v9311_v23 }
 0xff3   : > { %9354 = vst.msk [vmem:[%s17086_s26 + $0x20] sm:$0xff] %vm912_vm1, %v9338_v47 }
 0xff6   : > { %v11470_v62 = vpop.eup %11469 }
 0xff7   : > { %v9313_v34 = vmul.f32 0.6931472, %v11470_v62  ;;  %v9274_v17 = vpop.xlane.xlu1 %9273 }
 0xff8   : > { %11471 = vlog2.f32 %v9274_v17 }
 0xff9   : > { %v9339_v43 = vsub.f32 %v17026_v37, %v9313_v34 }
 0xffb   : > { %9355 = vst.msk [vmem:[%s17086_s26 + $0x28] sm:$0xff] %vm912_vm1, %v9339_v43 }
 0xffe   : > { %v11472_v25 = vpop.eup %11471 }
 0xfff   : > { %v9315_v13 = vmul.f32 0.6931472, %v11472_v25  ;;  %v9277_v3 = vpop.xlane.xlu2 %9276 }
0x1000   : > { %11473 = vlog2.f32 %v9277_v3 }
0x1001   : > { %v9340_v0 = vsub.f32 %v17031_v27, %v9315_v13 }
0x1003   : > { %9356 = vst.msk [vmem:[%s17086_s26 + $0x30] sm:$0xff] %vm912_vm1, %v9340_v0 }
0x1006   : > { %v11474_v10 = vpop.eup %11473 }
0x1007   : > { %v9317_v11 = vmul.f32 0.6931472, %v11474_v10  ;;  %v9280_v4 = vpop.xlane.xlu0 %9279 }
0x1008   : > { %11475 = vlog2.f32 %v9280_v4 }
0x1009   : > { %v9341_v38 = vsub.f32 %v17036_v60, %v9317_v11 }
0x100b   : > { %9357 = vst.msk [vmem:[%s17086_s26 + $0x38] sm:$0xff] %vm912_vm1, %v9341_v38 }
0x100e   : > { %v11476_v37 = vpop.eup %11475 }
0x100f   : > { %v9319_v28 = vmul.f32 0.6931472, %v11476_v37  ;;  %v9283_v44 = vpop.xlane.xlu1 %9282 }
0x1010   : > { %11477 = vlog2.f32 %v9283_v44 }
0x1011   : > { %v9342_v5 = vsub.f32 %v17041_v9, %v9319_v28 }
0x1013   : > { %9358 = vst.msk [vmem:[%s17086_s26 + $0x40] sm:$0xff] %vm912_vm1, %v9342_v5 }
0x1016   : > { %v11478_v27 = vpop.eup %11477 }
0x1017   : > { %v9321_v45 = vmul.f32 0.6931472, %v11478_v27  ;;  %v9286_v48 = vpop.xlane.xlu2 %9285 }
0x1018   : > { %11479 = vlog2.f32 %v9286_v48 }
0x1019   : > { %v9343_v12 = vsub.f32 %v17046_v35, %v9321_v45 }
0x101b   : > { %9359 = vst.msk [vmem:[%s17086_s26 + $0x48] sm:$0xff] %vm912_vm1, %v9343_v12 }
0x101e   : > { %v11480_v60 = vpop.eup %11479 }
0x101f   : > { %v9323_v22 = vmul.f32 0.6931472, %v11480_v60  ;;  %v9289_v33 = vpop.xlane.xlu0 %9288 }
0x1020   : > { %11481 = vlog2.f32 %v9289_v33 }
0x1021   : > { %v9344_v24 = vsub.f32 %v17051_v53, %v9323_v22 }
0x1023   : > { %9360 = vst.msk [vmem:[%s17086_s26 + $0x50] sm:$0xff] %vm912_vm1, %v9344_v24 }
0x1026   : > { %v11482_v9 = vpop.eup %11481 }
0x1027   : > { %v9325_v36 = vmul.f32 0.6931472, %v11482_v9  ;;  %v9292_v19 = vpop.xlane.xlu1 %9291 }
0x1028   : > { %11483 = vlog2.f32 %v9292_v19 }
0x1029   : > { %v9345_v15 = vsub.f32 %v17056_v18, %v9325_v36 }
0x102b   : > { %9361 = vst.msk [vmem:[%s17086_s26 + $0x58] sm:$0xff] %vm912_vm1, %v9345_v15 }
0x102e   : > { %v11484_v35 = vpop.eup %11483 }
0x102f   : > { %v9327_v50 = vmul.f32 0.6931472, %v11484_v35  ;;  %v9295_v57 = vpop.xlane.xlu2 %9294 }
0x1030   : > { %11485 = vlog2.f32 %v9295_v57 }
0x1031   : > { %v9346_v20 = vsub.f32 %v17061_v2, %v9327_v50 }
0x1033   : > { %9362 = vst.msk [vmem:[%s17086_s26 + $0x60] sm:$0xff] %vm912_vm1, %v9346_v20 }
0x1036   : > { %v11486_v53 = vpop.eup %11485 }
0x1037   : > { %v9329_v14 = vmul.f32 0.6931472, %v11486_v53  ;;  %v9298_v7 = vpop.xlane.xlu0 %9297 }
0x1038   : > { %11487 = vlog2.f32 %v9298_v7 }
0x1039   : > { %v9347_v61 = vsub.f32 %v17066_v56, %v9329_v14 }
0x103b   : > { %9363 = vst.msk [vmem:[%s17086_s26 + $0x68] sm:$0xff] %vm912_vm1, %v9347_v61 }
0x103e   : > { %v11488_v18 = vpop.eup %11487 }
0x103f   : > { %v9331_v49 = vmul.f32 0.6931472, %v11488_v18  ;;  %v9301_v51 = vpop.xlane.xlu1 %9300 }
0x1040   : > { %11489 = vlog2.f32 %v9301_v51 }
0x1041   : > { %v9348_v26 = vsub.f32 %v17071_v54, %v9331_v49 }
0x1043   : > { %9364 = vst.msk [vmem:[%s17086_s26 + $0x70] sm:$0xff] %vm912_vm1, %v9348_v26 }
0x1046   : > { %v11490_v2 = vpop.eup %11489 }
0x1047   : > { %v9333_v31 = vmul.f32 0.6931472, %v11490_v2 }
0x1049   : > { %v9349_v30 = vsub.f32 %v17076_v6, %v9333_v31 }
0x104b   : > { %9365 = vst.msk [vmem:[%s17086_s26 + $0x78] sm:$0xff] %vm912_vm1, %v9349_v30 }
0x104c PF: > { %p24_p9 = scmp.ge.s32.totalorder %s11632_s28, 4   ;;  %s17873_s24 = smov %s11517_s25 }
0x104d   : > { %s17874_s25 = smov %s11641_s30  ;;  %s17875_s26 = smov %s11632_s28 }
0x104e   :  { %26 = sbr.rel (!%p24_p9) target bundleno = 5 (0x5), region = 164 }

</bundles_post_ra>
